<compile_context>
chip_gen: v7x
topology: tpu7x:2x2x1
jax: 0.10.0
libtpu: 0.0.40
codegen_flags: <defaults>
</compile_context>

<pallas_src>
import functools
import jax
import jax.numpy as jnp
from jax.experimental import pallas as pl
from jax.experimental.pallas import tpu as pltpu

# ------------------------- configuration (args) ------------------------------
IMG_CH = 3                       # args.img_ch
DCTVFI_NF = 4                    # args.dctvfi_nf
NF = IMG_CH * DCTVFI_NF          # DCTVFInet.nf = 12
REFINE_NF = 8                    # args.nf (PCARefineUNet nf)
INPUT_MAPS = 6 * IMG_CH + 8      # 26   (sminterp=True)
OUTPUT_MAPS = 3 + 4              # 7    (sminterp=True, sminterpInpIm=False)
T_PARAM = 1.0                    # torch.ones(1), non-trainable -> folded away


def _round_up(x, m):
    return (x + m - 1) // m * m


# ===== Pallas kernel 1: fused 3x3/stride-1 conv (tap gather inside kernel) ====
def _conv3x3_kernel(x_ref, w_ref, b_ref, o_ref, *, th, relu):
    """x_ref:(Hp,Wp,Cin) bf16 (full padded plane for this batch element),
    w_ref:(9,Cin,Cout) bf16, b_ref:(1,Cout) f32, o_ref:(th,W,Cout)."""
    h = pl.program_id(1)
    row0 = h * th
    _, wout, n = o_ref.shape
    c = x_ref.shape[-1]
    acc = jnp.zeros((th * wout, n), jnp.float32)
    # Single "K block": the 9 taps accumulate in registers - no scratch, no
    # pl.when init/finalize, no K grid axis.
    for di in range(3):
        for dj in range(3):
            tap = x_ref[pl.ds(row0 + di, th), pl.ds(dj, wout), :]   # (th, W, Cin)
            a = tap.reshape(th * wout, c)
            acc = acc + jnp.dot(a, w_ref[di * 3 + dj],
                                preferred_element_type=jnp.float32)
    r = acc + b_ref[...]
    if relu:
        r = jnp.maximum(r, 0.0)
    o_ref[...] = r.reshape(th, wout, n).astype(o_ref.dtype)


def _pick_conv_rows(H, W, cin, cout, budget=2 << 20):
    """Largest divisor of H whose per-step temporaries fit the budget."""
    per_row = 2 * W * (8 * cout + 2 * cin)
    best = 1
    for th in range(1, H + 1):
        if H % th == 0 and th * per_row <= budget:
            best = th
    return best


def conv3x3_fused(x, w_packed, bias, relu, out_dtype=jnp.bfloat16):
    """x: [B,H,W,Cin] bf16 NHWC.  3x3 conv, stride 1, pad 1, fused patch gather.

    The padded plane is DMA'd to VMEM once per batch element (block index is
    constant across the row axis, so Pallas does not re-fetch it).
    # TODO(synk): for very large frames the full padded plane exceeds VMEM; a
    #             halo-tiled manual-DMA variant (pl.ANY + make_async_copy) is a
    #             follow-up.
    """
    B, H, W, C = x.shape
    _, _, N = w_packed.shape
    xp = jnp.pad(x, ((0, 0), (1, 1), (1, 1), (0, 0)))
    Hp, Wp = H + 2, W + 2
    th = _pick_conv_rows(H, W, C, N)
    grid = (B, H // th)
    out_bytes = jnp.dtype(out_dtype).itemsize
    out = pl.pallas_call(
        functools.partial(_conv3x3_kernel, th=th, relu=relu),
        out_shape=jax.ShapeDtypeStruct((B, H, W, N), out_dtype),
        grid=grid,
        in_specs=[
            pl.BlockSpec((None, Hp, Wp, C), lambda b, h: (b, 0, 0, 0)),
            pl.BlockSpec((9, C, N), lambda b, h: (0, 0, 0)),
            pl.BlockSpec((1, N), lambda b, h: (0, 0)),
        ],
        out_specs=pl.BlockSpec((None, th, W, N), lambda b, h: (b, h, 0, 0)),
        compiler_params=pltpu.CompilerParams(
            dimension_semantics=("parallel", "arbitrary")),
        cost_estimate=pl.CostEstimate(
            flops=2 * B * H * W * 9 * C * N,
            transcendentals=0,
            bytes_accessed=B * (Hp * Wp * C * 2 + H * W * N * out_bytes)
            + 9 * C * N * 2),
    )(xp, w_packed, bias)
    return out


# ===== Pallas kernel 2: single-K-block matmul + bias (+ReLU) for im2col =======
def _mm_bias_kernel(a_ref, w_ref, b_ref, o_ref, *, relu):
    r = jnp.dot(a_ref[...], w_ref[...],
                preferred_element_type=jnp.float32) + b_ref[...]
    if relu:
        r = jnp.maximum(r, 0.0)
    o_ref[...] = r.astype(o_ref.dtype)


def pallas_matmul(a, w, bias, relu, out_dtype=jnp.bfloat16):
    """a:[M,K] bf16 @ w:[K,N] bf16 + bias:[1,N] f32.  K is a single block
    (K<=512 for every layer here); N stays un-padded (block == full dim)."""
    M, K = a.shape
    _, N = w.shape
    if M <= 512:
        tm = _round_up(M, 8)
    else:
        tm = 512
    Mp = _round_up(M, tm)
    if Mp != M:
        a = jnp.pad(a, ((0, Mp - M), (0, 0)))
    out = pl.pallas_call(
        functools.partial(_mm_bias_kernel, relu=relu),
        out_shape=jax.ShapeDtypeStruct((Mp, N), out_dtype),
        grid=(Mp // tm,),
        in_specs=[
            pl.BlockSpec((tm, K), lambda i: (i, 0)),
            pl.BlockSpec((K, N), lambda i: (0, 0)),
            pl.BlockSpec((1, N), lambda i: (0, 0)),
        ],
        out_specs=pl.BlockSpec((tm, N), lambda i: (i, 0)),
        compiler_params=pltpu.CompilerParams(
            dimension_semantics=("parallel",)),
        cost_estimate=pl.CostEstimate(
            flops=2 * Mp * K * N,
            transcendentals=0,
            bytes_accessed=Mp * K * 2 + K * N * 2
            + Mp * N * jnp.dtype(out_dtype).itemsize),
    )(a, w, bias)
    return out[:M] if Mp != M else out


def conv2d_s2_im2col(x, wmat, bias, relu, out_dtype=jnp.bfloat16):
    """4x4, stride-2, pad-1 conv via bf16 im2col + Pallas matmul (enc layers;
    they run at /2,/4,/8 resolution so the 16x patch expansion is cheap)."""
    B, H, W, C = x.shape
    kh = kw = 4
    stride, pad = 2, 1
    xp = jnp.pad(x, ((0, 0), (pad, pad), (pad, pad), (0, 0)))
    Ho = (H + 2 * pad - kh) // stride + 1
    Wo = (W + 2 * pad - kw) // stride + 1
    cols = [xp[:, i:i + stride * Ho:stride, j:j + stride * Wo:stride, :]
            for i in range(kh) for j in range(kw)]
    patches = jnp.concatenate(cols, axis=-1)                 # bf16, [B,Ho,Wo,16C]
    a = patches.reshape(B * Ho * Wo, kh * kw * C)
    out = pallas_matmul(a, wmat, bias, relu, out_dtype=out_dtype)
    return out.reshape(B, Ho, Wo, -1)


# ============ Pallas kernel 3: softmax occlusion blend (out_l) ================
def _blend_kernel(t_ref, lg_ref, w0_ref, w1_ref, i0_ref, i1_ref,
                  x0_ref, x1_ref, out_ref, occ_ref):
    b = pl.program_id(0)
    t = t_ref[b, 0]
    wa = 1.0 - t
    wb = t

    logits = lg_ref[...]                                 # (6, TH, W); T_param==1 folded
    m = jnp.max(logits, axis=0, keepdims=True)
    e = jnp.exp(logits - m)                              # unnormalized softmax
    s = jnp.sum(e, axis=0, keepdims=True)                # >= 1 -> approx recip is safe
    occ_ref[...] = e[0:1] * pl.reciprocal(s, approx=True)

    e0, e1, e2, e3, e4, e5 = e[0], e[1], e[2], e[3], e[4], e[5]
    # 1/s cancels between numerator and divisor -> raw exps everywhere else.
    div = wa * (e0 + e2 + e4) + wb * (e1 + e3 + e5)
    num = (wa * e0 * w0_ref[...] + wb * e1 * w1_ref[...]
           + wa * e2 * i0_ref[...] + wb * e3 * i1_ref[...]
           + wa * e4 * x0_ref[...] + wb * e5 * x1_ref[...])
    # Exact divide (matches the PyTorch reference; avoids approx-recip blow-up
    # when t is near 0/1 and div becomes small).
    out_ref[...] = num / div


def _pick_blend_rows(H, W, nplanes=28, budget=6 << 20):
    per_row = nplanes * W * 4 * 2          # f32 blocks, double-buffered
    if H * per_row <= budget:
        return H
    for th in range((H // 8) * 8, 0, -8):  # TH must be mult. of 8 (or == H)
        if H % th == 0 and th * per_row <= budget:
            return th
    return H  # fallback: whole plane (only for odd H; may need more VMEM)


def pallas_blend(t_scalars, logits, w0, w1, i0, i1, x0, x1):
    """t_scalars:[B,1] (SMEM); 7 image tensors stay separate (no slab concat)."""
    B, _, H, W = logits.shape
    C = w0.shape[1]
    th = _pick_blend_rows(H, W)
    grid = (B, H // th)

    def plane(c):
        return pl.BlockSpec((None, c, th, W), lambda b, h: (b, 0, h, 0))

    out, occ0 = pl.pallas_call(
        _blend_kernel,
        out_shape=(jax.ShapeDtypeStruct((B, C, H, W), jnp.float32),
                   jax.ShapeDtypeStruct((B, 1, H, W), jnp.float32)),
        grid=grid,
        in_specs=[
            pl.BlockSpec(memory_space=pltpu.MemorySpace.SMEM),
            plane(6), plane(C), plane(C), plane(C), plane(C), plane(C), plane(C),
        ],
        out_specs=(plane(C), plane(1)),
        compiler_params=pltpu.CompilerParams(
            dimension_semantics=("parallel", "parallel")),
    )(t_scalars, logits, w0, w1, i0, i1, x0, x1)
    return out, occ0


# ============================ JAX glue ops ====================================
def nn_upsample_x2_nhwc(x):
    return jnp.repeat(jnp.repeat(x, 2, axis=1), 2, axis=2)


def upsample_bilinear_x2(x):
    """F.interpolate(scale_factor=2, mode='bilinear', align_corners=False), NCHW.
    Static-slice formulation (no gathers)."""
    B, C, H, W = x.shape
    xt = jnp.concatenate([x[:, :, :1], x[:, :, :-1]], axis=2)     # row i-1 (clamped)
    xb = jnp.concatenate([x[:, :, 1:], x[:, :, -1:]], axis=2)     # row i+1 (clamped)
    even = 0.25 * xt + 0.75 * x
    odd = 0.75 * x + 0.25 * xb
    rows = jnp.stack([even, odd], axis=3).reshape(B, C, 2 * H, W)
    xl = jnp.concatenate([rows[..., :1], rows[..., :-1]], axis=3)
    xr = jnp.concatenate([rows[..., 1:], rows[..., -1:]], axis=3)
    even = 0.25 * xl + 0.75 * rows
    odd = 0.75 * rows + 0.25 * xr
    return jnp.stack([even, odd], axis=4).reshape(B, C, 2 * H, 2 * W)


def grid_sample_bilinear(x, gx, gy):
    """grid_sample(mode='bilinear', padding_mode='zeros', align_corners=False).
    Flat-index jnp.take gathers; also returns the tap weight sum (== the
    grid-sampled ones tensor) so bwarp's mask comes for free."""
    B, C, H, W = x.shape
    ix = ((gx + 1.0) * W - 1.0) * 0.5
    iy = ((gy + 1.0) * H - 1.0) * 0.5

    def one(xb, ixb, iyb):
        ixf = ixb.reshape(-1)
        iyf = iyb.reshape(-1)
        x0 = jnp.floor(ixf)
        y0 = jnp.floor(iyf)
        xb_flat = xb.reshape(C, H * W)
        out = jnp.zeros((C, H * W), jnp.float32)
        wsum = jnp.zeros((H * W,), jnp.float32)
        for dy in (0.0, 1.0):
            for dx in (0.0, 1.0):
                xf = x0 + dx
                yf = y0 + dy
                wgt = (1.0 - jnp.abs(ixf - xf)) * (1.0 - jnp.abs(iyf - yf))
                valid = ((xf >= 0) & (xf <= W - 1) & (yf >= 0) & (yf <= H - 1)
                         ).astype(jnp.float32)
                wgt = wgt * valid
                idx = (jnp.clip(yf, 0, H - 1) * W
                       + jnp.clip(xf, 0, W - 1)).astype(jnp.int32)
                out = out + jnp.take(xb_flat, idx, axis=1) * wgt[None, :]
                wsum = wsum + wgt
        return out.reshape(C, H, W), wsum.reshape(H, W)

    # TODO(synk): data-dependent bilinear gather stays in plain JAX (jnp.take);
    #             a Pallas dynamic-gather kernel is a follow-up.
    return jax.vmap(one)(x, ix, iy)


def bwarp(x, flo, withmask=True):
    B, C, H, W = x.shape
    xx = jnp.broadcast_to(jnp.arange(W, dtype=jnp.float32).reshape(1, 1, W), (B, H, W))
    yy = jnp.broadcast_to(jnp.arange(H, dtype=jnp.float32).reshape(1, H, 1), (B, H, W))
    vx = 2.0 * (xx + flo[:, 0]) / max(W - 1, 1) - 1.0
    vy = 2.0 * (yy + flo[:, 1]) / max(H - 1, 1) - 1.0
    out, wsum = grid_sample_bilinear(x, vx, vy)
    if withmask:
        mask = jnp.where(wsum < 0.999, 0.0, 1.0)[:, None, :, :]
        out = out * mask
    return out


def softsplat_avg(x, flow, eps=1e-7):
    """Average forward (soft)splatting with ONE combined scatter-add per image
    (values + weight channel packed, all 4 taps concatenated)."""
    # TODO(synk): Softsplat class source not provided; z-less call assumed to be
    #             average splatting.  Scatter-add left in plain JAX.
    B, C, H, W = x.shape
    gy, gx = jnp.meshgrid(jnp.arange(H, dtype=jnp.float32),
                          jnp.arange(W, dtype=jnp.float32), indexing='ij')

    def one(xb, fb):
        fx = (gx + fb[0]).reshape(-1)
        fy = (gy + fb[1]).reshape(-1)
        x0f = jnp.floor(fx)
        y0f = jnp.floor(fy)
        src = jnp.concatenate([xb.reshape(C, H * W),
                               jnp.ones((1, H * W), jnp.float32)], axis=0)
        idx_list, val_list = [], []
        for dy in (0.0, 1.0):
            for dx in (0.0, 1.0):
                xf = x0f + dx
                yf = y0f + dy
                w = (1.0 - jnp.abs(fx - xf)) * (1.0 - jnp.abs(fy - yf))
                valid = ((xf >= 0) & (xf <= W - 1) & (yf >= 0) & (yf <= H - 1)
                         ).astype(jnp.float32)
                w = w * valid
                idx_list.append((jnp.clip(yf, 0, H - 1) * W
                                 + jnp.clip(xf, 0, W - 1)).astype(jnp.int32))
                val_list.append(src * w[None, :])
        idx_all = jnp.concatenate(idx_list)                  # [4*H*W]
        val_all = jnp.concatenate(val_list, axis=1)          # [C+1, 4*H*W]
        acc = jnp.zeros((C + 1, H * W), jnp.float32).at[:, idx_all].add(val_all)
        wsum = acc[C]
        out = jnp.where(wsum[None, :] > eps,
                        acc[:C] / jnp.maximum(wsum, eps)[None, :], 0.0)
        return out.reshape(C, H, W)

    return jax.vmap(one)(x, flow)


# ============================ parameters ======================================
def init_params(key):
    def conv_init(k, cout, cin, kh, kw):
        k1, k2 = jax.random.split(k)
        scale = 1.0 / jnp.sqrt(float(cin * kh * kw))
        w = jax.random.uniform(k1, (cout, cin, kh, kw), jnp.float32, -scale, scale)
        b = jax.random.uniform(k2, (cout,), jnp.float32, -scale, scale)
        return w, b

    layer_defs = {
        # conv_flow_bottom (flow_l_prev is None path)
        'cfb0': (2 * NF, 2 * NF, 3, 3),
        'cfb1': (2 * NF, 2 * NF, 3, 3),
        'cfb2': (2 * NF, 2 * NF, 3, 3),
        'cfb3': (NF, 2 * NF, 3, 3),
        'cfb4': (4, NF, 3, 3),       # cutoffUnnec=True, tempbottomflowfix=False -> 4 ch
        # PCARefineUNet
        'enc1': (REFINE_NF, INPUT_MAPS, 4, 4),
        'enc2': (2 * REFINE_NF, REFINE_NF, 4, 4),
        'enc3': (4 * REFINE_NF, 2 * REFINE_NF, 4, 4),
        'dec0': (4 * REFINE_NF, 4 * REFINE_NF, 3, 3),
        'dec1': (2 * REFINE_NF, 6 * REFINE_NF, 3, 3),
        'dec2': (REFINE_NF, 3 * REFINE_NF, 3, 3),
        'dec3': (OUTPUT_MAPS, REFINE_NF, 3, 3),
    }
    keys = jax.random.split(key, len(layer_defs))
    packed = {}
    for k, (name, d) in zip(keys, layer_defs.items()):
        w, b = conv_init(k, *d)
        cout, cin, kh, kw = w.shape
        # Pre-pack once: bf16 matmul operands (no per-call pad/cast passes).
        if kh == 3:   # fused 3x3 path: (9, Cin, Cout)
            wp = w.transpose(2, 3, 1, 0).reshape(kh * kw, cin, cout).astype(jnp.bfloat16)
        else:         # im2col 4x4/s2 path: (16*Cin, Cout)
            wp = w.transpose(2, 3, 1, 0).reshape(kh * kw * cin, cout).astype(jnp.bfloat16)
        packed[name] = (wp, b.reshape(1, cout).astype(jnp.float32))
    return packed


# ============================ forward pass ====================================
def refine_unet(params, x_nhwc_bf16):
    enc1 = conv2d_s2_im2col(x_nhwc_bf16, *params['enc1'], relu=True)
    enc2 = conv2d_s2_im2col(enc1, *params['enc2'], relu=True)
    out = conv2d_s2_im2col(enc2, *params['enc3'], relu=True)
    out = conv3x3_fused(out, *params['dec0'], relu=True)
    out = nn_upsample_x2_nhwc(out)
    out = jnp.concatenate([out, enc2], axis=-1)
    out = conv3x3_fused(out, *params['dec1'], relu=True)
    out = nn_upsample_x2_nhwc(out)
    out = jnp.concatenate([out, enc1], axis=-1)
    out = conv3x3_fused(out, *params['dec2'], relu=True)
    out = nn_upsample_x2_nhwc(out)
    out = conv3x3_fused(out, *params['dec3'], relu=False, out_dtype=jnp.float32)
    return out


def dctvfinet_forward(params, feat_x, t_value, x_l):
    """feat_x:[B, 2*IMG_CH*DCTVFI_NF, H, W], t_value:[B,1,1,1], x_l:[B,IMG_CH,2,2H,2W]."""
    B, C, H, W = feat_x.shape
    feat_x = feat_x.reshape(B, 2, IMG_CH * DCTVFI_NF, H, W)
    feat0 = feat_x[:, 0]
    feat1 = feat_x[:, 1]

    # --- conv_flow_bottom (flow_l_prev is None branch), NHWC bf16, fused taps ---
    h = (jnp.concatenate([feat0, feat1], axis=1)
         .transpose(0, 2, 3, 1).astype(jnp.bfloat16))
    h = conv3x3_fused(h, *params['cfb0'], relu=True)
    h = conv3x3_fused(h, *params['cfb1'], relu=True)
    h = conv3x3_fused(h, *params['cfb2'], relu=True)
    h = conv3x3_fused(h, *params['cfb3'], relu=True)
    flow_l_tmp = conv3x3_fused(h, *params['cfb4'], relu=False, out_dtype=jnp.float32)
    flow_l = flow_l_tmp.transpose(0, 3, 1, 2)[:, :4]            # back to NCHW

    flow_10 = flow_l[:, :2]
    flow_01 = flow_l[:, 2:]
    t = t_value
    flow_t0 = t * flow_01
    flow_t1 = (1.0 - t) * flow_10
    flow_refine_l = jnp.concatenate([flow_t0, flow_t1], axis=1)

    upscale = x_l.shape[3] // flow_t0.shape[2]   # = 2
    flow_t0 = upscale * upsample_bilinear_x2(flow_t0)
    flow_t1 = upscale * upsample_bilinear_x2(flow_t1)
    flow_10 = upscale * upsample_bilinear_x2(flow_10)
    flow_01 = upscale * upsample_bilinear_x2(flow_01)

    x0 = x_l[:, :, 0]
    x1 = x_l[:, :, 1]

    warped_img0 = softsplat_avg(x0, flow_t0)
    warped_img1 = softsplat_avg(x1, flow_t1)

    flowback_0 = bwarp(flow_10 * t, (1.0 - t) * flow_01, withmask=True)
    flowback_1 = bwarp(flow_01 * (1.0 - t), t * flow_10, withmask=True)
    im0_tot = bwarp(x0, flowback_0, withmask=True)
    im1_tot = bwarp(x1, flowback_1, withmask=True)

    refine_in = jnp.concatenate([x0, x1, warped_img0, warped_img1,
                                 flow_t0, flow_t1, flowback_0, flowback_1,
                                 im0_tot, im1_tot], axis=1)            # 26 maps NCHW
    refine_out = refine_unet(params, refine_in.transpose(0, 2, 3, 1)
                             .astype(jnp.bfloat16))                    # NHWC, 7 maps f32
    logits = refine_out.transpose(0, 3, 1, 2)[:, :6]                   # NCHW

    # Blend: 7 separate inputs (no 24-plane slab concat), t from SMEM.
    t_scalars = t_value.reshape(B, 1)
    out_l, occ_0 = pallas_blend(t_scalars, logits, warped_img0, warped_img1,
                                im0_tot, im1_tot, x0, x1)

    # is_training=True, level==0 return signature
    return out_l, flow_l, flow_refine_l[:, 0:4], occ_0, (flow_t0, flow_t1)


# ================================ main ========================================
if __name__ == "__main__":
    key = jax.random.PRNGKey(0)
    kp, kf, kx = jax.random.split(key, 3)
    params = init_params(kp)

    B, H, W = 2, 8, 8
    feat_x = jax.random.normal(kf, (B, 2 * IMG_CH * DCTVFI_NF, H, W), jnp.float32)
    x_l = jax.random.normal(kx, (B, IMG_CH, 2, 2 * H, 2 * W), jnp.float32)
    t_value = jnp.full((B, 1, 1, 1), 0.5, jnp.float32)

    fwd = jax.jit(dctvfinet_forward)
    out_l, flow_l, flow_refine, occ0, (ft0, ft1) = fwd(params, feat_x, t_value, x_l)
    jax.block_until_ready(out_l)

    assert out_l.shape == (B, IMG_CH, 2 * H, 2 * W)
    assert flow_l.shape == (B, 4, H, W)
    assert flow_refine.shape == (B, 4, H, W)
    assert occ0.shape == (B, 1, 2 * H, 2 * W)
    assert ft0.shape == (B, 2, 2 * H, 2 * W)
    assert bool(jnp.isfinite(out_l).all())
    print("KERNEL_OK")
</pallas_src>

<mosaic_0001>
module attributes {stable_mosaic.version = 11 : i64} {
  func.func @_conv3x3_kernel(%arg0: i32, %arg1: i32, %arg2: memref<1x10x10x24xbf16, #tpu.memory_space<vmem>>, %arg3: memref<9x24x24xbf16, #tpu.memory_space<vmem>>, %arg4: memref<1x24xf32, #tpu.memory_space<vmem>>, %arg5: memref<1x8x8x24xbf16, #tpu.memory_space<vmem>>) attributes {dimension_semantics = [#tpu.dimension_semantics<parallel>, #tpu.dimension_semantics<arbitrary>], iteration_bounds = array<i64: 2, 1>, scalar_prefetch = 0 : i64, scratch_operands = 0 : i64, tpu.core_type = #tpu.core_type<tc>, window_params = [{transform_indices = @transform_0, window_bounds = array<i64: 1, 10, 10, 24>}, {pipeline_mode = #tpu.pipeline_mode<synchronous>, transform_indices = @transform_1, window_bounds = array<i64: 9, 24, 24>}, {pipeline_mode = #tpu.pipeline_mode<synchronous>, transform_indices = @transform_2, window_bounds = array<i64: 1, 24>}, {transform_indices = @transform_3, window_bounds = array<i64: 1, 8, 8, 24>}]} {
    %c8_i32 = arith.constant 8 : i32
    %0 = arith.muli %arg1, %c8_i32 : i32
    %cst = arith.constant 0.000000e+00 : f32
    %1 = vector.broadcast %cst : f32 to vector<64x24xf32>
    %c0_i32 = arith.constant 0 : i32
    %2 = arith.addi %0, %c0_i32 : i32
    %c0 = arith.constant 0 : index
    %3 = arith.index_cast %2 : i32 to index
    %c0_0 = arith.constant 0 : index
    %c0_1 = arith.constant 0 : index
    %4 = vector.load %arg2[%c0, %3, %c0_0, %c0_1] : memref<1x10x10x24xbf16, #tpu.memory_space<vmem>>, vector<1x8x8x24xbf16>
    %5 = vector.shape_cast %4 : vector<1x8x8x24xbf16> to vector<8x8x24xbf16>
    %6 = vector.shape_cast %5 : vector<8x8x24xbf16> to vector<64x24xbf16>
    %c0_2 = arith.constant 0 : index
    %c0_3 = arith.constant 0 : index
    %c0_4 = arith.constant 0 : index
    %7 = vector.load %arg3[%c0_2, %c0_3, %c0_4] : memref<9x24x24xbf16, #tpu.memory_space<vmem>>, vector<1x24x24xbf16>
    %8 = vector.shape_cast %7 : vector<1x24x24xbf16> to vector<24x24xbf16>
    %cst_5 = arith.constant dense<0.000000e+00> : vector<64x24xf32>
    %9 = tpu.matmul %6, %8, %cst_5 {dimension_numbers = #tpu.dot_dimension_numbers<[1], [0], [0], [1], [0, 0, 1, 1], [], []>} : vector<64x24xbf16>, vector<24x24xbf16>, vector<64x24xf32> -> vector<64x24xf32>
    %10 = arith.addf %1, %9 : vector<64x24xf32>
    %c0_i32_6 = arith.constant 0 : i32
    %11 = arith.addi %0, %c0_i32_6 : i32
    %c0_7 = arith.constant 0 : index
    %12 = arith.index_cast %11 : i32 to index
    %c1 = arith.constant 1 : index
    %c0_8 = arith.constant 0 : index
    %13 = vector.load %arg2[%c0_7, %12, %c1, %c0_8] : memref<1x10x10x24xbf16, #tpu.memory_space<vmem>>, vector<1x8x8x24xbf16>
    %14 = vector.shape_cast %13 : vector<1x8x8x24xbf16> to vector<8x8x24xbf16>
    %15 = vector.shape_cast %14 : vector<8x8x24xbf16> to vector<64x24xbf16>
    %c1_9 = arith.constant 1 : index
    %c0_10 = arith.constant 0 : index
    %c0_11 = arith.constant 0 : index
    %16 = vector.load %arg3[%c1_9, %c0_10, %c0_11] : memref<9x24x24xbf16, #tpu.memory_space<vmem>>, vector<1x24x24xbf16>
    %17 = vector.shape_cast %16 : vector<1x24x24xbf16> to vector<24x24xbf16>
    %cst_12 = arith.constant dense<0.000000e+00> : vector<64x24xf32>
    %18 = tpu.matmul %15, %17, %cst_12 {dimension_numbers = #tpu.dot_dimension_numbers<[1], [0], [0], [1], [0, 0, 1, 1], [], []>} : vector<64x24xbf16>, vector<24x24xbf16>, vector<64x24xf32> -> vector<64x24xf32>
    %19 = arith.addf %10, %18 : vector<64x24xf32>
    %c0_i32_13 = arith.constant 0 : i32
    %20 = arith.addi %0, %c0_i32_13 : i32
    %c0_14 = arith.constant 0 : index
    %21 = arith.index_cast %20 : i32 to index
    %c2 = arith.constant 2 : index
    %c0_15 = arith.constant 0 : index
    %22 = vector.load %arg2[%c0_14, %21, %c2, %c0_15] : memref<1x10x10x24xbf16, #tpu.memory_space<vmem>>, vector<1x8x8x24xbf16>
    %23 = vector.shape_cast %22 : vector<1x8x8x24xbf16> to vector<8x8x24xbf16>
    %24 = vector.shape_cast %23 : vector<8x8x24xbf16> to vector<64x24xbf16>
    %c2_16 = arith.constant 2 : index
    %c0_17 = arith.constant 0 : index
    %c0_18 = arith.constant 0 : index
    %25 = vector.load %arg3[%c2_16, %c0_17, %c0_18] : memref<9x24x24xbf16, #tpu.memory_space<vmem>>, vector<1x24x24xbf16>
    %26 = vector.shape_cast %25 : vector<1x24x24xbf16> to vector<24x24xbf16>
    %cst_19 = arith.constant dense<0.000000e+00> : vector<64x24xf32>
    %27 = tpu.matmul %24, %26, %cst_19 {dimension_numbers = #tpu.dot_dimension_numbers<[1], [0], [0], [1], [0, 0, 1, 1], [], []>} : vector<64x24xbf16>, vector<24x24xbf16>, vector<64x24xf32> -> vector<64x24xf32>
    %28 = arith.addf %19, %27 : vector<64x24xf32>
    %c1_i32 = arith.constant 1 : i32
    %29 = arith.addi %0, %c1_i32 : i32
    %c0_20 = arith.constant 0 : index
    %30 = arith.index_cast %29 : i32 to index
    %c0_21 = arith.constant 0 : index
    %c0_22 = arith.constant 0 : index
    %31 = vector.load %arg2[%c0_20, %30, %c0_21, %c0_22] : memref<1x10x10x24xbf16, #tpu.memory_space<vmem>>, vector<1x8x8x24xbf16>
    %32 = vector.shape_cast %31 : vector<1x8x8x24xbf16> to vector<8x8x24xbf16>
    %33 = vector.shape_cast %32 : vector<8x8x24xbf16> to vector<64x24xbf16>
    %c3 = arith.constant 3 : index
    %c0_23 = arith.constant 0 : index
    %c0_24 = arith.constant 0 : index
    %34 = vector.load %arg3[%c3, %c0_23, %c0_24] : memref<9x24x24xbf16, #tpu.memory_space<vmem>>, vector<1x24x24xbf16>
    %35 = vector.shape_cast %34 : vector<1x24x24xbf16> to vector<24x24xbf16>
    %cst_25 = arith.constant dense<0.000000e+00> : vector<64x24xf32>
    %36 = tpu.matmul %33, %35, %cst_25 {dimension_numbers = #tpu.dot_dimension_numbers<[1], [0], [0], [1], [0, 0, 1, 1], [], []>} : vector<64x24xbf16>, vector<24x24xbf16>, vector<64x24xf32> -> vector<64x24xf32>
    %37 = arith.addf %28, %36 : vector<64x24xf32>
    %c1_i32_26 = arith.constant 1 : i32
    %38 = arith.addi %0, %c1_i32_26 : i32
    %c0_27 = arith.constant 0 : index
    %39 = arith.index_cast %38 : i32 to index
    %c1_28 = arith.constant 1 : index
    %c0_29 = arith.constant 0 : index
    %40 = vector.load %arg2[%c0_27, %39, %c1_28, %c0_29] : memref<1x10x10x24xbf16, #tpu.memory_space<vmem>>, vector<1x8x8x24xbf16>
    %41 = vector.shape_cast %40 : vector<1x8x8x24xbf16> to vector<8x8x24xbf16>
    %42 = vector.shape_cast %41 : vector<8x8x24xbf16> to vector<64x24xbf16>
    %c4 = arith.constant 4 : index
    %c0_30 = arith.constant 0 : index
    %c0_31 = arith.constant 0 : index
    %43 = vector.load %arg3[%c4, %c0_30, %c0_31] : memref<9x24x24xbf16, #tpu.memory_space<vmem>>, vector<1x24x24xbf16>
    %44 = vector.shape_cast %43 : vector<1x24x24xbf16> to vector<24x24xbf16>
    %cst_32 = arith.constant dense<0.000000e+00> : vector<64x24xf32>
    %45 = tpu.matmul %42, %44, %cst_32 {dimension_numbers = #tpu.dot_dimension_numbers<[1], [0], [0], [1], [0, 0, 1, 1], [], []>} : vector<64x24xbf16>, vector<24x24xbf16>, vector<64x24xf32> -> vector<64x24xf32>
    %46 = arith.addf %37, %45 : vector<64x24xf32>
    %c1_i32_33 = arith.constant 1 : i32
    %47 = arith.addi %0, %c1_i32_33 : i32
    %c0_34 = arith.constant 0 : index
    %48 = arith.index_cast %47 : i32 to index
    %c2_35 = arith.constant 2 : index
    %c0_36 = arith.constant 0 : index
    %49 = vector.load %arg2[%c0_34, %48, %c2_35, %c0_36] : memref<1x10x10x24xbf16, #tpu.memory_space<vmem>>, vector<1x8x8x24xbf16>
    %50 = vector.shape_cast %49 : vector<1x8x8x24xbf16> to vector<8x8x24xbf16>
    %51 = vector.shape_cast %50 : vector<8x8x24xbf16> to vector<64x24xbf16>
    %c5 = arith.constant 5 : index
    %c0_37 = arith.constant 0 : index
    %c0_38 = arith.constant 0 : index
    %52 = vector.load %arg3[%c5, %c0_37, %c0_38] : memref<9x24x24xbf16, #tpu.memory_space<vmem>>, vector<1x24x24xbf16>
    %53 = vector.shape_cast %52 : vector<1x24x24xbf16> to vector<24x24xbf16>
    %cst_39 = arith.constant dense<0.000000e+00> : vector<64x24xf32>
    %54 = tpu.matmul %51, %53, %cst_39 {dimension_numbers = #tpu.dot_dimension_numbers<[1], [0], [0], [1], [0, 0, 1, 1], [], []>} : vector<64x24xbf16>, vector<24x24xbf16>, vector<64x24xf32> -> vector<64x24xf32>
    %55 = arith.addf %46, %54 : vector<64x24xf32>
    %c2_i32 = arith.constant 2 : i32
    %56 = arith.addi %0, %c2_i32 : i32
    %c0_40 = arith.constant 0 : index
    %57 = arith.index_cast %56 : i32 to index
    %c0_41 = arith.constant 0 : index
    %c0_42 = arith.constant 0 : index
    %58 = vector.load %arg2[%c0_40, %57, %c0_41, %c0_42] : memref<1x10x10x24xbf16, #tpu.memory_space<vmem>>, vector<1x8x8x24xbf16>
    %59 = vector.shape_cast %58 : vector<1x8x8x24xbf16> to vector<8x8x24xbf16>
    %60 = vector.shape_cast %59 : vector<8x8x24xbf16> to vector<64x24xbf16>
    %c6 = arith.constant 6 : index
    %c0_43 = arith.constant 0 : index
    %c0_44 = arith.constant 0 : index
    %61 = vector.load %arg3[%c6, %c0_43, %c0_44] : memref<9x24x24xbf16, #tpu.memory_space<vmem>>, vector<1x24x24xbf16>
    %62 = vector.shape_cast %61 : vector<1x24x24xbf16> to vector<24x24xbf16>
    %cst_45 = arith.constant dense<0.000000e+00> : vector<64x24xf32>
    %63 = tpu.matmul %60, %62, %cst_45 {dimension_numbers = #tpu.dot_dimension_numbers<[1], [0], [0], [1], [0, 0, 1, 1], [], []>} : vector<64x24xbf16>, vector<24x24xbf16>, vector<64x24xf32> -> vector<64x24xf32>
    %64 = arith.addf %55, %63 : vector<64x24xf32>
    %c2_i32_46 = arith.constant 2 : i32
    %65 = arith.addi %0, %c2_i32_46 : i32
    %c0_47 = arith.constant 0 : index
    %66 = arith.index_cast %65 : i32 to index
    %c1_48 = arith.constant 1 : index
    %c0_49 = arith.constant 0 : index
    %67 = vector.load %arg2[%c0_47, %66, %c1_48, %c0_49] : memref<1x10x10x24xbf16, #tpu.memory_space<vmem>>, vector<1x8x8x24xbf16>
    %68 = vector.shape_cast %67 : vector<1x8x8x24xbf16> to vector<8x8x24xbf16>
    %69 = vector.shape_cast %68 : vector<8x8x24xbf16> to vector<64x24xbf16>
    %c7 = arith.constant 7 : index
    %c0_50 = arith.constant 0 : index
    %c0_51 = arith.constant 0 : index
    %70 = vector.load %arg3[%c7, %c0_50, %c0_51] : memref<9x24x24xbf16, #tpu.memory_space<vmem>>, vector<1x24x24xbf16>
    %71 = vector.shape_cast %70 : vector<1x24x24xbf16> to vector<24x24xbf16>
    %cst_52 = arith.constant dense<0.000000e+00> : vector<64x24xf32>
    %72 = tpu.matmul %69, %71, %cst_52 {dimension_numbers = #tpu.dot_dimension_numbers<[1], [0], [0], [1], [0, 0, 1, 1], [], []>} : vector<64x24xbf16>, vector<24x24xbf16>, vector<64x24xf32> -> vector<64x24xf32>
    %73 = arith.addf %64, %72 : vector<64x24xf32>
    %c2_i32_53 = arith.constant 2 : i32
    %74 = arith.addi %0, %c2_i32_53 : i32
    %c0_54 = arith.constant 0 : index
    %75 = arith.index_cast %74 : i32 to index
    %c2_55 = arith.constant 2 : index
    %c0_56 = arith.constant 0 : index
    %76 = vector.load %arg2[%c0_54, %75, %c2_55, %c0_56] : memref<1x10x10x24xbf16, #tpu.memory_space<vmem>>, vector<1x8x8x24xbf16>
    %77 = vector.shape_cast %76 : vector<1x8x8x24xbf16> to vector<8x8x24xbf16>
    %78 = vector.shape_cast %77 : vector<8x8x24xbf16> to vector<64x24xbf16>
    %c8 = arith.constant 8 : index
    %c0_57 = arith.constant 0 : index
    %c0_58 = arith.constant 0 : index
    %79 = vector.load %arg3[%c8, %c0_57, %c0_58] : memref<9x24x24xbf16, #tpu.memory_space<vmem>>, vector<1x24x24xbf16>
    %80 = vector.shape_cast %79 : vector<1x24x24xbf16> to vector<24x24xbf16>
    %cst_59 = arith.constant dense<0.000000e+00> : vector<64x24xf32>
    %81 = tpu.matmul %78, %80, %cst_59 {dimension_numbers = #tpu.dot_dimension_numbers<[1], [0], [0], [1], [0, 0, 1, 1], [], []>} : vector<64x24xbf16>, vector<24x24xbf16>, vector<64x24xf32> -> vector<64x24xf32>
    %82 = arith.addf %73, %81 : vector<64x24xf32>
    %c0_60 = arith.constant 0 : index
    %c0_61 = arith.constant 0 : index
    %83 = vector.load %arg4[%c0_60, %c0_61] : memref<1x24xf32, #tpu.memory_space<vmem>>, vector<1x24xf32>
    %84 = vector.broadcast %83 : vector<1x24xf32> to vector<64x24xf32>
    %85 = arith.addf %82, %84 : vector<64x24xf32>
    %cst_62 = arith.constant 0.000000e+00 : f32
    %86 = vector.broadcast %cst_62 : f32 to vector<64x24xf32>
    %87 = arith.maximumf %85, %86 : vector<64x24xf32>
    %88 = vector.shape_cast %87 : vector<64x24xf32> to vector<8x8x24xf32>
    %89 = arith.truncf %88 : vector<8x8x24xf32> to vector<8x8x24xbf16>
    %c0_63 = arith.constant 0 : index
    %c0_64 = arith.constant 0 : index
    %c0_65 = arith.constant 0 : index
    %c0_66 = arith.constant 0 : index
    %90 = vector.load %arg5[%c0_63, %c0_64, %c0_65, %c0_66] : memref<1x8x8x24xbf16, #tpu.memory_space<vmem>>, vector<1x8x8x24xbf16>
    %91 = vector.shape_cast %90 : vector<1x8x8x24xbf16> to vector<8x8x24xbf16>
    %92 = vector.shape_cast %89 : vector<8x8x24xbf16> to vector<1x8x8x24xbf16>
    tpu.vector_store %arg5[%c0_63, %c0_64, %c0_65, %c0_66], %92 {strides = array<i32>} : memref<1x8x8x24xbf16, #tpu.memory_space<vmem>>, vector<1x8x8x24xbf16>,
    return
  }
  func.func @transform_0(%arg0: i32, %arg1: i32) -> (i32, i32, i32, i32) {
    %c0_i32 = arith.constant 0 : i32
    %c0_i32_0 = arith.constant 0 : i32
    %c0_i32_1 = arith.constant 0 : i32
    %c0_i32_2 = arith.constant 0 : i32
    return %arg0, %c0_i32, %c0_i32_0, %c0_i32_1 : i32, i32, i32, i32
  }
  func.func @transform_1(%arg0: i32, %arg1: i32) -> (i32, i32, i32) {
    %c0_i32 = arith.constant 0 : i32
    %c0_i32_0 = arith.constant 0 : i32
    %c0_i32_1 = arith.constant 0 : i32
    %c0_i32_2 = arith.constant 0 : i32
    return %c0_i32, %c0_i32_0, %c0_i32_1 : i32, i32, i32
  }
  func.func @transform_2(%arg0: i32, %arg1: i32) -> (i32, i32) {
    %c0_i32 = arith.constant 0 : i32
    %c0_i32_0 = arith.constant 0 : i32
    %c0_i32_1 = arith.constant 0 : i32
    return %c0_i32, %c0_i32_0 : i32, i32
  }
  func.func @transform_3(%arg0: i32, %arg1: i32) -> (i32, i32, i32, i32) {
    %c0_i32 = arith.constant 0 : i32
    %c0_i32_0 = arith.constant 0 : i32
    %c0_i32_1 = arith.constant 0 : i32
    return %arg0, %arg1, %c0_i32, %c0_i32_0 : i32, i32, i32, i32
  }
}

module attributes {stable_mosaic.version = 11 : i64} {
  func.func @_conv3x3_kernel(%arg0: i32, %arg1: i32, %arg2: memref<1x10x10x24xbf16, #tpu.memory_space<vmem>>, %arg3: memref<9x24x12xbf16, #tpu.memory_space<vmem>>, %arg4: memref<1x12xf32, #tpu.memory_space<vmem>>, %arg5: memref<1x8x8x12xbf16, #tpu.memory_space<vmem>>) attributes {dimension_semantics = [#tpu.dimension_semantics<parallel>, #tpu.dimension_semantics<arbitrary>], iteration_bounds = array<i64: 2, 1>, scalar_prefetch = 0 : i64, scratch_operands = 0 : i64, tpu.core_type = #tpu.core_type<tc>, window_params = [{transform_indices = @transform_0, window_bounds = array<i64: 1, 10, 10, 24>}, {pipeline_mode = #tpu.pipeline_mode<synchronous>, transform_indices = @transform_1, window_bounds = array<i64: 9, 24, 12>}, {pipeline_mode = #tpu.pipeline_mode<synchronous>, transform_indices = @transform_2, window_bounds = array<i64: 1, 12>}, {transform_indices = @transform_3, window_bounds = array<i64: 1, 8, 8, 12>}]} {
    %c8_i32 = arith.constant 8 : i32
    %0 = arith.muli %arg1, %c8_i32 : i32
    %cst = arith.constant 0.000000e+00 : f32
    %1 = vector.broadcast %cst : f32 to vector<64x12xf32>
    %c0_i32 = arith.constant 0 : i32
    %2 = arith.addi %0, %c0_i32 : i32
    %c0 = arith.constant 0 : index
    %3 = arith.index_cast %2 : i32 to index
    %c0_0 = arith.constant 0 : index
    %c0_1 = arith.constant 0 : index
    %4 = vector.load %arg2[%c0, %3, %c0_0, %c0_1] : memref<1x10x10x24xbf16, #tpu.memory_space<vmem>>, vector<1x8x8x24xbf16>
    %5 = vector.shape_cast %4 : vector<1x8x8x24xbf16> to vector<8x8x24xbf16>
    %6 = vector.shape_cast %5 : vector<8x8x24xbf16> to vector<64x24xbf16>
    %c0_2 = arith.constant 0 : index
    %c0_3 = arith.constant 0 : index
    %c0_4 = arith.constant 0 : index
    %7 = vector.load %arg3[%c0_2, %c0_3, %c0_4] : memref<9x24x12xbf16, #tpu.memory_space<vmem>>, vector<1x24x12xbf16>
    %8 = vector.shape_cast %7 : vector<1x24x12xbf16> to vector<24x12xbf16>
    %cst_5 = arith.constant dense<0.000000e+00> : vector<64x12xf32>
    %9 = tpu.matmul %6, %8, %cst_5 {dimension_numbers = #tpu.dot_dimension_numbers<[1], [0], [0], [1], [0, 0, 1, 1], [], []>} : vector<64x24xbf16>, vector<24x12xbf16>, vector<64x12xf32> -> vector<64x12xf32>
    %10 = arith.addf %1, %9 : vector<64x12xf32>
    %c0_i32_6 = arith.constant 0 : i32
    %11 = arith.addi %0, %c0_i32_6 : i32
    %c0_7 = arith.constant 0 : index
    %12 = arith.index_cast %11 : i32 to index
    %c1 = arith.constant 1 : index
    %c0_8 = arith.constant 0 : index
    %13 = vector.load %arg2[%c0_7, %12, %c1, %c0_8] : memref<1x10x10x24xbf16, #tpu.memory_space<vmem>>, vector<1x8x8x24xbf16>
    %14 = vector.shape_cast %13 : vector<1x8x8x24xbf16> to vector<8x8x24xbf16>
    %15 = vector.shape_cast %14 : vector<8x8x24xbf16> to vector<64x24xbf16>
    %c1_9 = arith.constant 1 : index
    %c0_10 = arith.constant 0 : index
    %c0_11 = arith.constant 0 : index
    %16 = vector.load %arg3[%c1_9, %c0_10, %c0_11] : memref<9x24x12xbf16, #tpu.memory_space<vmem>>, vector<1x24x12xbf16>
    %17 = vector.shape_cast %16 : vector<1x24x12xbf16> to vector<24x12xbf16>
    %cst_12 = arith.constant dense<0.000000e+00> : vector<64x12xf32>
    %18 = tpu.matmul %15, %17, %cst_12 {dimension_numbers = #tpu.dot_dimension_numbers<[1], [0], [0], [1], [0, 0, 1, 1], [], []>} : vector<64x24xbf16>, vector<24x12xbf16>, vector<64x12xf32> -> vector<64x12xf32>
    %19 = arith.addf %10, %18 : vector<64x12xf32>
    %c0_i32_13 = arith.constant 0 : i32
    %20 = arith.addi %0, %c0_i32_13 : i32
    %c0_14 = arith.constant 0 : index
    %21 = arith.index_cast %20 : i32 to index
    %c2 = arith.constant 2 : index
    %c0_15 = arith.constant 0 : index
    %22 = vector.load %arg2[%c0_14, %21, %c2, %c0_15] : memref<1x10x10x24xbf16, #tpu.memory_space<vmem>>, vector<1x8x8x24xbf16>
    %23 = vector.shape_cast %22 : vector<1x8x8x24xbf16> to vector<8x8x24xbf16>
    %24 = vector.shape_cast %23 : vector<8x8x24xbf16> to vector<64x24xbf16>
    %c2_16 = arith.constant 2 : index
    %c0_17 = arith.constant 0 : index
    %c0_18 = arith.constant 0 : index
    %25 = vector.load %arg3[%c2_16, %c0_17, %c0_18] : memref<9x24x12xbf16, #tpu.memory_space<vmem>>, vector<1x24x12xbf16>
    %26 = vector.shape_cast %25 : vector<1x24x12xbf16> to vector<24x12xbf16>
    %cst_19 = arith.constant dense<0.000000e+00> : vector<64x12xf32>
    %27 = tpu.matmul %24, %26, %cst_19 {dimension_numbers = #tpu.dot_dimension_numbers<[1], [0], [0], [1], [0, 0, 1, 1], [], []>} : vector<64x24xbf16>, vector<24x12xbf16>, vector<64x12xf32> -> vector<64x12xf32>
    %28 = arith.addf %19, %27 : vector<64x12xf32>
    %c1_i32 = arith.constant 1 : i32
    %29 = arith.addi %0, %c1_i32 : i32
    %c0_20 = arith.constant 0 : index
    %30 = arith.index_cast %29 : i32 to index
    %c0_21 = arith.constant 0 : index
    %c0_22 = arith.constant 0 : index
    %31 = vector.load %arg2[%c0_20, %30, %c0_21, %c0_22] : memref<1x10x10x24xbf16, #tpu.memory_space<vmem>>, vector<1x8x8x24xbf16>
    %32 = vector.shape_cast %31 : vector<1x8x8x24xbf16> to vector<8x8x24xbf16>
    %33 = vector.shape_cast %32 : vector<8x8x24xbf16> to vector<64x24xbf16>
    %c3 = arith.constant 3 : index
    %c0_23 = arith.constant 0 : index
    %c0_24 = arith.constant 0 : index
    %34 = vector.load %arg3[%c3, %c0_23, %c0_24] : memref<9x24x12xbf16, #tpu.memory_space<vmem>>, vector<1x24x12xbf16>
    %35 = vector.shape_cast %34 : vector<1x24x12xbf16> to vector<24x12xbf16>
    %cst_25 = arith.constant dense<0.000000e+00> : vector<64x12xf32>
    %36 = tpu.matmul %33, %35, %cst_25 {dimension_numbers = #tpu.dot_dimension_numbers<[1], [0], [0], [1], [0, 0, 1, 1], [], []>} : vector<64x24xbf16>, vector<24x12xbf16>, vector<64x12xf32> -> vector<64x12xf32>
    %37 = arith.addf %28, %36 : vector<64x12xf32>
    %c1_i32_26 = arith.constant 1 : i32
    %38 = arith.addi %0, %c1_i32_26 : i32
    %c0_27 = arith.constant 0 : index
    %39 = arith.index_cast %38 : i32 to index
    %c1_28 = arith.constant 1 : index
    %c0_29 = arith.constant 0 : index
    %40 = vector.load %arg2[%c0_27, %39, %c1_28, %c0_29] : memref<1x10x10x24xbf16, #tpu.memory_space<vmem>>, vector<1x8x8x24xbf16>
    %41 = vector.shape_cast %40 : vector<1x8x8x24xbf16> to vector<8x8x24xbf16>
    %42 = vector.shape_cast %41 : vector<8x8x24xbf16> to vector<64x24xbf16>
    %c4 = arith.constant 4 : index
    %c0_30 = arith.constant 0 : index
    %c0_31 = arith.constant 0 : index
    %43 = vector.load %arg3[%c4, %c0_30, %c0_31] : memref<9x24x12xbf16, #tpu.memory_space<vmem>>, vector<1x24x12xbf16>
    %44 = vector.shape_cast %43 : vector<1x24x12xbf16> to vector<24x12xbf16>
    %cst_32 = arith.constant dense<0.000000e+00> : vector<64x12xf32>
    %45 = tpu.matmul %42, %44, %cst_32 {dimension_numbers = #tpu.dot_dimension_numbers<[1], [0], [0], [1], [0, 0, 1, 1], [], []>} : vector<64x24xbf16>, vector<24x12xbf16>, vector<64x12xf32> -> vector<64x12xf32>
    %46 = arith.addf %37, %45 : vector<64x12xf32>
    %c1_i32_33 = arith.constant 1 : i32
    %47 = arith.addi %0, %c1_i32_33 : i32
    %c0_34 = arith.constant 0 : index
    %48 = arith.index_cast %47 : i32 to index
    %c2_35 = arith.constant 2 : index
    %c0_36 = arith.constant 0 : index
    %49 = vector.load %arg2[%c0_34, %48, %c2_35, %c0_36] : memref<1x10x10x24xbf16, #tpu.memory_space<vmem>>, vector<1x8x8x24xbf16>
    %50 = vector.shape_cast %49 : vector<1x8x8x24xbf16> to vector<8x8x24xbf16>
    %51 = vector.shape_cast %50 : vector<8x8x24xbf16> to vector<64x24xbf16>
    %c5 = arith.constant 5 : index
    %c0_37 = arith.constant 0 : index
    %c0_38 = arith.constant 0 : index
    %52 = vector.load %arg3[%c5, %c0_37, %c0_38] : memref<9x24x12xbf16, #tpu.memory_space<vmem>>, vector<1x24x12xbf16>
    %53 = vector.shape_cast %52 : vector<1x24x12xbf16> to vector<24x12xbf16>
    %cst_39 = arith.constant dense<0.000000e+00> : vector<64x12xf32>
    %54 = tpu.matmul %51, %53, %cst_39 {dimension_numbers = #tpu.dot_dimension_numbers<[1], [0], [0], [1], [0, 0, 1, 1], [], []>} : vector<64x24xbf16>, vector<24x12xbf16>, vector<64x12xf32> -> vector<64x12xf32>
    %55 = arith.addf %46, %54 : vector<64x12xf32>
    %c2_i32 = arith.constant 2 : i32
    %56 = arith.addi %0, %c2_i32 : i32
    %c0_40 = arith.constant 0 : index
    %57 = arith.index_cast %56 : i32 to index
    %c0_41 = arith.constant 0 : index
    %c0_42 = arith.constant 0 : index
    %58 = vector.load %arg2[%c0_40, %57, %c0_41, %c0_42] : memref<1x10x10x24xbf16, #tpu.memory_space<vmem>>, vector<1x8x8x24xbf16>
    %59 = vector.shape_cast %58 : vector<1x8x8x24xbf16> to vector<8x8x24xbf16>
    %60 = vector.shape_cast %59 : vector<8x8x24xbf16> to vector<64x24xbf16>
    %c6 = arith.constant 6 : index
    %c0_43 = arith.constant 0 : index
    %c0_44 = arith.constant 0 : index
    %61 = vector.load %arg3[%c6, %c0_43, %c0_44] : memref<9x24x12xbf16, #tpu.memory_space<vmem>>, vector<1x24x12xbf16>
    %62 = vector.shape_cast %61 : vector<1x24x12xbf16> to vector<24x12xbf16>
    %cst_45 = arith.constant dense<0.000000e+00> : vector<64x12xf32>
    %63 = tpu.matmul %60, %62, %cst_45 {dimension_numbers = #tpu.dot_dimension_numbers<[1], [0], [0], [1], [0, 0, 1, 1], [], []>} : vector<64x24xbf16>, vector<24x12xbf16>, vector<64x12xf32> -> vector<64x12xf32>
    %64 = arith.addf %55, %63 : vector<64x12xf32>
    %c2_i32_46 = arith.constant 2 : i32
    %65 = arith.addi %0, %c2_i32_46 : i32
    %c0_47 = arith.constant 0 : index
    %66 = arith.index_cast %65 : i32 to index
    %c1_48 = arith.constant 1 : index
    %c0_49 = arith.constant 0 : index
    %67 = vector.load %arg2[%c0_47, %66, %c1_48, %c0_49] : memref<1x10x10x24xbf16, #tpu.memory_space<vmem>>, vector<1x8x8x24xbf16>
    %68 = vector.shape_cast %67 : vector<1x8x8x24xbf16> to vector<8x8x24xbf16>
    %69 = vector.shape_cast %68 : vector<8x8x24xbf16> to vector<64x24xbf16>
    %c7 = arith.constant 7 : index
    %c0_50 = arith.constant 0 : index
    %c0_51 = arith.constant 0 : index
    %70 = vector.load %arg3[%c7, %c0_50, %c0_51] : memref<9x24x12xbf16, #tpu.memory_space<vmem>>, vector<1x24x12xbf16>
    %71 = vector.shape_cast %70 : vector<1x24x12xbf16> to vector<24x12xbf16>
    %cst_52 = arith.constant dense<0.000000e+00> : vector<64x12xf32>
    %72 = tpu.matmul %69, %71, %cst_52 {dimension_numbers = #tpu.dot_dimension_numbers<[1], [0], [0], [1], [0, 0, 1, 1], [], []>} : vector<64x24xbf16>, vector<24x12xbf16>, vector<64x12xf32> -> vector<64x12xf32>
    %73 = arith.addf %64, %72 : vector<64x12xf32>
    %c2_i32_53 = arith.constant 2 : i32
    %74 = arith.addi %0, %c2_i32_53 : i32
    %c0_54 = arith.constant 0 : index
    %75 = arith.index_cast %74 : i32 to index
    %c2_55 = arith.constant 2 : index
    %c0_56 = arith.constant 0 : index
    %76 = vector.load %arg2[%c0_54, %75, %c2_55, %c0_56] : memref<1x10x10x24xbf16, #tpu.memory_space<vmem>>, vector<1x8x8x24xbf16>
    %77 = vector.shape_cast %76 : vector<1x8x8x24xbf16> to vector<8x8x24xbf16>
    %78 = vector.shape_cast %77 : vector<8x8x24xbf16> to vector<64x24xbf16>
    %c8 = arith.constant 8 : index
    %c0_57 = arith.constant 0 : index
    %c0_58 = arith.constant 0 : index
    %79 = vector.load %arg3[%c8, %c0_57, %c0_58] : memref<9x24x12xbf16, #tpu.memory_space<vmem>>, vector<1x24x12xbf16>
    %80 = vector.shape_cast %79 : vector<1x24x12xbf16> to vector<24x12xbf16>
    %cst_59 = arith.constant dense<0.000000e+00> : vector<64x12xf32>
    %81 = tpu.matmul %78, %80, %cst_59 {dimension_numbers = #tpu.dot_dimension_numbers<[1], [0], [0], [1], [0, 0, 1, 1], [], []>} : vector<64x24xbf16>, vector<24x12xbf16>, vector<64x12xf32> -> vector<64x12xf32>
    %82 = arith.addf %73, %81 : vector<64x12xf32>
    %c0_60 = arith.constant 0 : index
    %c0_61 = arith.constant 0 : index
    %83 = vector.load %arg4[%c0_60, %c0_61] : memref<1x12xf32, #tpu.memory_space<vmem>>, vector<1x12xf32>
    %84 = vector.broadcast %83 : vector<1x12xf32> to vector<64x12xf32>
    %85 = arith.addf %82, %84 : vector<64x12xf32>
    %cst_62 = arith.constant 0.000000e+00 : f32
    %86 = vector.broadcast %cst_62 : f32 to vector<64x12xf32>
    %87 = arith.maximumf %85, %86 : vector<64x12xf32>
    %88 = vector.shape_cast %87 : vector<64x12xf32> to vector<8x8x12xf32>
    %89 = arith.truncf %88 : vector<8x8x12xf32> to vector<8x8x12xbf16>
    %c0_63 = arith.constant 0 : index
    %c0_64 = arith.constant 0 : index
    %c0_65 = arith.constant 0 : index
    %c0_66 = arith.constant 0 : index
    %90 = vector.load %arg5[%c0_63, %c0_64, %c0_65, %c0_66] : memref<1x8x8x12xbf16, #tpu.memory_space<vmem>>, vector<1x8x8x12xbf16>
    %91 = vector.shape_cast %90 : vector<1x8x8x12xbf16> to vector<8x8x12xbf16>
    %92 = vector.shape_cast %89 : vector<8x8x12xbf16> to vector<1x8x8x12xbf16>
    tpu.vector_store %arg5[%c0_63, %c0_64, %c0_65, %c0_66], %92 {strides = array<i32>} : memref<1x8x8x12xbf16, #tpu.memory_space<vmem>>, vector<1x8x8x12xbf16>,
    return
  }
  func.func @transform_0(%arg0: i32, %arg1: i32) -> (i32, i32, i32, i32) {
    %c0_i32 = arith.constant 0 : i32
    %c0_i32_0 = arith.constant 0 : i32
    %c0_i32_1 = arith.constant 0 : i32
    %c0_i32_2 = arith.constant 0 : i32
    return %arg0, %c0_i32, %c0_i32_0, %c0_i32_1 : i32, i32, i32, i32
  }
  func.func @transform_1(%arg0: i32, %arg1: i32) -> (i32, i32, i32) {
    %c0_i32 = arith.constant 0 : i32
    %c0_i32_0 = arith.constant 0 : i32
    %c0_i32_1 = arith.constant 0 : i32
    %c0_i32_2 = arith.constant 0 : i32
    return %c0_i32, %c0_i32_0, %c0_i32_1 : i32, i32, i32
  }
  func.func @transform_2(%arg0: i32, %arg1: i32) -> (i32, i32) {
    %c0_i32 = arith.constant 0 : i32
    %c0_i32_0 = arith.constant 0 : i32
    %c0_i32_1 = arith.constant 0 : i32
    return %c0_i32, %c0_i32_0 : i32, i32
  }
  func.func @transform_3(%arg0: i32, %arg1: i32) -> (i32, i32, i32, i32) {
    %c0_i32 = arith.constant 0 : i32
    %c0_i32_0 = arith.constant 0 : i32
    %c0_i32_1 = arith.constant 0 : i32
    return %arg0, %arg1, %c0_i32, %c0_i32_0 : i32, i32, i32, i32
  }
}

module attributes {stable_mosaic.version = 11 : i64} {
  func.func @_conv3x3_kernel(%arg0: i32, %arg1: i32, %arg2: memref<1x10x10x12xbf16, #tpu.memory_space<vmem>>, %arg3: memref<9x12x4xbf16, #tpu.memory_space<vmem>>, %arg4: memref<1x4xf32, #tpu.memory_space<vmem>>, %arg5: memref<1x8x8x4xf32, #tpu.memory_space<vmem>>) attributes {dimension_semantics = [#tpu.dimension_semantics<parallel>, #tpu.dimension_semantics<arbitrary>], iteration_bounds = array<i64: 2, 1>, scalar_prefetch = 0 : i64, scratch_operands = 0 : i64, tpu.core_type = #tpu.core_type<tc>, window_params = [{transform_indices = @transform_0, window_bounds = array<i64: 1, 10, 10, 12>}, {pipeline_mode = #tpu.pipeline_mode<synchronous>, transform_indices = @transform_1, window_bounds = array<i64: 9, 12, 4>}, {pipeline_mode = #tpu.pipeline_mode<synchronous>, transform_indices = @transform_2, window_bounds = array<i64: 1, 4>}, {transform_indices = @transform_3, window_bounds = array<i64: 1, 8, 8, 4>}]} {
    %c8_i32 = arith.constant 8 : i32
    %0 = arith.muli %arg1, %c8_i32 : i32
    %cst = arith.constant 0.000000e+00 : f32
    %1 = vector.broadcast %cst : f32 to vector<64x4xf32>
    %c0_i32 = arith.constant 0 : i32
    %2 = arith.addi %0, %c0_i32 : i32
    %c0 = arith.constant 0 : index
    %3 = arith.index_cast %2 : i32 to index
    %c0_0 = arith.constant 0 : index
    %c0_1 = arith.constant 0 : index
    %4 = vector.load %arg2[%c0, %3, %c0_0, %c0_1] : memref<1x10x10x12xbf16, #tpu.memory_space<vmem>>, vector<1x8x8x12xbf16>
    %5 = vector.shape_cast %4 : vector<1x8x8x12xbf16> to vector<8x8x12xbf16>
    %6 = vector.shape_cast %5 : vector<8x8x12xbf16> to vector<64x12xbf16>
    %c0_2 = arith.constant 0 : index
    %c0_3 = arith.constant 0 : index
    %c0_4 = arith.constant 0 : index
    %7 = vector.load %arg3[%c0_2, %c0_3, %c0_4] : memref<9x12x4xbf16, #tpu.memory_space<vmem>>, vector<1x12x4xbf16>
    %8 = vector.shape_cast %7 : vector<1x12x4xbf16> to vector<12x4xbf16>
    %cst_5 = arith.constant dense<0.000000e+00> : vector<64x4xf32>
    %9 = tpu.matmul %6, %8, %cst_5 {dimension_numbers = #tpu.dot_dimension_numbers<[1], [0], [0], [1], [0, 0, 1, 1], [], []>} : vector<64x12xbf16>, vector<12x4xbf16>, vector<64x4xf32> -> vector<64x4xf32>
    %10 = arith.addf %1, %9 : vector<64x4xf32>
    %c0_i32_6 = arith.constant 0 : i32
    %11 = arith.addi %0, %c0_i32_6 : i32
    %c0_7 = arith.constant 0 : index
    %12 = arith.index_cast %11 : i32 to index
    %c1 = arith.constant 1 : index
    %c0_8 = arith.constant 0 : index
    %13 = vector.load %arg2[%c0_7, %12, %c1, %c0_8] : memref<1x10x10x12xbf16, #tpu.memory_space<vmem>>, vector<1x8x8x12xbf16>
    %14 = vector.shape_cast %13 : vector<1x8x8x12xbf16> to vector<8x8x12xbf16>
    %15 = vector.shape_cast %14 : vector<8x8x12xbf16> to vector<64x12xbf16>
    %c1_9 = arith.constant 1 : index
    %c0_10 = arith.constant 0 : index
    %c0_11 = arith.constant 0 : index
    %16 = vector.load %arg3[%c1_9, %c0_10, %c0_11] : memref<9x12x4xbf16, #tpu.memory_space<vmem>>, vector<1x12x4xbf16>
    %17 = vector.shape_cast %16 : vector<1x12x4xbf16> to vector<12x4xbf16>
    %cst_12 = arith.constant dense<0.000000e+00> : vector<64x4xf32>
    %18 = tpu.matmul %15, %17, %cst_12 {dimension_numbers = #tpu.dot_dimension_numbers<[1], [0], [0], [1], [0, 0, 1, 1], [], []>} : vector<64x12xbf16>, vector<12x4xbf16>, vector<64x4xf32> -> vector<64x4xf32>
    %19 = arith.addf %10, %18 : vector<64x4xf32>
    %c0_i32_13 = arith.constant 0 : i32
    %20 = arith.addi %0, %c0_i32_13 : i32
    %c0_14 = arith.constant 0 : index
    %21 = arith.index_cast %20 : i32 to index
    %c2 = arith.constant 2 : index
    %c0_15 = arith.constant 0 : index
    %22 = vector.load %arg2[%c0_14, %21, %c2, %c0_15] : memref<1x10x10x12xbf16, #tpu.memory_space<vmem>>, vector<1x8x8x12xbf16>
    %23 = vector.shape_cast %22 : vector<1x8x8x12xbf16> to vector<8x8x12xbf16>
    %24 = vector.shape_cast %23 : vector<8x8x12xbf16> to vector<64x12xbf16>
    %c2_16 = arith.constant 2 : index
    %c0_17 = arith.constant 0 : index
    %c0_18 = arith.constant 0 : index
    %25 = vector.load %arg3[%c2_16, %c0_17, %c0_18] : memref<9x12x4xbf16, #tpu.memory_space<vmem>>, vector<1x12x4xbf16>
    %26 = vector.shape_cast %25 : vector<1x12x4xbf16> to vector<12x4xbf16>
    %cst_19 = arith.constant dense<0.000000e+00> : vector<64x4xf32>
    %27 = tpu.matmul %24, %26, %cst_19 {dimension_numbers = #tpu.dot_dimension_numbers<[1], [0], [0], [1], [0, 0, 1, 1], [], []>} : vector<64x12xbf16>, vector<12x4xbf16>, vector<64x4xf32> -> vector<64x4xf32>
    %28 = arith.addf %19, %27 : vector<64x4xf32>
    %c1_i32 = arith.constant 1 : i32
    %29 = arith.addi %0, %c1_i32 : i32
    %c0_20 = arith.constant 0 : index
    %30 = arith.index_cast %29 : i32 to index
    %c0_21 = arith.constant 0 : index
    %c0_22 = arith.constant 0 : index
    %31 = vector.load %arg2[%c0_20, %30, %c0_21, %c0_22] : memref<1x10x10x12xbf16, #tpu.memory_space<vmem>>, vector<1x8x8x12xbf16>
    %32 = vector.shape_cast %31 : vector<1x8x8x12xbf16> to vector<8x8x12xbf16>
    %33 = vector.shape_cast %32 : vector<8x8x12xbf16> to vector<64x12xbf16>
    %c3 = arith.constant 3 : index
    %c0_23 = arith.constant 0 : index
    %c0_24 = arith.constant 0 : index
    %34 = vector.load %arg3[%c3, %c0_23, %c0_24] : memref<9x12x4xbf16, #tpu.memory_space<vmem>>, vector<1x12x4xbf16>
    %35 = vector.shape_cast %34 : vector<1x12x4xbf16> to vector<12x4xbf16>
    %cst_25 = arith.constant dense<0.000000e+00> : vector<64x4xf32>
    %36 = tpu.matmul %33, %35, %cst_25 {dimension_numbers = #tpu.dot_dimension_numbers<[1], [0], [0], [1], [0, 0, 1, 1], [], []>} : vector<64x12xbf16>, vector<12x4xbf16>, vector<64x4xf32> -> vector<64x4xf32>
    %37 = arith.addf %28, %36 : vector<64x4xf32>
    %c1_i32_26 = arith.constant 1 : i32
    %38 = arith.addi %0, %c1_i32_26 : i32
    %c0_27 = arith.constant 0 : index
    %39 = arith.index_cast %38 : i32 to index
    %c1_28 = arith.constant 1 : index
    %c0_29 = arith.constant 0 : index
    %40 = vector.load %arg2[%c0_27, %39, %c1_28, %c0_29] : memref<1x10x10x12xbf16, #tpu.memory_space<vmem>>, vector<1x8x8x12xbf16>
    %41 = vector.shape_cast %40 : vector<1x8x8x12xbf16> to vector<8x8x12xbf16>
    %42 = vector.shape_cast %41 : vector<8x8x12xbf16> to vector<64x12xbf16>
    %c4 = arith.constant 4 : index
    %c0_30 = arith.constant 0 : index
    %c0_31 = arith.constant 0 : index
    %43 = vector.load %arg3[%c4, %c0_30, %c0_31] : memref<9x12x4xbf16, #tpu.memory_space<vmem>>, vector<1x12x4xbf16>
    %44 = vector.shape_cast %43 : vector<1x12x4xbf16> to vector<12x4xbf16>
    %cst_32 = arith.constant dense<0.000000e+00> : vector<64x4xf32>
    %45 = tpu.matmul %42, %44, %cst_32 {dimension_numbers = #tpu.dot_dimension_numbers<[1], [0], [0], [1], [0, 0, 1, 1], [], []>} : vector<64x12xbf16>, vector<12x4xbf16>, vector<64x4xf32> -> vector<64x4xf32>
    %46 = arith.addf %37, %45 : vector<64x4xf32>
    %c1_i32_33 = arith.constant 1 : i32
    %47 = arith.addi %0, %c1_i32_33 : i32
    %c0_34 = arith.constant 0 : index
    %48 = arith.index_cast %47 : i32 to index
    %c2_35 = arith.constant 2 : index
    %c0_36 = arith.constant 0 : index
    %49 = vector.load %arg2[%c0_34, %48, %c2_35, %c0_36] : memref<1x10x10x12xbf16, #tpu.memory_space<vmem>>, vector<1x8x8x12xbf16>
    %50 = vector.shape_cast %49 : vector<1x8x8x12xbf16> to vector<8x8x12xbf16>
    %51 = vector.shape_cast %50 : vector<8x8x12xbf16> to vector<64x12xbf16>
    %c5 = arith.constant 5 : index
    %c0_37 = arith.constant 0 : index
    %c0_38 = arith.constant 0 : index
    %52 = vector.load %arg3[%c5, %c0_37, %c0_38] : memref<9x12x4xbf16, #tpu.memory_space<vmem>>, vector<1x12x4xbf16>
    %53 = vector.shape_cast %52 : vector<1x12x4xbf16> to vector<12x4xbf16>
    %cst_39 = arith.constant dense<0.000000e+00> : vector<64x4xf32>
    %54 = tpu.matmul %51, %53, %cst_39 {dimension_numbers = #tpu.dot_dimension_numbers<[1], [0], [0], [1], [0, 0, 1, 1], [], []>} : vector<64x12xbf16>, vector<12x4xbf16>, vector<64x4xf32> -> vector<64x4xf32>
    %55 = arith.addf %46, %54 : vector<64x4xf32>
    %c2_i32 = arith.constant 2 : i32
    %56 = arith.addi %0, %c2_i32 : i32
    %c0_40 = arith.constant 0 : index
    %57 = arith.index_cast %56 : i32 to index
    %c0_41 = arith.constant 0 : index
    %c0_42 = arith.constant 0 : index
    %58 = vector.load %arg2[%c0_40, %57, %c0_41, %c0_42] : memref<1x10x10x12xbf16, #tpu.memory_space<vmem>>, vector<1x8x8x12xbf16>
    %59 = vector.shape_cast %58 : vector<1x8x8x12xbf16> to vector<8x8x12xbf16>
    %60 = vector.shape_cast %59 : vector<8x8x12xbf16> to vector<64x12xbf16>
    %c6 = arith.constant 6 : index
    %c0_43 = arith.constant 0 : index
    %c0_44 = arith.constant 0 : index
    %61 = vector.load %arg3[%c6, %c0_43, %c0_44] : memref<9x12x4xbf16, #tpu.memory_space<vmem>>, vector<1x12x4xbf16>
    %62 = vector.shape_cast %61 : vector<1x12x4xbf16> to vector<12x4xbf16>
    %cst_45 = arith.constant dense<0.000000e+00> : vector<64x4xf32>
    %63 = tpu.matmul %60, %62, %cst_45 {dimension_numbers = #tpu.dot_dimension_numbers<[1], [0], [0], [1], [0, 0, 1, 1], [], []>} : vector<64x12xbf16>, vector<12x4xbf16>, vector<64x4xf32> -> vector<64x4xf32>
    %64 = arith.addf %55, %63 : vector<64x4xf32>
    %c2_i32_46 = arith.constant 2 : i32
    %65 = arith.addi %0, %c2_i32_46 : i32
    %c0_47 = arith.constant 0 : index
    %66 = arith.index_cast %65 : i32 to index
    %c1_48 = arith.constant 1 : index
    %c0_49 = arith.constant 0 : index
    %67 = vector.load %arg2[%c0_47, %66, %c1_48, %c0_49] : memref<1x10x10x12xbf16, #tpu.memory_space<vmem>>, vector<1x8x8x12xbf16>
    %68 = vector.shape_cast %67 : vector<1x8x8x12xbf16> to vector<8x8x12xbf16>
    %69 = vector.shape_cast %68 : vector<8x8x12xbf16> to vector<64x12xbf16>
    %c7 = arith.constant 7 : index
    %c0_50 = arith.constant 0 : index
    %c0_51 = arith.constant 0 : index
    %70 = vector.load %arg3[%c7, %c0_50, %c0_51] : memref<9x12x4xbf16, #tpu.memory_space<vmem>>, vector<1x12x4xbf16>
    %71 = vector.shape_cast %70 : vector<1x12x4xbf16> to vector<12x4xbf16>
    %cst_52 = arith.constant dense<0.000000e+00> : vector<64x4xf32>
    %72 = tpu.matmul %69, %71, %cst_52 {dimension_numbers = #tpu.dot_dimension_numbers<[1], [0], [0], [1], [0, 0, 1, 1], [], []>} : vector<64x12xbf16>, vector<12x4xbf16>, vector<64x4xf32> -> vector<64x4xf32>
    %73 = arith.addf %64, %72 : vector<64x4xf32>
    %c2_i32_53 = arith.constant 2 : i32
    %74 = arith.addi %0, %c2_i32_53 : i32
    %c0_54 = arith.constant 0 : index
    %75 = arith.index_cast %74 : i32 to index
    %c2_55 = arith.constant 2 : index
    %c0_56 = arith.constant 0 : index
    %76 = vector.load %arg2[%c0_54, %75, %c2_55, %c0_56] : memref<1x10x10x12xbf16, #tpu.memory_space<vmem>>, vector<1x8x8x12xbf16>
    %77 = vector.shape_cast %76 : vector<1x8x8x12xbf16> to vector<8x8x12xbf16>
    %78 = vector.shape_cast %77 : vector<8x8x12xbf16> to vector<64x12xbf16>
    %c8 = arith.constant 8 : index
    %c0_57 = arith.constant 0 : index
    %c0_58 = arith.constant 0 : index
    %79 = vector.load %arg3[%c8, %c0_57, %c0_58] : memref<9x12x4xbf16, #tpu.memory_space<vmem>>, vector<1x12x4xbf16>
    %80 = vector.shape_cast %79 : vector<1x12x4xbf16> to vector<12x4xbf16>
    %cst_59 = arith.constant dense<0.000000e+00> : vector<64x4xf32>
    %81 = tpu.matmul %78, %80, %cst_59 {dimension_numbers = #tpu.dot_dimension_numbers<[1], [0], [0], [1], [0, 0, 1, 1], [], []>} : vector<64x12xbf16>, vector<12x4xbf16>, vector<64x4xf32> -> vector<64x4xf32>
    %82 = arith.addf %73, %81 : vector<64x4xf32>
    %c0_60 = arith.constant 0 : index
    %c0_61 = arith.constant 0 : index
    %83 = vector.load %arg4[%c0_60, %c0_61] : memref<1x4xf32, #tpu.memory_space<vmem>>, vector<1x4xf32>
    %84 = vector.broadcast %83 : vector<1x4xf32> to vector<64x4xf32>
    %85 = arith.addf %82, %84 : vector<64x4xf32>
    %86 = vector.shape_cast %85 : vector<64x4xf32> to vector<8x8x4xf32>
    %c0_62 = arith.constant 0 : index
    %c0_63 = arith.constant 0 : index
    %c0_64 = arith.constant 0 : index
    %c0_65 = arith.constant 0 : index
    %87 = vector.load %arg5[%c0_62, %c0_63, %c0_64, %c0_65] : memref<1x8x8x4xf32, #tpu.memory_space<vmem>>, vector<1x8x8x4xf32>
    %88 = vector.shape_cast %87 : vector<1x8x8x4xf32> to vector<8x8x4xf32>
    %89 = vector.shape_cast %86 : vector<8x8x4xf32> to vector<1x8x8x4xf32>
    tpu.vector_store %arg5[%c0_62, %c0_63, %c0_64, %c0_65], %89 {strides = array<i32>} : memref<1x8x8x4xf32, #tpu.memory_space<vmem>>, vector<1x8x8x4xf32>,
    return
  }
  func.func @transform_0(%arg0: i32, %arg1: i32) -> (i32, i32, i32, i32) {
    %c0_i32 = arith.constant 0 : i32
    %c0_i32_0 = arith.constant 0 : i32
    %c0_i32_1 = arith.constant 0 : i32
    %c0_i32_2 = arith.constant 0 : i32
    return %arg0, %c0_i32, %c0_i32_0, %c0_i32_1 : i32, i32, i32, i32
  }
  func.func @transform_1(%arg0: i32, %arg1: i32) -> (i32, i32, i32) {
    %c0_i32 = arith.constant 0 : i32
    %c0_i32_0 = arith.constant 0 : i32
    %c0_i32_1 = arith.constant 0 : i32
    %c0_i32_2 = arith.constant 0 : i32
    return %c0_i32, %c0_i32_0, %c0_i32_1 : i32, i32, i32
  }
  func.func @transform_2(%arg0: i32, %arg1: i32) -> (i32, i32) {
    %c0_i32 = arith.constant 0 : i32
    %c0_i32_0 = arith.constant 0 : i32
    %c0_i32_1 = arith.constant 0 : i32
    return %c0_i32, %c0_i32_0 : i32, i32
  }
  func.func @transform_3(%arg0: i32, %arg1: i32) -> (i32, i32, i32, i32) {
    %c0_i32 = arith.constant 0 : i32
    %c0_i32_0 = arith.constant 0 : i32
    %c0_i32_1 = arith.constant 0 : i32
    return %arg0, %arg1, %c0_i32, %c0_i32_0 : i32, i32, i32, i32
  }
}

module attributes {stable_mosaic.version = 11 : i64} {
  func.func @_mm_bias_kernel(%arg0: i32, %arg1: memref<128x416xbf16, #tpu.memory_space<vmem>>, %arg2: memref<416x8xbf16, #tpu.memory_space<vmem>>, %arg3: memref<1x8xf32, #tpu.memory_space<vmem>>, %arg4: memref<128x8xbf16, #tpu.memory_space<vmem>>) attributes {dimension_semantics = [#tpu.dimension_semantics<parallel>], iteration_bounds = array<i64: 1>, scalar_prefetch = 0 : i64, scratch_operands = 0 : i64, tpu.core_type = #tpu.core_type<tc>, window_params = [{transform_indices = @transform_0, window_bounds = array<i64: 128, 416>}, {pipeline_mode = #tpu.pipeline_mode<synchronous>, transform_indices = @transform_1, window_bounds = array<i64: 416, 8>}, {pipeline_mode = #tpu.pipeline_mode<synchronous>, transform_indices = @transform_2, window_bounds = array<i64: 1, 8>}, {transform_indices = @transform_3, window_bounds = array<i64: 128, 8>}]} {
    %c0 = arith.constant 0 : index
    %c0_0 = arith.constant 0 : index
    %0 = vector.load %arg1[%c0, %c0_0] : memref<128x416xbf16, #tpu.memory_space<vmem>>, vector<128x416xbf16>
    %c0_1 = arith.constant 0 : index
    %c0_2 = arith.constant 0 : index
    %1 = vector.load %arg2[%c0_1, %c0_2] : memref<416x8xbf16, #tpu.memory_space<vmem>>, vector<416x8xbf16>
    %cst = arith.constant dense<0.000000e+00> : vector<128x8xf32>
    %2 = tpu.matmul %0, %1, %cst {dimension_numbers = #tpu.dot_dimension_numbers<[1], [0], [0], [1], [0, 0, 1, 1], [], []>} : vector<128x416xbf16>, vector<416x8xbf16>, vector<128x8xf32> -> vector<128x8xf32>
    %c0_3 = arith.constant 0 : index
    %c0_4 = arith.constant 0 : index
    %3 = vector.load %arg3[%c0_3, %c0_4] : memref<1x8xf32, #tpu.memory_space<vmem>>, vector<1x8xf32>
    %4 = vector.broadcast %3 : vector<1x8xf32> to vector<128x8xf32>
    %5 = arith.addf %2, %4 : vector<128x8xf32>
    %cst_5 = arith.constant 0.000000e+00 : f32
    %6 = vector.broadcast %cst_5 : f32 to vector<128x8xf32>
    %7 = arith.maximumf %5, %6 : vector<128x8xf32>
    %8 = arith.truncf %7 : vector<128x8xf32> to vector<128x8xbf16>
    %c0_6 = arith.constant 0 : index
    %c0_7 = arith.constant 0 : index
    %9 = vector.load %arg4[%c0_6, %c0_7] : memref<128x8xbf16, #tpu.memory_space<vmem>>, vector<128x8xbf16>
    tpu.vector_store %arg4[%c0_6, %c0_7], %8 {strides = array<i32>} : memref<128x8xbf16, #tpu.memory_space<vmem>>, vector<128x8xbf16>,
    return
  }
  func.func @transform_0(%arg0: i32) -> (i32, i32) {
    %c0_i32 = arith.constant 0 : i32
    %c0_i32_0 = arith.constant 0 : i32
    return %arg0, %c0_i32 : i32, i32
  }
  func.func @transform_1(%arg0: i32) -> (i32, i32) {
    %c0_i32 = arith.constant 0 : i32
    %c0_i32_0 = arith.constant 0 : i32
    %c0_i32_1 = arith.constant 0 : i32
    return %c0_i32, %c0_i32_0 : i32, i32
  }
  func.func @transform_2(%arg0: i32) -> (i32, i32) {
    %c0_i32 = arith.constant 0 : i32
    %c0_i32_0 = arith.constant 0 : i32
    %c0_i32_1 = arith.constant 0 : i32
    return %c0_i32, %c0_i32_0 : i32, i32
  }
  func.func @transform_3(%arg0: i32) -> (i32, i32) {
    %c0_i32 = arith.constant 0 : i32
    %c0_i32_0 = arith.constant 0 : i32
    return %arg0, %c0_i32 : i32, i32
  }
}

module attributes {stable_mosaic.version = 11 : i64} {
  func.func @_mm_bias_kernel(%arg0: i32, %arg1: memref<32x128xbf16, #tpu.memory_space<vmem>>, %arg2: memref<128x16xbf16, #tpu.memory_space<vmem>>, %arg3: memref<1x16xf32, #tpu.memory_space<vmem>>, %arg4: memref<32x16xbf16, #tpu.memory_space<vmem>>) attributes {dimension_semantics = [#tpu.dimension_semantics<parallel>], iteration_bounds = array<i64: 1>, scalar_prefetch = 0 : i64, scratch_operands = 0 : i64, tpu.core_type = #tpu.core_type<tc>, window_params = [{transform_indices = @transform_0, window_bounds = array<i64: 32, 128>}, {pipeline_mode = #tpu.pipeline_mode<synchronous>, transform_indices = @transform_1, window_bounds = array<i64: 128, 16>}, {pipeline_mode = #tpu.pipeline_mode<synchronous>, transform_indices = @transform_2, window_bounds = array<i64: 1, 16>}, {transform_indices = @transform_3, window_bounds = array<i64: 32, 16>}]} {
    %c0 = arith.constant 0 : index
    %c0_0 = arith.constant 0 : index
    %0 = vector.load %arg1[%c0, %c0_0] : memref<32x128xbf16, #tpu.memory_space<vmem>>, vector<32x128xbf16>
    %c0_1 = arith.constant 0 : index
    %c0_2 = arith.constant 0 : index
    %1 = vector.load %arg2[%c0_1, %c0_2] : memref<128x16xbf16, #tpu.memory_space<vmem>>, vector<128x16xbf16>
    %cst = arith.constant dense<0.000000e+00> : vector<32x16xf32>
    %2 = tpu.matmul %0, %1, %cst {dimension_numbers = #tpu.dot_dimension_numbers<[1], [0], [0], [1], [0, 0, 1, 1], [], []>} : vector<32x128xbf16>, vector<128x16xbf16>, vector<32x16xf32> -> vector<32x16xf32>
    %c0_3 = arith.constant 0 : index
    %c0_4 = arith.constant 0 : index
    %3 = vector.load %arg3[%c0_3, %c0_4] : memref<1x16xf32, #tpu.memory_space<vmem>>, vector<1x16xf32>
    %4 = vector.broadcast %3 : vector<1x16xf32> to vector<32x16xf32>
    %5 = arith.addf %2, %4 : vector<32x16xf32>
    %cst_5 = arith.constant 0.000000e+00 : f32
    %6 = vector.broadcast %cst_5 : f32 to vector<32x16xf32>
    %7 = arith.maximumf %5, %6 : vector<32x16xf32>
    %8 = arith.truncf %7 : vector<32x16xf32> to vector<32x16xbf16>
    %c0_6 = arith.constant 0 : index
    %c0_7 = arith.constant 0 : index
    %9 = vector.load %arg4[%c0_6, %c0_7] : memref<32x16xbf16, #tpu.memory_space<vmem>>, vector<32x16xbf16>
    tpu.vector_store %arg4[%c0_6, %c0_7], %8 {strides = array<i32>} : memref<32x16xbf16, #tpu.memory_space<vmem>>, vector<32x16xbf16>,
    return
  }
  func.func @transform_0(%arg0: i32) -> (i32, i32) {
    %c0_i32 = arith.constant 0 : i32
    %c0_i32_0 = arith.constant 0 : i32
    return %arg0, %c0_i32 : i32, i32
  }
  func.func @transform_1(%arg0: i32) -> (i32, i32) {
    %c0_i32 = arith.constant 0 : i32
    %c0_i32_0 = arith.constant 0 : i32
    %c0_i32_1 = arith.constant 0 : i32
    return %c0_i32, %c0_i32_0 : i32, i32
  }
  func.func @transform_2(%arg0: i32) -> (i32, i32) {
    %c0_i32 = arith.constant 0 : i32
    %c0_i32_0 = arith.constant 0 : i32
    %c0_i32_1 = arith.constant 0 : i32
    return %c0_i32, %c0_i32_0 : i32, i32
  }
  func.func @transform_3(%arg0: i32) -> (i32, i32) {
    %c0_i32 = arith.constant 0 : i32
    %c0_i32_0 = arith.constant 0 : i32
    return %arg0, %c0_i32 : i32, i32
  }
}

module attributes {stable_mosaic.version = 11 : i64} {
  func.func @_conv3x3_kernel(%arg0: i32, %arg1: i32, %arg2: memref<1x4x4x32xbf16, #tpu.memory_space<vmem>>, %arg3: memref<9x32x32xbf16, #tpu.memory_space<vmem>>, %arg4: memref<1x32xf32, #tpu.memory_space<vmem>>, %arg5: memref<1x2x2x32xbf16, #tpu.memory_space<vmem>>) attributes {dimension_semantics = [#tpu.dimension_semantics<parallel>, #tpu.dimension_semantics<arbitrary>], iteration_bounds = array<i64: 2, 1>, scalar_prefetch = 0 : i64, scratch_operands = 0 : i64, tpu.core_type = #tpu.core_type<tc>, window_params = [{transform_indices = @transform_0, window_bounds = array<i64: 1, 4, 4, 32>}, {pipeline_mode = #tpu.pipeline_mode<synchronous>, transform_indices = @transform_1, window_bounds = array<i64: 9, 32, 32>}, {pipeline_mode = #tpu.pipeline_mode<synchronous>, transform_indices = @transform_2, window_bounds = array<i64: 1, 32>}, {transform_indices = @transform_3, window_bounds = array<i64: 1, 2, 2, 32>}]} {
    %c2_i32 = arith.constant 2 : i32
    %0 = arith.muli %arg1, %c2_i32 : i32
    %cst = arith.constant 0.000000e+00 : f32
    %1 = vector.broadcast %cst : f32 to vector<4x32xf32>
    %c0_i32 = arith.constant 0 : i32
    %2 = arith.addi %0, %c0_i32 : i32
    %c0 = arith.constant 0 : index
    %3 = arith.index_cast %2 : i32 to index
    %c0_0 = arith.constant 0 : index
    %c0_1 = arith.constant 0 : index
    %4 = vector.load %arg2[%c0, %3, %c0_0, %c0_1] : memref<1x4x4x32xbf16, #tpu.memory_space<vmem>>, vector<1x2x2x32xbf16>
    %5 = vector.shape_cast %4 : vector<1x2x2x32xbf16> to vector<2x2x32xbf16>
    %6 = vector.shape_cast %5 : vector<2x2x32xbf16> to vector<4x32xbf16>
    %c0_2 = arith.constant 0 : index
    %c0_3 = arith.constant 0 : index
    %c0_4 = arith.constant 0 : index
    %7 = vector.load %arg3[%c0_2, %c0_3, %c0_4] : memref<9x32x32xbf16, #tpu.memory_space<vmem>>, vector<1x32x32xbf16>
    %8 = vector.shape_cast %7 : vector<1x32x32xbf16> to vector<32x32xbf16>
    %cst_5 = arith.constant dense<0.000000e+00> : vector<4x32xf32>
    %9 = tpu.matmul %6, %8, %cst_5 {dimension_numbers = #tpu.dot_dimension_numbers<[1], [0], [0], [1], [0, 0, 1, 1], [], []>} : vector<4x32xbf16>, vector<32x32xbf16>, vector<4x32xf32> -> vector<4x32xf32>
    %10 = arith.addf %1, %9 : vector<4x32xf32>
    %c0_i32_6 = arith.constant 0 : i32
    %11 = arith.addi %0, %c0_i32_6 : i32
    %c0_7 = arith.constant 0 : index
    %12 = arith.index_cast %11 : i32 to index
    %c1 = arith.constant 1 : index
    %c0_8 = arith.constant 0 : index
    %13 = vector.load %arg2[%c0_7, %12, %c1, %c0_8] : memref<1x4x4x32xbf16, #tpu.memory_space<vmem>>, vector<1x2x2x32xbf16>
    %14 = vector.shape_cast %13 : vector<1x2x2x32xbf16> to vector<2x2x32xbf16>
    %15 = vector.shape_cast %14 : vector<2x2x32xbf16> to vector<4x32xbf16>
    %c1_9 = arith.constant 1 : index
    %c0_10 = arith.constant 0 : index
    %c0_11 = arith.constant 0 : index
    %16 = vector.load %arg3[%c1_9, %c0_10, %c0_11] : memref<9x32x32xbf16, #tpu.memory_space<vmem>>, vector<1x32x32xbf16>
    %17 = vector.shape_cast %16 : vector<1x32x32xbf16> to vector<32x32xbf16>
    %cst_12 = arith.constant dense<0.000000e+00> : vector<4x32xf32>
    %18 = tpu.matmul %15, %17, %cst_12 {dimension_numbers = #tpu.dot_dimension_numbers<[1], [0], [0], [1], [0, 0, 1, 1], [], []>} : vector<4x32xbf16>, vector<32x32xbf16>, vector<4x32xf32> -> vector<4x32xf32>
    %19 = arith.addf %10, %18 : vector<4x32xf32>
    %c0_i32_13 = arith.constant 0 : i32
    %20 = arith.addi %0, %c0_i32_13 : i32
    %c0_14 = arith.constant 0 : index
    %21 = arith.index_cast %20 : i32 to index
    %c2 = arith.constant 2 : index
    %c0_15 = arith.constant 0 : index
    %22 = vector.load %arg2[%c0_14, %21, %c2, %c0_15] : memref<1x4x4x32xbf16, #tpu.memory_space<vmem>>, vector<1x2x2x32xbf16>
    %23 = vector.shape_cast %22 : vector<1x2x2x32xbf16> to vector<2x2x32xbf16>
    %24 = vector.shape_cast %23 : vector<2x2x32xbf16> to vector<4x32xbf16>
    %c2_16 = arith.constant 2 : index
    %c0_17 = arith.constant 0 : index
    %c0_18 = arith.constant 0 : index
    %25 = vector.load %arg3[%c2_16, %c0_17, %c0_18] : memref<9x32x32xbf16, #tpu.memory_space<vmem>>, vector<1x32x32xbf16>
    %26 = vector.shape_cast %25 : vector<1x32x32xbf16> to vector<32x32xbf16>
    %cst_19 = arith.constant dense<0.000000e+00> : vector<4x32xf32>
    %27 = tpu.matmul %24, %26, %cst_19 {dimension_numbers = #tpu.dot_dimension_numbers<[1], [0], [0], [1], [0, 0, 1, 1], [], []>} : vector<4x32xbf16>, vector<32x32xbf16>, vector<4x32xf32> -> vector<4x32xf32>
    %28 = arith.addf %19, %27 : vector<4x32xf32>
    %c1_i32 = arith.constant 1 : i32
    %29 = arith.addi %0, %c1_i32 : i32
    %c0_20 = arith.constant 0 : index
    %30 = arith.index_cast %29 : i32 to index
    %c0_21 = arith.constant 0 : index
    %c0_22 = arith.constant 0 : index
    %31 = vector.load %arg2[%c0_20, %30, %c0_21, %c0_22] : memref<1x4x4x32xbf16, #tpu.memory_space<vmem>>, vector<1x2x2x32xbf16>
    %32 = vector.shape_cast %31 : vector<1x2x2x32xbf16> to vector<2x2x32xbf16>
    %33 = vector.shape_cast %32 : vector<2x2x32xbf16> to vector<4x32xbf16>
    %c3 = arith.constant 3 : index
    %c0_23 = arith.constant 0 : index
    %c0_24 = arith.constant 0 : index
    %34 = vector.load %arg3[%c3, %c0_23, %c0_24] : memref<9x32x32xbf16, #tpu.memory_space<vmem>>, vector<1x32x32xbf16>
    %35 = vector.shape_cast %34 : vector<1x32x32xbf16> to vector<32x32xbf16>
    %cst_25 = arith.constant dense<0.000000e+00> : vector<4x32xf32>
    %36 = tpu.matmul %33, %35, %cst_25 {dimension_numbers = #tpu.dot_dimension_numbers<[1], [0], [0], [1], [0, 0, 1, 1], [], []>} : vector<4x32xbf16>, vector<32x32xbf16>, vector<4x32xf32> -> vector<4x32xf32>
    %37 = arith.addf %28, %36 : vector<4x32xf32>
    %c1_i32_26 = arith.constant 1 : i32
    %38 = arith.addi %0, %c1_i32_26 : i32
    %c0_27 = arith.constant 0 : index
    %39 = arith.index_cast %38 : i32 to index
    %c1_28 = arith.constant 1 : index
    %c0_29 = arith.constant 0 : index
    %40 = vector.load %arg2[%c0_27, %39, %c1_28, %c0_29] : memref<1x4x4x32xbf16, #tpu.memory_space<vmem>>, vector<1x2x2x32xbf16>
    %41 = vector.shape_cast %40 : vector<1x2x2x32xbf16> to vector<2x2x32xbf16>
    %42 = vector.shape_cast %41 : vector<2x2x32xbf16> to vector<4x32xbf16>
    %c4 = arith.constant 4 : index
    %c0_30 = arith.constant 0 : index
    %c0_31 = arith.constant 0 : index
    %43 = vector.load %arg3[%c4, %c0_30, %c0_31] : memref<9x32x32xbf16, #tpu.memory_space<vmem>>, vector<1x32x32xbf16>
    %44 = vector.shape_cast %43 : vector<1x32x32xbf16> to vector<32x32xbf16>
    %cst_32 = arith.constant dense<0.000000e+00> : vector<4x32xf32>
    %45 = tpu.matmul %42, %44, %cst_32 {dimension_numbers = #tpu.dot_dimension_numbers<[1], [0], [0], [1], [0, 0, 1, 1], [], []>} : vector<4x32xbf16>, vector<32x32xbf16>, vector<4x32xf32> -> vector<4x32xf32>
    %46 = arith.addf %37, %45 : vector<4x32xf32>
    %c1_i32_33 = arith.constant 1 : i32
    %47 = arith.addi %0, %c1_i32_33 : i32
    %c0_34 = arith.constant 0 : index
    %48 = arith.index_cast %47 : i32 to index
    %c2_35 = arith.constant 2 : index
    %c0_36 = arith.constant 0 : index
    %49 = vector.load %arg2[%c0_34, %48, %c2_35, %c0_36] : memref<1x4x4x32xbf16, #tpu.memory_space<vmem>>, vector<1x2x2x32xbf16>
    %50 = vector.shape_cast %49 : vector<1x2x2x32xbf16> to vector<2x2x32xbf16>
    %51 = vector.shape_cast %50 : vector<2x2x32xbf16> to vector<4x32xbf16>
    %c5 = arith.constant 5 : index
    %c0_37 = arith.constant 0 : index
    %c0_38 = arith.constant 0 : index
    %52 = vector.load %arg3[%c5, %c0_37, %c0_38] : memref<9x32x32xbf16, #tpu.memory_space<vmem>>, vector<1x32x32xbf16>
    %53 = vector.shape_cast %52 : vector<1x32x32xbf16> to vector<32x32xbf16>
    %cst_39 = arith.constant dense<0.000000e+00> : vector<4x32xf32>
    %54 = tpu.matmul %51, %53, %cst_39 {dimension_numbers = #tpu.dot_dimension_numbers<[1], [0], [0], [1], [0, 0, 1, 1], [], []>} : vector<4x32xbf16>, vector<32x32xbf16>, vector<4x32xf32> -> vector<4x32xf32>
    %55 = arith.addf %46, %54 : vector<4x32xf32>
    %c2_i32_40 = arith.constant 2 : i32
    %56 = arith.addi %0, %c2_i32_40 : i32
    %c0_41 = arith.constant 0 : index
    %57 = arith.index_cast %56 : i32 to index
    %c0_42 = arith.constant 0 : index
    %c0_43 = arith.constant 0 : index
    %58 = vector.load %arg2[%c0_41, %57, %c0_42, %c0_43] : memref<1x4x4x32xbf16, #tpu.memory_space<vmem>>, vector<1x2x2x32xbf16>
    %59 = vector.shape_cast %58 : vector<1x2x2x32xbf16> to vector<2x2x32xbf16>
    %60 = vector.shape_cast %59 : vector<2x2x32xbf16> to vector<4x32xbf16>
    %c6 = arith.constant 6 : index
    %c0_44 = arith.constant 0 : index
    %c0_45 = arith.constant 0 : index
    %61 = vector.load %arg3[%c6, %c0_44, %c0_45] : memref<9x32x32xbf16, #tpu.memory_space<vmem>>, vector<1x32x32xbf16>
    %62 = vector.shape_cast %61 : vector<1x32x32xbf16> to vector<32x32xbf16>
    %cst_46 = arith.constant dense<0.000000e+00> : vector<4x32xf32>
    %63 = tpu.matmul %60, %62, %cst_46 {dimension_numbers = #tpu.dot_dimension_numbers<[1], [0], [0], [1], [0, 0, 1, 1], [], []>} : vector<4x32xbf16>, vector<32x32xbf16>, vector<4x32xf32> -> vector<4x32xf32>
    %64 = arith.addf %55, %63 : vector<4x32xf32>
    %c2_i32_47 = arith.constant 2 : i32
    %65 = arith.addi %0, %c2_i32_47 : i32
    %c0_48 = arith.constant 0 : index
    %66 = arith.index_cast %65 : i32 to index
    %c1_49 = arith.constant 1 : index
    %c0_50 = arith.constant 0 : index
    %67 = vector.load %arg2[%c0_48, %66, %c1_49, %c0_50] : memref<1x4x4x32xbf16, #tpu.memory_space<vmem>>, vector<1x2x2x32xbf16>
    %68 = vector.shape_cast %67 : vector<1x2x2x32xbf16> to vector<2x2x32xbf16>
    %69 = vector.shape_cast %68 : vector<2x2x32xbf16> to vector<4x32xbf16>
    %c7 = arith.constant 7 : index
    %c0_51 = arith.constant 0 : index
    %c0_52 = arith.constant 0 : index
    %70 = vector.load %arg3[%c7, %c0_51, %c0_52] : memref<9x32x32xbf16, #tpu.memory_space<vmem>>, vector<1x32x32xbf16>
    %71 = vector.shape_cast %70 : vector<1x32x32xbf16> to vector<32x32xbf16>
    %cst_53 = arith.constant dense<0.000000e+00> : vector<4x32xf32>
    %72 = tpu.matmul %69, %71, %cst_53 {dimension_numbers = #tpu.dot_dimension_numbers<[1], [0], [0], [1], [0, 0, 1, 1], [], []>} : vector<4x32xbf16>, vector<32x32xbf16>, vector<4x32xf32> -> vector<4x32xf32>
    %73 = arith.addf %64, %72 : vector<4x32xf32>
    %c2_i32_54 = arith.constant 2 : i32
    %74 = arith.addi %0, %c2_i32_54 : i32
    %c0_55 = arith.constant 0 : index
    %75 = arith.index_cast %74 : i32 to index
    %c2_56 = arith.constant 2 : index
    %c0_57 = arith.constant 0 : index
    %76 = vector.load %arg2[%c0_55, %75, %c2_56, %c0_57] : memref<1x4x4x32xbf16, #tpu.memory_space<vmem>>, vector<1x2x2x32xbf16>
    %77 = vector.shape_cast %76 : vector<1x2x2x32xbf16> to vector<2x2x32xbf16>
    %78 = vector.shape_cast %77 : vector<2x2x32xbf16> to vector<4x32xbf16>
    %c8 = arith.constant 8 : index
    %c0_58 = arith.constant 0 : index
    %c0_59 = arith.constant 0 : index
    %79 = vector.load %arg3[%c8, %c0_58, %c0_59] : memref<9x32x32xbf16, #tpu.memory_space<vmem>>, vector<1x32x32xbf16>
    %80 = vector.shape_cast %79 : vector<1x32x32xbf16> to vector<32x32xbf16>
    %cst_60 = arith.constant dense<0.000000e+00> : vector<4x32xf32>
    %81 = tpu.matmul %78, %80, %cst_60 {dimension_numbers = #tpu.dot_dimension_numbers<[1], [0], [0], [1], [0, 0, 1, 1], [], []>} : vector<4x32xbf16>, vector<32x32xbf16>, vector<4x32xf32> -> vector<4x32xf32>
    %82 = arith.addf %73, %81 : vector<4x32xf32>
    %c0_61 = arith.constant 0 : index
    %c0_62 = arith.constant 0 : index
    %83 = vector.load %arg4[%c0_61, %c0_62] : memref<1x32xf32, #tpu.memory_space<vmem>>, vector<1x32xf32>
    %84 = vector.broadcast %83 : vector<1x32xf32> to vector<4x32xf32>
    %85 = arith.addf %82, %84 : vector<4x32xf32>
    %cst_63 = arith.constant 0.000000e+00 : f32
    %86 = vector.broadcast %cst_63 : f32 to vector<4x32xf32>
    %87 = arith.maximumf %85, %86 : vector<4x32xf32>
    %88 = vector.shape_cast %87 : vector<4x32xf32> to vector<2x2x32xf32>
    %89 = arith.truncf %88 : vector<2x2x32xf32> to vector<2x2x32xbf16>
    %c0_64 = arith.constant 0 : index
    %c0_65 = arith.constant 0 : index
    %c0_66 = arith.constant 0 : index
    %c0_67 = arith.constant 0 : index
    %90 = vector.load %arg5[%c0_64, %c0_65, %c0_66, %c0_67] : memref<1x2x2x32xbf16, #tpu.memory_space<vmem>>, vector<1x2x2x32xbf16>
    %91 = vector.shape_cast %90 : vector<1x2x2x32xbf16> to vector<2x2x32xbf16>
    %92 = vector.shape_cast %89 : vector<2x2x32xbf16> to vector<1x2x2x32xbf16>
    tpu.vector_store %arg5[%c0_64, %c0_65, %c0_66, %c0_67], %92 {strides = array<i32>} : memref<1x2x2x32xbf16, #tpu.memory_space<vmem>>, vector<1x2x2x32xbf16>,
    return
  }
  func.func @transform_0(%arg0: i32, %arg1: i32) -> (i32, i32, i32, i32) {
    %c0_i32 = arith.constant 0 : i32
    %c0_i32_0 = arith.constant 0 : i32
    %c0_i32_1 = arith.constant 0 : i32
    %c0_i32_2 = arith.constant 0 : i32
    return %arg0, %c0_i32, %c0_i32_0, %c0_i32_1 : i32, i32, i32, i32
  }
  func.func @transform_1(%arg0: i32, %arg1: i32) -> (i32, i32, i32) {
    %c0_i32 = arith.constant 0 : i32
    %c0_i32_0 = arith.constant 0 : i32
    %c0_i32_1 = arith.constant 0 : i32
    %c0_i32_2 = arith.constant 0 : i32
    return %c0_i32, %c0_i32_0, %c0_i32_1 : i32, i32, i32
  }
  func.func @transform_2(%arg0: i32, %arg1: i32) -> (i32, i32) {
    %c0_i32 = arith.constant 0 : i32
    %c0_i32_0 = arith.constant 0 : i32
    %c0_i32_1 = arith.constant 0 : i32
    return %c0_i32, %c0_i32_0 : i32, i32
  }
  func.func @transform_3(%arg0: i32, %arg1: i32) -> (i32, i32, i32, i32) {
    %c0_i32 = arith.constant 0 : i32
    %c0_i32_0 = arith.constant 0 : i32
    %c0_i32_1 = arith.constant 0 : i32
    return %arg0, %arg1, %c0_i32, %c0_i32_0 : i32, i32, i32, i32
  }
}

module attributes {stable_mosaic.version = 11 : i64} {
  func.func @_mm_bias_kernel(%arg0: i32, %arg1: memref<8x256xbf16, #tpu.memory_space<vmem>>, %arg2: memref<256x32xbf16, #tpu.memory_space<vmem>>, %arg3: memref<1x32xf32, #tpu.memory_space<vmem>>, %arg4: memref<8x32xbf16, #tpu.memory_space<vmem>>) attributes {dimension_semantics = [#tpu.dimension_semantics<parallel>], iteration_bounds = array<i64: 1>, scalar_prefetch = 0 : i64, scratch_operands = 0 : i64, tpu.core_type = #tpu.core_type<tc>, window_params = [{transform_indices = @transform_0, window_bounds = array<i64: 8, 256>}, {pipeline_mode = #tpu.pipeline_mode<synchronous>, transform_indices = @transform_1, window_bounds = array<i64: 256, 32>}, {pipeline_mode = #tpu.pipeline_mode<synchronous>, transform_indices = @transform_2, window_bounds = array<i64: 1, 32>}, {transform_indices = @transform_3, window_bounds = array<i64: 8, 32>}]} {
    %c0 = arith.constant 0 : index
    %c0_0 = arith.constant 0 : index
    %0 = vector.load %arg1[%c0, %c0_0] : memref<8x256xbf16, #tpu.memory_space<vmem>>, vector<8x256xbf16>
    %c0_1 = arith.constant 0 : index
    %c0_2 = arith.constant 0 : index
    %1 = vector.load %arg2[%c0_1, %c0_2] : memref<256x32xbf16, #tpu.memory_space<vmem>>, vector<256x32xbf16>
    %cst = arith.constant dense<0.000000e+00> : vector<8x32xf32>
    %2 = tpu.matmul %0, %1, %cst {dimension_numbers = #tpu.dot_dimension_numbers<[1], [0], [0], [1], [0, 0, 1, 1], [], []>} : vector<8x256xbf16>, vector<256x32xbf16>, vector<8x32xf32> -> vector<8x32xf32>
    %c0_3 = arith.constant 0 : index
    %c0_4 = arith.constant 0 : index
    %3 = vector.load %arg3[%c0_3, %c0_4] : memref<1x32xf32, #tpu.memory_space<vmem>>, vector<1x32xf32>
    %4 = vector.broadcast %3 : vector<1x32xf32> to vector<8x32xf32>
    %5 = arith.addf %2, %4 : vector<8x32xf32>
    %cst_5 = arith.constant 0.000000e+00 : f32
    %6 = vector.broadcast %cst_5 : f32 to vector<8x32xf32>
    %7 = arith.maximumf %5, %6 : vector<8x32xf32>
    %8 = arith.truncf %7 : vector<8x32xf32> to vector<8x32xbf16>
    %c0_6 = arith.constant 0 : index
    %c0_7 = arith.constant 0 : index
    %9 = vector.load %arg4[%c0_6, %c0_7] : memref<8x32xbf16, #tpu.memory_space<vmem>>, vector<8x32xbf16>
    tpu.vector_store %arg4[%c0_6, %c0_7], %8 {strides = array<i32>} : memref<8x32xbf16, #tpu.memory_space<vmem>>, vector<8x32xbf16>,
    return
  }
  func.func @transform_0(%arg0: i32) -> (i32, i32) {
    %c0_i32 = arith.constant 0 : i32
    %c0_i32_0 = arith.constant 0 : i32
    return %arg0, %c0_i32 : i32, i32
  }
  func.func @transform_1(%arg0: i32) -> (i32, i32) {
    %c0_i32 = arith.constant 0 : i32
    %c0_i32_0 = arith.constant 0 : i32
    %c0_i32_1 = arith.constant 0 : i32
    return %c0_i32, %c0_i32_0 : i32, i32
  }
  func.func @transform_2(%arg0: i32) -> (i32, i32) {
    %c0_i32 = arith.constant 0 : i32
    %c0_i32_0 = arith.constant 0 : i32
    %c0_i32_1 = arith.constant 0 : i32
    return %c0_i32, %c0_i32_0 : i32, i32
  }
  func.func @transform_3(%arg0: i32) -> (i32, i32) {
    %c0_i32 = arith.constant 0 : i32
    %c0_i32_0 = arith.constant 0 : i32
    return %arg0, %c0_i32 : i32, i32
  }
}

module attributes {stable_mosaic.version = 11 : i64} {
  func.func @_conv3x3_kernel(%arg0: i32, %arg1: i32, %arg2: memref<1x6x6x48xbf16, #tpu.memory_space<vmem>>, %arg3: memref<9x48x16xbf16, #tpu.memory_space<vmem>>, %arg4: memref<1x16xf32, #tpu.memory_space<vmem>>, %arg5: memref<1x4x4x16xbf16, #tpu.memory_space<vmem>>) attributes {dimension_semantics = [#tpu.dimension_semantics<parallel>, #tpu.dimension_semantics<arbitrary>], iteration_bounds = array<i64: 2, 1>, scalar_prefetch = 0 : i64, scratch_operands = 0 : i64, tpu.core_type = #tpu.core_type<tc>, window_params = [{transform_indices = @transform_0, window_bounds = array<i64: 1, 6, 6, 48>}, {pipeline_mode = #tpu.pipeline_mode<synchronous>, transform_indices = @transform_1, window_bounds = array<i64: 9, 48, 16>}, {pipeline_mode = #tpu.pipeline_mode<synchronous>, transform_indices = @transform_2, window_bounds = array<i64: 1, 16>}, {transform_indices = @transform_3, window_bounds = array<i64: 1, 4, 4, 16>}]} {
    %c4_i32 = arith.constant 4 : i32
    %0 = arith.muli %arg1, %c4_i32 : i32
    %cst = arith.constant 0.000000e+00 : f32
    %1 = vector.broadcast %cst : f32 to vector<16x16xf32>
    %c0_i32 = arith.constant 0 : i32
    %2 = arith.addi %0, %c0_i32 : i32
    %c0 = arith.constant 0 : index
    %3 = arith.index_cast %2 : i32 to index
    %c0_0 = arith.constant 0 : index
    %c0_1 = arith.constant 0 : index
    %4 = vector.load %arg2[%c0, %3, %c0_0, %c0_1] : memref<1x6x6x48xbf16, #tpu.memory_space<vmem>>, vector<1x4x4x48xbf16>
    %5 = vector.shape_cast %4 : vector<1x4x4x48xbf16> to vector<4x4x48xbf16>
    %6 = vector.shape_cast %5 : vector<4x4x48xbf16> to vector<16x48xbf16>
    %c0_2 = arith.constant 0 : index
    %c0_3 = arith.constant 0 : index
    %c0_4 = arith.constant 0 : index
    %7 = vector.load %arg3[%c0_2, %c0_3, %c0_4] : memref<9x48x16xbf16, #tpu.memory_space<vmem>>, vector<1x48x16xbf16>
    %8 = vector.shape_cast %7 : vector<1x48x16xbf16> to vector<48x16xbf16>
    %cst_5 = arith.constant dense<0.000000e+00> : vector<16x16xf32>
    %9 = tpu.matmul %6, %8, %cst_5 {dimension_numbers = #tpu.dot_dimension_numbers<[1], [0], [0], [1], [0, 0, 1, 1], [], []>} : vector<16x48xbf16>, vector<48x16xbf16>, vector<16x16xf32> -> vector<16x16xf32>
    %10 = arith.addf %1, %9 : vector<16x16xf32>
    %c0_i32_6 = arith.constant 0 : i32
    %11 = arith.addi %0, %c0_i32_6 : i32
    %c0_7 = arith.constant 0 : index
    %12 = arith.index_cast %11 : i32 to index
    %c1 = arith.constant 1 : index
    %c0_8 = arith.constant 0 : index
    %13 = vector.load %arg2[%c0_7, %12, %c1, %c0_8] : memref<1x6x6x48xbf16, #tpu.memory_space<vmem>>, vector<1x4x4x48xbf16>
    %14 = vector.shape_cast %13 : vector<1x4x4x48xbf16> to vector<4x4x48xbf16>
    %15 = vector.shape_cast %14 : vector<4x4x48xbf16> to vector<16x48xbf16>
    %c1_9 = arith.constant 1 : index
    %c0_10 = arith.constant 0 : index
    %c0_11 = arith.constant 0 : index
    %16 = vector.load %arg3[%c1_9, %c0_10, %c0_11] : memref<9x48x16xbf16, #tpu.memory_space<vmem>>, vector<1x48x16xbf16>
    %17 = vector.shape_cast %16 : vector<1x48x16xbf16> to vector<48x16xbf16>
    %cst_12 = arith.constant dense<0.000000e+00> : vector<16x16xf32>
    %18 = tpu.matmul %15, %17, %cst_12 {dimension_numbers = #tpu.dot_dimension_numbers<[1], [0], [0], [1], [0, 0, 1, 1], [], []>} : vector<16x48xbf16>, vector<48x16xbf16>, vector<16x16xf32> -> vector<16x16xf32>
    %19 = arith.addf %10, %18 : vector<16x16xf32>
    %c0_i32_13 = arith.constant 0 : i32
    %20 = arith.addi %0, %c0_i32_13 : i32
    %c0_14 = arith.constant 0 : index
    %21 = arith.index_cast %20 : i32 to index
    %c2 = arith.constant 2 : index
    %c0_15 = arith.constant 0 : index
    %22 = vector.load %arg2[%c0_14, %21, %c2, %c0_15] : memref<1x6x6x48xbf16, #tpu.memory_space<vmem>>, vector<1x4x4x48xbf16>
    %23 = vector.shape_cast %22 : vector<1x4x4x48xbf16> to vector<4x4x48xbf16>
    %24 = vector.shape_cast %23 : vector<4x4x48xbf16> to vector<16x48xbf16>
    %c2_16 = arith.constant 2 : index
    %c0_17 = arith.constant 0 : index
    %c0_18 = arith.constant 0 : index
    %25 = vector.load %arg3[%c2_16, %c0_17, %c0_18] : memref<9x48x16xbf16, #tpu.memory_space<vmem>>, vector<1x48x16xbf16>
    %26 = vector.shape_cast %25 : vector<1x48x16xbf16> to vector<48x16xbf16>
    %cst_19 = arith.constant dense<0.000000e+00> : vector<16x16xf32>
    %27 = tpu.matmul %24, %26, %cst_19 {dimension_numbers = #tpu.dot_dimension_numbers<[1], [0], [0], [1], [0, 0, 1, 1], [], []>} : vector<16x48xbf16>, vector<48x16xbf16>, vector<16x16xf32> -> vector<16x16xf32>
    %28 = arith.addf %19, %27 : vector<16x16xf32>
    %c1_i32 = arith.constant 1 : i32
    %29 = arith.addi %0, %c1_i32 : i32
    %c0_20 = arith.constant 0 : index
    %30 = arith.index_cast %29 : i32 to index
    %c0_21 = arith.constant 0 : index
    %c0_22 = arith.constant 0 : index
    %31 = vector.load %arg2[%c0_20, %30, %c0_21, %c0_22] : memref<1x6x6x48xbf16, #tpu.memory_space<vmem>>, vector<1x4x4x48xbf16>
    %32 = vector.shape_cast %31 : vector<1x4x4x48xbf16> to vector<4x4x48xbf16>
    %33 = vector.shape_cast %32 : vector<4x4x48xbf16> to vector<16x48xbf16>
    %c3 = arith.constant 3 : index
    %c0_23 = arith.constant 0 : index
    %c0_24 = arith.constant 0 : index
    %34 = vector.load %arg3[%c3, %c0_23, %c0_24] : memref<9x48x16xbf16, #tpu.memory_space<vmem>>, vector<1x48x16xbf16>
    %35 = vector.shape_cast %34 : vector<1x48x16xbf16> to vector<48x16xbf16>
    %cst_25 = arith.constant dense<0.000000e+00> : vector<16x16xf32>
    %36 = tpu.matmul %33, %35, %cst_25 {dimension_numbers = #tpu.dot_dimension_numbers<[1], [0], [0], [1], [0, 0, 1, 1], [], []>} : vector<16x48xbf16>, vector<48x16xbf16>, vector<16x16xf32> -> vector<16x16xf32>
    %37 = arith.addf %28, %36 : vector<16x16xf32>
    %c1_i32_26 = arith.constant 1 : i32
    %38 = arith.addi %0, %c1_i32_26 : i32
    %c0_27 = arith.constant 0 : index
    %39 = arith.index_cast %38 : i32 to index
    %c1_28 = arith.constant 1 : index
    %c0_29 = arith.constant 0 : index
    %40 = vector.load %arg2[%c0_27, %39, %c1_28, %c0_29] : memref<1x6x6x48xbf16, #tpu.memory_space<vmem>>, vector<1x4x4x48xbf16>
    %41 = vector.shape_cast %40 : vector<1x4x4x48xbf16> to vector<4x4x48xbf16>
    %42 = vector.shape_cast %41 : vector<4x4x48xbf16> to vector<16x48xbf16>
    %c4 = arith.constant 4 : index
    %c0_30 = arith.constant 0 : index
    %c0_31 = arith.constant 0 : index
    %43 = vector.load %arg3[%c4, %c0_30, %c0_31] : memref<9x48x16xbf16, #tpu.memory_space<vmem>>, vector<1x48x16xbf16>
    %44 = vector.shape_cast %43 : vector<1x48x16xbf16> to vector<48x16xbf16>
    %cst_32 = arith.constant dense<0.000000e+00> : vector<16x16xf32>
    %45 = tpu.matmul %42, %44, %cst_32 {dimension_numbers = #tpu.dot_dimension_numbers<[1], [0], [0], [1], [0, 0, 1, 1], [], []>} : vector<16x48xbf16>, vector<48x16xbf16>, vector<16x16xf32> -> vector<16x16xf32>
    %46 = arith.addf %37, %45 : vector<16x16xf32>
    %c1_i32_33 = arith.constant 1 : i32
    %47 = arith.addi %0, %c1_i32_33 : i32
    %c0_34 = arith.constant 0 : index
    %48 = arith.index_cast %47 : i32 to index
    %c2_35 = arith.constant 2 : index
    %c0_36 = arith.constant 0 : index
    %49 = vector.load %arg2[%c0_34, %48, %c2_35, %c0_36] : memref<1x6x6x48xbf16, #tpu.memory_space<vmem>>, vector<1x4x4x48xbf16>
    %50 = vector.shape_cast %49 : vector<1x4x4x48xbf16> to vector<4x4x48xbf16>
    %51 = vector.shape_cast %50 : vector<4x4x48xbf16> to vector<16x48xbf16>
    %c5 = arith.constant 5 : index
    %c0_37 = arith.constant 0 : index
    %c0_38 = arith.constant 0 : index
    %52 = vector.load %arg3[%c5, %c0_37, %c0_38] : memref<9x48x16xbf16, #tpu.memory_space<vmem>>, vector<1x48x16xbf16>
    %53 = vector.shape_cast %52 : vector<1x48x16xbf16> to vector<48x16xbf16>
    %cst_39 = arith.constant dense<0.000000e+00> : vector<16x16xf32>
    %54 = tpu.matmul %51, %53, %cst_39 {dimension_numbers = #tpu.dot_dimension_numbers<[1], [0], [0], [1], [0, 0, 1, 1], [], []>} : vector<16x48xbf16>, vector<48x16xbf16>, vector<16x16xf32> -> vector<16x16xf32>
    %55 = arith.addf %46, %54 : vector<16x16xf32>
    %c2_i32 = arith.constant 2 : i32
    %56 = arith.addi %0, %c2_i32 : i32
    %c0_40 = arith.constant 0 : index
    %57 = arith.index_cast %56 : i32 to index
    %c0_41 = arith.constant 0 : index
    %c0_42 = arith.constant 0 : index
    %58 = vector.load %arg2[%c0_40, %57, %c0_41, %c0_42] : memref<1x6x6x48xbf16, #tpu.memory_space<vmem>>, vector<1x4x4x48xbf16>
    %59 = vector.shape_cast %58 : vector<1x4x4x48xbf16> to vector<4x4x48xbf16>
    %60 = vector.shape_cast %59 : vector<4x4x48xbf16> to vector<16x48xbf16>
    %c6 = arith.constant 6 : index
    %c0_43 = arith.constant 0 : index
    %c0_44 = arith.constant 0 : index
    %61 = vector.load %arg3[%c6, %c0_43, %c0_44] : memref<9x48x16xbf16, #tpu.memory_space<vmem>>, vector<1x48x16xbf16>
    %62 = vector.shape_cast %61 : vector<1x48x16xbf16> to vector<48x16xbf16>
    %cst_45 = arith.constant dense<0.000000e+00> : vector<16x16xf32>
    %63 = tpu.matmul %60, %62, %cst_45 {dimension_numbers = #tpu.dot_dimension_numbers<[1], [0], [0], [1], [0, 0, 1, 1], [], []>} : vector<16x48xbf16>, vector<48x16xbf16>, vector<16x16xf32> -> vector<16x16xf32>
    %64 = arith.addf %55, %63 : vector<16x16xf32>
    %c2_i32_46 = arith.constant 2 : i32
    %65 = arith.addi %0, %c2_i32_46 : i32
    %c0_47 = arith.constant 0 : index
    %66 = arith.index_cast %65 : i32 to index
    %c1_48 = arith.constant 1 : index
    %c0_49 = arith.constant 0 : index
    %67 = vector.load %arg2[%c0_47, %66, %c1_48, %c0_49] : memref<1x6x6x48xbf16, #tpu.memory_space<vmem>>, vector<1x4x4x48xbf16>
    %68 = vector.shape_cast %67 : vector<1x4x4x48xbf16> to vector<4x4x48xbf16>
    %69 = vector.shape_cast %68 : vector<4x4x48xbf16> to vector<16x48xbf16>
    %c7 = arith.constant 7 : index
    %c0_50 = arith.constant 0 : index
    %c0_51 = arith.constant 0 : index
    %70 = vector.load %arg3[%c7, %c0_50, %c0_51] : memref<9x48x16xbf16, #tpu.memory_space<vmem>>, vector<1x48x16xbf16>
    %71 = vector.shape_cast %70 : vector<1x48x16xbf16> to vector<48x16xbf16>
    %cst_52 = arith.constant dense<0.000000e+00> : vector<16x16xf32>
    %72 = tpu.matmul %69, %71, %cst_52 {dimension_numbers = #tpu.dot_dimension_numbers<[1], [0], [0], [1], [0, 0, 1, 1], [], []>} : vector<16x48xbf16>, vector<48x16xbf16>, vector<16x16xf32> -> vector<16x16xf32>
    %73 = arith.addf %64, %72 : vector<16x16xf32>
    %c2_i32_53 = arith.constant 2 : i32
    %74 = arith.addi %0, %c2_i32_53 : i32
    %c0_54 = arith.constant 0 : index
    %75 = arith.index_cast %74 : i32 to index
    %c2_55 = arith.constant 2 : index
    %c0_56 = arith.constant 0 : index
    %76 = vector.load %arg2[%c0_54, %75, %c2_55, %c0_56] : memref<1x6x6x48xbf16, #tpu.memory_space<vmem>>, vector<1x4x4x48xbf16>
    %77 = vector.shape_cast %76 : vector<1x4x4x48xbf16> to vector<4x4x48xbf16>
    %78 = vector.shape_cast %77 : vector<4x4x48xbf16> to vector<16x48xbf16>
    %c8 = arith.constant 8 : index
    %c0_57 = arith.constant 0 : index
    %c0_58 = arith.constant 0 : index
    %79 = vector.load %arg3[%c8, %c0_57, %c0_58] : memref<9x48x16xbf16, #tpu.memory_space<vmem>>, vector<1x48x16xbf16>
    %80 = vector.shape_cast %79 : vector<1x48x16xbf16> to vector<48x16xbf16>
    %cst_59 = arith.constant dense<0.000000e+00> : vector<16x16xf32>
    %81 = tpu.matmul %78, %80, %cst_59 {dimension_numbers = #tpu.dot_dimension_numbers<[1], [0], [0], [1], [0, 0, 1, 1], [], []>} : vector<16x48xbf16>, vector<48x16xbf16>, vector<16x16xf32> -> vector<16x16xf32>
    %82 = arith.addf %73, %81 : vector<16x16xf32>
    %c0_60 = arith.constant 0 : index
    %c0_61 = arith.constant 0 : index
    %83 = vector.load %arg4[%c0_60, %c0_61] : memref<1x16xf32, #tpu.memory_space<vmem>>, vector<1x16xf32>
    %84 = vector.broadcast %83 : vector<1x16xf32> to vector<16x16xf32>
    %85 = arith.addf %82, %84 : vector<16x16xf32>
    %cst_62 = arith.constant 0.000000e+00 : f32
    %86 = vector.broadcast %cst_62 : f32 to vector<16x16xf32>
    %87 = arith.maximumf %85, %86 : vector<16x16xf32>
    %88 = vector.shape_cast %87 : vector<16x16xf32> to vector<4x4x16xf32>
    %89 = arith.truncf %88 : vector<4x4x16xf32> to vector<4x4x16xbf16>
    %c0_63 = arith.constant 0 : index
    %c0_64 = arith.constant 0 : index
    %c0_65 = arith.constant 0 : index
    %c0_66 = arith.constant 0 : index
    %90 = vector.load %arg5[%c0_63, %c0_64, %c0_65, %c0_66] : memref<1x4x4x16xbf16, #tpu.memory_space<vmem>>, vector<1x4x4x16xbf16>
    %91 = vector.shape_cast %90 : vector<1x4x4x16xbf16> to vector<4x4x16xbf16>
    %92 = vector.shape_cast %89 : vector<4x4x16xbf16> to vector<1x4x4x16xbf16>
    tpu.vector_store %arg5[%c0_63, %c0_64, %c0_65, %c0_66], %92 {strides = array<i32>} : memref<1x4x4x16xbf16, #tpu.memory_space<vmem>>, vector<1x4x4x16xbf16>,
    return
  }
  func.func @transform_0(%arg0: i32, %arg1: i32) -> (i32, i32, i32, i32) {
    %c0_i32 = arith.constant 0 : i32
    %c0_i32_0 = arith.constant 0 : i32
    %c0_i32_1 = arith.constant 0 : i32
    %c0_i32_2 = arith.constant 0 : i32
    return %arg0, %c0_i32, %c0_i32_0, %c0_i32_1 : i32, i32, i32, i32
  }
  func.func @transform_1(%arg0: i32, %arg1: i32) -> (i32, i32, i32) {
    %c0_i32 = arith.constant 0 : i32
    %c0_i32_0 = arith.constant 0 : i32
    %c0_i32_1 = arith.constant 0 : i32
    %c0_i32_2 = arith.constant 0 : i32
    return %c0_i32, %c0_i32_0, %c0_i32_1 : i32, i32, i32
  }
  func.func @transform_2(%arg0: i32, %arg1: i32) -> (i32, i32) {
    %c0_i32 = arith.constant 0 : i32
    %c0_i32_0 = arith.constant 0 : i32
    %c0_i32_1 = arith.constant 0 : i32
    return %c0_i32, %c0_i32_0 : i32, i32
  }
  func.func @transform_3(%arg0: i32, %arg1: i32) -> (i32, i32, i32, i32) {
    %c0_i32 = arith.constant 0 : i32
    %c0_i32_0 = arith.constant 0 : i32
    %c0_i32_1 = arith.constant 0 : i32
    return %arg0, %arg1, %c0_i32, %c0_i32_0 : i32, i32, i32, i32
  }
}

module attributes {stable_mosaic.version = 11 : i64} {
  func.func @_conv3x3_kernel(%arg0: i32, %arg1: i32, %arg2: memref<1x10x10x24xbf16, #tpu.memory_space<vmem>>, %arg3: memref<9x24x8xbf16, #tpu.memory_space<vmem>>, %arg4: memref<1x8xf32, #tpu.memory_space<vmem>>, %arg5: memref<1x8x8x8xbf16, #tpu.memory_space<vmem>>) attributes {dimension_semantics = [#tpu.dimension_semantics<parallel>, #tpu.dimension_semantics<arbitrary>], iteration_bounds = array<i64: 2, 1>, scalar_prefetch = 0 : i64, scratch_operands = 0 : i64, tpu.core_type = #tpu.core_type<tc>, window_params = [{transform_indices = @transform_0, window_bounds = array<i64: 1, 10, 10, 24>}, {pipeline_mode = #tpu.pipeline_mode<synchronous>, transform_indices = @transform_1, window_bounds = array<i64: 9, 24, 8>}, {pipeline_mode = #tpu.pipeline_mode<synchronous>, transform_indices = @transform_2, window_bounds = array<i64: 1, 8>}, {transform_indices = @transform_3, window_bounds = array<i64: 1, 8, 8, 8>}]} {
    %c8_i32 = arith.constant 8 : i32
    %0 = arith.muli %arg1, %c8_i32 : i32
    %cst = arith.constant 0.000000e+00 : f32
    %1 = vector.broadcast %cst : f32 to vector<64x8xf32>
    %c0_i32 = arith.constant 0 : i32
    %2 = arith.addi %0, %c0_i32 : i32
    %c0 = arith.constant 0 : index
    %3 = arith.index_cast %2 : i32 to index
    %c0_0 = arith.constant 0 : index
    %c0_1 = arith.constant 0 : index
    %4 = vector.load %arg2[%c0, %3, %c0_0, %c0_1] : memref<1x10x10x24xbf16, #tpu.memory_space<vmem>>, vector<1x8x8x24xbf16>
    %5 = vector.shape_cast %4 : vector<1x8x8x24xbf16> to vector<8x8x24xbf16>
    %6 = vector.shape_cast %5 : vector<8x8x24xbf16> to vector<64x24xbf16>
    %c0_2 = arith.constant 0 : index
    %c0_3 = arith.constant 0 : index
    %c0_4 = arith.constant 0 : index
    %7 = vector.load %arg3[%c0_2, %c0_3, %c0_4] : memref<9x24x8xbf16, #tpu.memory_space<vmem>>, vector<1x24x8xbf16>
    %8 = vector.shape_cast %7 : vector<1x24x8xbf16> to vector<24x8xbf16>
    %cst_5 = arith.constant dense<0.000000e+00> : vector<64x8xf32>
    %9 = tpu.matmul %6, %8, %cst_5 {dimension_numbers = #tpu.dot_dimension_numbers<[1], [0], [0], [1], [0, 0, 1, 1], [], []>} : vector<64x24xbf16>, vector<24x8xbf16>, vector<64x8xf32> -> vector<64x8xf32>
    %10 = arith.addf %1, %9 : vector<64x8xf32>
    %c0_i32_6 = arith.constant 0 : i32
    %11 = arith.addi %0, %c0_i32_6 : i32
    %c0_7 = arith.constant 0 : index
    %12 = arith.index_cast %11 : i32 to index
    %c1 = arith.constant 1 : index
    %c0_8 = arith.constant 0 : index
    %13 = vector.load %arg2[%c0_7, %12, %c1, %c0_8] : memref<1x10x10x24xbf16, #tpu.memory_space<vmem>>, vector<1x8x8x24xbf16>
    %14 = vector.shape_cast %13 : vector<1x8x8x24xbf16> to vector<8x8x24xbf16>
    %15 = vector.shape_cast %14 : vector<8x8x24xbf16> to vector<64x24xbf16>
    %c1_9 = arith.constant 1 : index
    %c0_10 = arith.constant 0 : index
    %c0_11 = arith.constant 0 : index
    %16 = vector.load %arg3[%c1_9, %c0_10, %c0_11] : memref<9x24x8xbf16, #tpu.memory_space<vmem>>, vector<1x24x8xbf16>
    %17 = vector.shape_cast %16 : vector<1x24x8xbf16> to vector<24x8xbf16>
    %cst_12 = arith.constant dense<0.000000e+00> : vector<64x8xf32>
    %18 = tpu.matmul %15, %17, %cst_12 {dimension_numbers = #tpu.dot_dimension_numbers<[1], [0], [0], [1], [0, 0, 1, 1], [], []>} : vector<64x24xbf16>, vector<24x8xbf16>, vector<64x8xf32> -> vector<64x8xf32>
    %19 = arith.addf %10, %18 : vector<64x8xf32>
    %c0_i32_13 = arith.constant 0 : i32
    %20 = arith.addi %0, %c0_i32_13 : i32
    %c0_14 = arith.constant 0 : index
    %21 = arith.index_cast %20 : i32 to index
    %c2 = arith.constant 2 : index
    %c0_15 = arith.constant 0 : index
    %22 = vector.load %arg2[%c0_14, %21, %c2, %c0_15] : memref<1x10x10x24xbf16, #tpu.memory_space<vmem>>, vector<1x8x8x24xbf16>
    %23 = vector.shape_cast %22 : vector<1x8x8x24xbf16> to vector<8x8x24xbf16>
    %24 = vector.shape_cast %23 : vector<8x8x24xbf16> to vector<64x24xbf16>
    %c2_16 = arith.constant 2 : index
    %c0_17 = arith.constant 0 : index
    %c0_18 = arith.constant 0 : index
    %25 = vector.load %arg3[%c2_16, %c0_17, %c0_18] : memref<9x24x8xbf16, #tpu.memory_space<vmem>>, vector<1x24x8xbf16>
    %26 = vector.shape_cast %25 : vector<1x24x8xbf16> to vector<24x8xbf16>
    %cst_19 = arith.constant dense<0.000000e+00> : vector<64x8xf32>
    %27 = tpu.matmul %24, %26, %cst_19 {dimension_numbers = #tpu.dot_dimension_numbers<[1], [0], [0], [1], [0, 0, 1, 1], [], []>} : vector<64x24xbf16>, vector<24x8xbf16>, vector<64x8xf32> -> vector<64x8xf32>
    %28 = arith.addf %19, %27 : vector<64x8xf32>
    %c1_i32 = arith.constant 1 : i32
    %29 = arith.addi %0, %c1_i32 : i32
    %c0_20 = arith.constant 0 : index
    %30 = arith.index_cast %29 : i32 to index
    %c0_21 = arith.constant 0 : index
    %c0_22 = arith.constant 0 : index
    %31 = vector.load %arg2[%c0_20, %30, %c0_21, %c0_22] : memref<1x10x10x24xbf16, #tpu.memory_space<vmem>>, vector<1x8x8x24xbf16>
    %32 = vector.shape_cast %31 : vector<1x8x8x24xbf16> to vector<8x8x24xbf16>
    %33 = vector.shape_cast %32 : vector<8x8x24xbf16> to vector<64x24xbf16>
    %c3 = arith.constant 3 : index
    %c0_23 = arith.constant 0 : index
    %c0_24 = arith.constant 0 : index
    %34 = vector.load %arg3[%c3, %c0_23, %c0_24] : memref<9x24x8xbf16, #tpu.memory_space<vmem>>, vector<1x24x8xbf16>
    %35 = vector.shape_cast %34 : vector<1x24x8xbf16> to vector<24x8xbf16>
    %cst_25 = arith.constant dense<0.000000e+00> : vector<64x8xf32>
    %36 = tpu.matmul %33, %35, %cst_25 {dimension_numbers = #tpu.dot_dimension_numbers<[1], [0], [0], [1], [0, 0, 1, 1], [], []>} : vector<64x24xbf16>, vector<24x8xbf16>, vector<64x8xf32> -> vector<64x8xf32>
    %37 = arith.addf %28, %36 : vector<64x8xf32>
    %c1_i32_26 = arith.constant 1 : i32
    %38 = arith.addi %0, %c1_i32_26 : i32
    %c0_27 = arith.constant 0 : index
    %39 = arith.index_cast %38 : i32 to index
    %c1_28 = arith.constant 1 : index
    %c0_29 = arith.constant 0 : index
    %40 = vector.load %arg2[%c0_27, %39, %c1_28, %c0_29] : memref<1x10x10x24xbf16, #tpu.memory_space<vmem>>, vector<1x8x8x24xbf16>
    %41 = vector.shape_cast %40 : vector<1x8x8x24xbf16> to vector<8x8x24xbf16>
    %42 = vector.shape_cast %41 : vector<8x8x24xbf16> to vector<64x24xbf16>
    %c4 = arith.constant 4 : index
    %c0_30 = arith.constant 0 : index
    %c0_31 = arith.constant 0 : index
    %43 = vector.load %arg3[%c4, %c0_30, %c0_31] : memref<9x24x8xbf16, #tpu.memory_space<vmem>>, vector<1x24x8xbf16>
    %44 = vector.shape_cast %43 : vector<1x24x8xbf16> to vector<24x8xbf16>
    %cst_32 = arith.constant dense<0.000000e+00> : vector<64x8xf32>
    %45 = tpu.matmul %42, %44, %cst_32 {dimension_numbers = #tpu.dot_dimension_numbers<[1], [0], [0], [1], [0, 0, 1, 1], [], []>} : vector<64x24xbf16>, vector<24x8xbf16>, vector<64x8xf32> -> vector<64x8xf32>
    %46 = arith.addf %37, %45 : vector<64x8xf32>
    %c1_i32_33 = arith.constant 1 : i32
    %47 = arith.addi %0, %c1_i32_33 : i32
    %c0_34 = arith.constant 0 : index
    %48 = arith.index_cast %47 : i32 to index
    %c2_35 = arith.constant 2 : index
    %c0_36 = arith.constant 0 : index
    %49 = vector.load %arg2[%c0_34, %48, %c2_35, %c0_36] : memref<1x10x10x24xbf16, #tpu.memory_space<vmem>>, vector<1x8x8x24xbf16>
    %50 = vector.shape_cast %49 : vector<1x8x8x24xbf16> to vector<8x8x24xbf16>
    %51 = vector.shape_cast %50 : vector<8x8x24xbf16> to vector<64x24xbf16>
    %c5 = arith.constant 5 : index
    %c0_37 = arith.constant 0 : index
    %c0_38 = arith.constant 0 : index
    %52 = vector.load %arg3[%c5, %c0_37, %c0_38] : memref<9x24x8xbf16, #tpu.memory_space<vmem>>, vector<1x24x8xbf16>
    %53 = vector.shape_cast %52 : vector<1x24x8xbf16> to vector<24x8xbf16>
    %cst_39 = arith.constant dense<0.000000e+00> : vector<64x8xf32>
    %54 = tpu.matmul %51, %53, %cst_39 {dimension_numbers = #tpu.dot_dimension_numbers<[1], [0], [0], [1], [0, 0, 1, 1], [], []>} : vector<64x24xbf16>, vector<24x8xbf16>, vector<64x8xf32> -> vector<64x8xf32>
    %55 = arith.addf %46, %54 : vector<64x8xf32>
    %c2_i32 = arith.constant 2 : i32
    %56 = arith.addi %0, %c2_i32 : i32
    %c0_40 = arith.constant 0 : index
    %57 = arith.index_cast %56 : i32 to index
    %c0_41 = arith.constant 0 : index
    %c0_42 = arith.constant 0 : index
    %58 = vector.load %arg2[%c0_40, %57, %c0_41, %c0_42] : memref<1x10x10x24xbf16, #tpu.memory_space<vmem>>, vector<1x8x8x24xbf16>
    %59 = vector.shape_cast %58 : vector<1x8x8x24xbf16> to vector<8x8x24xbf16>
    %60 = vector.shape_cast %59 : vector<8x8x24xbf16> to vector<64x24xbf16>
    %c6 = arith.constant 6 : index
    %c0_43 = arith.constant 0 : index
    %c0_44 = arith.constant 0 : index
    %61 = vector.load %arg3[%c6, %c0_43, %c0_44] : memref<9x24x8xbf16, #tpu.memory_space<vmem>>, vector<1x24x8xbf16>
    %62 = vector.shape_cast %61 : vector<1x24x8xbf16> to vector<24x8xbf16>
    %cst_45 = arith.constant dense<0.000000e+00> : vector<64x8xf32>
    %63 = tpu.matmul %60, %62, %cst_45 {dimension_numbers = #tpu.dot_dimension_numbers<[1], [0], [0], [1], [0, 0, 1, 1], [], []>} : vector<64x24xbf16>, vector<24x8xbf16>, vector<64x8xf32> -> vector<64x8xf32>
    %64 = arith.addf %55, %63 : vector<64x8xf32>
    %c2_i32_46 = arith.constant 2 : i32
    %65 = arith.addi %0, %c2_i32_46 : i32
    %c0_47 = arith.constant 0 : index
    %66 = arith.index_cast %65 : i32 to index
    %c1_48 = arith.constant 1 : index
    %c0_49 = arith.constant 0 : index
    %67 = vector.load %arg2[%c0_47, %66, %c1_48, %c0_49] : memref<1x10x10x24xbf16, #tpu.memory_space<vmem>>, vector<1x8x8x24xbf16>
    %68 = vector.shape_cast %67 : vector<1x8x8x24xbf16> to vector<8x8x24xbf16>
    %69 = vector.shape_cast %68 : vector<8x8x24xbf16> to vector<64x24xbf16>
    %c7 = arith.constant 7 : index
    %c0_50 = arith.constant 0 : index
    %c0_51 = arith.constant 0 : index
    %70 = vector.load %arg3[%c7, %c0_50, %c0_51] : memref<9x24x8xbf16, #tpu.memory_space<vmem>>, vector<1x24x8xbf16>
    %71 = vector.shape_cast %70 : vector<1x24x8xbf16> to vector<24x8xbf16>
    %cst_52 = arith.constant dense<0.000000e+00> : vector<64x8xf32>
    %72 = tpu.matmul %69, %71, %cst_52 {dimension_numbers = #tpu.dot_dimension_numbers<[1], [0], [0], [1], [0, 0, 1, 1], [], []>} : vector<64x24xbf16>, vector<24x8xbf16>, vector<64x8xf32> -> vector<64x8xf32>
    %73 = arith.addf %64, %72 : vector<64x8xf32>
    %c2_i32_53 = arith.constant 2 : i32
    %74 = arith.addi %0, %c2_i32_53 : i32
    %c0_54 = arith.constant 0 : index
    %75 = arith.index_cast %74 : i32 to index
    %c2_55 = arith.constant 2 : index
    %c0_56 = arith.constant 0 : index
    %76 = vector.load %arg2[%c0_54, %75, %c2_55, %c0_56] : memref<1x10x10x24xbf16, #tpu.memory_space<vmem>>, vector<1x8x8x24xbf16>
    %77 = vector.shape_cast %76 : vector<1x8x8x24xbf16> to vector<8x8x24xbf16>
    %78 = vector.shape_cast %77 : vector<8x8x24xbf16> to vector<64x24xbf16>
    %c8 = arith.constant 8 : index
    %c0_57 = arith.constant 0 : index
    %c0_58 = arith.constant 0 : index
    %79 = vector.load %arg3[%c8, %c0_57, %c0_58] : memref<9x24x8xbf16, #tpu.memory_space<vmem>>, vector<1x24x8xbf16>
    %80 = vector.shape_cast %79 : vector<1x24x8xbf16> to vector<24x8xbf16>
    %cst_59 = arith.constant dense<0.000000e+00> : vector<64x8xf32>
    %81 = tpu.matmul %78, %80, %cst_59 {dimension_numbers = #tpu.dot_dimension_numbers<[1], [0], [0], [1], [0, 0, 1, 1], [], []>} : vector<64x24xbf16>, vector<24x8xbf16>, vector<64x8xf32> -> vector<64x8xf32>
    %82 = arith.addf %73, %81 : vector<64x8xf32>
    %c0_60 = arith.constant 0 : index
    %c0_61 = arith.constant 0 : index
    %83 = vector.load %arg4[%c0_60, %c0_61] : memref<1x8xf32, #tpu.memory_space<vmem>>, vector<1x8xf32>
    %84 = vector.broadcast %83 : vector<1x8xf32> to vector<64x8xf32>
    %85 = arith.addf %82, %84 : vector<64x8xf32>
    %cst_62 = arith.constant 0.000000e+00 : f32
    %86 = vector.broadcast %cst_62 : f32 to vector<64x8xf32>
    %87 = arith.maximumf %85, %86 : vector<64x8xf32>
    %88 = vector.shape_cast %87 : vector<64x8xf32> to vector<8x8x8xf32>
    %89 = arith.truncf %88 : vector<8x8x8xf32> to vector<8x8x8xbf16>
    %c0_63 = arith.constant 0 : index
    %c0_64 = arith.constant 0 : index
    %c0_65 = arith.constant 0 : index
    %c0_66 = arith.constant 0 : index
    %90 = vector.load %arg5[%c0_63, %c0_64, %c0_65, %c0_66] : memref<1x8x8x8xbf16, #tpu.memory_space<vmem>>, vector<1x8x8x8xbf16>
    %91 = vector.shape_cast %90 : vector<1x8x8x8xbf16> to vector<8x8x8xbf16>
    %92 = vector.shape_cast %89 : vector<8x8x8xbf16> to vector<1x8x8x8xbf16>
    tpu.vector_store %arg5[%c0_63, %c0_64, %c0_65, %c0_66], %92 {strides = array<i32>} : memref<1x8x8x8xbf16, #tpu.memory_space<vmem>>, vector<1x8x8x8xbf16>,
    return
  }
  func.func @transform_0(%arg0: i32, %arg1: i32) -> (i32, i32, i32, i32) {
    %c0_i32 = arith.constant 0 : i32
    %c0_i32_0 = arith.constant 0 : i32
    %c0_i32_1 = arith.constant 0 : i32
    %c0_i32_2 = arith.constant 0 : i32
    return %arg0, %c0_i32, %c0_i32_0, %c0_i32_1 : i32, i32, i32, i32
  }
  func.func @transform_1(%arg0: i32, %arg1: i32) -> (i32, i32, i32) {
    %c0_i32 = arith.constant 0 : i32
    %c0_i32_0 = arith.constant 0 : i32
    %c0_i32_1 = arith.constant 0 : i32
    %c0_i32_2 = arith.constant 0 : i32
    return %c0_i32, %c0_i32_0, %c0_i32_1 : i32, i32, i32
  }
  func.func @transform_2(%arg0: i32, %arg1: i32) -> (i32, i32) {
    %c0_i32 = arith.constant 0 : i32
    %c0_i32_0 = arith.constant 0 : i32
    %c0_i32_1 = arith.constant 0 : i32
    return %c0_i32, %c0_i32_0 : i32, i32
  }
  func.func @transform_3(%arg0: i32, %arg1: i32) -> (i32, i32, i32, i32) {
    %c0_i32 = arith.constant 0 : i32
    %c0_i32_0 = arith.constant 0 : i32
    %c0_i32_1 = arith.constant 0 : i32
    return %arg0, %arg1, %c0_i32, %c0_i32_0 : i32, i32, i32, i32
  }
}

module attributes {stable_mosaic.version = 11 : i64} {
  func.func @_conv3x3_kernel(%arg0: i32, %arg1: i32, %arg2: memref<1x18x18x8xbf16, #tpu.memory_space<vmem>>, %arg3: memref<9x8x7xbf16, #tpu.memory_space<vmem>>, %arg4: memref<1x7xf32, #tpu.memory_space<vmem>>, %arg5: memref<1x16x16x7xf32, #tpu.memory_space<vmem>>) attributes {dimension_semantics = [#tpu.dimension_semantics<parallel>, #tpu.dimension_semantics<arbitrary>], iteration_bounds = array<i64: 2, 1>, scalar_prefetch = 0 : i64, scratch_operands = 0 : i64, tpu.core_type = #tpu.core_type<tc>, window_params = [{transform_indices = @transform_0, window_bounds = array<i64: 1, 18, 18, 8>}, {pipeline_mode = #tpu.pipeline_mode<synchronous>, transform_indices = @transform_1, window_bounds = array<i64: 9, 8, 7>}, {pipeline_mode = #tpu.pipeline_mode<synchronous>, transform_indices = @transform_2, window_bounds = array<i64: 1, 7>}, {transform_indices = @transform_3, window_bounds = array<i64: 1, 16, 16, 7>}]} {
    %c16_i32 = arith.constant 16 : i32
    %0 = arith.muli %arg1, %c16_i32 : i32
    %cst = arith.constant 0.000000e+00 : f32
    %1 = vector.broadcast %cst : f32 to vector<256x7xf32>
    %c0_i32 = arith.constant 0 : i32
    %2 = arith.addi %0, %c0_i32 : i32
    %c0 = arith.constant 0 : index
    %3 = arith.index_cast %2 : i32 to index
    %c0_0 = arith.constant 0 : index
    %c0_1 = arith.constant 0 : index
    %4 = vector.load %arg2[%c0, %3, %c0_0, %c0_1] : memref<1x18x18x8xbf16, #tpu.memory_space<vmem>>, vector<1x16x16x8xbf16>
    %5 = vector.shape_cast %4 : vector<1x16x16x8xbf16> to vector<16x16x8xbf16>
    %6 = vector.shape_cast %5 : vector<16x16x8xbf16> to vector<256x8xbf16>
    %c0_2 = arith.constant 0 : index
    %c0_3 = arith.constant 0 : index
    %c0_4 = arith.constant 0 : index
    %7 = vector.load %arg3[%c0_2, %c0_3, %c0_4] : memref<9x8x7xbf16, #tpu.memory_space<vmem>>, vector<1x8x7xbf16>
    %8 = vector.shape_cast %7 : vector<1x8x7xbf16> to vector<8x7xbf16>
    %cst_5 = arith.constant dense<0.000000e+00> : vector<256x7xf32>
    %9 = tpu.matmul %6, %8, %cst_5 {dimension_numbers = #tpu.dot_dimension_numbers<[1], [0], [0], [1], [0, 0, 1, 1], [], []>} : vector<256x8xbf16>, vector<8x7xbf16>, vector<256x7xf32> -> vector<256x7xf32>
    %10 = arith.addf %1, %9 : vector<256x7xf32>
    %c0_i32_6 = arith.constant 0 : i32
    %11 = arith.addi %0, %c0_i32_6 : i32
    %c0_7 = arith.constant 0 : index
    %12 = arith.index_cast %11 : i32 to index
    %c1 = arith.constant 1 : index
    %c0_8 = arith.constant 0 : index
    %13 = vector.load %arg2[%c0_7, %12, %c1, %c0_8] : memref<1x18x18x8xbf16, #tpu.memory_space<vmem>>, vector<1x16x16x8xbf16>
    %14 = vector.shape_cast %13 : vector<1x16x16x8xbf16> to vector<16x16x8xbf16>
    %15 = vector.shape_cast %14 : vector<16x16x8xbf16> to vector<256x8xbf16>
    %c1_9 = arith.constant 1 : index
    %c0_10 = arith.constant 0 : index
    %c0_11 = arith.constant 0 : index
    %16 = vector.load %arg3[%c1_9, %c0_10, %c0_11] : memref<9x8x7xbf16, #tpu.memory_space<vmem>>, vector<1x8x7xbf16>
    %17 = vector.shape_cast %16 : vector<1x8x7xbf16> to vector<8x7xbf16>
    %cst_12 = arith.constant dense<0.000000e+00> : vector<256x7xf32>
    %18 = tpu.matmul %15, %17, %cst_12 {dimension_numbers = #tpu.dot_dimension_numbers<[1], [0], [0], [1], [0, 0, 1, 1], [], []>} : vector<256x8xbf16>, vector<8x7xbf16>, vector<256x7xf32> -> vector<256x7xf32>
    %19 = arith.addf %10, %18 : vector<256x7xf32>
    %c0_i32_13 = arith.constant 0 : i32
    %20 = arith.addi %0, %c0_i32_13 : i32
    %c0_14 = arith.constant 0 : index
    %21 = arith.index_cast %20 : i32 to index
    %c2 = arith.constant 2 : index
    %c0_15 = arith.constant 0 : index
    %22 = vector.load %arg2[%c0_14, %21, %c2, %c0_15] : memref<1x18x18x8xbf16, #tpu.memory_space<vmem>>, vector<1x16x16x8xbf16>
    %23 = vector.shape_cast %22 : vector<1x16x16x8xbf16> to vector<16x16x8xbf16>
    %24 = vector.shape_cast %23 : vector<16x16x8xbf16> to vector<256x8xbf16>
    %c2_16 = arith.constant 2 : index
    %c0_17 = arith.constant 0 : index
    %c0_18 = arith.constant 0 : index
    %25 = vector.load %arg3[%c2_16, %c0_17, %c0_18] : memref<9x8x7xbf16, #tpu.memory_space<vmem>>, vector<1x8x7xbf16>
    %26 = vector.shape_cast %25 : vector<1x8x7xbf16> to vector<8x7xbf16>
    %cst_19 = arith.constant dense<0.000000e+00> : vector<256x7xf32>
    %27 = tpu.matmul %24, %26, %cst_19 {dimension_numbers = #tpu.dot_dimension_numbers<[1], [0], [0], [1], [0, 0, 1, 1], [], []>} : vector<256x8xbf16>, vector<8x7xbf16>, vector<256x7xf32> -> vector<256x7xf32>
    %28 = arith.addf %19, %27 : vector<256x7xf32>
    %c1_i32 = arith.constant 1 : i32
    %29 = arith.addi %0, %c1_i32 : i32
    %c0_20 = arith.constant 0 : index
    %30 = arith.index_cast %29 : i32 to index
    %c0_21 = arith.constant 0 : index
    %c0_22 = arith.constant 0 : index
    %31 = vector.load %arg2[%c0_20, %30, %c0_21, %c0_22] : memref<1x18x18x8xbf16, #tpu.memory_space<vmem>>, vector<1x16x16x8xbf16>
    %32 = vector.shape_cast %31 : vector<1x16x16x8xbf16> to vector<16x16x8xbf16>
    %33 = vector.shape_cast %32 : vector<16x16x8xbf16> to vector<256x8xbf16>
    %c3 = arith.constant 3 : index
    %c0_23 = arith.constant 0 : index
    %c0_24 = arith.constant 0 : index
    %34 = vector.load %arg3[%c3, %c0_23, %c0_24] : memref<9x8x7xbf16, #tpu.memory_space<vmem>>, vector<1x8x7xbf16>
    %35 = vector.shape_cast %34 : vector<1x8x7xbf16> to vector<8x7xbf16>
    %cst_25 = arith.constant dense<0.000000e+00> : vector<256x7xf32>
    %36 = tpu.matmul %33, %35, %cst_25 {dimension_numbers = #tpu.dot_dimension_numbers<[1], [0], [0], [1], [0, 0, 1, 1], [], []>} : vector<256x8xbf16>, vector<8x7xbf16>, vector<256x7xf32> -> vector<256x7xf32>
    %37 = arith.addf %28, %36 : vector<256x7xf32>
    %c1_i32_26 = arith.constant 1 : i32
    %38 = arith.addi %0, %c1_i32_26 : i32
    %c0_27 = arith.constant 0 : index
    %39 = arith.index_cast %38 : i32 to index
    %c1_28 = arith.constant 1 : index
    %c0_29 = arith.constant 0 : index
    %40 = vector.load %arg2[%c0_27, %39, %c1_28, %c0_29] : memref<1x18x18x8xbf16, #tpu.memory_space<vmem>>, vector<1x16x16x8xbf16>
    %41 = vector.shape_cast %40 : vector<1x16x16x8xbf16> to vector<16x16x8xbf16>
    %42 = vector.shape_cast %41 : vector<16x16x8xbf16> to vector<256x8xbf16>
    %c4 = arith.constant 4 : index
    %c0_30 = arith.constant 0 : index
    %c0_31 = arith.constant 0 : index
    %43 = vector.load %arg3[%c4, %c0_30, %c0_31] : memref<9x8x7xbf16, #tpu.memory_space<vmem>>, vector<1x8x7xbf16>
    %44 = vector.shape_cast %43 : vector<1x8x7xbf16> to vector<8x7xbf16>
    %cst_32 = arith.constant dense<0.000000e+00> : vector<256x7xf32>
    %45 = tpu.matmul %42, %44, %cst_32 {dimension_numbers = #tpu.dot_dimension_numbers<[1], [0], [0], [1], [0, 0, 1, 1], [], []>} : vector<256x8xbf16>, vector<8x7xbf16>, vector<256x7xf32> -> vector<256x7xf32>
    %46 = arith.addf %37, %45 : vector<256x7xf32>
    %c1_i32_33 = arith.constant 1 : i32
    %47 = arith.addi %0, %c1_i32_33 : i32
    %c0_34 = arith.constant 0 : index
    %48 = arith.index_cast %47 : i32 to index
    %c2_35 = arith.constant 2 : index
    %c0_36 = arith.constant 0 : index
    %49 = vector.load %arg2[%c0_34, %48, %c2_35, %c0_36] : memref<1x18x18x8xbf16, #tpu.memory_space<vmem>>, vector<1x16x16x8xbf16>
    %50 = vector.shape_cast %49 : vector<1x16x16x8xbf16> to vector<16x16x8xbf16>
    %51 = vector.shape_cast %50 : vector<16x16x8xbf16> to vector<256x8xbf16>
    %c5 = arith.constant 5 : index
    %c0_37 = arith.constant 0 : index
    %c0_38 = arith.constant 0 : index
    %52 = vector.load %arg3[%c5, %c0_37, %c0_38] : memref<9x8x7xbf16, #tpu.memory_space<vmem>>, vector<1x8x7xbf16>
    %53 = vector.shape_cast %52 : vector<1x8x7xbf16> to vector<8x7xbf16>
    %cst_39 = arith.constant dense<0.000000e+00> : vector<256x7xf32>
    %54 = tpu.matmul %51, %53, %cst_39 {dimension_numbers = #tpu.dot_dimension_numbers<[1], [0], [0], [1], [0, 0, 1, 1], [], []>} : vector<256x8xbf16>, vector<8x7xbf16>, vector<256x7xf32> -> vector<256x7xf32>
    %55 = arith.addf %46, %54 : vector<256x7xf32>
    %c2_i32 = arith.constant 2 : i32
    %56 = arith.addi %0, %c2_i32 : i32
    %c0_40 = arith.constant 0 : index
    %57 = arith.index_cast %56 : i32 to index
    %c0_41 = arith.constant 0 : index
    %c0_42 = arith.constant 0 : index
    %58 = vector.load %arg2[%c0_40, %57, %c0_41, %c0_42] : memref<1x18x18x8xbf16, #tpu.memory_space<vmem>>, vector<1x16x16x8xbf16>
    %59 = vector.shape_cast %58 : vector<1x16x16x8xbf16> to vector<16x16x8xbf16>
    %60 = vector.shape_cast %59 : vector<16x16x8xbf16> to vector<256x8xbf16>
    %c6 = arith.constant 6 : index
    %c0_43 = arith.constant 0 : index
    %c0_44 = arith.constant 0 : index
    %61 = vector.load %arg3[%c6, %c0_43, %c0_44] : memref<9x8x7xbf16, #tpu.memory_space<vmem>>, vector<1x8x7xbf16>
    %62 = vector.shape_cast %61 : vector<1x8x7xbf16> to vector<8x7xbf16>
    %cst_45 = arith.constant dense<0.000000e+00> : vector<256x7xf32>
    %63 = tpu.matmul %60, %62, %cst_45 {dimension_numbers = #tpu.dot_dimension_numbers<[1], [0], [0], [1], [0, 0, 1, 1], [], []>} : vector<256x8xbf16>, vector<8x7xbf16>, vector<256x7xf32> -> vector<256x7xf32>
    %64 = arith.addf %55, %63 : vector<256x7xf32>
    %c2_i32_46 = arith.constant 2 : i32
    %65 = arith.addi %0, %c2_i32_46 : i32
    %c0_47 = arith.constant 0 : index
    %66 = arith.index_cast %65 : i32 to index
    %c1_48 = arith.constant 1 : index
    %c0_49 = arith.constant 0 : index
    %67 = vector.load %arg2[%c0_47, %66, %c1_48, %c0_49] : memref<1x18x18x8xbf16, #tpu.memory_space<vmem>>, vector<1x16x16x8xbf16>
    %68 = vector.shape_cast %67 : vector<1x16x16x8xbf16> to vector<16x16x8xbf16>
    %69 = vector.shape_cast %68 : vector<16x16x8xbf16> to vector<256x8xbf16>
    %c7 = arith.constant 7 : index
    %c0_50 = arith.constant 0 : index
    %c0_51 = arith.constant 0 : index
    %70 = vector.load %arg3[%c7, %c0_50, %c0_51] : memref<9x8x7xbf16, #tpu.memory_space<vmem>>, vector<1x8x7xbf16>
    %71 = vector.shape_cast %70 : vector<1x8x7xbf16> to vector<8x7xbf16>
    %cst_52 = arith.constant dense<0.000000e+00> : vector<256x7xf32>
    %72 = tpu.matmul %69, %71, %cst_52 {dimension_numbers = #tpu.dot_dimension_numbers<[1], [0], [0], [1], [0, 0, 1, 1], [], []>} : vector<256x8xbf16>, vector<8x7xbf16>, vector<256x7xf32> -> vector<256x7xf32>
    %73 = arith.addf %64, %72 : vector<256x7xf32>
    %c2_i32_53 = arith.constant 2 : i32
    %74 = arith.addi %0, %c2_i32_53 : i32
    %c0_54 = arith.constant 0 : index
    %75 = arith.index_cast %74 : i32 to index
    %c2_55 = arith.constant 2 : index
    %c0_56 = arith.constant 0 : index
    %76 = vector.load %arg2[%c0_54, %75, %c2_55, %c0_56] : memref<1x18x18x8xbf16, #tpu.memory_space<vmem>>, vector<1x16x16x8xbf16>
    %77 = vector.shape_cast %76 : vector<1x16x16x8xbf16> to vector<16x16x8xbf16>
    %78 = vector.shape_cast %77 : vector<16x16x8xbf16> to vector<256x8xbf16>
    %c8 = arith.constant 8 : index
    %c0_57 = arith.constant 0 : index
    %c0_58 = arith.constant 0 : index
    %79 = vector.load %arg3[%c8, %c0_57, %c0_58] : memref<9x8x7xbf16, #tpu.memory_space<vmem>>, vector<1x8x7xbf16>
    %80 = vector.shape_cast %79 : vector<1x8x7xbf16> to vector<8x7xbf16>
    %cst_59 = arith.constant dense<0.000000e+00> : vector<256x7xf32>
    %81 = tpu.matmul %78, %80, %cst_59 {dimension_numbers = #tpu.dot_dimension_numbers<[1], [0], [0], [1], [0, 0, 1, 1], [], []>} : vector<256x8xbf16>, vector<8x7xbf16>, vector<256x7xf32> -> vector<256x7xf32>
    %82 = arith.addf %73, %81 : vector<256x7xf32>
    %c0_60 = arith.constant 0 : index
    %c0_61 = arith.constant 0 : index
    %83 = vector.load %arg4[%c0_60, %c0_61] : memref<1x7xf32, #tpu.memory_space<vmem>>, vector<1x7xf32>
    %84 = vector.broadcast %83 : vector<1x7xf32> to vector<256x7xf32>
    %85 = arith.addf %82, %84 : vector<256x7xf32>
    %86 = vector.shape_cast %85 : vector<256x7xf32> to vector<16x16x7xf32>
    %c0_62 = arith.constant 0 : index
    %c0_63 = arith.constant 0 : index
    %c0_64 = arith.constant 0 : index
    %c0_65 = arith.constant 0 : index
    %87 = vector.load %arg5[%c0_62, %c0_63, %c0_64, %c0_65] : memref<1x16x16x7xf32, #tpu.memory_space<vmem>>, vector<1x16x16x7xf32>
    %88 = vector.shape_cast %87 : vector<1x16x16x7xf32> to vector<16x16x7xf32>
    %89 = vector.shape_cast %86 : vector<16x16x7xf32> to vector<1x16x16x7xf32>
    tpu.vector_store %arg5[%c0_62, %c0_63, %c0_64, %c0_65], %89 {strides = array<i32>} : memref<1x16x16x7xf32, #tpu.memory_space<vmem>>, vector<1x16x16x7xf32>,
    return
  }
  func.func @transform_0(%arg0: i32, %arg1: i32) -> (i32, i32, i32, i32) {
    %c0_i32 = arith.constant 0 : i32
    %c0_i32_0 = arith.constant 0 : i32
    %c0_i32_1 = arith.constant 0 : i32
    %c0_i32_2 = arith.constant 0 : i32
    return %arg0, %c0_i32, %c0_i32_0, %c0_i32_1 : i32, i32, i32, i32
  }
  func.func @transform_1(%arg0: i32, %arg1: i32) -> (i32, i32, i32) {
    %c0_i32 = arith.constant 0 : i32
    %c0_i32_0 = arith.constant 0 : i32
    %c0_i32_1 = arith.constant 0 : i32
    %c0_i32_2 = arith.constant 0 : i32
    return %c0_i32, %c0_i32_0, %c0_i32_1 : i32, i32, i32
  }
  func.func @transform_2(%arg0: i32, %arg1: i32) -> (i32, i32) {
    %c0_i32 = arith.constant 0 : i32
    %c0_i32_0 = arith.constant 0 : i32
    %c0_i32_1 = arith.constant 0 : i32
    return %c0_i32, %c0_i32_0 : i32, i32
  }
  func.func @transform_3(%arg0: i32, %arg1: i32) -> (i32, i32, i32, i32) {
    %c0_i32 = arith.constant 0 : i32
    %c0_i32_0 = arith.constant 0 : i32
    %c0_i32_1 = arith.constant 0 : i32
    return %arg0, %arg1, %c0_i32, %c0_i32_0 : i32, i32, i32, i32
  }
}

module attributes {stable_mosaic.version = 11 : i64} {
  func.func @_blend_kernel(%arg0: i32, %arg1: i32, %arg2: memref<2x1xf32, #tpu.memory_space<smem>>, %arg3: memref<1x6x16x16xf32, #tpu.memory_space<vmem>>, %arg4: memref<1x3x16x16xf32, #tpu.memory_space<vmem>>, %arg5: memref<1x3x16x16xf32, #tpu.memory_space<vmem>>, %arg6: memref<1x3x16x16xf32, #tpu.memory_space<vmem>>, %arg7: memref<1x3x16x16xf32, #tpu.memory_space<vmem>>, %arg8: memref<1x3x16x16xf32, #tpu.memory_space<vmem>>, %arg9: memref<1x3x16x16xf32, #tpu.memory_space<vmem>>, %arg10: memref<1x3x16x16xf32, #tpu.memory_space<vmem>>, %arg11: memref<1x1x16x16xf32, #tpu.memory_space<vmem>>) attributes {dimension_semantics = [#tpu.dimension_semantics<parallel>, #tpu.dimension_semantics<parallel>], iteration_bounds = array<i64: 2, 1>, scalar_prefetch = 0 : i64, scratch_operands = 0 : i64, tpu.core_type = #tpu.core_type<tc>, window_params = [{transform_indices = @transform_0, window_bounds = array<i64: 2, 1>}, {transform_indices = @transform_1, window_bounds = array<i64: 1, 6, 16, 16>}, {transform_indices = @transform_2, window_bounds = array<i64: 1, 3, 16, 16>}, {transform_indices = @transform_3, window_bounds = array<i64: 1, 3, 16, 16>}, {transform_indices = @transform_4, window_bounds = array<i64: 1, 3, 16, 16>}, {transform_indices = @transform_5, window_bounds = array<i64: 1, 3, 16, 16>}, {transform_indices = @transform_6, window_bounds = array<i64: 1, 3, 16, 16>}, {transform_indices = @transform_7, window_bounds = array<i64: 1, 3, 16, 16>}, {transform_indices = @transform_8, window_bounds = array<i64: 1, 3, 16, 16>}, {transform_indices = @transform_9, window_bounds = array<i64: 1, 1, 16, 16>}]} {
    %0 = arith.index_cast %arg0 : i32 to index
    %c0 = arith.constant 0 : index
    %1 = memref.load %arg2[%0, %c0] : memref<2x1xf32, #tpu.memory_space<smem>>
    %cst = arith.constant 1.000000e+00 : f32
    %2 = arith.subf %cst, %1 : f32
    %c0_0 = arith.constant 0 : index
    %c0_1 = arith.constant 0 : index
    %c0_2 = arith.constant 0 : index
    %c0_3 = arith.constant 0 : index
    %3 = vector.load %arg3[%c0_0, %c0_1, %c0_2, %c0_3] : memref<1x6x16x16xf32, #tpu.memory_space<vmem>>, vector<1x6x16x16xf32>
    %4 = vector.shape_cast %3 : vector<1x6x16x16xf32> to vector<6x16x16xf32>
    %cst_4 = arith.constant dense<0xFF800000> : vector<16x16xf32>
    %5 = vector.multi_reduction <maximumf>, %4, %cst_4 [0] : vector<6x16x16xf32> to vector<16x16xf32>
    %6 = vector.shape_cast %5 : vector<16x16xf32> to vector<1x16x16xf32>
    %7 = vector.broadcast %6 : vector<1x16x16xf32> to vector<6x16x16xf32>
    %8 = arith.subf %4, %7 : vector<6x16x16xf32>
    %9 = math.exp %8 : vector<6x16x16xf32>
    %cst_5 = arith.constant dense<0.000000e+00> : vector<16x16xf32>
    %10 = vector.multi_reduction <add>, %9, %cst_5 [0] : vector<6x16x16xf32> to vector<16x16xf32>
    %11 = vector.shape_cast %10 : vector<16x16xf32> to vector<1x16x16xf32>
    %12 = vector.extract_strided_slice %9 {offsets = [0, 0, 0], sizes = [1, 16, 16], strides = [1, 1, 1]} : vector<6x16x16xf32> to vector<1x16x16xf32>
    %13 = tpu.reciprocal %11 {approx = true} : vector<1x16x16xf32> -> vector<1x16x16xf32>
    %14 = arith.mulf %12, %13 : vector<1x16x16xf32>
    %c0_6 = arith.constant 0 : index
    %c0_7 = arith.constant 0 : index
    %c0_8 = arith.constant 0 : index
    %c0_9 = arith.constant 0 : index
    %15 = vector.load %arg11[%c0_6, %c0_7, %c0_8, %c0_9] : memref<1x1x16x16xf32, #tpu.memory_space<vmem>>, vector<1x1x16x16xf32>
    %16 = vector.shape_cast %15 : vector<1x1x16x16xf32> to vector<1x16x16xf32>
    %17 = vector.shape_cast %14 : vector<1x16x16xf32> to vector<1x1x16x16xf32>
    tpu.vector_store %arg11[%c0_6, %c0_7, %c0_8, %c0_9], %17 {strides = array<i32>} : memref<1x1x16x16xf32, #tpu.memory_space<vmem>>, vector<1x1x16x16xf32>,
    %18 = vector.extract_strided_slice %9 {offsets = [0, 0, 0], sizes = [1, 16, 16], strides = [1, 1, 1]} : vector<6x16x16xf32> to vector<1x16x16xf32>
    %19 = vector.shape_cast %18 : vector<1x16x16xf32> to vector<16x16xf32>
    %20 = vector.extract_strided_slice %9 {offsets = [1, 0, 0], sizes = [1, 16, 16], strides = [1, 1, 1]} : vector<6x16x16xf32> to vector<1x16x16xf32>
    %21 = vector.shape_cast %20 : vector<1x16x16xf32> to vector<16x16xf32>
    %22 = vector.extract_strided_slice %9 {offsets = [2, 0, 0], sizes = [1, 16, 16], strides = [1, 1, 1]} : vector<6x16x16xf32> to vector<1x16x16xf32>
    %23 = vector.shape_cast %22 : vector<1x16x16xf32> to vector<16x16xf32>
    %24 = vector.extract_strided_slice %9 {offsets = [3, 0, 0], sizes = [1, 16, 16], strides = [1, 1, 1]} : vector<6x16x16xf32> to vector<1x16x16xf32>
    %25 = vector.shape_cast %24 : vector<1x16x16xf32> to vector<16x16xf32>
    %26 = vector.extract_strided_slice %9 {offsets = [4, 0, 0], sizes = [1, 16, 16], strides = [1, 1, 1]} : vector<6x16x16xf32> to vector<1x16x16xf32>
    %27 = vector.shape_cast %26 : vector<1x16x16xf32> to vector<16x16xf32>
    %28 = vector.extract_strided_slice %9 {offsets = [5, 0, 0], sizes = [1, 16, 16], strides = [1, 1, 1]} : vector<6x16x16xf32> to vector<1x16x16xf32>
    %29 = vector.shape_cast %28 : vector<1x16x16xf32> to vector<16x16xf32>
    %30 = arith.addf %19, %23 : vector<16x16xf32>
    %31 = arith.addf %30, %27 : vector<16x16xf32>
    %32 = vector.broadcast %2 : f32 to vector<16x16xf32>
    %33 = arith.mulf %32, %31 : vector<16x16xf32>
    %34 = arith.addf %21, %25 : vector<16x16xf32>
    %35 = arith.addf %34, %29 : vector<16x16xf32>
    %36 = vector.broadcast %1 : f32 to vector<16x16xf32>
    %37 = arith.mulf %36, %35 : vector<16x16xf32>
    %38 = arith.addf %33, %37 : vector<16x16xf32>
    %39 = vector.broadcast %2 : f32 to vector<16x16xf32>
    %40 = arith.mulf %39, %19 : vector<16x16xf32>
    %c0_10 = arith.constant 0 : index
    %c0_11 = arith.constant 0 : index
    %c0_12 = arith.constant 0 : index
    %c0_13 = arith.constant 0 : index
    %41 = vector.load %arg4[%c0_10, %c0_11, %c0_12, %c0_13] : memref<1x3x16x16xf32, #tpu.memory_space<vmem>>, vector<1x3x16x16xf32>
    %42 = vector.shape_cast %41 : vector<1x3x16x16xf32> to vector<3x16x16xf32>
    %43 = vector.shape_cast %40 : vector<16x16xf32> to vector<1x16x16xf32>
    %44 = vector.broadcast %43 : vector<1x16x16xf32> to vector<3x16x16xf32>
    %45 = arith.mulf %44, %42 : vector<3x16x16xf32>
    %46 = vector.broadcast %1 : f32 to vector<16x16xf32>
    %47 = arith.mulf %46, %21 : vector<16x16xf32>
    %c0_14 = arith.constant 0 : index
    %c0_15 = arith.constant 0 : index
    %c0_16 = arith.constant 0 : index
    %c0_17 = arith.constant 0 : index
    %48 = vector.load %arg5[%c0_14, %c0_15, %c0_16, %c0_17] : memref<1x3x16x16xf32, #tpu.memory_space<vmem>>, vector<1x3x16x16xf32>
    %49 = vector.shape_cast %48 : vector<1x3x16x16xf32> to vector<3x16x16xf32>
    %50 = vector.shape_cast %47 : vector<16x16xf32> to vector<1x16x16xf32>
    %51 = vector.broadcast %50 : vector<1x16x16xf32> to vector<3x16x16xf32>
    %52 = arith.mulf %51, %49 : vector<3x16x16xf32>
    %53 = arith.addf %45, %52 : vector<3x16x16xf32>
    %54 = vector.broadcast %2 : f32 to vector<16x16xf32>
    %55 = arith.mulf %54, %23 : vector<16x16xf32>
    %c0_18 = arith.constant 0 : index
    %c0_19 = arith.constant 0 : index
    %c0_20 = arith.constant 0 : index
    %c0_21 = arith.constant 0 : index
    %56 = vector.load %arg6[%c0_18, %c0_19, %c0_20, %c0_21] : memref<1x3x16x16xf32, #tpu.memory_space<vmem>>, vector<1x3x16x16xf32>
    %57 = vector.shape_cast %56 : vector<1x3x16x16xf32> to vector<3x16x16xf32>
    %58 = vector.shape_cast %55 : vector<16x16xf32> to vector<1x16x16xf32>
    %59 = vector.broadcast %58 : vector<1x16x16xf32> to vector<3x16x16xf32>
    %60 = arith.mulf %59, %57 : vector<3x16x16xf32>
    %61 = arith.addf %53, %60 : vector<3x16x16xf32>
    %62 = vector.broadcast %1 : f32 to vector<16x16xf32>
    %63 = arith.mulf %62, %25 : vector<16x16xf32>
    %c0_22 = arith.constant 0 : index
    %c0_23 = arith.constant 0 : index
    %c0_24 = arith.constant 0 : index
    %c0_25 = arith.constant 0 : index
    %64 = vector.load %arg7[%c0_22, %c0_23, %c0_24, %c0_25] : memref<1x3x16x16xf32, #tpu.memory_space<vmem>>, vector<1x3x16x16xf32>
    %65 = vector.shape_cast %64 : vector<1x3x16x16xf32> to vector<3x16x16xf32>
    %66 = vector.shape_cast %63 : vector<16x16xf32> to vector<1x16x16xf32>
    %67 = vector.broadcast %66 : vector<1x16x16xf32> to vector<3x16x16xf32>
    %68 = arith.mulf %67, %65 : vector<3x16x16xf32>
    %69 = arith.addf %61, %68 : vector<3x16x16xf32>
    %70 = vector.broadcast %2 : f32 to vector<16x16xf32>
    %71 = arith.mulf %70, %27 : vector<16x16xf32>
    %c0_26 = arith.constant 0 : index
    %c0_27 = arith.constant 0 : index
    %c0_28 = arith.constant 0 : index
    %c0_29 = arith.constant 0 : index
    %72 = vector.load %arg8[%c0_26, %c0_27, %c0_28, %c0_29] : memref<1x3x16x16xf32, #tpu.memory_space<vmem>>, vector<1x3x16x16xf32>
    %73 = vector.shape_cast %72 : vector<1x3x16x16xf32> to vector<3x16x16xf32>
    %74 = vector.shape_cast %71 : vector<16x16xf32> to vector<1x16x16xf32>
    %75 = vector.broadcast %74 : vector<1x16x16xf32> to vector<3x16x16xf32>
    %76 = arith.mulf %75, %73 : vector<3x16x16xf32>
    %77 = arith.addf %69, %76 : vector<3x16x16xf32>
    %78 = vector.broadcast %1 : f32 to vector<16x16xf32>
    %79 = arith.mulf %78, %29 : vector<16x16xf32>
    %c0_30 = arith.constant 0 : index
    %c0_31 = arith.constant 0 : index
    %c0_32 = arith.constant 0 : index
    %c0_33 = arith.constant 0 : index
    %80 = vector.load %arg9[%c0_30, %c0_31, %c0_32, %c0_33] : memref<1x3x16x16xf32, #tpu.memory_space<vmem>>, vector<1x3x16x16xf32>
    %81 = vector.shape_cast %80 : vector<1x3x16x16xf32> to vector<3x16x16xf32>
    %82 = vector.shape_cast %79 : vector<16x16xf32> to vector<1x16x16xf32>
    %83 = vector.broadcast %82 : vector<1x16x16xf32> to vector<3x16x16xf32>
    %84 = arith.mulf %83, %81 : vector<3x16x16xf32>
    %85 = arith.addf %77, %84 : vector<3x16x16xf32>
    %86 = vector.shape_cast %38 : vector<16x16xf32> to vector<1x16x16xf32>
    %87 = vector.broadcast %86 : vector<1x16x16xf32> to vector<3x16x16xf32>
    %88 = arith.divf %85, %87 : vector<3x16x16xf32>
    %c0_34 = arith.constant 0 : index
    %c0_35 = arith.constant 0 : index
    %c0_36 = arith.constant 0 : index
    %c0_37 = arith.constant 0 : index
    %89 = vector.load %arg10[%c0_34, %c0_35, %c0_36, %c0_37] : memref<1x3x16x16xf32, #tpu.memory_space<vmem>>, vector<1x3x16x16xf32>
    %90 = vector.shape_cast %89 : vector<1x3x16x16xf32> to vector<3x16x16xf32>
    %91 = vector.shape_cast %88 : vector<3x16x16xf32> to vector<1x3x16x16xf32>
    tpu.vector_store %arg10[%c0_34, %c0_35, %c0_36, %c0_37], %91 {strides = array<i32>} : memref<1x3x16x16xf32, #tpu.memory_space<vmem>>, vector<1x3x16x16xf32>,
    return
  }
  func.func @transform_0(%arg0: i32, %arg1: i32) -> (i32, i32) {
    %c0_i32 = arith.constant 0 : i32
    %c0_i32_0 = arith.constant 0 : i32
    %c0_i32_1 = arith.constant 0 : i32
    return %c0_i32, %c0_i32_0 : i32, i32
  }
  func.func @transform_1(%arg0: i32, %arg1: i32) -> (i32, i32, i32, i32) {
    %c0_i32 = arith.constant 0 : i32
    %c0_i32_0 = arith.constant 0 : i32
    %c0_i32_1 = arith.constant 0 : i32
    return %arg0, %c0_i32, %arg1, %c0_i32_0 : i32, i32, i32, i32
  }
  func.func @transform_2(%arg0: i32, %arg1: i32) -> (i32, i32, i32, i32) {
    %c0_i32 = arith.constant 0 : i32
    %c0_i32_0 = arith.constant 0 : i32
    %c0_i32_1 = arith.constant 0 : i32
    return %arg0, %c0_i32, %arg1, %c0_i32_0 : i32, i32, i32, i32
  }
  func.func @transform_3(%arg0: i32, %arg1: i32) -> (i32, i32, i32, i32) {
    %c0_i32 = arith.constant 0 : i32
    %c0_i32_0 = arith.constant 0 : i32
    %c0_i32_1 = arith.constant 0 : i32
    return %arg0, %c0_i32, %arg1, %c0_i32_0 : i32, i32, i32, i32
  }
  func.func @transform_4(%arg0: i32, %arg1: i32) -> (i32, i32, i32, i32) {
    %c0_i32 = arith.constant 0 : i32
    %c0_i32_0 = arith.constant 0 : i32
    %c0_i32_1 = arith.constant 0 : i32
    return %arg0, %c0_i32, %arg1, %c0_i32_0 : i32, i32, i32, i32
  }
  func.func @transform_5(%arg0: i32, %arg1: i32) -> (i32, i32, i32, i32) {
    %c0_i32 = arith.constant 0 : i32
    %c0_i32_0 = arith.constant 0 : i32
    %c0_i32_1 = arith.constant 0 : i32
    return %arg0, %c0_i32, %arg1, %c0_i32_0 : i32, i32, i32, i32
  }
  func.func @transform_6(%arg0: i32, %arg1: i32) -> (i32, i32, i32, i32) {
    %c0_i32 = arith.constant 0 : i32
    %c0_i32_0 = arith.constant 0 : i32
    %c0_i32_1 = arith.constant 0 : i32
    return %arg0, %c0_i32, %arg1, %c0_i32_0 : i32, i32, i32, i32
  }
  func.func @transform_7(%arg0: i32, %arg1: i32) -> (i32, i32, i32, i32) {
    %c0_i32 = arith.constant 0 : i32
    %c0_i32_0 = arith.constant 0 : i32
    %c0_i32_1 = arith.constant 0 : i32
    return %arg0, %c0_i32, %arg1, %c0_i32_0 : i32, i32, i32, i32
  }
  func.func @transform_8(%arg0: i32, %arg1: i32) -> (i32, i32, i32, i32) {
    %c0_i32 = arith.constant 0 : i32
    %c0_i32_0 = arith.constant 0 : i32
    %c0_i32_1 = arith.constant 0 : i32
    return %arg0, %c0_i32, %arg1, %c0_i32_0 : i32, i32, i32, i32
  }
  func.func @transform_9(%arg0: i32, %arg1: i32) -> (i32, i32, i32, i32) {
    %c0_i32 = arith.constant 0 : i32
    %c0_i32_0 = arith.constant 0 : i32
    %c0_i32_1 = arith.constant 0 : i32
    return %arg0, %c0_i32, %arg1, %c0_i32_0 : i32, i32, i32, i32
  }
}

</mosaic_0001>

<bundles_post_ra>
// kernel: dctvfinet_forward.13
= control target key start
LH: loop header
LB: loop body
LE: loop exit
PB: predicated region body
PF: predicated region fallthrough
CT: control target
= control target key end

     0   :  { %s2491_s12 = smov 0   ;;  %s2493_s13 = smov 0   ;;  %s3083_s0 = inlined_call_operand.vmem [shape: bf16[2,10,10,24], index: 0, kind: input, shape index: {}]   ;;  %s3084_s1 = inlined_call_operand.vmem [shape: bf16[9,24,24], index: 1, kind: input, shape index: {}]   ;;  %s3085_s2 = inlined_call_operand.vmem [shape: f32[1,24], index: 2, kind: input, shape index: {}]   ;;  %s3086_s3 = inlined_call_operand.vmem [shape: bf16[2,8,8,24], index: 3, kind: output, shape index: {}]  }
   0x1   :  { %s2495_s14 = smov 0  }
   0x2 LB: > { %s25_s15 = sadd.s32 1, %s2465_s13  ;;  %p1942_p0 = scmp.ge.s32.totalorder %s2469_s14, 1  ;;  %s2469_s14 = sphi %s2495_s14, %s13_s14   ;;  %s2465_s13 = sphi %s2493_s13, %s3092_s13   ;;  %s2461_s12 = sphi %s2491_s12, %s3091_s12  }
   0x3   : > { %p27_p1 = scmp.ge.s32.totalorder %s25_s15, 2  ;;  %p151_p2 = scmp.lt.s32.totalorder %s2469_s14, 3 }
   0x5   : > { %s3094_s15 = smov (%p27_p1, %s25_s15), 0  ;;  %p152_p3 = pnand %p1942_p0, %p151_p2 }
   0x6   : > { %v2417_v0 = vld [vmem:[%s3084_s1 + $0xc] sm:$0xff] (!%p152_p3)   ;;  %vm371_vm0 = vcmask (!%p152_p3), 1043456   ;;  %p179_p4 = scmp.lt.s32.totalorder (!%p152_p3), %s2461_s12, 1  ;;  %v2419_v2 = vld [vmem:[%s3084_s1 + $0x14] ss:$0 sps:$4 sm:$0xff] (!%p152_p3)   ;;  %v2534_v5 = vld [vmem:[%s3084_s1] sm:$0xff] (!%p152_p3)  }
   0x7   : > { %155 = sbr.rel (%p152_p3) target bundleno = 339 (0x153), region = 32  ;;  %v2515_v1 = vld [vmem:[%s3084_s1 + $0x30] sm:$0xff] (!%p152_p3)   ;;  %2206 = vmatprep.subr.bf16.mxu1 (!%p152_p3), %v2417_v0  ;;  %v2524_v3 = vld [vmem:[%s3084_s1 + $0x38] ss:$0 sps:$4 sm:$0xff] (!%p152_p3)   ;;  %v373_v4 = vsel (!%p152_p3), %vm371_vm0, %v2419_v2, 0  ;;  %v2546_v7 = vld [vmem:[%s3084_s1 + $0x3c] sm:$0xff] (!%p152_p3)  }
   0x8   : > { %2254 = vmatprep.subr.bf16.mxu0 (!%p152_p3), %v2515_v1  ;;  %2207 = vmatpush3.bf16.msra.mxu1 (!%p152_p3), %v2417_v0  ;;  %v2540_v6 = vsel (!%p152_p3), %vm371_vm0, %v2524_v3, 0  ;;  %vm218_vm1 = vsmask.f32 (!%p152_p3), 3328  ;;  %vm219_vm2 = vsmask.f32 (!%p152_p3), 7440  ;;  %vm358_vm4 = vcmask (!%p152_p3), 195584  }
   0x9   : > { %2255 = vmatpush3.bf16.msra.mxu0 (!%p152_p3), %v2515_v1  ;;  %2382 = vmatprep.subr.msk.bf16.mxu1 (!%p152_p3), %vm371_vm0, %v2419_v2  ;;  %vm2585_vm3 = vmor (!%p152_p3), %vm218_vm1, %vm219_vm2  ;;  %vm573_vm5 = vcmask (!%p152_p3), 1042432   ;;  %vm574_vm6 = vcmask (!%p152_p3), 1046532   ;;  %vm1838_vm8 = vcmask (!%p152_p3), 191488  }
   0xa   : > { %2386 = vmatprep.subr.msk.bf16.mxu0 (!%p152_p3), %vm371_vm0, %v2524_v3  ;;  %vm2719_vm7 = vmor (!%p152_p3), %vm573_vm5, %vm574_vm6 }
   0xc   : > { %2209 = vmatpush3.bf16.msra.mxu1 (!%p152_p3), %v373_v4 }
   0xd   : > { %2257 = vmatpush3.bf16.msra.mxu0 (!%p152_p3), %v2540_v6  ;;  %2218 = vmatprep.subr.bf16.mxu1 (!%p152_p3), %v2534_v5 }
   0xe   : > { %s3096_s12 = smov (!%p179_p4, %s2461_s12), 1  ;;  %2266 = vmatprep.subr.bf16.mxu0 %v2546_v7 }
   0xf   : > { %s2392_s26 = smul.u32 80, %s3096_s12  ;;  %s2151_s8 = sshll.u32 %s3096_s12, 5 }
  0x10   : > { %s3056_s11 = scalar_lea.vmem %s3086_s3, %s2151_s8 }
  0x11   : > { %s2551_s4 = scalar_lea.vmem %s3083_s0, %s2392_s26 }
  0x12   : > { %v2555_v8 = vld [vmem:[%s2551_s4] sm:$0xf]  ;;  %v2558_v9 = vld [vmem:[%s2551_s4 + $0x8] sm:$0xf]  ;;  %v2561_v10 = vld [vmem:[%s2551_s4 + $0x4] sm:$0x1] }
  0x13   : > { %v2565_v11 = vld [vmem:[%s2551_s4 + $0xc] sm:$0x1]  ;;  %v222_v12 = vshrl.u32 %v2555_v8, 16  ;;  %v225_v13 = vshll.u32 %v2555_v8, 16  ;;  %v231_v14 = vshll.u32 %v2561_v10, 16  ;;  %v236_v15 = vshrl.u32 %v2558_v9, 16 }
  0x14   : > { %v239_v16 = vshll.u32 %v2558_v9, 16  ;;  %v245_v17 = vshll.u32 %v2565_v11, 16  ;;  %v2011_v18 = vld [vmem:[%s2551_s4 + $0x8] sm:$0xf]  ;;  %v2576_v23 = vld [vmem:[%s2551_s4 + $0xc] sm:$0x1] }
  0x15   : > { %v224_v19 = vrot.slane %v222_v12, 4  ;;  %v227_v20 = vrot.slane %v225_v13, 5  ;;  %v233_v21 = vrot.slane %v231_v14, 5  ;;  %v238_v22 = vrot.slane %v236_v15, 4  ;;  %v2013_v26 = vld [vmem:[%s2551_s4 + $0x10] sm:$0xf] }
  0x16   : > { %v241_v24 = vrot.slane %v239_v16, 5  ;;  %v247_v25 = vrot.slane %v245_v17, 5  ;;  %v2580_v27 = vld [vmem:[%s2551_s4 + $0x14] sm:$0x1]  ;;  %v871_v29 = vshrl.u32 %v2011_v18, 16  ;;  %v874_v30 = vshll.u32 %v2011_v18, 16 }
  0x17   : > { %v228_v28 = vor.u32 %v227_v20, %v224_v19  ;;  %v880_v31 = vshll.u32 %v2576_v23, 16  ;;  %v885_v34 = vshrl.u32 %v2013_v26, 16  ;;  %v888_v35 = vshll.u32 %v2013_v26, 16  ;;  %v2591_v37 = vld [vmem:[%s2551_s4 + $0x10] sm:$0xf] }
  0x18   : > { %v242_v33 = vor.u32 %v241_v24, %v238_v22  ;;  %v894_v36 = vshll.u32 %v2580_v27, 16  ;;  %v873_v39 = vrot.slane %v871_v29, 4  ;;  %v876_v40 = vrot.slane %v874_v30, 5  ;;  %v2594_v41 = vld [vmem:[%s2551_s4 + $0x18] sm:$0xf] }
  0x19   : > { %v229_v38 = vrot.slane %v228_v28, 4  ;;  %v887_v43 = vrot.slane %v885_v34, 4  ;;  %v890_v44 = vrot.slane %v888_v35, 5  ;;  %v2597_v45 = vld [vmem:[%s2551_s4 + $0x14] sm:$0x1]  ;;  %v882_v48 = vrot.slane %v880_v31, 5 }
  0x1a   : > { %v243_v42 = vrot.slane %v242_v33, 4  ;;  %v877_v47 = vor.u32 %v876_v40, %v873_v39  ;;  %v896_v49 = vrot.slane %v894_v36, 5  ;;  %v2604_v52 = vld [vmem:[%s2551_s4 + $0x1c] sm:$0x1]  ;;  %v250_v53 = vshrl.u32 %v2591_v37, 16 }
  0x1b   : > { %v234_v46 = vsel %vm2585_vm3, %v229_v38, %v233_v21  ;;  %v891_v51 = vor.u32 %v890_v44, %v887_v43  ;;  %v253_v54 = vshll.u32 %v2591_v37, 16  ;;  %v259_v57 = vshll.u32 %v2597_v45, 16  ;;  %v2015_v63 = vld [vmem:[%s2551_s4 + $0x18] sm:$0xf]  ;;  %v2618_v13 = vld [vmem:[%s2551_s4 + $0x1c] sm:$0x1] }
  0x1c   : > { %v248_v50 = vsel %vm2585_vm3, %v243_v42, %v247_v25  ;;  %v878_v56 = vrot.slane %v877_v47, 4  ;;  %v264_v58 = vshrl.u32 %v2594_v41, 16  ;;  %v252_v60 = vrot.slane %v250_v53, 4  ;;  %v2017_v18 = vld [vmem:[%s2551_s4 + $0x20] sm:$0xf] }
  0x1d   : > { %v1949_v55 = vcombine.low %v234_v46, %v248_v50  ;;  %v892_v59 = vrot.slane %v891_v51, 4  ;;  %v255_v61 = vrot.slane %v253_v54, 5  ;;  %v267_v62 = vshll.u32 %v2594_v41, 16  ;;  %v2624_v19 = vld [vmem:[%s2551_s4 + $0x24] sm:$0x1] }
  0x1e   : > { %v883_v0 = vsel %vm2585_vm3, %v878_v56, %v882_v48  ;;  %v1121_v2 = vrot.slane %v2576_v23, 5  ;;  %v266_v4 = vrot.slane %v264_v58, 4  ;;  %v273_v12 = vshll.u32 %v2604_v52, 16  ;;  %v2630_v25 = vld [vmem:[%s3084_s1 + $0x44] ss:$0 sps:$4 sm:$0xff]  }
  0x1f   : > { %2210 = vmatprep.mubr.msk.bf16.mxu1 %vm358_vm4, %v1949_v55  ;;  %v897_v14 = vsel %vm2585_vm3, %v892_v59, %v896_v49  ;;  %v256_v15 = vor.u32 %v255_v61, %v252_v60  ;;  %v261_v16 = vrot.slane %v259_v57, 5  ;;  %v269_v17 = vrot.slane %v267_v62, 5  ;;  %v2634_v31 = vld [vmem:[%s2551_s4 + $0x20] sm:$0xf]  ;;  %v2639_v38 = vld [vmem:[%s2551_s4 + $0x28] sm:$0xf] }
  0x20   : > { %v2030_v20 = vcombine.low %v883_v0, %v897_v14  ;;  %v1125_v21 = vrot.slane %v2580_v27, 5  ;;  %v275_v22 = vrot.slane %v273_v12, 5  ;;  %v899_v24 = vshrl.u32 %v2015_v63, 16  ;;  %v2644_v44 = vld [vmem:[%s2551_s4 + $0x24] sm:$0x1] }
  0x21   : > { %v257_v26 = vrot.slane %v256_v15, 4  ;;  %v270_v28 = vor.u32 %v269_v17, %v266_v4  ;;  %v902_v29 = vshll.u32 %v2015_v63, 16  ;;  %v908_v30 = vshll.u32 %v2618_v13, 16  ;;  %v2648_v50 = vld [vmem:[%s2551_s4 + $0x2c] sm:$0x1] }
  0x22   : > { %2258 = vmatprep.mubr.msk.bf16.mxu0 %vm358_vm4, %v2030_v20  ;;  %v901_v33 = vrot.slane %v899_v24, 4  ;;  %v913_v34 = vshrl.u32 %v2017_v18, 16  ;;  %v916_v35 = vshll.u32 %v2017_v18, 16  ;;  %v922_v36 = vshll.u32 %v2624_v19, 16  ;;  %v2424_v51 = vld [vmem:[%s3084_s1 + $0x8] ss:$0 sps:$4 sm:$0xff]  }
  0x23   : > { %v262_v39 = vsel %vm2585_vm3, %v257_v26, %v261_v16  ;;  %v271_v40 = vrot.slane %v270_v28, 4  ;;  %v904_v42 = vrot.slane %v902_v29, 5  ;;  %v910_v43 = vrot.slane %v908_v30, 5  ;;  %v2663_v61 = vld [vmem:[%s2551_s4 + $0x30] sm:$0xf] }
  0x24   : > { %v915_v46 = vrot.slane %v913_v34, 4  ;;  %v918_v47 = vrot.slane %v916_v35, 5  ;;  %v924_v48 = vrot.slane %v922_v36, 5  ;;  %v1129_v49 = vrot.slane %v2618_v13, 5  ;;  %v2666_v62 = vld [vmem:[%s2551_s4 + $0x34] sm:$0x1] }
  0x25   : > { %v276_v53 = vsel %vm2585_vm3, %v271_v40, %v275_v22  ;;  %v905_v54 = vor.u32 %v904_v42, %v901_v33  ;;  %v1133_v55 = vrot.slane %v2624_v19, 5  ;;  %v2658_v56 = vsel %vm371_vm0, %v2630_v25, 0  ;;  %v2677_v26 = vld [vmem:[%s2551_s4 + $0x38] sm:$0xf]  ;;  %v2683_v33 = vld [vmem:[%s2551_s4 + $0x3c] sm:$0x1] }
  0x26   : > { %v1950_v57 = vcombine.low %v262_v39, %v276_v53  ;;  %v919_v58 = vor.u32 %v918_v47, %v915_v46  ;;  %v278_v59 = vshrl.u32 %v2634_v31, 16  ;;  %v281_v60 = vshll.u32 %v2634_v31, 16  ;;  %v2689_v34 = vld [vmem:[%s3084_s1 + $0x18] sm:$0xff]   ;;  %v2040_v42 = vld [vmem:[%s2551_s4 + $0x8] sm:$0xe] }
  0x27   : > { %v906_v63 = vrot.slane %v905_v54, 4  ;;  %v287_v0 = vshll.u32 %v2644_v44, 16  ;;  %v292_v4 = vshrl.u32 %v2639_v38, 16  ;;  %v295_v12 = vshll.u32 %v2639_v38, 16  ;;  %v2041_v53 = vld [vmem:[%s2551_s4 + $0x10] sm:$0xe] }
  0x28   : > { %2211 = vmatmul.mubr.msk.bf16.vlgmr.msra.gmra.mrb[0].mxu1 %vm358_vm4, %v1950_v57  ;;  %v920_v14 = vrot.slane %v919_v58, 4  ;;  %v280_v15 = vrot.slane %v278_v59, 4  ;;  %v283_v16 = vrot.slane %v281_v60, 5  ;;  %v301_v17 = vshll.u32 %v2648_v50, 16  ;;  %v2042_v60 = vld [vmem:[%s2551_s4 + $0x18] sm:$0xe] }
  0x29   : > { %2219 = vmatpush3.bf16.msra.mxu1 %v2534_v5  ;;  %v911_v18 = vsel %vm2585_vm3, %v906_v63, %v910_v43  ;;  %v289_v20 = vrot.slane %v287_v0, 5  ;;  %v294_v22 = vrot.slane %v292_v4, 4  ;;  %v297_v24 = vrot.slane %v295_v12, 5  ;;  %v2760_v13 = vld [vmem:[%s2551_s4 + $0x44] sm:$0x1] }
  0x2a   : > { %v925_v28 = vsel %vm2585_vm3, %v920_v14, %v924_v48  ;;  %v284_v29 = vor.u32 %v283_v16, %v280_v15  ;;  %v303_v30 = vrot.slane %v301_v17, 5  ;;  %2383 = vmatprep.subr.msk.bf16.mxu1 %vm371_vm0, %v2424_v51  ;;  %v306_v5 = vshrl.u32 %v2663_v61, 16  ;;  %v2707_v14 = vld [vmem:[%s3084_s1 + $0x48] sm:$0xff]   ;;  %v2043_v15 = vld [vmem:[%s2551_s4 + $0x20] sm:$0xe] }
  0x2b   : > { %v2031_v35 = vcombine.low %v911_v18, %v925_v28  ;;  %v298_v36 = vor.u32 %v297_v24, %v294_v22  ;;  %v309_v39 = vshll.u32 %v2663_v61, 16  ;;  %v315_v40 = vshll.u32 %v2666_v62, 16  ;;  %v2044_v18 = vld [vmem:[%s2551_s4 + $0x28] sm:$0xe]  ;;  %v2148_v24 = vld [vmem:[%s3085_s2] ss:$0 sm:$0xff] }
  0x2c   : > { %v285_v43 = vrot.slane %v284_v29, 4  ;;  %v308_v46 = vrot.slane %v306_v5, 4  ;;  %v320_v47 = vshrl.u32 %v2677_v26, 16  ;;  %v323_v48 = vshll.u32 %v2677_v26, 16  ;;  %v2725_v29 = vld [vmem:[%s2551_s4 + $0x34] sm:$0x1] }
  0x2d   : > { %2259 = vmatmul.mubr.msk.bf16.vlgmr.msra.gmra.mrb[0].mxu0 %vm358_vm4, %v2031_v35  ;;  %v299_v54 = vrot.slane %v298_v36, 4  ;;  %v311_v57 = vrot.slane %v309_v39, 5  ;;  %v317_v58 = vrot.slane %v315_v40, 5  ;;  %v329_v59 = vshll.u32 %v2683_v33, 16  ;;  %v2729_v39 = vld [vmem:[%s2551_s4 + $0x3c] sm:$0x1] }
  0x2e   : > { %2267 = vmatpush3.bf16.msra.mxu0 %v2546_v7  ;;  %v290_v63 = vsel %vm2585_vm3, %v285_v43, %v289_v20  ;;  %v322_v0 = vrot.slane %v320_v47, 4  ;;  %v325_v4 = vrot.slane %v323_v48, 5  ;;  %v482_v12 = vsel %vm371_vm0, %v2424_v51, 0  ;;  %v2715_v51 = vld [vmem:[%s2551_s4 + $0x2c] sm:$0x1] }
  0x2f   : > { %2388 = vmatprep.subr.msk.bf16.mxu0 %vm371_vm0, %v2630_v25  ;;  %v304_v7 = vsel %vm2585_vm3, %v299_v54, %v303_v30  ;;  %v312_v16 = vor.u32 %v311_v57, %v308_v46  ;;  %v331_v17 = vrot.slane %v329_v59, 5  ;;  %2221 = vmatpush3.bf16.msra.mxu1 %v482_v12  ;;  %v2048_v25 = vrot.slane %v2040_v42, 9  ;;  %v2045_v30 = vld [vmem:[%s2551_s4 + $0x30] sm:$0xe]  ;;  %v2046_v40 = vld [vmem:[%s2551_s4 + $0x38] sm:$0xe] }
  0x30   : > { %v1951_v20 = vcombine.low %v290_v63, %v304_v7  ;;  %v326_v22 = vor.u32 %v325_v4, %v322_v0  ;;  %v2049_v28 = vrot.slane %v2041_v53, 9  ;;  %2230 = vmatprep.subr.bf16.mxu1 %v2689_v34  ;;  %v2050_v35 = vrot.slane %v2042_v60, 9  ;;  %v2047_v48 = vld [vmem:[%s2551_s4 + $0x40] sm:$0xe] }
  0x31   : > { %v313_v5 = vrot.slane %v312_v16, 4  ;;  %v2051_v36 = vrot.slane %v2043_v15, 9  ;;  %v1122_v42 = vsel %vm2719_vm7, %v2048_v25, %v1121_v2  ;;  %v2052_v47 = vrot.slane %v2044_v18, 9  ;;  %v549_v63 = vld [vmem:[%s2551_s4] sm:$0xe] }
  0x32   : > { %2269 = vmatpush3.bf16.msra.mxu0 %v2658_v56  ;;  %2214 = vmatprep.mubr.msk.bf16.mxu1 %vm358_vm4, %v1951_v20  ;;  %v327_v43 = vrot.slane %v326_v22, 4  ;;  %v1126_v46 = vsel %vm2719_vm7, %v2049_v28, %v1125_v21  ;;  %v1130_v23 = vsel %vm2719_vm7, %v2050_v35, %v1129_v49  ;;  %v1959_v21 = vcombine.low %v2555_v8, %v2558_v9  ;;  %v550_v15 = vld [vmem:[%s2551_s4 + $0x8] sm:$0xe]  ;;  %v551_v18 = vld [vmem:[%s2551_s4 + $0x10] sm:$0xe]  ;;  %v2800_v35 = vld [vmem:[%s3084_s1 + $0x54] sm:$0xff]  }
  0x33   : > { %v318_v53 = vsel %vm2585_vm3, %v313_v5, %v317_v58  ;;  %v2059_v56 = vcombine.low %v1122_v42, %v1126_v46  ;;  %2278 = vmatprep.subr.bf16.mxu0 %v2707_v14  ;;  %v1134_v27 = vsel %vm2719_vm7, %v2051_v36, %v1133_v55  ;;  %v1137_v54 = vrot.slane %v2715_v51, 5  ;;  %v2429_v55 = vld [vmem:[%s3084_s1 + $0x50] ss:$0 sps:$4 sm:$0xff]   ;;  %v552_v25 = vld [vmem:[%s2551_s4 + $0x18] sm:$0xe] }
  0x34   : > { %v332_v2 = vsel %vm2585_vm3, %v327_v43, %v331_v17  ;;  %v2053_v57 = vrot.slane %v2045_v30, 9  ;;  %v2060_v19 = vcombine.low %v1130_v23, %v1134_v27  ;;  %v1141_v49 = vrot.slane %v2725_v29, 5  ;;  %v553_v43 = vld [vmem:[%s2551_s4 + $0x20] sm:$0xe]  ;;  %v554_v42 = vld [vmem:[%s2551_s4 + $0x28] sm:$0xe] }
  0x35   : > { %v1952_v58 = vcombine.low %v318_v53, %v332_v2  ;;  %2270 = vmatprep.mubr.msk.bf16.mxu0 %vm358_vm4, %v2059_v56  ;;  %v1138_v8 = vsel %vm2719_vm7, %v2052_v47, %v1137_v54  ;;  %v2054_v9 = vrot.slane %v2046_v40, 9  ;;  %v1145_v59 = vrot.slane %v2729_v39, 5  ;;  %v2433_v46 = vld [vmem:[%s2551_s4 + $0x10] ss:$8 sps:$4 sm:$0xff]   ;;  %v2830_v56 = vld [vmem:[%s3084_s1 + $0x24] sm:$0xff]  }
  0x36   : > { %v2055_v60 = vrot.slane %v2047_v48, 9  ;;  %v578_v0 = vrot.slane %v2561_v10, 5  ;;  %v1142_v4 = vsel %vm2719_vm7, %v2053_v57, %v1141_v49  ;;  %v1149_v12 = vrot.slane %v2760_v13, 5  ;;  %v2841_v54 = vld [vmem:[%s2551_s4 + $0x14] sm:$0x1] }
  0x37   : > { %2215 = vmatmul.mubr.msk.bf16.gmra.mrb[4].mxu1 %vm358_vm4, %v1952_v58  ;;  %v582_v7 = vrot.slane %v2565_v11, 5  ;;  %v586_v16 = vrot.slane %v2597_v45, 5  ;;  %v2061_v17 = vcombine.low %v1138_v8, %v1142_v4  ;;  %v590_v20 = vrot.slane %v2604_v52, 5  ;;  %v2852_v58 = vld [vmem:[%s2551_s4 + $0x38] sm:$0xe] }
  0x38   : > { %2222 = vmatprep.mubr.msk.bf16.mxu1 %vm358_vm4, %v1959_v21  ;;  %v1146_v10 = vsel %vm2719_vm7, %v2054_v9, %v1145_v59  ;;  %v1969_v22 = vrot.slane %v549_v63, 9  ;;  %v1150_v11 = vsel %vm2719_vm7, %v2055_v60, %v1149_v12  ;;  %v1970_v45 = vrot.slane %v550_v15, 9  ;;  %v2090_v21 = vld [vmem:[%s2551_s4 + $0x10] sm:$0xf]  ;;  %v2856_v49 = vld [vmem:[%s2551_s4 + $0x1c] sm:$0x1] }
  0x39   : > { %2271 = vmatmul.mubr.msk.bf16.vlgmr.msra.gmra.mrb[0].mxu0 %vm358_vm4, %v2060_v19  ;;  %v1971_v28 = vrot.slane %v551_v18, 9  ;;  %v1972_v52 = vrot.slane %v552_v25, 9  ;;  %v1960_v30 = vcombine.low %v2591_v37, %v2594_v41  ;;  %v1322_v5 = vsel %vm371_vm0, %v2429_v55, 0  ;;  %v2092_v19 = vld [vmem:[%s2551_s4 + $0x18] sm:$0xf] }
  0x3a   : > { %2279 = vmatpush3.bf16.msra.mxu0 %v2707_v14  ;;  %2274 = vmatprep.mubr.msk.bf16.mxu0 %vm358_vm4, %v2061_v17  ;;  %v2431_v14 = vld [vmem:[%s3084_s1 + $0x20] ss:$0 sps:$4 sm:$0xff]   ;;  %v1961_v36 = vcombine.low %v2634_v31, %v2639_v38  ;;  %v2062_v40 = vcombine.low %v1146_v10, %v1150_v11  ;;  %v2806_v37 = vsel %vm2719_vm7, %v1969_v22, %v578_v0  ;;  %v1973_v38 = vrot.slane %v553_v43, 9  ;;  %v2438_v59 = vld [vmem:[%s3084_s1 + $0x5c] ss:$0 sps:$4 sm:$0xff]  }
  0x3b   : > { %2389 = vmatprep.subr.msk.bf16.mxu0 %vm371_vm0, %v2429_v55  ;;  %v2810_v41 = vsel %vm2719_vm7, %v1970_v45, %v582_v7  ;;  %v2817_v47 = vsel %vm2719_vm7, %v1971_v28, %v586_v16  ;;  %v2821_v31 = vsel %vm2719_vm7, %v1972_v52, %v590_v20  ;;  %v594_v48 = vrot.slane %v2644_v44, 5  ;;  %v2837_v44 = vld [vmem:[%s2551_s4 + $0x30] sm:$0xe]  ;;  %v2435_v9 = vld [vmem:[%s2551_s4 + $0x20] ss:$8 sps:$4 sm:$0xff]  }
  0x3c   : > { %v646_v53 = vsel %vm371_vm0, %v2431_v14, 0  ;;  %v1974_v23 = vrot.slane %v554_v42, 9  ;;  %v598_v27 = vrot.slane %v2648_v50, 5  ;;  %v602_v2 = vrot.slane %v2666_v62, 5  ;;  %v2437_v12 = vld [vmem:[%s2551_s4 + $0x30] ss:$8 sps:$4 sm:$0xff]  }
  0x3d   : > { %v1962_v57 = vcombine.low %v2663_v61, %v2677_v26  ;;  %v1980_v50 = vcombine.low %v2806_v37, %v2810_v41  ;;  %v2861_v55 = vsel %vm2719_vm7, %v1973_v38, %v594_v48  ;;  %v1414_v8 = vshrl.u32 %v2090_v21, 16  ;;  %v2874_v15 = vld [vmem:[%s3084_s1 + $0x2c] ss:$0 sps:$4 sm:$0xff]   ;;  %v2094_v20 = vld [vmem:[%s2551_s4 + $0x20] sm:$0xf] }
  0x3e   : > { %2281 = vmatpush3.bf16.msra.mxu0 %v1322_v5  ;;  %v1417_v61 = vshll.u32 %v2090_v21, 16  ;;  %v1423_v26 = vshll.u32 %v2841_v54, 16  ;;  %v1975_v60 = vrot.slane %v2837_v44, 9  ;;  %v1428_v63 = vshrl.u32 %v2092_v19, 16  ;;  %v2880_v11 = vld [vmem:[%s2551_s4 + $0x24] sm:$0x1] }
  0x3f   : > { %2223 = vmatmul.mubr.msk.bf16.vlgmr.msra.gmra.mrb[0].mxu1 %vm358_vm4, %v1960_v30  ;;  %2290 = vmatprep.subr.bf16.mxu0 %v2800_v35  ;;  %v1431_v0 = vshll.u32 %v2092_v19, 16  ;;  %v1437_v4 = vshll.u32 %v2856_v49, 16  ;;  %v1976_v7 = vrot.slane %v2852_v58, 9  ;;  %v1416_v16 = vrot.slane %v1414_v8, 4  ;;  %v2096_v30 = vld [vmem:[%s2551_s4 + $0x28] sm:$0xf] }
  0x40   : > { %2231 = vmatpush3.bf16.msra.mxu1 %v2689_v34  ;;  %2226 = vmatprep.mubr.msk.bf16.mxu1 %vm358_vm4, %v1961_v36  ;;  %v1981_v34 = vcombine.low %v2817_v47, %v2821_v31  ;;  %v1419_v17 = vrot.slane %v1417_v61, 5  ;;  %v1425_v18 = vrot.slane %v1423_v26, 5  ;;  %v1430_v10 = vrot.slane %v1428_v63, 4  ;;  %v2886_v5 = vld [vmem:[%s2551_s4 + $0x2c] sm:$0x1] }
  0x41   : > { %2275 = vmatmul.mubr.msk.bf16.gmra.mrb[4].mxu0 %vm358_vm4, %v2062_v40  ;;  %2384 = vmatprep.subr.msk.bf16.mxu1 %vm371_vm0, %v2431_v14  ;;  %v1433_v22 = vrot.slane %v1431_v0, 5  ;;  %v1439_v25 = vrot.slane %v1437_v4, 5  ;;  %v1442_v45 = vshrl.u32 %v2094_v20, 16  ;;  %v599_v28 = vsel %vm2719_vm7, %v1974_v23, %v598_v27  ;;  %v2439_v58 = vld [vmem:[%s2551_s4 + $0x40] ss:$8 sps:$4 sm:$0xff]  }
  0x42   : > { %2282 = vmatprep.mubr.msk.bf16.mxu0 %vm358_vm4, %v2433_v46  ;;  %v1420_v52 = vor.u32 %v1419_v17, %v1416_v16  ;;  %v1445_v14 = vshll.u32 %v2094_v20, 16  ;;  %v1451_v36 = vshll.u32 %v2880_v11, 16  ;;  %v1456_v41 = vshrl.u32 %v2096_v30, 16  ;;  %v2098_v26 = vld [vmem:[%s2551_s4 + $0x30] sm:$0xf] }
  0x43   : > { %v1434_v40 = vor.u32 %v1433_v22, %v1430_v10  ;;  %v1444_v37 = vrot.slane %v1442_v45, 4  ;;  %v1459_v43 = vshll.u32 %v2096_v30, 16  ;;  %v606_v42 = vrot.slane %v2683_v33, 5  ;;  %v2100_v4 = vld [vmem:[%s2551_s4 + $0x38] sm:$0xf] }
  0x44   : > { %2233 = vmatpush3.bf16.msra.mxu1 %v646_v53  ;;  %v1421_v46 = vrot.slane %v1420_v52, 4  ;;  %v1447_v38 = vrot.slane %v1445_v14, 5  ;;  %v1465_v48 = vshll.u32 %v2886_v5, 16  ;;  %v1563_v53 = vsel %vm371_vm0, %v2438_v59, 0  ;;  %v2102_v52 = vld [vmem:[%s2551_s4 + $0x40] sm:$0xf] }
  0x45   : > { %2242 = vmatprep.subr.bf16.mxu1 %v2830_v56  ;;  %v1435_v23 = vrot.slane %v1434_v40, 4  ;;  %v1458_v27 = vrot.slane %v1456_v41, 4  ;;  %v1461_v44 = vrot.slane %v1459_v43, 5  ;;  %v1982_v33 = vcombine.low %v2861_v55, %v599_v28  ;;  %v2911_v55 = vld [vmem:[%s3084_s1 + $0x60] sm:$0xff]   ;;  %v2956_v40 = vld [vmem:[%s2551_s4 + $0x4c] sm:$0x1] }
  0x46   : > { %v779_v21 = vsel %vm371_vm0, %v2874_v15, 0  ;;  %v1426_v19 = vsel %vm2585_vm3, %v1421_v46, %v1425_v18  ;;  %v1467_v61 = vrot.slane %v1465_v48, 5  ;;  %v2925_v63 = vsel %vm2719_vm7, %v1976_v7, %v606_v42  ;;  %v2949_v14 = vld [vmem:[%s2551_s4 + $0x44] sm:$0x1]  ;;  %v2442_v42 = vld [vmem:[%s2551_s4 + $0x8] ss:$8 sps:$4 sm:$0xff]  }
  0x47   : > { %2227 = vmatmul.mubr.msk.bf16.gmra.mrb[4].mxu1 %vm358_vm4, %v1962_v57  ;;  %v1448_v57 = vor.u32 %v1447_v38, %v1444_v37  ;;  %v1462_v8 = vor.u32 %v1461_v44, %v1458_v27  ;;  %v1470_v16 = vshrl.u32 %v2098_v26, 16  ;;  %v1473_v18 = vshll.u32 %v2098_v26, 16 }
  0x48   : > { %2234 = vmatprep.mubr.msk.bf16.mxu1 %vm358_vm4, %v1980_v50  ;;  %v2900_v50 = vrot.slane %v1451_v36, 5  ;;  %v1484_v10 = vshrl.u32 %v2100_v4, 16  ;;  %v2104_v36 = vld [vmem:[%s2551_s4 + $0x48] sm:$0xf]  ;;  %v1498_v37 = vshrl.u32 %v2102_v52, 16  ;;  %v1501_v41 = vshll.u32 %v2102_v52, 16 }
  0x49   : > { %2283 = vmatmul.mubr.msk.bf16.vlgmr.msra.gmra.mrb[0].mxu0 %vm358_vm4, %v2435_v9  ;;  %v2915_v9 = vld [vmem:[%s2551_s4 + $0x34] sm:$0x1]  ;;  %v1449_v0 = vrot.slane %v1448_v57, 4  ;;  %v1463_v17 = vrot.slane %v1462_v8, 4  ;;  %v1472_v22 = vrot.slane %v1470_v16, 4  ;;  %v1507_v43 = vshll.u32 %v2949_v14, 16 }
  0x4a   : > { %2291 = vmatpush3.bf16.msra.mxu0 %v2800_v35  ;;  %2286 = vmatprep.mubr.msk.bf16.mxu0 %vm358_vm4, %v2437_v12  ;;  %v1440_v35 = vsel %vm2585_vm3, %v1435_v23, %v1439_v25  ;;  %v2929_v12 = vld [vmem:[%s2551_s4 + $0x3c] sm:$0x1]  ;;  %v1479_v20 = vshll.u32 %v2915_v9, 16  ;;  %v1475_v25 = vrot.slane %v1473_v18, 5  ;;  %v1486_v28 = vrot.slane %v1484_v10, 4 }
  0x4b   : > { %2390 = vmatprep.subr.msk.bf16.mxu0 %vm371_vm0, %v2438_v59  ;;  %v2921_v59 = vsel %vm2719_vm7, %v1975_v60, %v602_v2  ;;  %v2109_v62 = vcombine.low %v1426_v19, %v1440_v35  ;;  %v1487_v2 = vshll.u32 %v2100_v4, 16  ;;  %v1493_v60 = vshll.u32 %v2929_v12, 16  ;;  %v2444_v57 = vld [vmem:[%s3084_s1 + $0x68] ss:$0 sps:$4 sm:$0xff]  }
  0x4c   : > { %v1983_v7 = vcombine.low %v2921_v59, %v2925_v63  ;;  %v1481_v45 = vrot.slane %v1479_v20, 5  ;;  %v1454_v47 = vsel %vm2585_vm3, %v1449_v0, %v2900_v50  ;;  %v1468_v31 = vsel %vm2585_vm3, %v1463_v17, %v1467_v61  ;;  %v2119_v63 = vld [vmem:[%s2551_s4 + $0x10] sm:$0xe]  ;;  %v2120_v0 = vld [vmem:[%s2551_s4 + $0x18] sm:$0xe] }
  0x4d   : > { %v1495_v30 = vrot.slane %v1493_v60, 5  ;;  %v1512_v38 = vshrl.u32 %v2104_v36, 16  ;;  %v1515_v48 = vshll.u32 %v2104_v36, 16  ;;  %v1500_v27 = vrot.slane %v1498_v37, 4  ;;  %v2121_v20 = vld [vmem:[%s2551_s4 + $0x20] sm:$0xe] }
  0x4e   : > { %2293 = vmatpush3.bf16.msra.mxu0 %v1563_v53  ;;  %v1521_v53 = vshll.u32 %v2956_v40, 16  ;;  %v1503_v44 = vrot.slane %v1501_v41, 5  ;;  %v1668_v19 = vrot.slane %v2856_v49, 5  ;;  %v2110_v35 = vcombine.low %v1454_v47, %v1468_v31  ;;  %v2445_v36 = vld [vmem:[%s2551_s4 + $0x28] ss:$8 sps:$4 sm:$0xff]  }
  0x4f   : > { %2235 = vmatmul.mubr.msk.bf16.vlgmr.msra.gmra.mrb[0].mxu1 %vm358_vm4, %v1981_v34  ;;  %2302 = vmatprep.subr.bf16.mxu0 %v2911_v55  ;;  %v1489_v34 = vrot.slane %v1487_v2, 5  ;;  %v1514_v50 = vrot.slane %v1512_v38, 4  ;;  %v1672_v49 = vrot.slane %v2880_v11, 5  ;;  %v2127_v17 = vrot.slane %v2119_v63, 9  ;;  %v2443_v2 = vld [vmem:[%s2551_s4 + $0x18] ss:$8 sps:$4 sm:$0xff]  }
  0x50   : > { %2243 = vmatpush3.bf16.msra.mxu1 %v2830_v56  ;;  %2238 = vmatprep.mubr.msk.bf16.mxu1 %vm358_vm4, %v1982_v33  ;;  %v1476_v56 = vor.u32 %v1475_v25, %v1472_v22  ;;  %v1504_v61 = vor.u32 %v1503_v44, %v1500_v27  ;;  %v1523_v59 = vrot.slane %v1521_v53, 5  ;;  %v2128_v18 = vrot.slane %v2120_v0, 9  ;;  %v2025_v44 = vld [vmem:[%s2551_s4 + $0x40] sm:$0xf] }
  0x51   : > { %2287 = vmatmul.mubr.msk.bf16.gmra.mrb[4].mxu0 %vm358_vm4, %v2439_v58  ;;  %2385 = vmatprep.subr.msk.bf16.mxu1 %vm371_vm0, %v2874_v15  ;;  %v1490_v46 = vor.u32 %v1489_v34, %v1486_v28  ;;  %v1664_v15 = vrot.slane %v2841_v54, 5  ;;  %v1517_v58 = vrot.slane %v1515_v48, 5  ;;  %v1509_v54 = vrot.slane %v1507_v43, 5  ;;  %v2021_v28 = vld [vmem:[%s2551_s4 + $0x30] sm:$0xf] }
  0x52   : > { %2294 = vmatprep.mubr.msk.bf16.mxu0 %vm358_vm4, %v2109_v62  ;;  %v1477_v23 = vrot.slane %v1476_v56, 4  ;;  %v1505_v16 = vrot.slane %v1504_v61, 4  ;;  %v2122_v62 = vld [vmem:[%s2551_s4 + $0x28] sm:$0xe]  ;;  %v2129_v22 = vrot.slane %v2121_v20, 9  ;;  %v1732_v60 = vsel %vm371_vm0, %v2444_v57, 0 }
  0x53   : > { %v1491_v33 = vrot.slane %v1490_v46, 4  ;;  %v1518_v26 = vor.u32 %v1517_v58, %v1514_v50  ;;  %v1669_v25 = vsel %vm2719_vm7, %v2128_v18, %v1668_v19  ;;  %v1676_v47 = vrot.slane %v2886_v5, 5  ;;  %v2124_v43 = vld [vmem:[%s2551_s4 + $0x38] sm:$0xe]  ;;  %v2126_v18 = vld [vmem:[%s2551_s4 + $0x48] sm:$0xe] }
  0x54   : > { %2245 = vmatpush3.bf16.msra.mxu1 %v779_v21  ;;  %v1482_v8 = vsel %vm2585_vm3, %v1477_v23, %v1481_v45  ;;  %v1510_v11 = vsel %vm2585_vm3, %v1505_v16, %v1509_v54  ;;  %v2019_v45 = vld [vmem:[%s2551_s4 + $0x28] sm:$0xf]  ;;  %v936_v34 = vshll.u32 %v2715_v51, 16  ;;  %v2130_v37 = vrot.slane %v2122_v62, 9  ;;  %v2023_v48 = vld [vmem:[%s2551_s4 + $0x38] sm:$0xf] }
  0x55   : > { %2314 = vmatprep.subr.bf16.mxu1 %v2515_v1  ;;  %v1496_v21 = vsel %vm2585_vm3, %v1491_v33, %v1495_v30  ;;  %v1519_v10 = vrot.slane %v1518_v26, 4  ;;  %v927_v31 = vshrl.u32 %v2019_v45, 16  ;;  %v2123_v30 = vld [vmem:[%s2551_s4 + $0x30] sm:$0xe]  ;;  %v930_v41 = vshll.u32 %v2019_v45, 16 }
  0x56   : > { %v2111_v4 = vcombine.low %v1482_v8, %v1496_v21  ;;  %v941_v38 = vshrl.u32 %v2021_v28, 16  ;;  %v944_v5 = vshll.u32 %v2021_v28, 16  ;;  %v950_v51 = vshll.u32 %v2725_v29, 16 }
  0x57   : > { %2239 = vmatmul.mubr.msk.bf16.gmra.mrb[4].mxu1 %vm358_vm4, %v1983_v7  ;;  %v1665_v7 = vsel %vm2719_vm7, %v2127_v17, %v1664_v15  ;;  %v1524_v52 = vsel %vm2585_vm3, %v1519_v10, %v1523_v59  ;;  %v929_v46 = vrot.slane %v927_v31, 4  ;;  %v932_v53 = vrot.slane %v930_v41, 5 }
  0x58   : > { %2246 = vmatprep.mubr.msk.bf16.mxu1 %vm358_vm4, %v2442_v42  ;;  %v2138_v56 = vcombine.low %v1665_v7, %v1669_v25  ;;  %v2112_v42 = vcombine.low %v1510_v11, %v1524_v52  ;;  %v2131_v23 = vrot.slane %v2123_v30, 9  ;;  %v1680_v27 = vrot.slane %v2915_v9, 5 }
  0x59   : > { %2295 = vmatmul.mubr.msk.bf16.vlgmr.msra.gmra.mrb[0].mxu0 %vm358_vm4, %v2110_v35  ;;  %v943_v15 = vrot.slane %v941_v38, 4  ;;  %v946_v33 = vrot.slane %v944_v5, 5  ;;  %v1684_v50 = vrot.slane %v2929_v12, 5  ;;  %v1677_v58 = vsel %vm2719_vm7, %v2130_v37, %v1676_v47 }
  0x5a   : > { %2303 = vmatpush3.bf16.msra.mxu0 %v2911_v55  ;;  %2298 = vmatprep.mubr.msk.bf16.mxu0 %vm358_vm4, %v2111_v4  ;;  %v3001_v55 = vsel %vm2719_vm7, %v2129_v22, %v1672_v49  ;;  %v933_v19 = vor.u32 %v932_v53, %v929_v46  ;;  %v938_v35 = vrot.slane %v936_v34, 5  ;;  %v955_v8 = vshrl.u32 %v2023_v48, 16 }
  0x5b   : > { %2391 = vmatprep.subr.msk.bf16.mxu0 %vm371_vm0, %v2444_v57  ;;  %v2132_v57 = vrot.slane %v2124_v43, 9  ;;  %v947_v29 = vor.u32 %v946_v33, %v943_v15  ;;  %v952_v9 = vrot.slane %v950_v51, 5  ;;  %v958_v61 = vshll.u32 %v2023_v48, 16 }
  0x5c   : > { %v969_v54 = vshrl.u32 %v2025_v44, 16  ;;  %v934_v12 = vrot.slane %v933_v19, 4  ;;  %v1681_v21 = vsel %vm2719_vm7, %v2131_v23, %v1680_v27  ;;  %v957_v26 = vrot.slane %v955_v8, 4 }
  0x5d   : > { %v972_v59 = vshll.u32 %v2025_v44, 16  ;;  %v948_v63 = vrot.slane %v947_v29, 4  ;;  %v1685_v0 = vsel %vm2719_vm7, %v2132_v57, %v1684_v50  ;;  %v960_v49 = vrot.slane %v958_v61, 5 }
  0x5e   : > { %2305 = vmatpush3.bf16.msra.mxu0 %v1732_v60  ;;  %v971_v4 = vrot.slane %v969_v54, 4  ;;  %v939_v16 = vsel %vm2585_vm3, %v934_v12, %v938_v35  ;;  %v964_v20 = vshll.u32 %v2729_v39, 16  ;;  %v978_v10 = vshll.u32 %v2760_v13, 16 }
  0x5f   : > { %2247 = vmatmul.mubr.msk.bf16.vlgmr.msra.gmra.mrb[0].mxu1 %vm358_vm4, %v2443_v2  ;;  %v974_v17 = vrot.slane %v972_v59, 5  ;;  %v953_v62 = vsel %vm2585_vm3, %v948_v63, %v952_v9  ;;  %v961_v22 = vor.u32 %v960_v49, %v957_v26  ;;  %v2139_v2 = vcombine.low %v3001_v55, %v1677_v58 }
  0x60   : > { %2316 = vmatpush3.bf16.msra.mxu1 %v2515_v1  ;;  %2250 = vmatprep.mubr.msk.bf16.mxu1 %vm358_vm4, %v2445_v36  ;;  %v2446_v1 = vld [vmem:[%s2551_s4 + $0x38] ss:$8 sps:$4 sm:$0xff]   ;;  %v2032_v11 = vcombine.low %v939_v16, %v953_v62  ;;  %v2140_v60 = vcombine.low %v1681_v21, %v1685_v0  ;;  %v1688_v45 = vrot.slane %v2949_v14, 5  ;;  %v2134_v28 = vrot.slane %v2126_v18, 9 }
  0x61   : > { %2299 = vmatmul.mubr.msk.bf16.gmra.mrb[4].mxu0 %vm358_vm4, %v2112_v42  ;;  %2387 = vmatprep.subr.msk.bf16.mxu1 %vm371_vm0, %v2524_v3  ;;  %v2125_v3 = vld [vmem:[%s2551_s4 + $0x40] sm:$0xe]  ;;  %v975_v7 = vor.u32 %v974_v17, %v971_v4  ;;  %v1692_v52 = vrot.slane %v2956_v40, 5  ;;  %v966_v39 = vrot.slane %v964_v20, 5  ;;  %v980_v13 = vrot.slane %v978_v10, 5 }
  0x62   : > { %2306 = vmatprep.mubr.msk.bf16.mxu0 %vm358_vm4, %v2138_v56  ;;  %v2133_v25 = vrot.slane %v2125_v3, 9 }
  0x63   : > { %v976_v47 = vrot.slane %v975_v7, 4  ;;  %v1693_v14 = vsel %vm2719_vm7, %v2134_v28, %v1692_v52 }
  0x64   : > { %2317 = vmatpush3.bf16.msra.mxu1 %v2540_v6  ;;  %v962_v6 = vrot.slane %v961_v22, 4  ;;  %v1689_v31 = vsel %vm2719_vm7, %v2133_v25, %v1688_v45 }
  0x65   : > { %v981_v34 = vsel %vm2585_vm3, %v976_v47, %v980_v13  ;;  %v2141_v30 = vcombine.low %v1689_v31, %v1693_v14 }
  0x66   : > { %v967_v40 = vsel %vm2585_vm3, %v962_v6, %v966_v39 }
  0x67   : > { %2251 = vmatmul.mubr.msk.bf16.gmra.mrb[4].mxu1 %vm358_vm4, %v2446_v1  ;;  %v2033_v36 = vcombine.low %v967_v40, %v981_v34 }
  0x68   : > { %2262 = vmatprep.mubr.msk.bf16.mxu1 %vm358_vm4, %v2032_v11 }
  0x69   : > { %2307 = vmatmul.mubr.msk.bf16.vlgmr.msra.gmra.mrb[0].mxu0 %vm358_vm4, %v2139_v2 }
  0x6a   : > { %2310 = vmatprep.mubr.msk.bf16.mxu0 %vm358_vm4, %v2140_v60 }
  0x71   : > { %2311 = vmatmul.mubr.msk.bf16.gmra.mrb[4].mxu0 %vm358_vm4, %v2141_v30 }
  0x73   : > { %2263 = vmatmul.mubr.msk.bf16.vlgmr.msra.gmra.mrb[4].mxu1 %vm358_vm4, %v2033_v36 }
 0x132   : > { %v2248_v56 = vpop.f32.mrb[0].mxu1 }
 0x133   : > { %v815_v55 = vpop.f32.mrb[1].mxu1 }
 0x134   : > { %v2249_v37 = vpop.f32.mrb[2].mxu1 }
 0x135   : > { %v818_v41 = vpop.f32.mrb[3].mxu1 }
 0x13c   : > { %v2308_v43 = vpop.f32.mrb[0].mxu0 }
 0x13d   : > { %v2318_v42 = vadd.f32 %v2308_v43, %v2248_v56  ;;  %v1768_v46 = vpop.f32.mrb[1].mxu0 }
 0x13e   : > { %v2319_v32 = vadd.f32 %v1768_v46, %v815_v55  ;;  %v2309_v38 = vpop.f32.mrb[2].mxu0 }
 0x13f   : > { %v1816_v5 = vadd.f32 %v2318_v42, %v2148_v24  ;;  %v2320_v48 = vadd.f32 %v2309_v38, %v2249_v37  ;;  %v1771_v53 = vpop.f32.mrb[3].mxu0 }
 0x140   : > { %v1814_v51 = vadd.f32 %v2319_v32, %v2148_v24  ;;  %v2321_v23 = vadd.f32 %v1771_v53, %v818_v41 }
 0x141   : > { %v1824_v27 = vmax.f32 %v1816_v5, 0.0  ;;  %v1817_v44 = vadd.f32 %v2320_v48, %v2148_v24 }
 0x142   : > { %v1822_v15 = vmax.f32 %v1814_v51, 0.0  ;;  %v1815_v33 = vadd.f32 %v2321_v23, %v2148_v24 }
 0x143   : > { %v1832_v57 = vpack.c.bf16 %v1824_v27, %v1824_v27  ;;  %v1825_v50 = vmax.f32 %v1817_v44, 0.0 }
 0x144   : > { %v1830_v58 = vpack.c.bf16 %v1822_v15, %v1822_v15  ;;  %v1823_v19 = vmax.f32 %v1815_v33, 0.0  ;;  %v2312_v35 = vpop.f32.mrb[4].mxu0 }
 0x145   : > { %1841 = vst.msk [vmem:[%s3056_s11 + $0x8] sm:$0xf] %vm1838_vm8, %v1832_v57  ;;  %v1833_v8 = vpack.c.bf16 %v1825_v50, %v1825_v50  ;;  %v1784_v29 = vpop.f32.mrb[5].mxu0 }
 0x146   : > { %1839 = vst.msk [vmem:[%s3056_s11] sm:$0xf] %vm1838_vm8, %v1830_v58  ;;  %v1831_v9 = vpack.c.bf16 %v1823_v19, %v1823_v19  ;;  %v2264_v61 = vpop.f32.mrb[4].mxu1  ;;  %v2313_v54 = vpop.f32.mrb[6].mxu0 }
 0x147   : > { %1842 = vst.msk [vmem:[%s3056_s11 + $0xc] sm:$0xf] %vm1838_vm8, %v1833_v8  ;;  %v2322_v12 = vadd.f32 %v2312_v35, %v2264_v61  ;;  %v1072_v21 = vpop.f32.mrb[5].mxu1  ;;  %v1787_v26 = vpop.f32.mrb[7].mxu0 }
 0x148   : > { %1840 = vst.msk [vmem:[%s3056_s11 + $0x4] sm:$0xf] %vm1838_vm8, %v1831_v9  ;;  %v2323_v59 = vadd.f32 %v1784_v29, %v1072_v21  ;;  %v2265_v1 = vpop.f32.mrb[6].mxu1 }
 0x149   : > { %v1820_v63 = vadd.f32 %v2322_v12, %v2148_v24  ;;  %v2324_v0 = vadd.f32 %v2313_v54, %v2265_v1  ;;  %v1075_v49 = vpop.f32.mrb[7].mxu1 }
 0x14a   : > { %v1818_v4 = vadd.f32 %v2323_v59, %v2148_v24  ;;  %v2325_v16 = vadd.f32 %v1787_v26, %v1075_v49 }
 0x14b   : > { %v1828_v17 = vmax.f32 %v1820_v63, 0.0  ;;  %v1821_v3 = vadd.f32 %v2324_v0, %v2148_v24 }
 0x14c   : > { %v1826_v18 = vmax.f32 %v1818_v4, 0.0  ;;  %v1819_v20 = vadd.f32 %v2325_v16, %v2148_v24 }
 0x14d   : > { %v1836_v10 = vpack.c.bf16 %v1828_v17, %v1828_v17  ;;  %v1829_v62 = vmax.f32 %v1821_v3, 0.0 }
 0x14e   : > { %v1834_v22 = vpack.c.bf16 %v1826_v18, %v1826_v18  ;;  %v1827_v2 = vmax.f32 %v1819_v20, 0.0 }
 0x14f   : > { %1845 = vst.msk [vmem:[%s3056_s11 + $0x18] sm:$0xf] %vm1838_vm8, %v1836_v10  ;;  %v1837_v11 = vpack.c.bf16 %v1829_v62, %v1829_v62 }
 0x150   : > { %1843 = vst.msk [vmem:[%s3056_s11 + $0x10] sm:$0xf] %vm1838_vm8, %v1834_v22  ;;  %v1835_v60 = vpack.c.bf16 %v1827_v2, %v1827_v2 }
 0x151   : > { %1846 = vst.msk [vmem:[%s3056_s11 + $0x1c] sm:$0xf] %vm1838_vm8, %v1837_v11 }
 0x152   : > { %1844 = vst.msk [vmem:[%s3056_s11 + $0x14] sm:$0xf] %vm1838_vm8, %v1835_v60 }
 0x153 PF: > { %s13_s14 = sadd.s32 1, %s2469_s14   ;;  %s3091_s12 = smov %s2465_s13 }
 0x154   : > { %p10_p5 = scmp.ge.s32.totalorder %s13_s14, 4   ;;  %s3092_s13 = smov %s3094_s15 }
 0x156   :  { %12 = sbr.rel (!%p10_p5) target bundleno = 2 (0x2), region = 73 }

// kernel: dctvfinet_forward.17
= control target key start
LH: loop header
LB: loop body
LE: loop exit
PB: predicated region body
PF: predicated region fallthrough
CT: control target
= control target key end

     0   :  { %s2375_s12 = smov 0   ;;  %s2377_s13 = smov 0   ;;  %s2910_s0 = inlined_call_operand.vmem [shape: bf16[2,10,10,12], index: 0, kind: input, shape index: {}]   ;;  %s2911_s1 = inlined_call_operand.vmem [shape: bf16[9,12,4], index: 1, kind: input, shape index: {}]   ;;  %s2912_s2 = inlined_call_operand.vmem [shape: f32[1,4], index: 2, kind: input, shape index: {}]   ;;  %s2913_s3 = inlined_call_operand.vmem [shape: f32[2,8,8,4], index: 3, kind: output, shape index: {}]  }
   0x1   :  { %s2379_s14 = smov 0  }
   0x2 LB: > { %s25_s15 = sadd.s32 1, %s2349_s13  ;;  %p1881_p0 = scmp.ge.s32.totalorder %s2353_s14, 1  ;;  %s2353_s14 = sphi %s2379_s14, %s13_s14   ;;  %s2349_s13 = sphi %s2377_s13, %s2919_s13   ;;  %s2345_s12 = sphi %s2375_s12, %s2918_s12  }
   0x3   : > { %p27_p1 = scmp.ge.s32.totalorder %s25_s15, 2  ;;  %p151_p2 = scmp.lt.s32.totalorder %s2353_s14, 3 }
   0x5   : > { %s2921_s15 = smov (%p27_p1, %s25_s15), 0  ;;  %p152_p3 = pnand %p1881_p0, %p151_p2 }
   0x6   : > { %v2310_v0 = vld [vmem:[%s2911_s1 + $0x8] sm:$0x3f] (!%p152_p3)   ;;  %vm365_vm0 = vcmask (!%p152_p3), 1045504   ;;  %p179_p4 = scmp.lt.s32.totalorder (!%p152_p3), %s2345_s12, 1  ;;  %v2400_v1 = vld [vmem:[%s2911_s1 + $0x20] sm:$0x3f] (!%p152_p3)  }
   0x7   : > { %155 = sbr.rel (%p152_p3) target bundleno = 335 (0x14f), region = 32  ;;  %2275 = vmatprep.subr.msk.bf16.mxu1 (!%p152_p3), %vm365_vm0, %v2310_v0  ;;  %v367_v2 = vsel (!%p152_p3), %vm365_vm0, %v2310_v0, 0  ;;  %2279 = vmatprep.subr.msk.bf16.mxu0 (!%p152_p3), %vm365_vm0, %v2400_v1  ;;  %v2409_v3 = vsel (!%p152_p3), %vm365_vm0, %v2400_v1, 0  ;;  %v2312_v4 = vld [vmem:[%s2911_s1] sm:$0x3f] (!%p152_p3)   ;;  %vm352_vm4 = vcmask (!%p152_p3), 97280  }
   0x8   : > { %2120 = vmatpush3.bf16.msra.mxu1 (!%p152_p3), %v367_v2  ;;  %2160 = vmatpush3.bf16.msra.mxu0 (!%p152_p3), %v2409_v3  ;;  %v2420_v5 = vld [vmem:[%s2911_s1 + $0x28] sm:$0x3f] (!%p152_p3)   ;;  %vm217_vm1 = vsmask.f32 (!%p152_p3), 3328  ;;  %vm218_vm2 = vsmask.f32 (!%p152_p3), 7440 }
   0x9   : > { %2276 = vmatprep.subr.msk.bf16.mxu1 (!%p152_p3), %vm365_vm0, %v2312_v4  ;;  %2281 = vmatprep.subr.msk.bf16.mxu0 (!%p152_p3), %vm365_vm0, %v2420_v5  ;;  %vm2458_vm3 = vmor (!%p152_p3), %vm217_vm1, %vm218_vm2  ;;  %v2473_v44 = vsel (!%p152_p3), %vm365_vm0, %v2312_v4, 0  ;;  %vm563_vm5 = vcmask (!%p152_p3), 1042432   ;;  %vm564_vm6 = vcmask (!%p152_p3), 1046532   ;;  %vm1777_vm8 = vcmask (!%p152_p3), 31744  }
   0xa   : > { %vm2575_vm7 = vmor (!%p152_p3), %vm563_vm5, %vm564_vm6 }
   0xe   : > { %s2923_s12 = smov (!%p179_p4, %s2345_s12), 1 }
   0xf   : > { %s2285_s22 = smul.u32 80, %s2923_s12  ;;  %s2073_s11 = sshll.u32 %s2923_s12, 6 }
  0x10   : > { %s2883_s20 = scalar_lea.vmem %s2913_s3, %s2073_s11 }
  0x11   : > { %s2425_s27 = scalar_lea.vmem %s2910_s0, %s2285_s22 }
  0x12   : > { %v2428_v6 = vld [vmem:[%s2425_s27] sm:$0xf]  ;;  %v2431_v7 = vld [vmem:[%s2425_s27 + $0x8] sm:$0xf]  ;;  %v2434_v8 = vld [vmem:[%s2425_s27 + $0x4] sm:$0x1] }
  0x13   : > { %v2439_v9 = vld [vmem:[%s2425_s27 + $0xc] sm:$0x1]  ;;  %v221_v10 = vshrl.u32 %v2428_v6, 16  ;;  %v224_v11 = vshll.u32 %v2428_v6, 16  ;;  %v230_v12 = vshll.u32 %v2434_v8, 16  ;;  %v235_v13 = vshrl.u32 %v2431_v7, 16 }
  0x14   : > { %v238_v14 = vshll.u32 %v2431_v7, 16  ;;  %v244_v15 = vshll.u32 %v2439_v9, 16  ;;  %v1943_v16 = vld [vmem:[%s2425_s27 + $0x8] sm:$0xf]  ;;  %v2449_v21 = vld [vmem:[%s2425_s27 + $0xc] sm:$0x1] }
  0x15   : > { %v223_v17 = vrot.slane %v221_v10, 4  ;;  %v226_v18 = vrot.slane %v224_v11, 5  ;;  %v232_v19 = vrot.slane %v230_v12, 5  ;;  %v237_v20 = vrot.slane %v235_v13, 4  ;;  %v1945_v24 = vld [vmem:[%s2425_s27 + $0x10] sm:$0xf] }
  0x16   : > { %v240_v22 = vrot.slane %v238_v14, 5  ;;  %v246_v23 = vrot.slane %v244_v15, 5  ;;  %v2453_v25 = vld [vmem:[%s2425_s27 + $0x14] sm:$0x1]  ;;  %v851_v27 = vshrl.u32 %v1943_v16, 16  ;;  %v854_v28 = vshll.u32 %v1943_v16, 16 }
  0x17   : > { %v227_v26 = vor.u32 %v226_v18, %v223_v17  ;;  %v860_v29 = vshll.u32 %v2449_v21, 16  ;;  %v865_v32 = vshrl.u32 %v1945_v24, 16  ;;  %v868_v33 = vshll.u32 %v1945_v24, 16  ;;  %v2464_v35 = vld [vmem:[%s2425_s27 + $0x10] sm:$0xf] }
  0x18   : > { %v241_v31 = vor.u32 %v240_v22, %v237_v20  ;;  %v874_v34 = vshll.u32 %v2453_v25, 16  ;;  %v853_v37 = vrot.slane %v851_v27, 4  ;;  %v856_v38 = vrot.slane %v854_v28, 5  ;;  %v2467_v39 = vld [vmem:[%s2425_s27 + $0x18] sm:$0xf] }
  0x19   : > { %v228_v36 = vrot.slane %v227_v26, 4  ;;  %v867_v41 = vrot.slane %v865_v32, 4  ;;  %v870_v42 = vrot.slane %v868_v33, 5  ;;  %v2470_v43 = vld [vmem:[%s2425_s27 + $0x14] sm:$0x1]  ;;  %v862_v47 = vrot.slane %v860_v29, 5 }
  0x1a   : > { %v242_v40 = vrot.slane %v241_v31, 4  ;;  %v857_v46 = vor.u32 %v856_v38, %v853_v37  ;;  %v876_v48 = vrot.slane %v874_v34, 5  ;;  %v2480_v51 = vld [vmem:[%s2425_s27 + $0x1c] sm:$0x1]  ;;  %v249_v52 = vshrl.u32 %v2464_v35, 16 }
  0x1b   : > { %v233_v45 = vsel %vm2458_vm3, %v228_v36, %v232_v19  ;;  %v871_v50 = vor.u32 %v870_v42, %v867_v41  ;;  %v252_v53 = vshll.u32 %v2464_v35, 16  ;;  %v258_v56 = vshll.u32 %v2470_v43, 16  ;;  %v1947_v62 = vld [vmem:[%s2425_s27 + $0x18] sm:$0xf]  ;;  %v2494_v10 = vld [vmem:[%s2425_s27 + $0x1c] sm:$0x1] }
  0x1c   : > { %v247_v49 = vsel %vm2458_vm3, %v242_v40, %v246_v23  ;;  %v858_v55 = vrot.slane %v857_v46, 4  ;;  %v263_v57 = vshrl.u32 %v2467_v39, 16  ;;  %v251_v59 = vrot.slane %v249_v52, 4  ;;  %v1949_v15 = vld [vmem:[%s2425_s27 + $0x20] sm:$0xf] }
  0x1d   : > { %v1887_v54 = vcombine.low %v233_v45, %v247_v49  ;;  %v872_v58 = vrot.slane %v871_v50, 4  ;;  %v254_v60 = vrot.slane %v252_v53, 5  ;;  %v266_v61 = vshll.u32 %v2467_v39, 16  ;;  %v2500_v16 = vld [vmem:[%s2425_s27 + $0x24] sm:$0x1] }
  0x1e   : > { %v863_v63 = vsel %vm2458_vm3, %v858_v55, %v862_v47  ;;  %v1096_v0 = vrot.slane %v2449_v21, 5  ;;  %v265_v2 = vrot.slane %v263_v57, 4  ;;  %v272_v4 = vshll.u32 %v2480_v51, 16  ;;  %v2507_v32 = vld [vmem:[%s2425_s27 + $0x20] sm:$0xf] }
  0x1f   : > { %2121 = vmatprep.mubr.msk.bf16.mxu1 %vm352_vm4, %v1887_v54  ;;  %v877_v11 = vsel %vm2458_vm3, %v872_v58, %v876_v48  ;;  %v255_v12 = vor.u32 %v254_v60, %v251_v59  ;;  %v260_v13 = vrot.slane %v258_v56, 5  ;;  %v268_v14 = vrot.slane %v266_v61, 5  ;;  %v2512_v38 = vld [vmem:[%s2425_s27 + $0x28] sm:$0xf]  ;;  %v2516_v46 = vld [vmem:[%s2425_s27 + $0x24] sm:$0x1] }
  0x20   : > { %v1961_v17 = vcombine.low %v863_v63, %v877_v11  ;;  %v1100_v18 = vrot.slane %v2453_v25, 5  ;;  %v274_v19 = vrot.slane %v272_v4, 5  ;;  %v879_v20 = vshrl.u32 %v1947_v62, 16  ;;  %v2524_v52 = vld [vmem:[%s2425_s27 + $0x2c] sm:$0x1] }
  0x21   : > { %v256_v22 = vrot.slane %v255_v12, 4  ;;  %v269_v23 = vor.u32 %v268_v14, %v265_v2  ;;  %v882_v24 = vshll.u32 %v1947_v62, 16  ;;  %v888_v26 = vshll.u32 %v2494_v10, 16  ;;  %v2531_v57 = vld [vmem:[%s2911_s1 + $0x10] sm:$0x3f]  }
  0x22   : > { %2161 = vmatprep.mubr.msk.bf16.mxu0 %vm352_vm4, %v1961_v17  ;;  %v881_v27 = vrot.slane %v879_v20, 4  ;;  %v893_v28 = vshrl.u32 %v1949_v15, 16  ;;  %v896_v29 = vshll.u32 %v1949_v15, 16  ;;  %v902_v31 = vshll.u32 %v2500_v16, 16  ;;  %v2537_v61 = vld [vmem:[%s2425_s27 + $0x30] sm:$0xf] }
  0x23   : > { %v261_v33 = vsel %vm2458_vm3, %v256_v22, %v260_v13  ;;  %v270_v34 = vrot.slane %v269_v23, 4  ;;  %v884_v36 = vrot.slane %v882_v24, 5  ;;  %v890_v37 = vrot.slane %v888_v26, 5  ;;  %v2542_v11 = vld [vmem:[%s2425_s27 + $0x34] sm:$0x1] }
  0x24   : > { %v895_v40 = vrot.slane %v893_v28, 4  ;;  %v898_v41 = vrot.slane %v896_v29, 5  ;;  %v904_v42 = vrot.slane %v902_v31, 5  ;;  %v1104_v45 = vrot.slane %v2494_v10, 5  ;;  %v2548_v17 = vld [vmem:[%s2425_s27 + $0x38] sm:$0xf] }
  0x25   : > { %v275_v47 = vsel %vm2458_vm3, %v270_v34, %v274_v19  ;;  %v885_v48 = vor.u32 %v884_v36, %v881_v27  ;;  %v1108_v49 = vrot.slane %v2500_v16, 5  ;;  %v1159_v50 = vsel %vm365_vm0, %v2420_v5, 0  ;;  %v2553_v19 = vld [vmem:[%s2911_s1 + $0x30] sm:$0x3f]   ;;  %v2558_v23 = vld [vmem:[%s2425_s27 + $0x3c] sm:$0x1] }
  0x26   : > { %v1888_v53 = vcombine.low %v261_v33, %v275_v47  ;;  %v899_v54 = vor.u32 %v898_v41, %v895_v40  ;;  %v277_v55 = vshrl.u32 %v2507_v32, 16  ;;  %v280_v56 = vshll.u32 %v2507_v32, 16  ;;  %v1970_v26 = vld [vmem:[%s2425_s27 + $0x8] sm:$0xe]  ;;  %v1971_v33 = vld [vmem:[%s2425_s27 + $0x10] sm:$0xe] }
  0x27   : > { %v886_v58 = vrot.slane %v885_v48, 4  ;;  %v286_v59 = vshll.u32 %v2516_v46, 16  ;;  %v291_v5 = vshrl.u32 %v2512_v38, 16  ;;  %v294_v60 = vshll.u32 %v2512_v38, 16  ;;  %v1972_v34 = vld [vmem:[%s2425_s27 + $0x18] sm:$0xe] }
  0x28   : > { %2122 = vmatmul.mubr.msk.bf16.vlgmr.msra.gmra.mrb[0].mxu1 %vm352_vm4, %v1888_v53  ;;  %v900_v62 = vrot.slane %v899_v54, 4  ;;  %v279_v63 = vrot.slane %v277_v55, 4  ;;  %v282_v2 = vrot.slane %v280_v56, 5  ;;  %v300_v4 = vshll.u32 %v2524_v52, 16  ;;  %v1977_v10 = vld [vmem:[%s2425_s27 + $0x40] sm:$0xe] }
  0x29   : > { %2130 = vmatpush3.bf16.msra.mxu1 %v2473_v44  ;;  %v891_v12 = vsel %vm2458_vm3, %v886_v58, %v890_v37  ;;  %v288_v13 = vrot.slane %v286_v59, 5  ;;  %v293_v14 = vrot.slane %v291_v5, 4  ;;  %v296_v15 = vrot.slane %v294_v60, 5  ;;  %v2070_v55 = vld [vmem:[%s2912_s2] ss:$0 sm:$0xff] }
  0x2a   : > { %v905_v20 = vsel %vm2458_vm3, %v900_v62, %v904_v42  ;;  %v283_v22 = vor.u32 %v282_v2, %v279_v63  ;;  %v302_v44 = vrot.slane %v300_v4, 5  ;;  %v305_v24 = vshrl.u32 %v2537_v61, 16  ;;  %2277 = vmatprep.subr.msk.bf16.mxu1 %vm365_vm0, %v2531_v57  ;;  %v1973_v42 = vld [vmem:[%s2425_s27 + $0x20] sm:$0xe]  ;;  %v2586_v4 = vld [vmem:[%s2425_s27 + $0x2c] sm:$0x1] }
  0x2b   : > { %v1962_v27 = vcombine.low %v891_v12, %v905_v20  ;;  %v297_v28 = vor.u32 %v296_v15, %v293_v14  ;;  %v308_v29 = vshll.u32 %v2537_v61, 16  ;;  %v314_v31 = vshll.u32 %v2542_v11, 16  ;;  %v2594_v20 = vld [vmem:[%s2425_s27 + $0x34] sm:$0x1] }
  0x2c   : > { %v284_v36 = vrot.slane %v283_v22, 4  ;;  %v307_v37 = vrot.slane %v305_v24, 4  ;;  %v319_v40 = vshrl.u32 %v2548_v17, 16  ;;  %v322_v41 = vshll.u32 %v2548_v17, 16  ;;  %v1975_v22 = vld [vmem:[%s2425_s27 + $0x30] sm:$0xe] }
  0x2d   : > { %2162 = vmatmul.mubr.msk.bf16.vlgmr.msra.gmra.mrb[0].mxu0 %vm352_vm4, %v1962_v27  ;;  %v298_v47 = vrot.slane %v297_v28, 4  ;;  %v310_v48 = vrot.slane %v308_v29, 5  ;;  %v316_v53 = vrot.slane %v314_v31, 5  ;;  %v328_v54 = vshll.u32 %v2558_v23, 16  ;;  %v2602_v27 = vld [vmem:[%s2425_s27 + $0x3c] sm:$0x1] }
  0x2e   : > { %2170 = vmatpush3.bf16.msra.mxu0 %v1159_v50  ;;  %v289_v56 = vsel %vm2458_vm3, %v284_v36, %v288_v13  ;;  %v321_v58 = vrot.slane %v319_v40, 4  ;;  %v324_v59 = vrot.slane %v322_v41, 5  ;;  %v1978_v5 = vrot.slane %v1970_v26, 9  ;;  %v1974_v50 = vld [vmem:[%s2425_s27 + $0x28] sm:$0xe] }
  0x2f   : > { %v303_v60 = vsel %vm2458_vm3, %v298_v47, %v302_v44  ;;  %v311_v62 = vor.u32 %v310_v48, %v307_v37  ;;  %v330_v63 = vrot.slane %v328_v54, 5  ;;  %v1979_v2 = vrot.slane %v1971_v33, 9  ;;  %2282 = vmatprep.subr.msk.bf16.mxu0 %vm365_vm0, %v2553_v19  ;;  %v2610_v29 = vld [vmem:[%s2425_s27 + $0x44] sm:$0x1] }
  0x30   : > { %v1889_v12 = vcombine.low %v289_v56, %v303_v60  ;;  %v325_v13 = vor.u32 %v324_v59, %v321_v58  ;;  %v1097_v14 = vsel %vm2575_vm7, %v1978_v5, %v1096_v0  ;;  %v1980_v15 = vrot.slane %v1972_v34, 9  ;;  %v1976_v34 = vld [vmem:[%s2425_s27 + $0x38] sm:$0xe]  ;;  %v541_v60 = vld [vmem:[%s2425_s27 + $0x10] sm:$0xe] }
  0x31   : > { %v312_v44 = vrot.slane %v311_v62, 4  ;;  %v1101_v24 = vsel %vm2575_vm7, %v1979_v2, %v1100_v18  ;;  %v1981_v26 = vrot.slane %v1973_v42, 9  ;;  %v568_v25 = vrot.slane %v2434_v8, 5  ;;  %v539_v42 = vld [vmem:[%s2425_s27] sm:$0xe] }
  0x32   : > { %2125 = vmatprep.mubr.msk.bf16.mxu1 %vm352_vm4, %v1889_v12  ;;  %v326_v21 = vrot.slane %v325_v13, 4  ;;  %v1988_v28 = vcombine.low %v1097_v14, %v1101_v24  ;;  %v1105_v0 = vsel %vm2575_vm7, %v1980_v15, %v1104_v45  ;;  %v1982_v33 = vrot.slane %v1974_v50, 9  ;;  %v2321_v58 = vld [vmem:[%s2911_s1 + $0x38] sm:$0x3f]  }
  0x33   : > { %v317_v18 = vsel %vm2458_vm3, %v312_v44, %v316_v53  ;;  %v1109_v31 = vsel %vm2575_vm7, %v1981_v26, %v1108_v49  ;;  %v1896_v8 = vcombine.low %v2428_v6, %v2431_v7  ;;  %v1112_v36 = vrot.slane %v2586_v4, 5  ;;  %v540_v6 = vld [vmem:[%s2425_s27 + $0x8] sm:$0xe]  ;;  %v2323_v59 = vld [vmem:[%s2911_s1 + $0x18] sm:$0x3f]  }
  0x34   : > { %v331_v45 = vsel %vm2458_vm3, %v326_v21, %v330_v63  ;;  %2171 = vmatprep.mubr.msk.bf16.mxu0 %vm352_vm4, %v1988_v28  ;;  %v1983_v37 = vrot.slane %v1975_v22, 9  ;;  %v572_v16 = vrot.slane %v2439_v9, 5  ;;  %v1989_v41 = vcombine.low %v1105_v0, %v1109_v31  ;;  %v542_v63 = vld [vmem:[%s2425_s27 + $0x18] sm:$0xe]  ;;  %v544_v22 = vld [vmem:[%s2425_s27 + $0x28] sm:$0xe] }
  0x35   : > { %v1890_v40 = vcombine.low %v317_v18, %v331_v45  ;;  %v1116_v49 = vrot.slane %v2594_v20, 5  ;;  %v1113_v47 = vsel %vm2575_vm7, %v1982_v33, %v1112_v36  ;;  %v1984_v48 = vrot.slane %v1976_v34, 9  ;;  %v2320_v24 = vld [vmem:[%s2425_s27 + $0x10] ss:$8 sps:$4 sm:$0xff]   ;;  %v2686_v34 = vld [vmem:[%s2425_s27 + $0x14] sm:$0x1] }
  0x36   : > { %v1120_v53 = vrot.slane %v2602_v27, 5  ;;  %v1985_v54 = vrot.slane %v1977_v10, 9  ;;  %v1287_v7 = vsel %vm365_vm0, %v2553_v19, 0  ;;  %v1124_v56 = vrot.slane %v2610_v29, 5  ;;  %v2018_v10 = vld [vmem:[%s2425_s27 + $0x18] sm:$0xf] }
  0x37   : > { %2126 = vmatmul.mubr.msk.bf16.gmra.mrb[4].mxu1 %vm352_vm4, %v1890_v40  ;;  %v1117_v9 = vsel %vm2575_vm7, %v1983_v37, %v1116_v49  ;;  %v1905_v19 = vrot.slane %v539_v42, 9  ;;  %v1906_v62 = vrot.slane %v540_v6, 9  ;;  %v576_v2 = vrot.slane %v2470_v43, 5  ;;  %v543_v43 = vld [vmem:[%s2425_s27 + $0x20] sm:$0xe] }
  0x38   : > { %2131 = vmatprep.mubr.msk.bf16.mxu1 %vm352_vm4, %v1896_v8  ;;  %v1990_v5 = vcombine.low %v1113_v47, %v1117_v9  ;;  %v1121_v50 = vsel %vm2575_vm7, %v1984_v48, %v1120_v53  ;;  %v1125_v12 = vsel %vm2575_vm7, %v1985_v54, %v1124_v56  ;;  %v580_v13 = vrot.slane %v2480_v51, 5  ;;  %v2693_v45 = vld [vmem:[%s2425_s27 + $0x1c] sm:$0x1]  ;;  %v546_v42 = vld [vmem:[%s2425_s27 + $0x38] sm:$0xe] }
  0x39   : > { %2172 = vmatmul.mubr.msk.bf16.vlgmr.msra.gmra.mrb[0].mxu0 %vm352_vm4, %v1989_v41  ;;  %v1897_v14 = vcombine.low %v2464_v35, %v2467_v39  ;;  %v631_v15 = vsel %vm365_vm0, %v2531_v57, 0  ;;  %v1898_v44 = vcombine.low %v2507_v32, %v2512_v38  ;;  %v2668_v26 = vsel %vm365_vm0, %v2321_v58, 0  ;;  %v2680_v32 = vld [vmem:[%s2425_s27 + $0x30] sm:$0xe]  ;;  %v2020_v54 = vld [vmem:[%s2425_s27 + $0x20] sm:$0xf] }
  0x3a   : > { %2180 = vmatpush3.bf16.msra.mxu0 %v1287_v7  ;;  %2175 = vmatprep.mubr.msk.bf16.mxu0 %vm352_vm4, %v1990_v5  ;;  %v1907_v51 = vrot.slane %v541_v60, 9  ;;  %v1908_v21 = vrot.slane %v542_v63, 9  ;;  %v1991_v35 = vcombine.low %v1121_v50, %v1125_v12  ;;  %v2672_v39 = vsel %vm2575_vm7, %v1905_v19, %v568_v25  ;;  %v2016_v38 = vld [vmem:[%s2425_s27 + $0x10] sm:$0xf]  ;;  %v2322_v6 = vld [vmem:[%s2425_s27 + $0x20] ss:$8 sps:$4 sm:$0xff]  }
  0x3b   : > { %2283 = vmatprep.subr.msk.bf16.mxu0 %vm365_vm0, %v2321_v58  ;;  %v573_v57 = vsel %vm2575_vm7, %v1906_v62, %v572_v16  ;;  %v2677_v28 = vsel %vm365_vm0, %v2323_v59, 0  ;;  %v1909_v0 = vrot.slane %v543_v43, 9  ;;  %v584_v18 = vrot.slane %v2516_v46, 5  ;;  %v2724_v58 = vld [vmem:[%s2425_s27 + $0x24] sm:$0x1] }
  0x3c   : > { %v1910_v31 = vrot.slane %v544_v22, 9  ;;  %v588_v33 = vrot.slane %v2524_v52, 5  ;;  %v1899_v25 = vcombine.low %v2537_v61, %v2548_v17  ;;  %v1379_v8 = vshrl.u32 %v2016_v38, 16  ;;  %v2324_v60 = vld [vmem:[%s2425_s27 + $0x30] ss:$8 sps:$4 sm:$0xff]  }
  0x3d   : > { %v1382_v36 = vshll.u32 %v2016_v38, 16  ;;  %v1915_v46 = vcombine.low %v2672_v39, %v573_v57  ;;  %v2699_v52 = vsel %vm2575_vm7, %v1907_v51, %v576_v2  ;;  %v2703_v61 = vsel %vm2575_vm7, %v1908_v21, %v580_v13  ;;  %v2729_v63 = vld [vmem:[%s2425_s27 + $0x2c] sm:$0x1]  ;;  %v2738_v21 = vld [vmem:[%s2911_s1 + $0x40] sm:$0x3f]  }
  0x3e   : > { %v1388_v17 = vshll.u32 %v2686_v34, 16  ;;  %v1911_v37 = vrot.slane %v2680_v32, 9  ;;  %v1381_v16 = vrot.slane %v1379_v8, 4  ;;  %v1393_v41 = vshrl.u32 %v2018_v10, 16 }
  0x3f   : > { %2132 = vmatmul.mubr.msk.bf16.vlgmr.msra.gmra.mrb[0].mxu1 %vm352_vm4, %v1897_v14  ;;  %v1384_v40 = vrot.slane %v1382_v36, 5  ;;  %v2712_v49 = vsel %vm2575_vm7, %v1909_v0, %v584_v18  ;;  %v592_v47 = vrot.slane %v2542_v11, 5  ;;  %v1396_v48 = vshll.u32 %v2018_v10, 16  ;;  %v2750_v10 = vld [vmem:[%s2425_s27 + $0x34] sm:$0x1] }
  0x40   : > { %2140 = vmatpush3.bf16.msra.mxu1 %v631_v15  ;;  %2135 = vmatprep.mubr.msk.bf16.mxu1 %vm352_vm4, %v1898_v44  ;;  %v1402_v53 = vshll.u32 %v2693_v45, 16  ;;  %v2721_v7 = vsel %vm2575_vm7, %v1910_v31, %v588_v33  ;;  %v1395_v56 = vrot.slane %v1393_v41, 4  ;;  %v1407_v5 = vshrl.u32 %v2020_v54, 16  ;;  %v2028_v41 = vld [vmem:[%s2425_s27 + $0x40] sm:$0xf] }
  0x41   : > { %2176 = vmatmul.mubr.msk.bf16.gmra.mrb[4].mxu0 %vm352_vm4, %v1991_v35  ;;  %2278 = vmatprep.subr.msk.bf16.mxu1 %vm365_vm0, %v2323_v59  ;;  %v1385_v9 = vor.u32 %v1384_v40, %v1381_v16  ;;  %v2022_v59 = vld [vmem:[%s2425_s27 + $0x28] sm:$0xf]  ;;  %v1390_v19 = vrot.slane %v1388_v17, 5  ;;  %v1398_v62 = vrot.slane %v1396_v48, 5  ;;  %v1410_v11 = vshll.u32 %v2020_v54, 16 }
  0x42   : > { %2181 = vmatprep.mubr.msk.bf16.mxu0 %vm352_vm4, %v2320_v24  ;;  %v1416_v2 = vshll.u32 %v2724_v58, 16  ;;  %v1409_v12 = vrot.slane %v1407_v5, 4  ;;  %v1421_v13 = vshrl.u32 %v2022_v59, 16  ;;  %v1424_v14 = vshll.u32 %v2022_v59, 16  ;;  %v2325_v54 = vld [vmem:[%s2425_s27 + $0x40] ss:$8 sps:$4 sm:$0xff]  }
  0x43   : > { %v1386_v50 = vrot.slane %v1385_v9, 4  ;;  %v1399_v15 = vor.u32 %v1398_v62, %v1395_v56  ;;  %v1404_v43 = vrot.slane %v1402_v53, 5  ;;  %v1412_v22 = vrot.slane %v1410_v11, 5  ;;  %v2773_v53 = vld [vmem:[%s2425_s27 + $0x44] sm:$0x1] }
  0x44   : > { %v1430_v44 = vshll.u32 %v2729_v63, 16  ;;  %v1912_v24 = vrot.slane %v546_v42, 9  ;;  %v596_v51 = vrot.slane %v2558_v23, 5  ;;  %v1423_v35 = vrot.slane %v1421_v13, 4  ;;  %v2030_v59 = vld [vmem:[%s2425_s27 + $0x48] sm:$0xf] }
  0x45   : > { %v1426_v39 = vrot.slane %v1424_v14, 5  ;;  %v1916_v57 = vcombine.low %v2699_v52, %v2703_v61  ;;  %v1917_v32 = vcombine.low %v2712_v49, %v2721_v7  ;;  %v1400_v38 = vrot.slane %v1399_v15, 4  ;;  %v2026_v52 = vld [vmem:[%s2425_s27 + $0x38] sm:$0xf]  ;;  %v2762_v61 = vld [vmem:[%s2425_s27 + $0x3c] sm:$0x1] }
  0x46   : > { %v1413_v0 = vor.u32 %v1412_v22, %v1409_v12  ;;  %v1391_v23 = vsel %vm2458_vm3, %v1386_v50, %v1390_v19  ;;  %v1418_v18 = vrot.slane %v1416_v2, 5  ;;  %v1432_v33 = vrot.slane %v1430_v44, 5  ;;  %v2783_v62 = vld [vmem:[%s2425_s27 + $0x4c] sm:$0x1] }
  0x47   : > { %2136 = vmatmul.mubr.msk.bf16.gmra.mrb[4].mxu1 %vm352_vm4, %v1899_v25  ;;  %v1427_v31 = vor.u32 %v1426_v39, %v1423_v35  ;;  %v2024_v25 = vld [vmem:[%s2425_s27 + $0x30] sm:$0xf]  ;;  %v2756_v8 = vsel %vm2575_vm7, %v1911_v37, %v592_v47  ;;  %v1405_v36 = vsel %vm2458_vm3, %v1400_v38, %v1404_v43  ;;  %v2766_v16 = vsel %vm2575_vm7, %v1912_v24, %v596_v51 }
  0x48   : > { %2141 = vmatprep.mubr.msk.bf16.mxu1 %vm352_vm4, %v1915_v46  ;;  %v1414_v46 = vrot.slane %v1413_v0, 4  ;;  %v1435_v17 = vshrl.u32 %v2024_v25, 16  ;;  %v1438_v37 = vshll.u32 %v2024_v25, 16  ;;  %v1444_v40 = vshll.u32 %v2750_v10, 16  ;;  %v2327_v38 = vld [vmem:[%s2425_s27 + $0x8] ss:$8 sps:$4 sm:$0xff]  }
  0x49   : > { %2182 = vmatmul.mubr.msk.bf16.vlgmr.msra.gmra.mrb[0].mxu0 %vm352_vm4, %v2322_v6  ;;  %v2034_v49 = vcombine.low %v1391_v23, %v1405_v36  ;;  %v1449_v47 = vshrl.u32 %v2026_v52, 16  ;;  %v1452_v48 = vshll.u32 %v2026_v52, 16  ;;  %v1458_v56 = vshll.u32 %v2762_v61, 16  ;;  %v2043_v25 = vld [vmem:[%s2425_s27 + $0x10] sm:$0xe] }
  0x4a   : > { %2190 = vmatpush3.bf16.msra.mxu0 %v2668_v26  ;;  %2185 = vmatprep.mubr.msk.bf16.mxu0 %vm352_vm4, %v2324_v60  ;;  %v1428_v26 = vrot.slane %v1427_v31, 4  ;;  %v1437_v42 = vrot.slane %v1435_v17, 4  ;;  %v1419_v6 = vsel %vm2458_vm3, %v1414_v46, %v1418_v18  ;;  %v1440_v9 = vrot.slane %v1438_v37, 5 }
  0x4b   : > { %2284 = vmatprep.subr.msk.bf16.mxu0 %vm365_vm0, %v2738_v21  ;;  %v1446_v5 = vrot.slane %v1444_v40, 5  ;;  %v1451_v60 = vrot.slane %v1449_v47, 4  ;;  %v1454_v19 = vrot.slane %v1452_v48, 5  ;;  %v1463_v11 = vshrl.u32 %v2028_v41, 16  ;;  %v1951_v40 = vld [vmem:[%s2425_s27 + $0x28] sm:$0xf] }
  0x4c   : > { %v1433_v7 = vsel %vm2458_vm3, %v1428_v26, %v1432_v33  ;;  %v1441_v2 = vor.u32 %v1440_v9, %v1437_v42  ;;  %v1460_v50 = vrot.slane %v1458_v56, 5  ;;  %v1466_v12 = vshll.u32 %v2028_v41, 16  ;;  %v2806_v26 = vld [vmem:[%s2425_s27 + $0x20] sm:$0xe]  ;;  %v2046_v48 = vld [vmem:[%s2425_s27 + $0x28] sm:$0xe] }
  0x4d   : > { %v1472_v13 = vshll.u32 %v2773_v53, 16  ;;  %v1455_v14 = vor.u32 %v1454_v19, %v1451_v60  ;;  %v1465_v15 = vrot.slane %v1463_v11, 4  ;;  %v1477_v43 = vshrl.u32 %v2030_v59, 16  ;;  %v2329_v60 = vld [vmem:[%s2425_s27 + $0x28] ss:$8 sps:$4 sm:$0xff]  }
  0x4e   : > { %v1480_v22 = vshll.u32 %v2030_v59, 16  ;;  %v1442_v44 = vrot.slane %v1441_v2, 4  ;;  %v1468_v24 = vrot.slane %v1466_v12, 5  ;;  %v1486_v51 = vshll.u32 %v2783_v62, 16 }
  0x4f   : > { %2142 = vmatmul.mubr.msk.bf16.vlgmr.msra.gmra.mrb[0].mxu1 %vm352_vm4, %v1916_v57  ;;  %v1456_v35 = vrot.slane %v1455_v14, 4  ;;  %v1479_v39 = vrot.slane %v1477_v43, 4  ;;  %v1624_v23 = vrot.slane %v2686_v34, 5  ;;  %v1474_v31 = vrot.slane %v1472_v13, 5  ;;  %v1957_v43 = vld [vmem:[%s2425_s27 + $0x40] sm:$0xf] }
  0x50   : > { %2150 = vmatpush3.bf16.msra.mxu1 %v2677_v28  ;;  %2145 = vmatprep.mubr.msk.bf16.mxu1 %vm352_vm4, %v1917_v32  ;;  %v1918_v28 = vcombine.low %v2756_v8, %v2766_v16  ;;  %v1482_v57 = vrot.slane %v1480_v22, 5  ;;  %v2035_v32 = vcombine.low %v1419_v6, %v1433_v7  ;;  %v1469_v0 = vor.u32 %v1468_v24, %v1465_v15  ;;  %v2044_v8 = vld [vmem:[%s2425_s27 + $0x18] sm:$0xe] }
  0x51   : > { %2186 = vmatmul.mubr.msk.bf16.gmra.mrb[4].mxu0 %vm352_vm4, %v2325_v54  ;;  %2280 = vmatprep.subr.msk.bf16.mxu1 %vm365_vm0, %v2400_v1  ;;  %v1447_v1 = vsel %vm2458_vm3, %v1442_v44, %v1446_v5  ;;  %v1461_v18 = vsel %vm2458_vm3, %v1456_v35, %v1460_v50  ;;  %v1628_v36 = vrot.slane %v2693_v45, 5  ;;  %v1488_v52 = vrot.slane %v1486_v51, 5  ;;  %v2047_v5 = vld [vmem:[%s2425_s27 + $0x30] sm:$0xe]  ;;  %v1955_v50 = vld [vmem:[%s2425_s27 + $0x38] sm:$0xf] }
  0x52   : > { %2191 = vmatprep.mubr.msk.bf16.mxu0 %vm352_vm4, %v2034_v49  ;;  %v1483_v33 = vor.u32 %v1482_v57, %v1479_v39  ;;  %v1470_v46 = vrot.slane %v1469_v0, 4  ;;  %v2051_v17 = vrot.slane %v2043_v25, 9  ;;  %v2052_v16 = vrot.slane %v2044_v8, 9  ;;  %v1953_v49 = vld [vmem:[%s2425_s27 + $0x30] sm:$0xf] }
  0x53   : > { %v2036_v37 = vcombine.low %v1447_v1, %v1461_v18  ;;  %v1687_v41 = vsel %vm365_vm0, %v2738_v21, 0  ;;  %v907_v42 = vshrl.u32 %v1951_v40, 16  ;;  %v2053_v54 = vrot.slane %v2806_v26, 9  ;;  %v2328_v21 = vld [vmem:[%s2425_s27 + $0x18] ss:$8 sps:$4 sm:$0xff]  }
  0x54   : > { %v1484_v34 = vrot.slane %v1483_v33, 4  ;;  %v1625_v45 = vsel %vm2575_vm7, %v2051_v17, %v1624_v23  ;;  %v1629_v47 = vsel %vm2575_vm7, %v2052_v16, %v1628_v36  ;;  %v1632_v6 = vrot.slane %v2724_v58, 5  ;;  %v2048_v51 = vld [vmem:[%s2425_s27 + $0x38] sm:$0xe] }
  0x55   : > { %v1475_v7 = vsel %vm2458_vm3, %v1470_v46, %v1474_v31  ;;  %v909_v56 = vrot.slane %v907_v42, 4  ;;  %v910_v59 = vshll.u32 %v1951_v40, 16  ;;  %v916_v58 = vshll.u32 %v2586_v4, 16  ;;  %v2330_v16 = vld [vmem:[%s2425_s27 + $0x38] ss:$8 sps:$4 sm:$0xff]  }
  0x56   : > { %v1489_v9 = vsel %vm2458_vm3, %v1484_v34, %v1488_v52  ;;  %v921_v19 = vshrl.u32 %v1953_v49, 16  ;;  %v924_v11 = vshll.u32 %v1953_v49, 16  ;;  %v930_v2 = vshll.u32 %v2594_v20, 16  ;;  %v2049_v52 = vld [vmem:[%s2425_s27 + $0x40] sm:$0xe] }
  0x57   : > { %2146 = vmatmul.mubr.msk.bf16.gmra.mrb[4].mxu1 %vm352_vm4, %v1918_v28  ;;  %v2061_v12 = vcombine.low %v1625_v45, %v1629_v47  ;;  %v2054_v13 = vrot.slane %v2046_v48, 9  ;;  %v1636_v14 = vrot.slane %v2729_v63, 5  ;;  %v912_v15 = vrot.slane %v910_v59, 5  ;;  %v2050_v34 = vld [vmem:[%s2425_s27 + $0x48] sm:$0xe] }
  0x58   : > { %2151 = vmatprep.mubr.msk.bf16.mxu1 %vm352_vm4, %v2327_v38  ;;  %v2037_v22 = vcombine.low %v1475_v7, %v1489_v9  ;;  %v923_v44 = vrot.slane %v921_v19, 4  ;;  %v926_v24 = vrot.slane %v924_v11, 5  ;;  %v2055_v28 = vrot.slane %v2047_v5, 9 }
  0x59   : > { %2192 = vmatmul.mubr.msk.bf16.vlgmr.msra.gmra.mrb[0].mxu0 %vm352_vm4, %v2035_v32  ;;  %v913_v35 = vor.u32 %v912_v15, %v909_v56  ;;  %v918_v39 = vrot.slane %v916_v58, 5  ;;  %v932_v57 = vrot.slane %v930_v2, 5  ;;  %v935_v4 = vshrl.u32 %v1955_v50, 16 }
  0x5a   : > { %2200 = vmatpush3.bf16.msra.mxu0 %v1687_v41  ;;  %2195 = vmatprep.mubr.msk.bf16.mxu0 %vm352_vm4, %v2036_v37  ;;  %v927_v32 = vor.u32 %v926_v24, %v923_v44  ;;  %v938_v38 = vshll.u32 %v1955_v50, 16  ;;  %v949_v1 = vshrl.u32 %v1957_v43, 16  ;;  %v952_v20 = vshll.u32 %v1957_v43, 16 }
  0x5b   : > { %v914_v0 = vrot.slane %v913_v35, 4  ;;  %v1640_v63 = vrot.slane %v2750_v10, 5  ;;  %v2056_v23 = vrot.slane %v2048_v51, 9  ;;  %v1644_v18 = vrot.slane %v2762_v61, 5 }
  0x5c   : > { %v928_v31 = vrot.slane %v927_v32, 4  ;;  %v937_v33 = vrot.slane %v935_v4, 4  ;;  %v940_v25 = vrot.slane %v938_v38, 5  ;;  %v951_v8 = vrot.slane %v949_v1, 4 }
  0x5d   : > { %v919_v36 = vsel %vm2458_vm3, %v914_v0, %v918_v39  ;;  %v954_v10 = vrot.slane %v952_v20, 5  ;;  %v1633_v61 = vsel %vm2575_vm7, %v2053_v54, %v1632_v6  ;;  %v944_v17 = vshll.u32 %v2602_v27, 16 }
  0x5e   : > { %v933_v46 = vsel %vm2458_vm3, %v928_v31, %v932_v57  ;;  %v1641_v26 = vsel %vm2575_vm7, %v2055_v28, %v1640_v63  ;;  %v1645_v37 = vsel %vm2575_vm7, %v2056_v23, %v1644_v18  ;;  %v958_v40 = vshll.u32 %v2610_v29, 16 }
  0x5f   : > { %2152 = vmatmul.mubr.msk.bf16.vlgmr.msra.gmra.mrb[0].mxu1 %vm352_vm4, %v2328_v21  ;;  %v1963_v41 = vcombine.low %v919_v36, %v933_v46  ;;  %v941_v49 = vor.u32 %v940_v25, %v937_v33  ;;  %v955_v42 = vor.u32 %v954_v10, %v951_v8  ;;  %v2057_v47 = vrot.slane %v2049_v52, 9 }
  0x60   : > { %2210 = vmatpush3.bf16.msra.mxu1 %v2409_v3  ;;  %2155 = vmatprep.mubr.msk.bf16.mxu1 %vm352_vm4, %v2329_v60  ;;  %v1637_v3 = vsel %vm2575_vm7, %v2054_v13, %v1636_v14  ;;  %v2063_v48 = vcombine.low %v1641_v26, %v1645_v37  ;;  %v1648_v54 = vrot.slane %v2773_v53, 5  ;;  %v2058_v6 = vrot.slane %v2050_v34, 9 }
  0x61   : > { %2196 = vmatmul.mubr.msk.bf16.gmra.mrb[4].mxu0 %vm352_vm4, %v2037_v22  ;;  %v2062_v45 = vcombine.low %v1633_v61, %v1637_v3  ;;  %v1652_v27 = vrot.slane %v2783_v62, 5  ;;  %v946_v21 = vrot.slane %v944_v17, 5  ;;  %v960_v7 = vrot.slane %v958_v40, 5 }
  0x62   : > { %2201 = vmatprep.mubr.msk.bf16.mxu0 %vm352_vm4, %v2061_v12  ;;  %v942_v9 = vrot.slane %v941_v49, 4  ;;  %v956_v29 = vrot.slane %v955_v42, 4  ;;  %v1649_v56 = vsel %vm2575_vm7, %v2057_v47, %v1648_v54 }
  0x63   : > { %v1653_v53 = vsel %vm2575_vm7, %v2058_v6, %v1652_v27 }
  0x64   : > { %v947_v62 = vsel %vm2458_vm3, %v942_v9, %v946_v21  ;;  %v961_v59 = vsel %vm2458_vm3, %v956_v29, %v960_v7  ;;  %v2064_v5 = vcombine.low %v1649_v56, %v1653_v53 }
  0x65   : > { %v1964_v60 = vcombine.low %v947_v62, %v961_v59 }
  0x67   : > { %2156 = vmatmul.mubr.msk.bf16.gmra.mrb[4].mxu1 %vm352_vm4, %v2330_v16 }
  0x68   : > { %2165 = vmatprep.mubr.msk.bf16.mxu1 %vm352_vm4, %v1963_v41 }
  0x69   : > { %2202 = vmatmul.mubr.msk.bf16.vlgmr.msra.gmra.mrb[0].mxu0 %vm352_vm4, %v2062_v45 }
  0x6a   : > { %2205 = vmatprep.mubr.msk.bf16.mxu0 %vm352_vm4, %v2063_v48 }
  0x71   : > { %2206 = vmatmul.mubr.msk.bf16.gmra.mrb[4].mxu0 %vm352_vm4, %v2064_v5 }
  0x73   : > { %2166 = vmatmul.mubr.msk.bf16.vlgmr.msra.gmra.mrb[4].mxu1 %vm352_vm4, %v1964_v60 }
 0x132   : > { %v2153_v58 = vpop.f32.mrb[0].mxu1 }
 0x133   : > { %v795_v19 = vpop.f32.mrb[1].mxu1 }
 0x134   : > { %v2154_v11 = vpop.f32.mrb[2].mxu1 }
 0x135   : > { %v798_v2 = vpop.f32.mrb[3].mxu1 }
 0x13c   : > { %v2203_v50 = vpop.f32.mrb[0].mxu0 }
 0x13d   : > { %v2211_v12 = vadd.f32 %v2203_v50, %v2153_v58  ;;  %v1723_v13 = vpop.f32.mrb[1].mxu0 }
 0x13e   : > { %v2212_v30 = vadd.f32 %v1723_v13, %v795_v19  ;;  %v2204_v14 = vpop.f32.mrb[2].mxu0 }
 0x13f   : > { %v1771_v15 = vadd.f32 %v2211_v12, %v2070_v55  ;;  %v2213_v43 = vadd.f32 %v2204_v14, %v2154_v11  ;;  %v1726_v22 = vpop.f32.mrb[3].mxu0 }
 0x140   : > { %v1769_v44 = vadd.f32 %v2212_v30, %v2070_v55  ;;  %v2214_v24 = vadd.f32 %v1726_v22, %v798_v2 }
 0x141   : > { %1780 = vst.msk [vmem:[%s2883_s20 + $0x10] sm:$0xff] %vm1777_vm8, %v1771_v15  ;;  %v1772_v51 = vadd.f32 %v2213_v43, %v2070_v55 }
 0x142   : > { %1778 = vst.msk [vmem:[%s2883_s20] sm:$0xff] %vm1777_vm8, %v1769_v44  ;;  %v1770_v28 = vadd.f32 %v2214_v24, %v2070_v55 }
 0x143   : > { %1781 = vst.msk [vmem:[%s2883_s20 + $0x18] sm:$0xff] %vm1777_vm8, %v1772_v51 }
 0x144   : > { %1779 = vst.msk [vmem:[%s2883_s20 + $0x8] sm:$0xff] %vm1777_vm8, %v1770_v28  ;;  %v2207_v35 = vpop.f32.mrb[4].mxu0 }
 0x145   : > { %v1739_v39 = vpop.f32.mrb[5].mxu0 }
 0x146   : > { %v2167_v57 = vpop.f32.mrb[4].mxu1  ;;  %v2208_v4 = vpop.f32.mrb[6].mxu0 }
 0x147   : > { %v2215_v32 = vadd.f32 %v2207_v35, %v2167_v57  ;;  %v1047_v38 = vpop.f32.mrb[5].mxu1  ;;  %v1742_v1 = vpop.f32.mrb[7].mxu0 }
 0x148   : > { %v2216_v20 = vadd.f32 %v1739_v39, %v1047_v38  ;;  %v2168_v0 = vpop.f32.mrb[6].mxu1 }
 0x149   : > { %v1775_v63 = vadd.f32 %v2215_v32, %v2070_v55  ;;  %v2217_v23 = vadd.f32 %v2208_v4, %v2168_v0  ;;  %v1050_v18 = vpop.f32.mrb[7].mxu1 }
 0x14a   : > { %v1773_v31 = vadd.f32 %v2216_v20, %v2070_v55  ;;  %v2218_v33 = vadd.f32 %v1742_v1, %v1050_v18 }
 0x14b   : > { %1784 = vst.msk [vmem:[%s2883_s20 + $0x30] sm:$0xff] %vm1777_vm8, %v1775_v63  ;;  %v1776_v25 = vadd.f32 %v2217_v23, %v2070_v55 }
 0x14c   : > { %1782 = vst.msk [vmem:[%s2883_s20 + $0x20] sm:$0xff] %vm1777_vm8, %v1773_v31  ;;  %v1774_v8 = vadd.f32 %v2218_v33, %v2070_v55 }
 0x14d   : > { %1785 = vst.msk [vmem:[%s2883_s20 + $0x38] sm:$0xff] %vm1777_vm8, %v1776_v25 }
 0x14e   : > { %1783 = vst.msk [vmem:[%s2883_s20 + $0x28] sm:$0xff] %vm1777_vm8, %v1774_v8 }
 0x14f PF: > { %s13_s14 = sadd.s32 1, %s2353_s14   ;;  %s2918_s12 = smov %s2349_s13 }
 0x150   : > { %p10_p5 = scmp.ge.s32.totalorder %s13_s14, 4   ;;  %s2919_s13 = smov %s2921_s15 }
 0x152   :  { %12 = sbr.rel (!%p10_p5) target bundleno = 2 (0x2), region = 73 }

// kernel: dctvfinet_forward.16
= control target key start
LH: loop header
LB: loop body
LE: loop exit
PB: predicated region body
PF: predicated region fallthrough
CT: control target
= control target key end

     0   :  { %s2491_s12 = smov 0   ;;  %s2493_s13 = smov 0   ;;  %s3083_s0 = inlined_call_operand.vmem [shape: bf16[2,10,10,24], index: 0, kind: input, shape index: {}]   ;;  %s3084_s1 = inlined_call_operand.vmem [shape: bf16[9,24,12], index: 1, kind: input, shape index: {}]   ;;  %s3085_s2 = inlined_call_operand.vmem [shape: f32[1,12], index: 2, kind: input, shape index: {}]   ;;  %s3086_s3 = inlined_call_operand.vmem [shape: bf16[2,8,8,12], index: 3, kind: output, shape index: {}]  }
   0x1   :  { %s2495_s14 = smov 0  }
   0x2 LB: > { %s25_s15 = sadd.s32 1, %s2465_s13  ;;  %p1942_p0 = scmp.ge.s32.totalorder %s2469_s14, 1  ;;  %s2469_s14 = sphi %s2495_s14, %s13_s14   ;;  %s2465_s13 = sphi %s2493_s13, %s3092_s13   ;;  %s2461_s12 = sphi %s2491_s12, %s3091_s12  }
   0x3   : > { %p27_p1 = scmp.ge.s32.totalorder %s25_s15, 2  ;;  %p151_p2 = scmp.lt.s32.totalorder %s2469_s14, 3 }
   0x5   : > { %s3094_s15 = smov (%p27_p1, %s25_s15), 0  ;;  %p152_p3 = pnand %p1942_p0, %p151_p2 }
   0x6   : > { %v2417_v0 = vld [vmem:[%s3084_s1 + $0xc] sm:$0xff] (!%p152_p3)   ;;  %vm371_vm0 = vcmask (!%p152_p3), 1043456   ;;  %p179_p4 = scmp.lt.s32.totalorder (!%p152_p3), %s2461_s12, 1  ;;  %v2419_v2 = vld [vmem:[%s3084_s1 + $0x14] ss:$0 sps:$4 sm:$0xff] (!%p152_p3)   ;;  %v2534_v5 = vld [vmem:[%s3084_s1] sm:$0xff] (!%p152_p3)  }
   0x7   : > { %155 = sbr.rel (%p152_p3) target bundleno = 339 (0x153), region = 32  ;;  %v2515_v1 = vld [vmem:[%s3084_s1 + $0x30] sm:$0xff] (!%p152_p3)   ;;  %2206 = vmatprep.subr.bf16.mxu1 (!%p152_p3), %v2417_v0  ;;  %v2524_v3 = vld [vmem:[%s3084_s1 + $0x38] ss:$0 sps:$4 sm:$0xff] (!%p152_p3)   ;;  %v373_v4 = vsel (!%p152_p3), %vm371_vm0, %v2419_v2, 0  ;;  %v2546_v7 = vld [vmem:[%s3084_s1 + $0x3c] sm:$0xff] (!%p152_p3)  }
   0x8   : > { %2254 = vmatprep.subr.bf16.mxu0 (!%p152_p3), %v2515_v1  ;;  %2207 = vmatpush3.bf16.msra.mxu1 (!%p152_p3), %v2417_v0  ;;  %v2540_v6 = vsel (!%p152_p3), %vm371_vm0, %v2524_v3, 0  ;;  %vm218_vm1 = vsmask.f32 (!%p152_p3), 3328  ;;  %vm219_vm2 = vsmask.f32 (!%p152_p3), 7440  ;;  %vm358_vm4 = vcmask (!%p152_p3), 195584  }
   0x9   : > { %2255 = vmatpush3.bf16.msra.mxu0 (!%p152_p3), %v2515_v1  ;;  %2382 = vmatprep.subr.msk.bf16.mxu1 (!%p152_p3), %vm371_vm0, %v2419_v2  ;;  %vm2585_vm3 = vmor (!%p152_p3), %vm218_vm1, %vm219_vm2  ;;  %vm573_vm5 = vcmask (!%p152_p3), 1042432   ;;  %vm574_vm6 = vcmask (!%p152_p3), 1046532   ;;  %vm1838_vm8 = vcmask (!%p152_p3), 93184  }
   0xa   : > { %2386 = vmatprep.subr.msk.bf16.mxu0 (!%p152_p3), %vm371_vm0, %v2524_v3  ;;  %vm2719_vm7 = vmor (!%p152_p3), %vm573_vm5, %vm574_vm6 }
   0xc   : > { %2209 = vmatpush3.bf16.msra.mxu1 (!%p152_p3), %v373_v4 }
   0xd   : > { %2257 = vmatpush3.bf16.msra.mxu0 (!%p152_p3), %v2540_v6  ;;  %2218 = vmatprep.subr.bf16.mxu1 (!%p152_p3), %v2534_v5 }
   0xe   : > { %s3096_s12 = smov (!%p179_p4, %s2461_s12), 1  ;;  %2266 = vmatprep.subr.bf16.mxu0 %v2546_v7 }
   0xf   : > { %s2392_s26 = smul.u32 80, %s3096_s12  ;;  %s2151_s8 = sshll.u32 %s3096_s12, 5 }
  0x10   : > { %s3056_s11 = scalar_lea.vmem %s3086_s3, %s2151_s8 }
  0x11   : > { %s2551_s4 = scalar_lea.vmem %s3083_s0, %s2392_s26 }
  0x12   : > { %v2555_v8 = vld [vmem:[%s2551_s4] sm:$0xf]  ;;  %v2558_v9 = vld [vmem:[%s2551_s4 + $0x8] sm:$0xf]  ;;  %v2561_v10 = vld [vmem:[%s2551_s4 + $0x4] sm:$0x1] }
  0x13   : > { %v2565_v11 = vld [vmem:[%s2551_s4 + $0xc] sm:$0x1]  ;;  %v222_v12 = vshrl.u32 %v2555_v8, 16  ;;  %v225_v13 = vshll.u32 %v2555_v8, 16  ;;  %v231_v14 = vshll.u32 %v2561_v10, 16  ;;  %v236_v15 = vshrl.u32 %v2558_v9, 16 }
  0x14   : > { %v239_v16 = vshll.u32 %v2558_v9, 16  ;;  %v245_v17 = vshll.u32 %v2565_v11, 16  ;;  %v2011_v18 = vld [vmem:[%s2551_s4 + $0x8] sm:$0xf]  ;;  %v2576_v23 = vld [vmem:[%s2551_s4 + $0xc] sm:$0x1] }
  0x15   : > { %v224_v19 = vrot.slane %v222_v12, 4  ;;  %v227_v20 = vrot.slane %v225_v13, 5  ;;  %v233_v21 = vrot.slane %v231_v14, 5  ;;  %v238_v22 = vrot.slane %v236_v15, 4  ;;  %v2013_v26 = vld [vmem:[%s2551_s4 + $0x10] sm:$0xf] }
  0x16   : > { %v241_v24 = vrot.slane %v239_v16, 5  ;;  %v247_v25 = vrot.slane %v245_v17, 5  ;;  %v2580_v27 = vld [vmem:[%s2551_s4 + $0x14] sm:$0x1]  ;;  %v871_v29 = vshrl.u32 %v2011_v18, 16  ;;  %v874_v30 = vshll.u32 %v2011_v18, 16 }
  0x17   : > { %v228_v28 = vor.u32 %v227_v20, %v224_v19  ;;  %v880_v31 = vshll.u32 %v2576_v23, 16  ;;  %v885_v34 = vshrl.u32 %v2013_v26, 16  ;;  %v888_v35 = vshll.u32 %v2013_v26, 16  ;;  %v2591_v37 = vld [vmem:[%s2551_s4 + $0x10] sm:$0xf] }
  0x18   : > { %v242_v33 = vor.u32 %v241_v24, %v238_v22  ;;  %v894_v36 = vshll.u32 %v2580_v27, 16  ;;  %v873_v39 = vrot.slane %v871_v29, 4  ;;  %v876_v40 = vrot.slane %v874_v30, 5  ;;  %v2594_v41 = vld [vmem:[%s2551_s4 + $0x18] sm:$0xf] }
  0x19   : > { %v229_v38 = vrot.slane %v228_v28, 4  ;;  %v887_v43 = vrot.slane %v885_v34, 4  ;;  %v890_v44 = vrot.slane %v888_v35, 5  ;;  %v2597_v45 = vld [vmem:[%s2551_s4 + $0x14] sm:$0x1]  ;;  %v882_v48 = vrot.slane %v880_v31, 5 }
  0x1a   : > { %v243_v42 = vrot.slane %v242_v33, 4  ;;  %v877_v47 = vor.u32 %v876_v40, %v873_v39  ;;  %v896_v49 = vrot.slane %v894_v36, 5  ;;  %v2604_v52 = vld [vmem:[%s2551_s4 + $0x1c] sm:$0x1]  ;;  %v250_v53 = vshrl.u32 %v2591_v37, 16 }
  0x1b   : > { %v234_v46 = vsel %vm2585_vm3, %v229_v38, %v233_v21  ;;  %v891_v51 = vor.u32 %v890_v44, %v887_v43  ;;  %v253_v54 = vshll.u32 %v2591_v37, 16  ;;  %v259_v57 = vshll.u32 %v2597_v45, 16  ;;  %v2015_v63 = vld [vmem:[%s2551_s4 + $0x18] sm:$0xf]  ;;  %v2618_v13 = vld [vmem:[%s2551_s4 + $0x1c] sm:$0x1] }
  0x1c   : > { %v248_v50 = vsel %vm2585_vm3, %v243_v42, %v247_v25  ;;  %v878_v56 = vrot.slane %v877_v47, 4  ;;  %v264_v58 = vshrl.u32 %v2594_v41, 16  ;;  %v252_v60 = vrot.slane %v250_v53, 4  ;;  %v2017_v18 = vld [vmem:[%s2551_s4 + $0x20] sm:$0xf] }
  0x1d   : > { %v1949_v55 = vcombine.low %v234_v46, %v248_v50  ;;  %v892_v59 = vrot.slane %v891_v51, 4  ;;  %v255_v61 = vrot.slane %v253_v54, 5  ;;  %v267_v62 = vshll.u32 %v2594_v41, 16  ;;  %v2624_v19 = vld [vmem:[%s2551_s4 + $0x24] sm:$0x1] }
  0x1e   : > { %v883_v0 = vsel %vm2585_vm3, %v878_v56, %v882_v48  ;;  %v1121_v2 = vrot.slane %v2576_v23, 5  ;;  %v266_v4 = vrot.slane %v264_v58, 4  ;;  %v273_v12 = vshll.u32 %v2604_v52, 16  ;;  %v2630_v25 = vld [vmem:[%s3084_s1 + $0x44] ss:$0 sps:$4 sm:$0xff]  }
  0x1f   : > { %2210 = vmatprep.mubr.msk.bf16.mxu1 %vm358_vm4, %v1949_v55  ;;  %v897_v14 = vsel %vm2585_vm3, %v892_v59, %v896_v49  ;;  %v256_v15 = vor.u32 %v255_v61, %v252_v60  ;;  %v261_v16 = vrot.slane %v259_v57, 5  ;;  %v269_v17 = vrot.slane %v267_v62, 5  ;;  %v2634_v31 = vld [vmem:[%s2551_s4 + $0x20] sm:$0xf]  ;;  %v2639_v38 = vld [vmem:[%s2551_s4 + $0x28] sm:$0xf] }
  0x20   : > { %v2030_v20 = vcombine.low %v883_v0, %v897_v14  ;;  %v1125_v21 = vrot.slane %v2580_v27, 5  ;;  %v275_v22 = vrot.slane %v273_v12, 5  ;;  %v899_v24 = vshrl.u32 %v2015_v63, 16  ;;  %v2644_v44 = vld [vmem:[%s2551_s4 + $0x24] sm:$0x1] }
  0x21   : > { %v257_v26 = vrot.slane %v256_v15, 4  ;;  %v270_v28 = vor.u32 %v269_v17, %v266_v4  ;;  %v902_v29 = vshll.u32 %v2015_v63, 16  ;;  %v908_v30 = vshll.u32 %v2618_v13, 16  ;;  %v2648_v50 = vld [vmem:[%s2551_s4 + $0x2c] sm:$0x1] }
  0x22   : > { %2258 = vmatprep.mubr.msk.bf16.mxu0 %vm358_vm4, %v2030_v20  ;;  %v901_v33 = vrot.slane %v899_v24, 4  ;;  %v913_v34 = vshrl.u32 %v2017_v18, 16  ;;  %v916_v35 = vshll.u32 %v2017_v18, 16  ;;  %v922_v36 = vshll.u32 %v2624_v19, 16  ;;  %v2424_v51 = vld [vmem:[%s3084_s1 + $0x8] ss:$0 sps:$4 sm:$0xff]  }
  0x23   : > { %v262_v39 = vsel %vm2585_vm3, %v257_v26, %v261_v16  ;;  %v271_v40 = vrot.slane %v270_v28, 4  ;;  %v904_v42 = vrot.slane %v902_v29, 5  ;;  %v910_v43 = vrot.slane %v908_v30, 5  ;;  %v2663_v61 = vld [vmem:[%s2551_s4 + $0x30] sm:$0xf] }
  0x24   : > { %v915_v46 = vrot.slane %v913_v34, 4  ;;  %v918_v47 = vrot.slane %v916_v35, 5  ;;  %v924_v48 = vrot.slane %v922_v36, 5  ;;  %v1129_v49 = vrot.slane %v2618_v13, 5  ;;  %v2666_v62 = vld [vmem:[%s2551_s4 + $0x34] sm:$0x1] }
  0x25   : > { %v276_v53 = vsel %vm2585_vm3, %v271_v40, %v275_v22  ;;  %v905_v54 = vor.u32 %v904_v42, %v901_v33  ;;  %v1133_v55 = vrot.slane %v2624_v19, 5  ;;  %v2658_v56 = vsel %vm371_vm0, %v2630_v25, 0  ;;  %v2677_v26 = vld [vmem:[%s2551_s4 + $0x38] sm:$0xf]  ;;  %v2683_v33 = vld [vmem:[%s2551_s4 + $0x3c] sm:$0x1] }
  0x26   : > { %v1950_v57 = vcombine.low %v262_v39, %v276_v53  ;;  %v919_v58 = vor.u32 %v918_v47, %v915_v46  ;;  %v278_v59 = vshrl.u32 %v2634_v31, 16  ;;  %v281_v60 = vshll.u32 %v2634_v31, 16  ;;  %v2689_v34 = vld [vmem:[%s3084_s1 + $0x18] sm:$0xff]   ;;  %v2040_v42 = vld [vmem:[%s2551_s4 + $0x8] sm:$0xe] }
  0x27   : > { %v906_v63 = vrot.slane %v905_v54, 4  ;;  %v287_v0 = vshll.u32 %v2644_v44, 16  ;;  %v292_v4 = vshrl.u32 %v2639_v38, 16  ;;  %v295_v12 = vshll.u32 %v2639_v38, 16  ;;  %v2041_v53 = vld [vmem:[%s2551_s4 + $0x10] sm:$0xe] }
  0x28   : > { %2211 = vmatmul.mubr.msk.bf16.vlgmr.msra.gmra.mrb[0].mxu1 %vm358_vm4, %v1950_v57  ;;  %v920_v14 = vrot.slane %v919_v58, 4  ;;  %v280_v15 = vrot.slane %v278_v59, 4  ;;  %v283_v16 = vrot.slane %v281_v60, 5  ;;  %v301_v17 = vshll.u32 %v2648_v50, 16  ;;  %v2042_v60 = vld [vmem:[%s2551_s4 + $0x18] sm:$0xe] }
  0x29   : > { %2219 = vmatpush3.bf16.msra.mxu1 %v2534_v5  ;;  %v911_v18 = vsel %vm2585_vm3, %v906_v63, %v910_v43  ;;  %v289_v20 = vrot.slane %v287_v0, 5  ;;  %v294_v22 = vrot.slane %v292_v4, 4  ;;  %v297_v24 = vrot.slane %v295_v12, 5  ;;  %v2760_v13 = vld [vmem:[%s2551_s4 + $0x44] sm:$0x1] }
  0x2a   : > { %v925_v28 = vsel %vm2585_vm3, %v920_v14, %v924_v48  ;;  %v284_v29 = vor.u32 %v283_v16, %v280_v15  ;;  %v303_v30 = vrot.slane %v301_v17, 5  ;;  %2383 = vmatprep.subr.msk.bf16.mxu1 %vm371_vm0, %v2424_v51  ;;  %v306_v5 = vshrl.u32 %v2663_v61, 16  ;;  %v2707_v14 = vld [vmem:[%s3084_s1 + $0x48] sm:$0xff]   ;;  %v2043_v15 = vld [vmem:[%s2551_s4 + $0x20] sm:$0xe] }
  0x2b   : > { %v2031_v35 = vcombine.low %v911_v18, %v925_v28  ;;  %v298_v36 = vor.u32 %v297_v24, %v294_v22  ;;  %v309_v39 = vshll.u32 %v2663_v61, 16  ;;  %v315_v40 = vshll.u32 %v2666_v62, 16  ;;  %v2044_v18 = vld [vmem:[%s2551_s4 + $0x28] sm:$0xe]  ;;  %v2148_v24 = vld [vmem:[%s3085_s2] ss:$0 sm:$0xff] }
  0x2c   : > { %v285_v43 = vrot.slane %v284_v29, 4  ;;  %v308_v46 = vrot.slane %v306_v5, 4  ;;  %v320_v47 = vshrl.u32 %v2677_v26, 16  ;;  %v323_v48 = vshll.u32 %v2677_v26, 16  ;;  %v2725_v29 = vld [vmem:[%s2551_s4 + $0x34] sm:$0x1] }
  0x2d   : > { %2259 = vmatmul.mubr.msk.bf16.vlgmr.msra.gmra.mrb[0].mxu0 %vm358_vm4, %v2031_v35  ;;  %v299_v54 = vrot.slane %v298_v36, 4  ;;  %v311_v57 = vrot.slane %v309_v39, 5  ;;  %v317_v58 = vrot.slane %v315_v40, 5  ;;  %v329_v59 = vshll.u32 %v2683_v33, 16  ;;  %v2729_v39 = vld [vmem:[%s2551_s4 + $0x3c] sm:$0x1] }
  0x2e   : > { %2267 = vmatpush3.bf16.msra.mxu0 %v2546_v7  ;;  %v290_v63 = vsel %vm2585_vm3, %v285_v43, %v289_v20  ;;  %v322_v0 = vrot.slane %v320_v47, 4  ;;  %v325_v4 = vrot.slane %v323_v48, 5  ;;  %v482_v12 = vsel %vm371_vm0, %v2424_v51, 0  ;;  %v2715_v51 = vld [vmem:[%s2551_s4 + $0x2c] sm:$0x1] }
  0x2f   : > { %2388 = vmatprep.subr.msk.bf16.mxu0 %vm371_vm0, %v2630_v25  ;;  %v304_v7 = vsel %vm2585_vm3, %v299_v54, %v303_v30  ;;  %v312_v16 = vor.u32 %v311_v57, %v308_v46  ;;  %v331_v17 = vrot.slane %v329_v59, 5  ;;  %2221 = vmatpush3.bf16.msra.mxu1 %v482_v12  ;;  %v2048_v25 = vrot.slane %v2040_v42, 9  ;;  %v2045_v30 = vld [vmem:[%s2551_s4 + $0x30] sm:$0xe]  ;;  %v2046_v40 = vld [vmem:[%s2551_s4 + $0x38] sm:$0xe] }
  0x30   : > { %v1951_v20 = vcombine.low %v290_v63, %v304_v7  ;;  %v326_v22 = vor.u32 %v325_v4, %v322_v0  ;;  %v2049_v28 = vrot.slane %v2041_v53, 9  ;;  %2230 = vmatprep.subr.bf16.mxu1 %v2689_v34  ;;  %v2050_v35 = vrot.slane %v2042_v60, 9  ;;  %v2047_v48 = vld [vmem:[%s2551_s4 + $0x40] sm:$0xe] }
  0x31   : > { %v313_v5 = vrot.slane %v312_v16, 4  ;;  %v2051_v36 = vrot.slane %v2043_v15, 9  ;;  %v1122_v42 = vsel %vm2719_vm7, %v2048_v25, %v1121_v2  ;;  %v2052_v47 = vrot.slane %v2044_v18, 9  ;;  %v549_v63 = vld [vmem:[%s2551_s4] sm:$0xe] }
  0x32   : > { %2269 = vmatpush3.bf16.msra.mxu0 %v2658_v56  ;;  %2214 = vmatprep.mubr.msk.bf16.mxu1 %vm358_vm4, %v1951_v20  ;;  %v327_v43 = vrot.slane %v326_v22, 4  ;;  %v1126_v46 = vsel %vm2719_vm7, %v2049_v28, %v1125_v21  ;;  %v1130_v23 = vsel %vm2719_vm7, %v2050_v35, %v1129_v49  ;;  %v1959_v21 = vcombine.low %v2555_v8, %v2558_v9  ;;  %v550_v15 = vld [vmem:[%s2551_s4 + $0x8] sm:$0xe]  ;;  %v551_v18 = vld [vmem:[%s2551_s4 + $0x10] sm:$0xe]  ;;  %v2800_v35 = vld [vmem:[%s3084_s1 + $0x54] sm:$0xff]  }
  0x33   : > { %v318_v53 = vsel %vm2585_vm3, %v313_v5, %v317_v58  ;;  %v2059_v56 = vcombine.low %v1122_v42, %v1126_v46  ;;  %2278 = vmatprep.subr.bf16.mxu0 %v2707_v14  ;;  %v1134_v27 = vsel %vm2719_vm7, %v2051_v36, %v1133_v55  ;;  %v1137_v54 = vrot.slane %v2715_v51, 5  ;;  %v2429_v55 = vld [vmem:[%s3084_s1 + $0x50] ss:$0 sps:$4 sm:$0xff]   ;;  %v552_v25 = vld [vmem:[%s2551_s4 + $0x18] sm:$0xe] }
  0x34   : > { %v332_v2 = vsel %vm2585_vm3, %v327_v43, %v331_v17  ;;  %v2053_v57 = vrot.slane %v2045_v30, 9  ;;  %v2060_v19 = vcombine.low %v1130_v23, %v1134_v27  ;;  %v1141_v49 = vrot.slane %v2725_v29, 5  ;;  %v553_v43 = vld [vmem:[%s2551_s4 + $0x20] sm:$0xe]  ;;  %v554_v42 = vld [vmem:[%s2551_s4 + $0x28] sm:$0xe] }
  0x35   : > { %v1952_v58 = vcombine.low %v318_v53, %v332_v2  ;;  %2270 = vmatprep.mubr.msk.bf16.mxu0 %vm358_vm4, %v2059_v56  ;;  %v1138_v8 = vsel %vm2719_vm7, %v2052_v47, %v1137_v54  ;;  %v2054_v9 = vrot.slane %v2046_v40, 9  ;;  %v1145_v59 = vrot.slane %v2729_v39, 5  ;;  %v2433_v46 = vld [vmem:[%s2551_s4 + $0x10] ss:$8 sps:$4 sm:$0xff]   ;;  %v2830_v56 = vld [vmem:[%s3084_s1 + $0x24] sm:$0xff]  }
  0x36   : > { %v2055_v60 = vrot.slane %v2047_v48, 9  ;;  %v578_v0 = vrot.slane %v2561_v10, 5  ;;  %v1142_v4 = vsel %vm2719_vm7, %v2053_v57, %v1141_v49  ;;  %v1149_v12 = vrot.slane %v2760_v13, 5  ;;  %v2841_v54 = vld [vmem:[%s2551_s4 + $0x14] sm:$0x1] }
  0x37   : > { %2215 = vmatmul.mubr.msk.bf16.gmra.mrb[4].mxu1 %vm358_vm4, %v1952_v58  ;;  %v582_v7 = vrot.slane %v2565_v11, 5  ;;  %v586_v16 = vrot.slane %v2597_v45, 5  ;;  %v2061_v17 = vcombine.low %v1138_v8, %v1142_v4  ;;  %v590_v20 = vrot.slane %v2604_v52, 5  ;;  %v2852_v58 = vld [vmem:[%s2551_s4 + $0x38] sm:$0xe] }
  0x38   : > { %2222 = vmatprep.mubr.msk.bf16.mxu1 %vm358_vm4, %v1959_v21  ;;  %v1146_v10 = vsel %vm2719_vm7, %v2054_v9, %v1145_v59  ;;  %v1969_v22 = vrot.slane %v549_v63, 9  ;;  %v1150_v11 = vsel %vm2719_vm7, %v2055_v60, %v1149_v12  ;;  %v1970_v45 = vrot.slane %v550_v15, 9  ;;  %v2090_v21 = vld [vmem:[%s2551_s4 + $0x10] sm:$0xf]  ;;  %v2856_v49 = vld [vmem:[%s2551_s4 + $0x1c] sm:$0x1] }
  0x39   : > { %2271 = vmatmul.mubr.msk.bf16.vlgmr.msra.gmra.mrb[0].mxu0 %vm358_vm4, %v2060_v19  ;;  %v1971_v28 = vrot.slane %v551_v18, 9  ;;  %v1972_v52 = vrot.slane %v552_v25, 9  ;;  %v1960_v30 = vcombine.low %v2591_v37, %v2594_v41  ;;  %v1322_v5 = vsel %vm371_vm0, %v2429_v55, 0  ;;  %v2092_v19 = vld [vmem:[%s2551_s4 + $0x18] sm:$0xf] }
  0x3a   : > { %2279 = vmatpush3.bf16.msra.mxu0 %v2707_v14  ;;  %2274 = vmatprep.mubr.msk.bf16.mxu0 %vm358_vm4, %v2061_v17  ;;  %v2431_v14 = vld [vmem:[%s3084_s1 + $0x20] ss:$0 sps:$4 sm:$0xff]   ;;  %v1961_v36 = vcombine.low %v2634_v31, %v2639_v38  ;;  %v2062_v40 = vcombine.low %v1146_v10, %v1150_v11  ;;  %v2806_v37 = vsel %vm2719_vm7, %v1969_v22, %v578_v0  ;;  %v1973_v38 = vrot.slane %v553_v43, 9  ;;  %v2438_v59 = vld [vmem:[%s3084_s1 + $0x5c] ss:$0 sps:$4 sm:$0xff]  }
  0x3b   : > { %2389 = vmatprep.subr.msk.bf16.mxu0 %vm371_vm0, %v2429_v55  ;;  %v2810_v41 = vsel %vm2719_vm7, %v1970_v45, %v582_v7  ;;  %v2817_v47 = vsel %vm2719_vm7, %v1971_v28, %v586_v16  ;;  %v2821_v31 = vsel %vm2719_vm7, %v1972_v52, %v590_v20  ;;  %v594_v48 = vrot.slane %v2644_v44, 5  ;;  %v2837_v44 = vld [vmem:[%s2551_s4 + $0x30] sm:$0xe]  ;;  %v2435_v9 = vld [vmem:[%s2551_s4 + $0x20] ss:$8 sps:$4 sm:$0xff]  }
  0x3c   : > { %v646_v53 = vsel %vm371_vm0, %v2431_v14, 0  ;;  %v1974_v23 = vrot.slane %v554_v42, 9  ;;  %v598_v27 = vrot.slane %v2648_v50, 5  ;;  %v602_v2 = vrot.slane %v2666_v62, 5  ;;  %v2437_v12 = vld [vmem:[%s2551_s4 + $0x30] ss:$8 sps:$4 sm:$0xff]  }
  0x3d   : > { %v1962_v57 = vcombine.low %v2663_v61, %v2677_v26  ;;  %v1980_v50 = vcombine.low %v2806_v37, %v2810_v41  ;;  %v2861_v55 = vsel %vm2719_vm7, %v1973_v38, %v594_v48  ;;  %v1414_v8 = vshrl.u32 %v2090_v21, 16  ;;  %v2874_v15 = vld [vmem:[%s3084_s1 + $0x2c] ss:$0 sps:$4 sm:$0xff]   ;;  %v2094_v20 = vld [vmem:[%s2551_s4 + $0x20] sm:$0xf] }
  0x3e   : > { %2281 = vmatpush3.bf16.msra.mxu0 %v1322_v5  ;;  %v1417_v61 = vshll.u32 %v2090_v21, 16  ;;  %v1423_v26 = vshll.u32 %v2841_v54, 16  ;;  %v1975_v60 = vrot.slane %v2837_v44, 9  ;;  %v1428_v63 = vshrl.u32 %v2092_v19, 16  ;;  %v2880_v11 = vld [vmem:[%s2551_s4 + $0x24] sm:$0x1] }
  0x3f   : > { %2223 = vmatmul.mubr.msk.bf16.vlgmr.msra.gmra.mrb[0].mxu1 %vm358_vm4, %v1960_v30  ;;  %2290 = vmatprep.subr.bf16.mxu0 %v2800_v35  ;;  %v1431_v0 = vshll.u32 %v2092_v19, 16  ;;  %v1437_v4 = vshll.u32 %v2856_v49, 16  ;;  %v1976_v7 = vrot.slane %v2852_v58, 9  ;;  %v1416_v16 = vrot.slane %v1414_v8, 4  ;;  %v2096_v30 = vld [vmem:[%s2551_s4 + $0x28] sm:$0xf] }
  0x40   : > { %2231 = vmatpush3.bf16.msra.mxu1 %v2689_v34  ;;  %2226 = vmatprep.mubr.msk.bf16.mxu1 %vm358_vm4, %v1961_v36  ;;  %v1981_v34 = vcombine.low %v2817_v47, %v2821_v31  ;;  %v1419_v17 = vrot.slane %v1417_v61, 5  ;;  %v1425_v18 = vrot.slane %v1423_v26, 5  ;;  %v1430_v10 = vrot.slane %v1428_v63, 4  ;;  %v2886_v5 = vld [vmem:[%s2551_s4 + $0x2c] sm:$0x1] }
  0x41   : > { %2275 = vmatmul.mubr.msk.bf16.gmra.mrb[4].mxu0 %vm358_vm4, %v2062_v40  ;;  %2384 = vmatprep.subr.msk.bf16.mxu1 %vm371_vm0, %v2431_v14  ;;  %v1433_v22 = vrot.slane %v1431_v0, 5  ;;  %v1439_v25 = vrot.slane %v1437_v4, 5  ;;  %v1442_v45 = vshrl.u32 %v2094_v20, 16  ;;  %v599_v28 = vsel %vm2719_vm7, %v1974_v23, %v598_v27  ;;  %v2439_v58 = vld [vmem:[%s2551_s4 + $0x40] ss:$8 sps:$4 sm:$0xff]  }
  0x42   : > { %2282 = vmatprep.mubr.msk.bf16.mxu0 %vm358_vm4, %v2433_v46  ;;  %v1420_v52 = vor.u32 %v1419_v17, %v1416_v16  ;;  %v1445_v14 = vshll.u32 %v2094_v20, 16  ;;  %v1451_v36 = vshll.u32 %v2880_v11, 16  ;;  %v1456_v41 = vshrl.u32 %v2096_v30, 16  ;;  %v2098_v26 = vld [vmem:[%s2551_s4 + $0x30] sm:$0xf] }
  0x43   : > { %v1434_v40 = vor.u32 %v1433_v22, %v1430_v10  ;;  %v1444_v37 = vrot.slane %v1442_v45, 4  ;;  %v1459_v43 = vshll.u32 %v2096_v30, 16  ;;  %v606_v42 = vrot.slane %v2683_v33, 5  ;;  %v2100_v4 = vld [vmem:[%s2551_s4 + $0x38] sm:$0xf] }
  0x44   : > { %2233 = vmatpush3.bf16.msra.mxu1 %v646_v53  ;;  %v1421_v46 = vrot.slane %v1420_v52, 4  ;;  %v1447_v38 = vrot.slane %v1445_v14, 5  ;;  %v1465_v48 = vshll.u32 %v2886_v5, 16  ;;  %v1563_v53 = vsel %vm371_vm0, %v2438_v59, 0  ;;  %v2102_v52 = vld [vmem:[%s2551_s4 + $0x40] sm:$0xf] }
  0x45   : > { %2242 = vmatprep.subr.bf16.mxu1 %v2830_v56  ;;  %v1435_v23 = vrot.slane %v1434_v40, 4  ;;  %v1458_v27 = vrot.slane %v1456_v41, 4  ;;  %v1461_v44 = vrot.slane %v1459_v43, 5  ;;  %v1982_v33 = vcombine.low %v2861_v55, %v599_v28  ;;  %v2911_v55 = vld [vmem:[%s3084_s1 + $0x60] sm:$0xff]   ;;  %v2956_v40 = vld [vmem:[%s2551_s4 + $0x4c] sm:$0x1] }
  0x46   : > { %v779_v21 = vsel %vm371_vm0, %v2874_v15, 0  ;;  %v1426_v19 = vsel %vm2585_vm3, %v1421_v46, %v1425_v18  ;;  %v1467_v61 = vrot.slane %v1465_v48, 5  ;;  %v2925_v63 = vsel %vm2719_vm7, %v1976_v7, %v606_v42  ;;  %v2949_v14 = vld [vmem:[%s2551_s4 + $0x44] sm:$0x1]  ;;  %v2442_v42 = vld [vmem:[%s2551_s4 + $0x8] ss:$8 sps:$4 sm:$0xff]  }
  0x47   : > { %2227 = vmatmul.mubr.msk.bf16.gmra.mrb[4].mxu1 %vm358_vm4, %v1962_v57  ;;  %v1448_v57 = vor.u32 %v1447_v38, %v1444_v37  ;;  %v1462_v8 = vor.u32 %v1461_v44, %v1458_v27  ;;  %v1470_v16 = vshrl.u32 %v2098_v26, 16  ;;  %v1473_v18 = vshll.u32 %v2098_v26, 16 }
  0x48   : > { %2234 = vmatprep.mubr.msk.bf16.mxu1 %vm358_vm4, %v1980_v50  ;;  %v2900_v50 = vrot.slane %v1451_v36, 5  ;;  %v1484_v10 = vshrl.u32 %v2100_v4, 16  ;;  %v2104_v36 = vld [vmem:[%s2551_s4 + $0x48] sm:$0xf]  ;;  %v1498_v37 = vshrl.u32 %v2102_v52, 16  ;;  %v1501_v41 = vshll.u32 %v2102_v52, 16 }
  0x49   : > { %2283 = vmatmul.mubr.msk.bf16.vlgmr.msra.gmra.mrb[0].mxu0 %vm358_vm4, %v2435_v9  ;;  %v2915_v9 = vld [vmem:[%s2551_s4 + $0x34] sm:$0x1]  ;;  %v1449_v0 = vrot.slane %v1448_v57, 4  ;;  %v1463_v17 = vrot.slane %v1462_v8, 4  ;;  %v1472_v22 = vrot.slane %v1470_v16, 4  ;;  %v1507_v43 = vshll.u32 %v2949_v14, 16 }
  0x4a   : > { %2291 = vmatpush3.bf16.msra.mxu0 %v2800_v35  ;;  %2286 = vmatprep.mubr.msk.bf16.mxu0 %vm358_vm4, %v2437_v12  ;;  %v1440_v35 = vsel %vm2585_vm3, %v1435_v23, %v1439_v25  ;;  %v2929_v12 = vld [vmem:[%s2551_s4 + $0x3c] sm:$0x1]  ;;  %v1479_v20 = vshll.u32 %v2915_v9, 16  ;;  %v1475_v25 = vrot.slane %v1473_v18, 5  ;;  %v1486_v28 = vrot.slane %v1484_v10, 4 }
  0x4b   : > { %2390 = vmatprep.subr.msk.bf16.mxu0 %vm371_vm0, %v2438_v59  ;;  %v2921_v59 = vsel %vm2719_vm7, %v1975_v60, %v602_v2  ;;  %v2109_v62 = vcombine.low %v1426_v19, %v1440_v35  ;;  %v1487_v2 = vshll.u32 %v2100_v4, 16  ;;  %v1493_v60 = vshll.u32 %v2929_v12, 16  ;;  %v2444_v57 = vld [vmem:[%s3084_s1 + $0x68] ss:$0 sps:$4 sm:$0xff]  }
  0x4c   : > { %v1983_v7 = vcombine.low %v2921_v59, %v2925_v63  ;;  %v1481_v45 = vrot.slane %v1479_v20, 5  ;;  %v1454_v47 = vsel %vm2585_vm3, %v1449_v0, %v2900_v50  ;;  %v1468_v31 = vsel %vm2585_vm3, %v1463_v17, %v1467_v61  ;;  %v2119_v63 = vld [vmem:[%s2551_s4 + $0x10] sm:$0xe]  ;;  %v2120_v0 = vld [vmem:[%s2551_s4 + $0x18] sm:$0xe] }
  0x4d   : > { %v1495_v30 = vrot.slane %v1493_v60, 5  ;;  %v1512_v38 = vshrl.u32 %v2104_v36, 16  ;;  %v1515_v48 = vshll.u32 %v2104_v36, 16  ;;  %v1500_v27 = vrot.slane %v1498_v37, 4  ;;  %v2121_v20 = vld [vmem:[%s2551_s4 + $0x20] sm:$0xe] }
  0x4e   : > { %2293 = vmatpush3.bf16.msra.mxu0 %v1563_v53  ;;  %v1521_v53 = vshll.u32 %v2956_v40, 16  ;;  %v1503_v44 = vrot.slane %v1501_v41, 5  ;;  %v1668_v19 = vrot.slane %v2856_v49, 5  ;;  %v2110_v35 = vcombine.low %v1454_v47, %v1468_v31  ;;  %v2445_v36 = vld [vmem:[%s2551_s4 + $0x28] ss:$8 sps:$4 sm:$0xff]  }
  0x4f   : > { %2235 = vmatmul.mubr.msk.bf16.vlgmr.msra.gmra.mrb[0].mxu1 %vm358_vm4, %v1981_v34  ;;  %2302 = vmatprep.subr.bf16.mxu0 %v2911_v55  ;;  %v1489_v34 = vrot.slane %v1487_v2, 5  ;;  %v1514_v50 = vrot.slane %v1512_v38, 4  ;;  %v1672_v49 = vrot.slane %v2880_v11, 5  ;;  %v2127_v17 = vrot.slane %v2119_v63, 9  ;;  %v2443_v2 = vld [vmem:[%s2551_s4 + $0x18] ss:$8 sps:$4 sm:$0xff]  }
  0x50   : > { %2243 = vmatpush3.bf16.msra.mxu1 %v2830_v56  ;;  %2238 = vmatprep.mubr.msk.bf16.mxu1 %vm358_vm4, %v1982_v33  ;;  %v1476_v56 = vor.u32 %v1475_v25, %v1472_v22  ;;  %v1504_v61 = vor.u32 %v1503_v44, %v1500_v27  ;;  %v1523_v59 = vrot.slane %v1521_v53, 5  ;;  %v2128_v18 = vrot.slane %v2120_v0, 9  ;;  %v2025_v44 = vld [vmem:[%s2551_s4 + $0x40] sm:$0xf] }
  0x51   : > { %2287 = vmatmul.mubr.msk.bf16.gmra.mrb[4].mxu0 %vm358_vm4, %v2439_v58  ;;  %2385 = vmatprep.subr.msk.bf16.mxu1 %vm371_vm0, %v2874_v15  ;;  %v1490_v46 = vor.u32 %v1489_v34, %v1486_v28  ;;  %v1664_v15 = vrot.slane %v2841_v54, 5  ;;  %v1517_v58 = vrot.slane %v1515_v48, 5  ;;  %v1509_v54 = vrot.slane %v1507_v43, 5  ;;  %v2021_v28 = vld [vmem:[%s2551_s4 + $0x30] sm:$0xf] }
  0x52   : > { %2294 = vmatprep.mubr.msk.bf16.mxu0 %vm358_vm4, %v2109_v62  ;;  %v1477_v23 = vrot.slane %v1476_v56, 4  ;;  %v1505_v16 = vrot.slane %v1504_v61, 4  ;;  %v2122_v62 = vld [vmem:[%s2551_s4 + $0x28] sm:$0xe]  ;;  %v2129_v22 = vrot.slane %v2121_v20, 9  ;;  %v1732_v60 = vsel %vm371_vm0, %v2444_v57, 0 }
  0x53   : > { %v1491_v33 = vrot.slane %v1490_v46, 4  ;;  %v1518_v26 = vor.u32 %v1517_v58, %v1514_v50  ;;  %v1669_v25 = vsel %vm2719_vm7, %v2128_v18, %v1668_v19  ;;  %v1676_v47 = vrot.slane %v2886_v5, 5  ;;  %v2124_v43 = vld [vmem:[%s2551_s4 + $0x38] sm:$0xe]  ;;  %v2126_v18 = vld [vmem:[%s2551_s4 + $0x48] sm:$0xe] }
  0x54   : > { %2245 = vmatpush3.bf16.msra.mxu1 %v779_v21  ;;  %v1482_v8 = vsel %vm2585_vm3, %v1477_v23, %v1481_v45  ;;  %v1510_v11 = vsel %vm2585_vm3, %v1505_v16, %v1509_v54  ;;  %v2019_v45 = vld [vmem:[%s2551_s4 + $0x28] sm:$0xf]  ;;  %v936_v34 = vshll.u32 %v2715_v51, 16  ;;  %v2130_v37 = vrot.slane %v2122_v62, 9  ;;  %v2023_v48 = vld [vmem:[%s2551_s4 + $0x38] sm:$0xf] }
  0x55   : > { %2314 = vmatprep.subr.bf16.mxu1 %v2515_v1  ;;  %v1496_v21 = vsel %vm2585_vm3, %v1491_v33, %v1495_v30  ;;  %v1519_v10 = vrot.slane %v1518_v26, 4  ;;  %v927_v31 = vshrl.u32 %v2019_v45, 16  ;;  %v2123_v30 = vld [vmem:[%s2551_s4 + $0x30] sm:$0xe]  ;;  %v930_v41 = vshll.u32 %v2019_v45, 16 }
  0x56   : > { %v2111_v4 = vcombine.low %v1482_v8, %v1496_v21  ;;  %v941_v38 = vshrl.u32 %v2021_v28, 16  ;;  %v944_v5 = vshll.u32 %v2021_v28, 16  ;;  %v950_v51 = vshll.u32 %v2725_v29, 16 }
  0x57   : > { %2239 = vmatmul.mubr.msk.bf16.gmra.mrb[4].mxu1 %vm358_vm4, %v1983_v7  ;;  %v1665_v7 = vsel %vm2719_vm7, %v2127_v17, %v1664_v15  ;;  %v1524_v52 = vsel %vm2585_vm3, %v1519_v10, %v1523_v59  ;;  %v929_v46 = vrot.slane %v927_v31, 4  ;;  %v932_v53 = vrot.slane %v930_v41, 5 }
  0x58   : > { %2246 = vmatprep.mubr.msk.bf16.mxu1 %vm358_vm4, %v2442_v42  ;;  %v2138_v56 = vcombine.low %v1665_v7, %v1669_v25  ;;  %v2112_v42 = vcombine.low %v1510_v11, %v1524_v52  ;;  %v2131_v23 = vrot.slane %v2123_v30, 9  ;;  %v1680_v27 = vrot.slane %v2915_v9, 5 }
  0x59   : > { %2295 = vmatmul.mubr.msk.bf16.vlgmr.msra.gmra.mrb[0].mxu0 %vm358_vm4, %v2110_v35  ;;  %v943_v15 = vrot.slane %v941_v38, 4  ;;  %v946_v33 = vrot.slane %v944_v5, 5  ;;  %v1684_v50 = vrot.slane %v2929_v12, 5  ;;  %v1677_v58 = vsel %vm2719_vm7, %v2130_v37, %v1676_v47 }
  0x5a   : > { %2303 = vmatpush3.bf16.msra.mxu0 %v2911_v55  ;;  %2298 = vmatprep.mubr.msk.bf16.mxu0 %vm358_vm4, %v2111_v4  ;;  %v3001_v55 = vsel %vm2719_vm7, %v2129_v22, %v1672_v49  ;;  %v933_v19 = vor.u32 %v932_v53, %v929_v46  ;;  %v938_v35 = vrot.slane %v936_v34, 5  ;;  %v955_v8 = vshrl.u32 %v2023_v48, 16 }
  0x5b   : > { %2391 = vmatprep.subr.msk.bf16.mxu0 %vm371_vm0, %v2444_v57  ;;  %v2132_v57 = vrot.slane %v2124_v43, 9  ;;  %v947_v29 = vor.u32 %v946_v33, %v943_v15  ;;  %v952_v9 = vrot.slane %v950_v51, 5  ;;  %v958_v61 = vshll.u32 %v2023_v48, 16 }
  0x5c   : > { %v969_v54 = vshrl.u32 %v2025_v44, 16  ;;  %v934_v12 = vrot.slane %v933_v19, 4  ;;  %v1681_v21 = vsel %vm2719_vm7, %v2131_v23, %v1680_v27  ;;  %v957_v26 = vrot.slane %v955_v8, 4 }
  0x5d   : > { %v972_v59 = vshll.u32 %v2025_v44, 16  ;;  %v948_v63 = vrot.slane %v947_v29, 4  ;;  %v1685_v0 = vsel %vm2719_vm7, %v2132_v57, %v1684_v50  ;;  %v960_v49 = vrot.slane %v958_v61, 5 }
  0x5e   : > { %2305 = vmatpush3.bf16.msra.mxu0 %v1732_v60  ;;  %v971_v4 = vrot.slane %v969_v54, 4  ;;  %v939_v16 = vsel %vm2585_vm3, %v934_v12, %v938_v35  ;;  %v964_v20 = vshll.u32 %v2729_v39, 16  ;;  %v978_v10 = vshll.u32 %v2760_v13, 16 }
  0x5f   : > { %2247 = vmatmul.mubr.msk.bf16.vlgmr.msra.gmra.mrb[0].mxu1 %vm358_vm4, %v2443_v2  ;;  %v974_v17 = vrot.slane %v972_v59, 5  ;;  %v953_v62 = vsel %vm2585_vm3, %v948_v63, %v952_v9  ;;  %v961_v22 = vor.u32 %v960_v49, %v957_v26  ;;  %v2139_v2 = vcombine.low %v3001_v55, %v1677_v58 }
  0x60   : > { %2316 = vmatpush3.bf16.msra.mxu1 %v2515_v1  ;;  %2250 = vmatprep.mubr.msk.bf16.mxu1 %vm358_vm4, %v2445_v36  ;;  %v2446_v1 = vld [vmem:[%s2551_s4 + $0x38] ss:$8 sps:$4 sm:$0xff]   ;;  %v2032_v11 = vcombine.low %v939_v16, %v953_v62  ;;  %v2140_v60 = vcombine.low %v1681_v21, %v1685_v0  ;;  %v1688_v45 = vrot.slane %v2949_v14, 5  ;;  %v2134_v28 = vrot.slane %v2126_v18, 9 }
  0x61   : > { %2299 = vmatmul.mubr.msk.bf16.gmra.mrb[4].mxu0 %vm358_vm4, %v2112_v42  ;;  %2387 = vmatprep.subr.msk.bf16.mxu1 %vm371_vm0, %v2524_v3  ;;  %v2125_v3 = vld [vmem:[%s2551_s4 + $0x40] sm:$0xe]  ;;  %v975_v7 = vor.u32 %v974_v17, %v971_v4  ;;  %v1692_v52 = vrot.slane %v2956_v40, 5  ;;  %v966_v39 = vrot.slane %v964_v20, 5  ;;  %v980_v13 = vrot.slane %v978_v10, 5 }
  0x62   : > { %2306 = vmatprep.mubr.msk.bf16.mxu0 %vm358_vm4, %v2138_v56  ;;  %v2133_v25 = vrot.slane %v2125_v3, 9 }
  0x63   : > { %v976_v47 = vrot.slane %v975_v7, 4  ;;  %v1693_v14 = vsel %vm2719_vm7, %v2134_v28, %v1692_v52 }
  0x64   : > { %2317 = vmatpush3.bf16.msra.mxu1 %v2540_v6  ;;  %v962_v6 = vrot.slane %v961_v22, 4  ;;  %v1689_v31 = vsel %vm2719_vm7, %v2133_v25, %v1688_v45 }
  0x65   : > { %v981_v34 = vsel %vm2585_vm3, %v976_v47, %v980_v13  ;;  %v2141_v30 = vcombine.low %v1689_v31, %v1693_v14 }
  0x66   : > { %v967_v40 = vsel %vm2585_vm3, %v962_v6, %v966_v39 }
  0x67   : > { %2251 = vmatmul.mubr.msk.bf16.gmra.mrb[4].mxu1 %vm358_vm4, %v2446_v1  ;;  %v2033_v36 = vcombine.low %v967_v40, %v981_v34 }
  0x68   : > { %2262 = vmatprep.mubr.msk.bf16.mxu1 %vm358_vm4, %v2032_v11 }
  0x69   : > { %2307 = vmatmul.mubr.msk.bf16.vlgmr.msra.gmra.mrb[0].mxu0 %vm358_vm4, %v2139_v2 }
  0x6a   : > { %2310 = vmatprep.mubr.msk.bf16.mxu0 %vm358_vm4, %v2140_v60 }
  0x71   : > { %2311 = vmatmul.mubr.msk.bf16.gmra.mrb[4].mxu0 %vm358_vm4, %v2141_v30 }
  0x73   : > { %2263 = vmatmul.mubr.msk.bf16.vlgmr.msra.gmra.mrb[4].mxu1 %vm358_vm4, %v2033_v36 }
 0x132   : > { %v2248_v56 = vpop.f32.mrb[0].mxu1 }
 0x133   : > { %v815_v55 = vpop.f32.mrb[1].mxu1 }
 0x134   : > { %v2249_v37 = vpop.f32.mrb[2].mxu1 }
 0x135   : > { %v818_v41 = vpop.f32.mrb[3].mxu1 }
 0x13c   : > { %v2308_v43 = vpop.f32.mrb[0].mxu0 }
 0x13d   : > { %v2318_v42 = vadd.f32 %v2308_v43, %v2248_v56  ;;  %v1768_v46 = vpop.f32.mrb[1].mxu0 }
 0x13e   : > { %v2319_v32 = vadd.f32 %v1768_v46, %v815_v55  ;;  %v2309_v38 = vpop.f32.mrb[2].mxu0 }
 0x13f   : > { %v1816_v5 = vadd.f32 %v2318_v42, %v2148_v24  ;;  %v2320_v48 = vadd.f32 %v2309_v38, %v2249_v37  ;;  %v1771_v53 = vpop.f32.mrb[3].mxu0 }
 0x140   : > { %v1814_v51 = vadd.f32 %v2319_v32, %v2148_v24  ;;  %v2321_v23 = vadd.f32 %v1771_v53, %v818_v41 }
 0x141   : > { %v1824_v27 = vmax.f32 %v1816_v5, 0.0  ;;  %v1817_v44 = vadd.f32 %v2320_v48, %v2148_v24 }
 0x142   : > { %v1822_v15 = vmax.f32 %v1814_v51, 0.0  ;;  %v1815_v33 = vadd.f32 %v2321_v23, %v2148_v24 }
 0x143   : > { %v1832_v57 = vpack.c.bf16 %v1824_v27, %v1824_v27  ;;  %v1825_v50 = vmax.f32 %v1817_v44, 0.0 }
 0x144   : > { %v1830_v58 = vpack.c.bf16 %v1822_v15, %v1822_v15  ;;  %v1823_v19 = vmax.f32 %v1815_v33, 0.0  ;;  %v2312_v35 = vpop.f32.mrb[4].mxu0 }
 0x145   : > { %1841 = vst.msk [vmem:[%s3056_s11 + $0x8] sm:$0xf] %vm1838_vm8, %v1832_v57  ;;  %v1833_v8 = vpack.c.bf16 %v1825_v50, %v1825_v50  ;;  %v1784_v29 = vpop.f32.mrb[5].mxu0 }
 0x146   : > { %1839 = vst.msk [vmem:[%s3056_s11] sm:$0xf] %vm1838_vm8, %v1830_v58  ;;  %v1831_v9 = vpack.c.bf16 %v1823_v19, %v1823_v19  ;;  %v2264_v61 = vpop.f32.mrb[4].mxu1  ;;  %v2313_v54 = vpop.f32.mrb[6].mxu0 }
 0x147   : > { %1842 = vst.msk [vmem:[%s3056_s11 + $0xc] sm:$0xf] %vm1838_vm8, %v1833_v8  ;;  %v2322_v12 = vadd.f32 %v2312_v35, %v2264_v61  ;;  %v1072_v21 = vpop.f32.mrb[5].mxu1  ;;  %v1787_v26 = vpop.f32.mrb[7].mxu0 }
 0x148   : > { %1840 = vst.msk [vmem:[%s3056_s11 + $0x4] sm:$0xf] %vm1838_vm8, %v1831_v9  ;;  %v2323_v59 = vadd.f32 %v1784_v29, %v1072_v21  ;;  %v2265_v1 = vpop.f32.mrb[6].mxu1 }
 0x149   : > { %v1820_v63 = vadd.f32 %v2322_v12, %v2148_v24  ;;  %v2324_v0 = vadd.f32 %v2313_v54, %v2265_v1  ;;  %v1075_v49 = vpop.f32.mrb[7].mxu1 }
 0x14a   : > { %v1818_v4 = vadd.f32 %v2323_v59, %v2148_v24  ;;  %v2325_v16 = vadd.f32 %v1787_v26, %v1075_v49 }
 0x14b   : > { %v1828_v17 = vmax.f32 %v1820_v63, 0.0  ;;  %v1821_v3 = vadd.f32 %v2324_v0, %v2148_v24 }
 0x14c   : > { %v1826_v18 = vmax.f32 %v1818_v4, 0.0  ;;  %v1819_v20 = vadd.f32 %v2325_v16, %v2148_v24 }
 0x14d   : > { %v1836_v10 = vpack.c.bf16 %v1828_v17, %v1828_v17  ;;  %v1829_v62 = vmax.f32 %v1821_v3, 0.0 }
 0x14e   : > { %v1834_v22 = vpack.c.bf16 %v1826_v18, %v1826_v18  ;;  %v1827_v2 = vmax.f32 %v1819_v20, 0.0 }
 0x14f   : > { %1845 = vst.msk [vmem:[%s3056_s11 + $0x18] sm:$0xf] %vm1838_vm8, %v1836_v10  ;;  %v1837_v11 = vpack.c.bf16 %v1829_v62, %v1829_v62 }
 0x150   : > { %1843 = vst.msk [vmem:[%s3056_s11 + $0x10] sm:$0xf] %vm1838_vm8, %v1834_v22  ;;  %v1835_v60 = vpack.c.bf16 %v1827_v2, %v1827_v2 }
 0x151   : > { %1846 = vst.msk [vmem:[%s3056_s11 + $0x1c] sm:$0xf] %vm1838_vm8, %v1837_v11 }
 0x152   : > { %1844 = vst.msk [vmem:[%s3056_s11 + $0x14] sm:$0xf] %vm1838_vm8, %v1835_v60 }
 0x153 PF: > { %s13_s14 = sadd.s32 1, %s2469_s14   ;;  %s3091_s12 = smov %s2465_s13 }
 0x154   : > { %p10_p5 = scmp.ge.s32.totalorder %s13_s14, 4   ;;  %s3092_s13 = smov %s3094_s15 }
 0x156   :  { %12 = sbr.rel (!%p10_p5) target bundleno = 2 (0x2), region = 73 }

// kernel: dctvfinet_forward.18
= control target key start
LH: loop header
LB: loop body
LE: loop exit
PB: predicated region body
PF: predicated region fallthrough
CT: control target
= control target key end

     0   :  { %v972_v0 = vmov 0   ;;  %vm414_vm0 = vcmask 261120   ;;  %vm713_vm1 = vcmask 60416   ;;  %s1270_s1 = inlined_call_operand.vmem [shape: bf16[416,8], index: 1, kind: input, shape index: {}]   ;;  %s1271_s0 = inlined_call_operand.vmem [shape: bf16[128,416], index: 0, kind: input, shape index: {}]   ;;  %s1272_s2 = inlined_call_operand.vmem [shape: f32[1,8], index: 2, kind: input, shape index: {}]   ;;  %s1273_s3 = inlined_call_operand.vmem [shape: bf16[128,8], index: 3, kind: output, shape index: {}]  }
   0x1   :  { %536 = vmatprep.subr.bf16.mxu1 %v972_v0  ;;  %v898_v1 = vld [vmem:[%s1270_s1 + $0x40] sm:$0xff]   ;;  %v901_v4 = vld [vmem:[%s1270_s1 + $0x48] sm:$0xff]   ;;  %v904_v7 = vld [vmem:[%s1270_s1 + $0x50] sm:$0xff]  }
   0x2   :  { %v899_v2 = vld [vmem:[%s1270_s1 + $0x80] sm:$0xff]   ;;  %833 = vmatprep.subr.bf16.mxu0 %v898_v1  ;;  %v902_v5 = vld [vmem:[%s1270_s1 + $0x88] sm:$0xff]   ;;  %v905_v8 = vld [vmem:[%s1270_s1 + $0x90] sm:$0xff]  }
   0x3   :  { %v900_v3 = vld [vmem:[%s1270_s1] sm:$0xff]   ;;  %537 = vmatpush1.bf16.msra.mxu1 %v899_v2  ;;  %v903_v6 = vld [vmem:[%s1270_s1 + $0x8] sm:$0xff]   ;;  %v906_v9 = vld [vmem:[%s1270_s1 + $0x10] sm:$0xff]  }
   0x4   :  { %834 = vmatpush3.bf16.msra.mxu0 %v900_v3  ;;  %538 = vmatprep.subr.bf16.mxu1 %v972_v0  ;;  %v907_v10 = vld [vmem:[%s1270_s1 + $0x58] sm:$0xff]   ;;  %v910_v13 = vld [vmem:[%s1270_s1 + $0x60] sm:$0xff]   ;;  %v913_v16 = vld [vmem:[%s1270_s1 + $0x68] sm:$0xff]  }
   0x5   :  { %835 = vmatprep.subr.bf16.mxu0 %v901_v4  ;;  %v908_v11 = vld [vmem:[%s1270_s1 + $0x98] sm:$0xff]   ;;  %v911_v14 = vld [vmem:[%s1270_s1 + $0xa0] sm:$0xff]   ;;  %v914_v17 = vld [vmem:[%s1270_s1 + $0xa8] sm:$0xff]  }
   0x6   :  { %v909_v12 = vld [vmem:[%s1270_s1 + $0x18] sm:$0xff]   ;;  %v912_v15 = vld [vmem:[%s1270_s1 + $0x20] sm:$0xff]   ;;  %v915_v18 = vld [vmem:[%s1270_s1 + $0x28] sm:$0xff]  }
   0x7   :  { %539 = vmatpush1.bf16.msra.mxu1 %v902_v5  ;;  %v916_v19 = vld [vmem:[%s1270_s1 + $0x70] sm:$0xff]   ;;  %v919_v22 = vld [vmem:[%s1270_s1 + $0x78] sm:$0xff]   ;;  %v925_v28 = vld [vmem:[%s1270_s1 + $0xc0] sm:$0xff]  }
   0x8   :  { %836 = vmatpush3.bf16.msra.mxu0 %v903_v6  ;;  %540 = vmatprep.subr.bf16.mxu1 %v972_v0  ;;  %v917_v20 = vld [vmem:[%s1270_s1 + $0xb0] sm:$0xff]   ;;  %v920_v24 = vld [vmem:[%s1270_s1 + $0xb8] sm:$0xff]   ;;  %v926_v30 = vld [vmem:[%s1270_s1 + $0xc8] sm:$0xff]  }
   0x9   :  { %837 = vmatprep.subr.bf16.mxu0 %v904_v7  ;;  %v918_v21 = vld [vmem:[%s1270_s1 + $0x30] sm:$0xff]   ;;  %v921_v25 = vld [vmem:[%s1270_s1 + $0x38] sm:$0xff]   ;;  %v1188_v61 = vld [vmem:[%s1272_s2] ss:$0 sm:$0xff] }
   0xa   :  { %v924_v23 = vld [vmem:[%s1271_s0 + $0x4] ss:$16 sps:$4 sm:$0xff]   ;;  %v929_v26 = vld [vmem:[%s1271_s0 + $0xc] ss:$16 sps:$4 sm:$0xff]   ;;  %v922_v27 = vld [vmem:[%s1271_s0] ss:$16 sps:$4 sm:$0xff]  }
   0xb   :  { %541 = vmatpush1.bf16.msra.mxu1 %v905_v8  ;;  %471 = vmatprep.mubr.bf16.mxu0 %v924_v23  ;;  %v930_v29 = vld [vmem:[%s1271_s0 + $0x24] ss:$16 sps:$4 sm:$0xff]   ;;  %v927_v31 = vld [vmem:[%s1271_s0 + $0x8] ss:$16 sps:$4 sm:$0xff]   ;;  %v932_v32 = vld [vmem:[%s1271_s0 + $0x20] ss:$16 sps:$4 sm:$0xff]  }
   0xc   :  { %838 = vmatpush3.bf16.msra.mxu0 %v906_v9  ;;  %542 = vmatprep.subr.bf16.mxu1 %v972_v0  ;;  %v933_v33 = vld [vmem:[%s1271_s0 + $0x2c] ss:$16 sps:$4 sm:$0xff]   ;;  %v935_v34 = vld [vmem:[%s1271_s0 + $0x44] ss:$16 sps:$4 sm:$0xff]   ;;  %v937_v35 = vld [vmem:[%s1271_s0 + $0x28] ss:$16 sps:$4 sm:$0xff]  }
   0xd   :  { %839 = vmatprep.subr.bf16.mxu0 %v907_v10  ;;  %793 = vmatprep.mubr.msk.bf16.mxu1 %vm414_vm0, %v929_v26  ;;  %v938_v36 = vld [vmem:[%s1271_s0 + $0x40] ss:$16 sps:$4 sm:$0xff]   ;;  %v939_v37 = vld [vmem:[%s1271_s0 + $0x4c] ss:$16 sps:$4 sm:$0xff]   ;;  %v941_v38 = vld [vmem:[%s1271_s0 + $0x64] ss:$16 sps:$4 sm:$0xff]  }
   0xe   :  { %v943_v39 = vld [vmem:[%s1271_s0 + $0x48] ss:$16 sps:$4 sm:$0xff]   ;;  %v944_v40 = vld [vmem:[%s1271_s0 + $0x60] ss:$16 sps:$4 sm:$0xff]   ;;  %v945_v41 = vld [vmem:[%s1271_s0 + $0x6c] ss:$16 sps:$4 sm:$0xff]  }
   0xf   :  { %543 = vmatpush1.bf16.msra.mxu1 %v908_v11  ;;  %v947_v42 = vld [vmem:[%s1271_s0 + $0x84] ss:$16 sps:$4 sm:$0xff]   ;;  %v949_v43 = vld [vmem:[%s1271_s0 + $0x68] ss:$16 sps:$4 sm:$0xff]   ;;  %v950_v44 = vld [vmem:[%s1271_s0 + $0x80] ss:$16 sps:$4 sm:$0xff]  }
  0x10   :  { %840 = vmatpush3.bf16.msra.mxu0 %v909_v12  ;;  %544 = vmatprep.subr.bf16.mxu1 %v972_v0  ;;  %v951_v45 = vld [vmem:[%s1271_s0 + $0x8c] ss:$16 sps:$4 sm:$0xff]   ;;  %v953_v46 = vld [vmem:[%s1271_s0 + $0xa4] ss:$16 sps:$4 sm:$0xff]   ;;  %v955_v47 = vld [vmem:[%s1271_s0 + $0x88] ss:$16 sps:$4 sm:$0xff]  }
  0x11   :  { %841 = vmatprep.subr.bf16.mxu0 %v910_v13  ;;  %v956_v48 = vld [vmem:[%s1271_s0 + $0xa0] ss:$16 sps:$4 sm:$0xff]   ;;  %v957_v49 = vld [vmem:[%s1271_s0 + $0xac] ss:$16 sps:$4 sm:$0xff]   ;;  %v959_v50 = vld [vmem:[%s1271_s0 + $0xc4] ss:$16 sps:$4 sm:$0xff]  }
  0x12   :  { %v961_v51 = vld [vmem:[%s1271_s0 + $0xa8] ss:$16 sps:$4 sm:$0xff]   ;;  %v962_v52 = vld [vmem:[%s1271_s0 + $0xc0] ss:$16 sps:$4 sm:$0xff]   ;;  %v963_v53 = vld [vmem:[%s1271_s0 + $0xcc] ss:$16 sps:$4 sm:$0xff]  }
  0x13   :  { %545 = vmatpush1.bf16.msra.mxu1 %v911_v14  ;;  %v965_v54 = vld [vmem:[%s1271_s0 + $0xe4] ss:$16 sps:$4 sm:$0xff]   ;;  %v967_v55 = vld [vmem:[%s1271_s0 + $0xc8] ss:$16 sps:$4 sm:$0xff]   ;;  %v968_v56 = vld [vmem:[%s1271_s0 + $0xe0] ss:$16 sps:$4 sm:$0xff]  }
  0x14   :  { %842 = vmatpush3.bf16.msra.mxu0 %v912_v15  ;;  %546 = vmatprep.subr.bf16.mxu1 %v972_v0  ;;  %v969_v57 = vld [vmem:[%s1271_s0 + $0xec] ss:$16 sps:$4 sm:$0xff]   ;;  %v971_v58 = vld [vmem:[%s1271_s0 + $0xe8] ss:$16 sps:$4 sm:$0xff]  }
  0x15   :  { %843 = vmatprep.subr.bf16.mxu0 %v913_v16 }
  0x17   :  { %547 = vmatpush1.bf16.msra.mxu1 %v914_v17 }
  0x18   :  { %844 = vmatpush3.bf16.msra.mxu0 %v915_v18  ;;  %548 = vmatprep.subr.bf16.mxu1 %v972_v0 }
  0x19   :  { %845 = vmatprep.subr.bf16.mxu0 %v916_v19 }
  0x1b   :  { %549 = vmatpush1.bf16.msra.mxu1 %v917_v20 }
  0x1c   :  { %846 = vmatpush3.bf16.msra.mxu0 %v918_v21  ;;  %550 = vmatprep.subr.bf16.mxu1 %v972_v0 }
  0x1d   :  { %847 = vmatprep.subr.bf16.mxu0 %v919_v22 }
  0x1f   :  { %551 = vmatpush1.bf16.msra.mxu1 %v920_v24 }
  0x20   :  { %848 = vmatpush3.bf16.msra.mxu0 %v921_v25  ;;  %552 = vmatprep.subr.bf16.mxu1 %v972_v0 }
  0x23   :  { %472 = vmatmul.mubr.bf16.vlgmr.msra.gmra.mrb[0].mxu0 %v922_v27  ;;  %553 = vmatpush1.bf16.msra.mxu1 %v925_v28 }
  0x24   :  { %554 = vmatprep.subr.bf16.mxu1 %v972_v0  ;;  %479 = vmatprep.mubr.bf16.mxu0 %v930_v29 }
  0x27   :  { %555 = vmatpush1.bf16.msra.mxu1 %v926_v30 }
  0x2a   :  { %569 = vmatmul.mubr.bf16.vlgmr.msra.gmra.mrb[0].mxu1 %v927_v31 }
  0x2b   :  { %480 = vmatmul.mubr.bf16.gmra.mrb[4].mxu0 %v932_v32  ;;  %794 = vmatprep.mubr.msk.bf16.mxu1 %vm414_vm0, %v933_v33 }
  0x2c   :  { %487 = vmatprep.mubr.bf16.mxu0 %v935_v34 }
  0x32   :  { %577 = vmatmul.mubr.bf16.gmra.mrb[4].mxu1 %v937_v35 }
  0x33   :  { %488 = vmatmul.mubr.bf16.gmra.mrb[8].mxu0 %v938_v36  ;;  %795 = vmatprep.mubr.msk.bf16.mxu1 %vm414_vm0, %v939_v37 }
  0x34   :  { %495 = vmatprep.mubr.bf16.mxu0 %v941_v38 }
  0x3a   :  { %585 = vmatmul.mubr.bf16.gmra.mrb[8].mxu1 %v943_v39 }
  0x3b   :  { %496 = vmatmul.mubr.bf16.gmra.mrb[12].mxu0 %v944_v40  ;;  %796 = vmatprep.mubr.msk.bf16.mxu1 %vm414_vm0, %v945_v41 }
  0x3c   :  { %503 = vmatprep.mubr.bf16.mxu0 %v947_v42 }
  0x42   :  { %593 = vmatmul.mubr.bf16.gmra.mrb[12].mxu1 %v949_v43 }
  0x43   :  { %504 = vmatmul.mubr.bf16.gmra.mrb[16].mxu0 %v950_v44  ;;  %797 = vmatprep.mubr.msk.bf16.mxu1 %vm414_vm0, %v951_v45 }
  0x44   :  { %511 = vmatprep.mubr.bf16.mxu0 %v953_v46 }
  0x4a   :  { %601 = vmatmul.mubr.bf16.gmra.mrb[16].mxu1 %v955_v47 }
  0x4b   :  { %512 = vmatmul.mubr.bf16.gmra.mrb[20].mxu0 %v956_v48  ;;  %798 = vmatprep.mubr.msk.bf16.mxu1 %vm414_vm0, %v957_v49 }
  0x4c   :  { %519 = vmatprep.mubr.bf16.mxu0 %v959_v50 }
  0x52   :  { %609 = vmatmul.mubr.bf16.gmra.mrb[20].mxu1 %v961_v51 }
  0x53   :  { %520 = vmatmul.mubr.bf16.gmra.mrb[24].mxu0 %v962_v52  ;;  %799 = vmatprep.mubr.msk.bf16.mxu1 %vm414_vm0, %v963_v53 }
  0x54   :  { %527 = vmatprep.mubr.bf16.mxu0 %v965_v54 }
  0x5a   :  { %617 = vmatmul.mubr.bf16.gmra.mrb[24].mxu1 %v967_v55 }
  0x5b   :  { %528 = vmatmul.mubr.bf16.gmra.mrb[28].mxu0 %v968_v56  ;;  %800 = vmatprep.mubr.msk.bf16.mxu1 %vm414_vm0, %v969_v57 }
  0x62   :  { %625 = vmatmul.mubr.bf16.gmra.mrb[28].mxu1 %v971_v58 }
  0xf6   :  { %v849_v59 = vpop.f32.mrb[0].mxu0 }
  0xf7   :  { %v850_v60 = vpop.f32.mrb[1].mxu0 }
  0xf8   :  { %v851_v62 = vadd.f32 %v850_v60, %v849_v59  ;;  %v852_v63 = vpop.f32.mrb[2].mxu0 }
  0xf9   :  { %v853_v0 = vpop.f32.mrb[3].mxu0 }
  0xfa   :  { %v854_v1 = vadd.f32 %v853_v0, %v852_v63  ;;  %v474_v2 = vadd.f32 %v851_v62, %v1188_v61 }
  0xfc   :  { %v477_v7 = vadd.f32 %v854_v1, %v1188_v61 }
  0xfd   :  { %v570_v3 = vpop.f32.mrb[0].mxu1 }
  0xfe   :  { %v571_v4 = vadd.f32 %v570_v3, %v474_v2  ;;  %v855_v5 = vpop.f32.mrb[4].mxu0  ;;  %v572_v6 = vpop.f32.mrb[1].mxu1 }
  0xff   :  { %v856_v8 = vpop.f32.mrb[5].mxu0  ;;  %v573_v9 = vpop.f32.mrb[2].mxu1 }
 0x100   :  { %v633_v10 = vmax.f32 %v571_v4, 0.0  ;;  %v857_v11 = vadd.f32 %v856_v8, %v855_v5  ;;  %v574_v12 = vadd.f32 %v573_v9, %v477_v7  ;;  %v858_v13 = vpop.f32.mrb[6].mxu0  ;;  %v575_v14 = vpop.f32.mrb[3].mxu1 }
 0x101   :  { %v859_v15 = vpop.f32.mrb[7].mxu0 }
 0x102   :  { %v817_v16 = vpack.c.bf16 %v633_v10, %v633_v10  ;;  %v634_v17 = vmax.f32 %v574_v12, 0.0  ;;  %v860_v18 = vadd.f32 %v859_v15, %v858_v13  ;;  %v482_v19 = vadd.f32 %v857_v11, %v1188_v61 }
 0x104   :  { %714 = vst.msk [vmem:[%s1273_s3] sm:$0xf] %vm713_vm1, %v817_v16  ;;  %v818_v20 = vpack.c.bf16 %v634_v17, %v634_v17  ;;  %v485_v25 = vadd.f32 %v860_v18, %v1188_v61 }
 0x105   :  { %v578_v21 = vpop.f32.mrb[4].mxu1 }
 0x106   :  { %715 = vst.msk [vmem:[%s1273_s3 + $0x4] sm:$0xf] %vm713_vm1, %v818_v20  ;;  %v579_v22 = vadd.f32 %v578_v21, %v482_v19  ;;  %v861_v23 = vpop.f32.mrb[8].mxu0  ;;  %v580_v24 = vpop.f32.mrb[5].mxu1 }
 0x107   :  { %v862_v26 = vpop.f32.mrb[9].mxu0  ;;  %v581_v27 = vpop.f32.mrb[6].mxu1 }
 0x108   :  { %v635_v28 = vmax.f32 %v579_v22, 0.0  ;;  %v863_v29 = vadd.f32 %v862_v26, %v861_v23  ;;  %v582_v30 = vadd.f32 %v581_v27, %v485_v25  ;;  %v864_v31 = vpop.f32.mrb[10].mxu0  ;;  %v583_v32 = vpop.f32.mrb[7].mxu1 }
 0x109   :  { %v865_v33 = vpop.f32.mrb[11].mxu0 }
 0x10a   :  { %v819_v34 = vpack.c.bf16 %v635_v28, %v635_v28  ;;  %v636_v35 = vmax.f32 %v582_v30, 0.0  ;;  %v866_v36 = vadd.f32 %v865_v33, %v864_v31  ;;  %v490_v37 = vadd.f32 %v863_v29, %v1188_v61 }
 0x10c   :  { %716 = vst.msk [vmem:[%s1273_s3 + $0x8] sm:$0xf] %vm713_vm1, %v819_v34  ;;  %v820_v38 = vpack.c.bf16 %v636_v35, %v636_v35  ;;  %v493_v43 = vadd.f32 %v866_v36, %v1188_v61 }
 0x10d   :  { %v586_v39 = vpop.f32.mrb[8].mxu1 }
 0x10e   :  { %717 = vst.msk [vmem:[%s1273_s3 + $0xc] sm:$0xf] %vm713_vm1, %v820_v38  ;;  %v587_v40 = vadd.f32 %v586_v39, %v490_v37  ;;  %v867_v41 = vpop.f32.mrb[12].mxu0  ;;  %v588_v42 = vpop.f32.mrb[9].mxu1 }
 0x10f   :  { %v868_v44 = vpop.f32.mrb[13].mxu0  ;;  %v589_v45 = vpop.f32.mrb[10].mxu1 }
 0x110   :  { %v637_v46 = vmax.f32 %v587_v40, 0.0  ;;  %v869_v47 = vadd.f32 %v868_v44, %v867_v41  ;;  %v590_v48 = vadd.f32 %v589_v45, %v493_v43  ;;  %v870_v49 = vpop.f32.mrb[14].mxu0  ;;  %v591_v50 = vpop.f32.mrb[11].mxu1 }
 0x111   :  { %v871_v51 = vpop.f32.mrb[15].mxu0 }
 0x112   :  { %v821_v52 = vpack.c.bf16 %v637_v46, %v637_v46  ;;  %v638_v53 = vmax.f32 %v590_v48, 0.0  ;;  %v872_v54 = vadd.f32 %v871_v51, %v870_v49  ;;  %v498_v55 = vadd.f32 %v869_v47, %v1188_v61 }
 0x114   :  { %718 = vst.msk [vmem:[%s1273_s3 + $0x10] sm:$0xf] %vm713_vm1, %v821_v52  ;;  %v822_v56 = vpack.c.bf16 %v638_v53, %v638_v53  ;;  %v501_v62 = vadd.f32 %v872_v54, %v1188_v61 }
 0x115   :  { %v594_v57 = vpop.f32.mrb[12].mxu1 }
 0x116   :  { %719 = vst.msk [vmem:[%s1273_s3 + $0x14] sm:$0xf] %vm713_vm1, %v822_v56  ;;  %v595_v58 = vadd.f32 %v594_v57, %v498_v55  ;;  %v873_v59 = vpop.f32.mrb[16].mxu0  ;;  %v596_v60 = vpop.f32.mrb[13].mxu1 }
 0x117   :  { %v874_v63 = vpop.f32.mrb[17].mxu0  ;;  %v597_v0 = vpop.f32.mrb[14].mxu1 }
 0x118   :  { %v639_v1 = vmax.f32 %v595_v58, 0.0  ;;  %v875_v2 = vadd.f32 %v874_v63, %v873_v59  ;;  %v598_v3 = vadd.f32 %v597_v0, %v501_v62  ;;  %v876_v4 = vpop.f32.mrb[18].mxu0  ;;  %v599_v5 = vpop.f32.mrb[15].mxu1 }
 0x119   :  { %v877_v6 = vpop.f32.mrb[19].mxu0 }
 0x11a   :  { %v823_v7 = vpack.c.bf16 %v639_v1, %v639_v1  ;;  %v640_v8 = vmax.f32 %v598_v3, 0.0  ;;  %v878_v9 = vadd.f32 %v877_v6, %v876_v4  ;;  %v506_v10 = vadd.f32 %v875_v2, %v1188_v61 }
 0x11c   :  { %720 = vst.msk [vmem:[%s1273_s3 + $0x18] sm:$0xf] %vm713_vm1, %v823_v7  ;;  %v824_v11 = vpack.c.bf16 %v640_v8, %v640_v8  ;;  %v509_v16 = vadd.f32 %v878_v9, %v1188_v61 }
 0x11d   :  { %v602_v12 = vpop.f32.mrb[16].mxu1 }
 0x11e   :  { %721 = vst.msk [vmem:[%s1273_s3 + $0x1c] sm:$0xf] %vm713_vm1, %v824_v11  ;;  %v603_v13 = vadd.f32 %v602_v12, %v506_v10  ;;  %v879_v14 = vpop.f32.mrb[20].mxu0  ;;  %v604_v15 = vpop.f32.mrb[17].mxu1 }
 0x11f   :  { %v880_v17 = vpop.f32.mrb[21].mxu0  ;;  %v605_v18 = vpop.f32.mrb[18].mxu1 }
 0x120   :  { %v641_v19 = vmax.f32 %v603_v13, 0.0  ;;  %v881_v20 = vadd.f32 %v880_v17, %v879_v14  ;;  %v606_v21 = vadd.f32 %v605_v18, %v509_v16  ;;  %v882_v22 = vpop.f32.mrb[22].mxu0  ;;  %v607_v23 = vpop.f32.mrb[19].mxu1 }
 0x121   :  { %v883_v24 = vpop.f32.mrb[23].mxu0 }
 0x122   :  { %v825_v25 = vpack.c.bf16 %v641_v19, %v641_v19  ;;  %v642_v26 = vmax.f32 %v606_v21, 0.0  ;;  %v884_v27 = vadd.f32 %v883_v24, %v882_v22  ;;  %v514_v28 = vadd.f32 %v881_v20, %v1188_v61 }
 0x124   :  { %722 = vst.msk [vmem:[%s1273_s3 + $0x20] sm:$0xf] %vm713_vm1, %v825_v25  ;;  %v826_v29 = vpack.c.bf16 %v642_v26, %v642_v26  ;;  %v517_v34 = vadd.f32 %v884_v27, %v1188_v61 }
 0x125   :  { %v610_v30 = vpop.f32.mrb[20].mxu1 }
 0x126   :  { %723 = vst.msk [vmem:[%s1273_s3 + $0x24] sm:$0xf] %vm713_vm1, %v826_v29  ;;  %v611_v31 = vadd.f32 %v610_v30, %v514_v28  ;;  %v885_v32 = vpop.f32.mrb[24].mxu0  ;;  %v612_v33 = vpop.f32.mrb[21].mxu1 }
 0x127   :  { %v886_v35 = vpop.f32.mrb[25].mxu0  ;;  %v613_v36 = vpop.f32.mrb[22].mxu1 }
 0x128   :  { %v643_v37 = vmax.f32 %v611_v31, 0.0  ;;  %v887_v38 = vadd.f32 %v886_v35, %v885_v32  ;;  %v614_v39 = vadd.f32 %v613_v36, %v517_v34  ;;  %v888_v40 = vpop.f32.mrb[26].mxu0  ;;  %v615_v41 = vpop.f32.mrb[23].mxu1 }
 0x129   :  { %v889_v42 = vpop.f32.mrb[27].mxu0 }
 0x12a   :  { %v827_v43 = vpack.c.bf16 %v643_v37, %v643_v37  ;;  %v644_v44 = vmax.f32 %v614_v39, 0.0  ;;  %v890_v45 = vadd.f32 %v889_v42, %v888_v40  ;;  %v522_v46 = vadd.f32 %v887_v38, %v1188_v61 }
 0x12c   :  { %724 = vst.msk [vmem:[%s1273_s3 + $0x28] sm:$0xf] %vm713_vm1, %v827_v43  ;;  %v828_v47 = vpack.c.bf16 %v644_v44, %v644_v44  ;;  %v525_v52 = vadd.f32 %v890_v45, %v1188_v61 }
 0x12d   :  { %v618_v48 = vpop.f32.mrb[24].mxu1 }
 0x12e   :  { %725 = vst.msk [vmem:[%s1273_s3 + $0x2c] sm:$0xf] %vm713_vm1, %v828_v47  ;;  %v619_v49 = vadd.f32 %v618_v48, %v522_v46  ;;  %v891_v50 = vpop.f32.mrb[28].mxu0  ;;  %v620_v51 = vpop.f32.mrb[25].mxu1 }
 0x12f   :  { %v892_v53 = vpop.f32.mrb[29].mxu0  ;;  %v621_v54 = vpop.f32.mrb[26].mxu1 }
 0x130   :  { %v645_v55 = vmax.f32 %v619_v49, 0.0  ;;  %v893_v56 = vadd.f32 %v892_v53, %v891_v50  ;;  %v622_v57 = vadd.f32 %v621_v54, %v525_v52  ;;  %v894_v58 = vpop.f32.mrb[30].mxu0  ;;  %v623_v59 = vpop.f32.mrb[27].mxu1 }
 0x131   :  { %v895_v60 = vpop.f32.mrb[31].mxu0 }
 0x132   :  { %v829_v62 = vpack.c.bf16 %v645_v55, %v645_v55  ;;  %v646_v63 = vmax.f32 %v622_v57, 0.0  ;;  %v896_v0 = vadd.f32 %v895_v60, %v894_v58  ;;  %v530_v1 = vadd.f32 %v893_v56, %v1188_v61 }
 0x134   :  { %726 = vst.msk [vmem:[%s1273_s3 + $0x30] sm:$0xf] %vm713_vm1, %v829_v62  ;;  %v830_v2 = vpack.c.bf16 %v646_v63, %v646_v63  ;;  %v533_v6 = vadd.f32 %v896_v0, %v1188_v61 }
 0x135   :  { %v626_v3 = vpop.f32.mrb[28].mxu1 }
 0x136   :  { %727 = vst.msk [vmem:[%s1273_s3 + $0x34] sm:$0xf] %vm713_vm1, %v830_v2  ;;  %v627_v4 = vadd.f32 %v626_v3, %v530_v1  ;;  %v628_v5 = vpop.f32.mrb[29].mxu1 }
 0x137   :  { %v629_v7 = vpop.f32.mrb[30].mxu1 }
 0x138   :  { %v647_v8 = vmax.f32 %v627_v4, 0.0  ;;  %v630_v9 = vadd.f32 %v629_v7, %v533_v6  ;;  %v631_v10 = vpop.f32.mrb[31].mxu1 }
 0x13a   :  { %v831_v11 = vpack.c.bf16 %v647_v8, %v647_v8  ;;  %v648_v12 = vmax.f32 %v630_v9, 0.0 }
 0x13c   :  { %728 = vst.msk [vmem:[%s1273_s3 + $0x38] sm:$0xf] %vm713_vm1, %v831_v11  ;;  %v832_v13 = vpack.c.bf16 %v648_v12, %v648_v12 }
 0x13e   :  { %729 = vst.msk [vmem:[%s1273_s3 + $0x3c] sm:$0xf] %vm713_vm1, %v832_v13 }

// kernel: dctvfinet_forward.19
= control target key start
LH: loop header
LB: loop body
LE: loop exit
PB: predicated region body
PF: predicated region fallthrough
CT: control target
= control target key end

     0   :  { %vm171_vm0 = vcmask 125952   ;;  %s304_s1 = inlined_call_operand.vmem [shape: bf16[128,16], index: 1, kind: input, shape index: {}]   ;;  %s305_s0 = inlined_call_operand.vmem [shape: bf16[32,128], index: 0, kind: input, shape index: {}]   ;;  %s306_s2 = inlined_call_operand.vmem [shape: f32[1,16], index: 2, kind: input, shape index: {}]   ;;  %s307_s3 = inlined_call_operand.vmem [shape: bf16[32,16], index: 3, kind: output, shape index: {}]  }
   0x1   :  { %v229_v0 = vld [vmem:[%s304_s1] sm:$0xff]   ;;  %v230_v1 = vld [vmem:[%s304_s1 + $0x8] sm:$0xff]   ;;  %v231_v2 = vld [vmem:[%s304_s1 + $0x10] sm:$0xff]  }
   0x2   :  { %209 = vmatprep.subr.bf16.mxu0 %v229_v0  ;;  %v232_v3 = vld [vmem:[%s304_s1 + $0x18] sm:$0xff]   ;;  %v237_v4 = vld [vmem:[%s305_s0] sm:$0xff]   ;;  %v234_v6 = vld [vmem:[%s304_s1 + $0x28] sm:$0xff]  }
   0x3   :  { %210 = vmatpush3.bf16.msra.mxu0 %v229_v0  ;;  %225 = vmatprep.mubr.bf16.mxu0 %v237_v4  ;;  %v233_v5 = vld [vmem:[%s304_s1 + $0x20] sm:$0xff]   ;;  %v235_v7 = vld [vmem:[%s304_s1 + $0x30] sm:$0xff]   ;;  %v236_v8 = vld [vmem:[%s304_s1 + $0x38] sm:$0xff]  }
   0x4   :  { %211 = vmatprep.subr.bf16.mxu0 %v230_v1  ;;  %v238_v9 = vld [vmem:[%s305_s0 + $0x8] sm:$0xff]   ;;  %v180_v10 = vld [vmem:[%s306_s2] ss:$0 sm:$0xff] }
   0x7   :  { %212 = vmatpush3.bf16.msra.mxu0 %v230_v1 }
   0x8   :  { %213 = vmatprep.subr.bf16.mxu0 %v231_v2 }
   0xb   :  { %214 = vmatpush3.bf16.msra.mxu0 %v231_v2 }
   0xc   :  { %215 = vmatprep.subr.bf16.mxu0 %v232_v3 }
   0xf   :  { %216 = vmatpush3.bf16.msra.mxu0 %v232_v3 }
  0x10   :  { %217 = vmatprep.subr.bf16.mxu0 %v233_v5 }
  0x13   :  { %218 = vmatpush3.bf16.msra.mxu0 %v233_v5 }
  0x14   :  { %219 = vmatprep.subr.bf16.mxu0 %v234_v6 }
  0x17   :  { %220 = vmatpush3.bf16.msra.mxu0 %v234_v6 }
  0x18   :  { %221 = vmatprep.subr.bf16.mxu0 %v235_v7 }
  0x1b   :  { %222 = vmatpush3.bf16.msra.mxu0 %v235_v7 }
  0x1c   :  { %223 = vmatprep.subr.bf16.mxu0 %v236_v8 }
  0x1f   :  { %224 = vmatpush3.bf16.msra.mxu0 %v236_v8 }
  0x22   :  { %226 = vmatmul.mubr.bf16.vlgmr.msra.gmra.mrb[0].mxu0 %v238_v9 }
  0xf5   :  { %v227_v11 = vpop.f32.mrb[0].mxu0 }
  0xf6   :  { %v145_v12 = vadd.f32 %v227_v11, %v180_v10  ;;  %v136_v13 = vpop.f32.mrb[1].mxu0 }
  0xf7   :  { %v137_v14 = vadd.f32 %v180_v10, %v136_v13  ;;  %v228_v15 = vpop.f32.mrb[2].mxu0 }
  0xf8   :  { %v153_v16 = vmax.f32 %v145_v12, 0.0  ;;  %v148_v17 = vadd.f32 %v228_v15, %v180_v10  ;;  %v139_v18 = vpop.f32.mrb[3].mxu0 }
  0xf9   :  { %v151_v19 = vmax.f32 %v137_v14, 0.0  ;;  %v140_v20 = vadd.f32 %v180_v10, %v139_v18 }
  0xfa   :  { %v197_v21 = vpack.c.bf16 %v153_v16, %v153_v16  ;;  %v154_v22 = vmax.f32 %v148_v17, 0.0 }
  0xfb   :  { %v195_v23 = vpack.c.bf16 %v151_v19, %v151_v19  ;;  %v152_v24 = vmax.f32 %v140_v20, 0.0 }
  0xfc   :  { %174 = vst.msk [vmem:[%s307_s3 + $0x8] sm:$0xf] %vm171_vm0, %v197_v21  ;;  %v198_v25 = vpack.c.bf16 %v154_v22, %v154_v22 }
  0xfd   :  { %172 = vst.msk [vmem:[%s307_s3] sm:$0xf] %vm171_vm0, %v195_v23  ;;  %v196_v26 = vpack.c.bf16 %v152_v24, %v152_v24 }
  0xfe   :  { %175 = vst.msk [vmem:[%s307_s3 + $0xc] sm:$0xf] %vm171_vm0, %v198_v25 }
  0xff   :  { %173 = vst.msk [vmem:[%s307_s3 + $0x4] sm:$0xf] %vm171_vm0, %v196_v26 }

// kernel: dctvfinet_forward.20
= control target key start
LH: loop header
LB: loop body
LE: loop exit
PB: predicated region body
PF: predicated region fallthrough
CT: control target
= control target key end

     0   :  { %vm200_vm0 = vcmask 257024   ;;  %s342_s1 = inlined_call_operand.vmem [shape: bf16[256,32], index: 1, kind: input, shape index: {}]   ;;  %s343_s0 = inlined_call_operand.vmem [shape: bf16[8,256], index: 0, kind: input, shape index: {}]   ;;  %s344_s2 = inlined_call_operand.vmem [shape: f32[1,32], index: 2, kind: input, shape index: {}]   ;;  %s345_s3 = inlined_call_operand.vmem [shape: bf16[8,32], index: 3, kind: output, shape index: {}]  }
   0x1   :  { %v247_v0 = vld [vmem:[%s342_s1 + $0x40] sm:$0xff]   ;;  %v249_v2 = vld [vmem:[%s342_s1 + $0x48] sm:$0xff]   ;;  %v251_v4 = vld [vmem:[%s342_s1 + $0x50] sm:$0xff]  }
   0x2   :  { %v248_v1 = vld [vmem:[%s342_s1] sm:$0xff]   ;;  %225 = vmatprep.subr.bf16.mxu0 %v247_v0  ;;  %v250_v3 = vld [vmem:[%s342_s1 + $0x8] sm:$0xff]   ;;  %v252_v5 = vld [vmem:[%s342_s1 + $0x10] sm:$0xff]  }
   0x3   :  { %226 = vmatpush3.bf16.msra.mxu0 %v248_v1  ;;  %v253_v6 = vld [vmem:[%s342_s1 + $0x58] sm:$0xff]   ;;  %v255_v8 = vld [vmem:[%s342_s1 + $0x60] sm:$0xff]   ;;  %v257_v10 = vld [vmem:[%s342_s1 + $0x68] sm:$0xff]  }
   0x4   :  { %227 = vmatprep.subr.bf16.mxu0 %v249_v2  ;;  %v254_v7 = vld [vmem:[%s342_s1 + $0x18] sm:$0xff]   ;;  %v256_v9 = vld [vmem:[%s342_s1 + $0x20] sm:$0xff]   ;;  %v258_v13 = vld [vmem:[%s342_s1 + $0x28] sm:$0xff]  }
   0x5   :  { %v15_v11 = vld [vmem:[%s343_s0] sm:$0xff]  ;;  %v259_v14 = vld [vmem:[%s342_s1 + $0x70] sm:$0xff]   ;;  %v261_v16 = vld [vmem:[%s342_s1 + $0x78] sm:$0xff]  }
   0x6   :  { %v208_v12 = vcombine.high %v15_v11, %v15_v11  ;;  %v260_v15 = vld [vmem:[%s342_s1 + $0x30] sm:$0xff]   ;;  %v262_v17 = vld [vmem:[%s342_s1 + $0x38] sm:$0xff]   ;;  %v207_v18 = vcombine.low %v15_v11, %v15_v11  ;;  %v206_v20 = vld [vmem:[%s344_s2] ss:$0 sm:$0xff] }
   0x7   :  { %228 = vmatpush3.bf16.msra.mxu0 %v250_v3 }
   0x8   :  { %229 = vmatprep.subr.bf16.mxu0 %v251_v4  ;;  %190 = vmatprep.mubr.bf16.mxu0 %v208_v12 }
   0xb   :  { %230 = vmatpush3.bf16.msra.mxu0 %v252_v5 }
   0xc   :  { %231 = vmatprep.subr.bf16.mxu0 %v253_v6 }
   0xf   :  { %232 = vmatpush3.bf16.msra.mxu0 %v254_v7 }
  0x10   :  { %233 = vmatprep.subr.bf16.mxu0 %v255_v8 }
  0x13   :  { %234 = vmatpush3.bf16.msra.mxu0 %v256_v9 }
  0x14   :  { %235 = vmatprep.subr.bf16.mxu0 %v257_v10 }
  0x17   :  { %236 = vmatpush3.bf16.msra.mxu0 %v258_v13 }
  0x18   :  { %237 = vmatprep.subr.bf16.mxu0 %v259_v14 }
  0x1b   :  { %238 = vmatpush3.bf16.msra.mxu0 %v260_v15 }
  0x1c   :  { %239 = vmatprep.subr.bf16.mxu0 %v261_v16 }
  0x1f   :  { %240 = vmatpush3.bf16.msra.mxu0 %v262_v17 }
  0x22   :  { %191 = vmatmul.mubr.bf16.vlgmr.msra.gmra.mrb[0].mxu0 %v207_v18 }
  0xf5   :  { %v241_v19 = vpop.f32.mrb[0].mxu0 }
  0xf6   :  { %v242_v21 = vpop.f32.mrb[1].mxu0 }
  0xf7   :  { %v243_v22 = vadd.f32 %v242_v21, %v241_v19  ;;  %v244_v23 = vpop.f32.mrb[2].mxu0 }
  0xf8   :  { %v245_v24 = vpop.f32.mrb[3].mxu0 }
  0xf9   :  { %v193_v25 = vadd.f32 %v243_v22, %v206_v20 }
  0xfb   :  { %v198_v26 = vmax.f32 %v193_v25, 0.0 }
  0xfd   :  { %v199_v27 = vpack.c.bf16 %v198_v26, %v198_v26 }
  0xff   :  { %201 = vst.msk [vmem:[%s345_s3] sm:$0xf] %vm200_vm0, %v199_v27 }

// kernel: dctvfinet_forward.21
= control target key start
LH: loop header
LB: loop body
LE: loop exit
PB: predicated region body
PF: predicated region fallthrough
CT: control target
= control target key end

     0   :  { %s1492_s12 = smov 0   ;;  %s1494_s13 = smov 0   ;;  %s1690_s0 = inlined_call_operand.vmem [shape: bf16[2,4,4,32], index: 0, kind: input, shape index: {}]   ;;  %s1691_s1 = inlined_call_operand.vmem [shape: bf16[9,32,32], index: 1, kind: input, shape index: {}]   ;;  %s1692_s2 = inlined_call_operand.vmem [shape: f32[1,32], index: 2, kind: input, shape index: {}]   ;;  %s1693_s3 = inlined_call_operand.vmem [shape: bf16[2,2,2,32], index: 3, kind: output, shape index: {}]  }
   0x1   :  { %s1496_s14 = smov 0  }
   0x2 LB: > { %s25_s15 = sadd.s32 1, %s1462_s13  ;;  %p1199_p0 = scmp.ge.s32.totalorder %s1466_s14, 1  ;;  %s1466_s14 = sphi %s1496_s14, %s13_s14   ;;  %s1462_s13 = sphi %s1494_s13, %s1697_s13   ;;  %s1458_s12 = sphi %s1492_s12, %s1696_s12  }
   0x3   : > { %p27_p1 = scmp.ge.s32.totalorder %s25_s15, 2  ;;  %p151_p2 = scmp.lt.s32.totalorder %s1466_s14, 3 }
   0x5   : > { %s1699_s15 = smov (%p27_p1, %s25_s15), 0  ;;  %p152_p3 = pnand %p1199_p0, %p151_p2 }
   0x6   : > { %v1426_v0 = vld [vmem:[%s1691_s1 + $0x10] sm:$0xff] (!%p152_p3)   ;;  %v1468_v1 = vmov (!%p152_p3), 0.0   ;;  %v1427_v2 = vld [vmem:[%s1691_s1] sm:$0xff] (!%p152_p3)   ;;  %v1428_v3 = vld [vmem:[%s1691_s1 + $0x18] sm:$0xff] (!%p152_p3)   ;;  %vm1469_vm0 = vmmov (!%p152_p3), 0   ;;  %p178_p4 = scmp.lt.s32.totalorder (!%p152_p3), %s1458_s12, 1  ;;  %v264_v4 = vlaneseq (!%p152_p3) }
   0x7   : > { %155 = sbr.rel (%p152_p3) target bundleno = 287 (0x11f), region = 32  ;;  %1326 = vmatprep.subr.bf16.mxu0 (!%p152_p3), %v1468_v1  ;;  %1334 = vmatprep.subr.bf16.mxu1 (!%p152_p3), %v1468_v1  ;;  %v1429_v5 = vld [vmem:[%s1691_s1 + $0x8] sm:$0xff] (!%p152_p3)   ;;  %vm222_vm1 = vsmask.f32 (!%p152_p3), 256  ;;  %vm223_vm2 = vsmask.f32 (!%p152_p3), 1284 }
   0x8   : > { %1327 = vmatpush3.bf16.msra.mxu0 (!%p152_p3), %v1426_v0  ;;  %1330 = vmatprep.mubr.msk.bf16.mxu0 (!%p152_p3), %vm1469_vm0, %v1468_v1  ;;  %vm224_vm3 = vmor (!%p152_p3), %vm222_vm1, %vm223_vm2  ;;  %vm225_vm4 = vsmask.f32 (!%p152_p3), 2312  ;;  %vm227_vm5 = vsmask.f32 (!%p152_p3), 3340  ;;  %vm229_vm6 = vsmask.f32 (!%p152_p3), 4368 }
   0x9   : > { %1335 = vmatpush3.bf16.msra.mxu1 (!%p152_p3), %v1427_v2  ;;  %1328 = vmatprep.subr.bf16.mxu0 (!%p152_p3), %v1468_v1  ;;  %vm226_vm7 = vmor (!%p152_p3), %vm224_vm3, %vm225_vm4  ;;  %vm231_vm8 = vsmask.f32 (!%p152_p3), 5396  ;;  %vm233_vm9 = vsmask.f32 (!%p152_p3), 6424  ;;  %v1533_v6 = vshrl.u32 (!%p152_p3), %v264_v4, 7  ;;  %vm287_vm1 = vcmask (!%p152_p3), 261120  }
   0xa   : > { %1336 = vmatprep.subr.bf16.mxu1 (!%p152_p3), %v1468_v1  ;;  %1338 = vmatprep.mubr.msk.bf16.mxu1 (!%p152_p3), %vm1469_vm0, %v1468_v1  ;;  %vm228_vm10 = vmor (!%p152_p3), %vm226_vm7, %vm227_vm5  ;;  %vm235_vm11 = vsmask.f32 (!%p152_p3), 7452  ;;  %v1470_v8 = vmov (!%p152_p3), 1966171168   ;;  %v1431_v24 = vld [vmem:[%s1691_s1 + $0x30] sm:$0xff] (!%p152_p3)   ;;  %v1430_v36 = vld [vmem:[%s1691_s1 + $0x20] sm:$0xff] (!%p152_p3)  }
   0xb   : > { %vm230_vm12 = vmor (!%p152_p3), %vm228_vm10, %vm229_vm6  ;;  %v262_v9 = vunpack.c.l.s4 (!%p152_p3), %v1470_v8  ;;  %v1433_v38 = vld [vmem:[%s1691_s1 + $0x38] sm:$0xff] (!%p152_p3)   ;;  %v1432_v41 = vld [vmem:[%s1691_s1 + $0x28] sm:$0xff] (!%p152_p3)  }
   0xc   : > { %1329 = vmatpush3.bf16.msra.mxu0 (!%p152_p3), %v1428_v3  ;;  %vm232_vm13 = vmor (!%p152_p3), %vm230_vm12, %vm231_vm8  ;;  %v1435_v47 = vld [vmem:[%s1691_s1 + $0x50] sm:$0xff] (!%p152_p3)   ;;  %v1434_v51 = vld [vmem:[%s1691_s1 + $0x40] sm:$0xff] (!%p152_p3)  }
   0xd   : > { %1337 = vmatpush3.bf16.msra.mxu1 (!%p152_p3), %v1429_v5  ;;  %1342 = vmatprep.subr.bf16.mxu0 (!%p152_p3), %v1468_v1  ;;  %vm234_vm14 = vmor (!%p152_p3), %vm232_vm13, %vm233_vm9  ;;  %v263_v16 = vunpack.c.0.s8 (!%p152_p3), %v262_v9  ;;  %v1437_v53 = vld [vmem:[%s1691_s1 + $0x58] sm:$0xff] (!%p152_p3)   ;;  %v1436_v60 = vld [vmem:[%s1691_s1 + $0x48] sm:$0xff] (!%p152_p3)  }
   0xe   : > { %s1701_s12 = smov (!%p178_p4, %s1458_s12), 1  ;;  %1350 = vmatprep.subr.bf16.mxu1 %v1468_v1  ;;  %vm1549_vm15 = vmor %vm234_vm14, %vm235_vm11  ;;  %v1439_v2 = vld [vmem:[%s1691_s1 + $0x70] sm:$0xff]   ;;  %v1438_v8 = vld [vmem:[%s1691_s1 + $0x60] sm:$0xff]  }
   0xf   : > { %s1298_s24 = sshll.u32 %s1701_s12, 3  ;;  %v1554_v22 = vsub.s32 %v263_v16, %v1533_v6  ;;  %v1441_v9 = vld [vmem:[%s1691_s1 + $0x78] sm:$0xff]   ;;  %s1202_s8 = sshll.u32 %s1701_s12, 1 }
  0x10   : > { %s1539_s27 = scalar_lea.vmem %s1690_s0, %s1298_s24  ;;  %s190_s11 = scalar_lea.vmem %s1693_s3, %s1202_s8 }
  0x11   : > { %v1203_v7 = vld.sshfl [vmem:[%s1539_s27] sm:$0x11 pattern:$0x75316420]  ;;  %v197_v17 = vld [vmem:[%s1539_s27 + $0x2] sm:$0x1] }
  0x12   : > { %v196_v10 = vld [vmem:[%s1539_s27] sm:$0x1]  ;;  %v1204_v11 = vld.sshfl [vmem:[%s1539_s27 + $0x2] sm:$0x11 pattern:$0x75316420]  ;;  %v213_v12 = vcombine.high %v1203_v7, %v1203_v7 }
  0x13   : > { %v238_v13 = vshrl.u32 %v1203_v7, 16  ;;  %v221_v14 = vcombine.high %v1204_v11, %v1204_v11  ;;  %v247_v15 = vshrl.u32 %v1204_v11, 16  ;;  %v333_v20 = vcombine.low %v196_v10, %v197_v17  ;;  %v1217_v27 = vld.sshfl [vmem:[%s1539_s27] sm:$0x10 pattern:$0x75316420] }
  0x14   : > { %v243_v19 = vshll.u32 %v213_v12, 16  ;;  %v1218_v29 = vld.sshfl [vmem:[%s1539_s27 + $0x2] sm:$0x10 pattern:$0x75316420]  ;;  %v1440_v12 = vld [vmem:[%s1691_s1 + $0x68] sm:$0xff]  }
  0x15   : > { %v252_v21 = vshll.u32 %v221_v14, 16  ;;  %v340_v26 = vrot.slane %v333_v20, %v1554_v22  ;;  %v1227_v31 = vld [vmem:[%s1539_s27 + $0x2] sm:$0x1]  ;;  %v1228_v32 = vld [vmem:[%s1539_s27 + $0x4] sm:$0x1]  ;;  %v1223_v34 = vcombine.high %v1217_v27, %v1218_v29 }
  0x16   : > { %v245_v23 = vsel %vm1549_vm15, %v238_v13, %v243_v19  ;;  %v511_v35 = vcombine.low %v1227_v31, %v1228_v32  ;;  %v1239_v40 = vld.sshfl [vmem:[%s1539_s27 + $0x4] sm:$0x11 pattern:$0x75316420]  ;;  %v1262_v63 = vld [vmem:[%s1539_s27 + $0x6] sm:$0x1] }
  0x17   : > { %v254_v25 = vsel %vm1549_vm15, %v247_v15, %v252_v21  ;;  %v347_v30 = vrot.slane %v340_v26, %v1554_v22  ;;  %v435_v42 = vrot.slane %v1223_v34, %v1554_v22  ;;  %v601_v43 = vcombine.high %v1239_v40, %v1239_v40  ;;  %v1592_v46 = vld.sshfl [vmem:[%s1539_s27 + $0x4] sm:$0x10 pattern:$0x75316420]  ;;  %v1261_v62 = vld [vmem:[%s1539_s27 + $0x4] sm:$0x1] }
  0x18   : > { %v260_v28 = vcombine.low %v245_v23, %v254_v25  ;;  %v518_v39 = vrot.slane %v511_v35, %v1554_v22  ;;  %v612_v44 = vshrl.u32 %v1239_v40, 16  ;;  %v1257_v49 = vcombine.high %v1218_v29, %v1592_v46  ;;  %v1273_v56 = vld.sshfl [vmem:[%s1539_s27 + $0x6] sm:$0x11 pattern:$0x75316420]  ;;  %v1443_v19 = vld [vmem:[%s1691_s1 + $0x88] sm:$0xff]  }
  0x19   : > { %1339 = vmatmul.mubr.msk.bf16.vlgmr.msra.gmra.mrb[0].mxu1 %vm287_vm1, %v347_v30  ;;  %v617_v48 = vshll.u32 %v601_v43, 16  ;;  %v442_v50 = vrot.slane %v435_v42, %v1554_v22  ;;  %v894_v57 = vcombine.high %v1273_v56, %v1273_v56  ;;  %v905_v58 = vshrl.u32 %v1273_v56, 16  ;;  %v1286_v14 = vld.sshfl [vmem:[%s1539_s27 + $0x6] sm:$0x10 pattern:$0x75316420] }
  0x1a   : > { %v267_v33 = vrot.slane %v260_v28, %v1554_v22  ;;  %1351 = vmatpush3.bf16.msra.mxu1 %v1431_v24  ;;  %1354 = vmatprep.mubr.msk.bf16.mxu1 %vm1469_vm0, %v1468_v1  ;;  %v525_v45 = vrot.slane %v518_v39, %v1554_v22  ;;  %v728_v55 = vrot.slane %v1257_v49, %v1554_v22  ;;  %v1442_v17 = vld [vmem:[%s1691_s1 + $0x80] sm:$0xff]  }
  0x1b   : > { %1352 = vmatprep.subr.bf16.mxu1 %v1468_v1  ;;  %v619_v52 = vsel %vm1549_vm15, %v612_v44, %v617_v48  ;;  %v910_v0 = vshll.u32 %v894_v57, 16  ;;  %v804_v5 = vcombine.low %v1261_v62, %v1262_v63  ;;  %v1291_v16 = vcombine.high %v1592_v46, %v1286_v14  ;;  %v1295_v63 = vld [vmem:[%s1692_s2] ss:$0 sm:$0xff] }
  0x1c   : > { %v274_v37 = vrot.slane %v267_v33, %v1554_v22  ;;  %v625_v54 = vcombine.low %v254_v25, %v619_v52  ;;  %v735_v61 = vrot.slane %v728_v55, %v1554_v22 }
  0x1d   : > { %v912_v3 = vsel %vm1549_vm15, %v905_v58, %v910_v0  ;;  %v811_v11 = vrot.slane %v804_v5, %v1554_v22  ;;  %v1021_v18 = vrot.slane %v1291_v16, %v1554_v22 }
  0x1e   : > { %1331 = vmatmul.mubr.msk.bf16.vlgmr.msra.gmra.mrb[0].mxu0 %vm287_vm1, %v274_v37  ;;  %1353 = vmatpush3.bf16.msra.mxu1 %v1433_v38  ;;  %v632_v59 = vrot.slane %v625_v54, %v1554_v22  ;;  %v918_v7 = vcombine.low %v619_v52, %v912_v3 }
  0x1f   : > { %1343 = vmatpush3.bf16.msra.mxu0 %v1430_v36  ;;  %1346 = vmatprep.mubr.msk.bf16.mxu0 %vm1469_vm0, %v1468_v1  ;;  %v818_v15 = vrot.slane %v811_v11, %v1554_v22  ;;  %v1028_v20 = vrot.slane %v1021_v18, %v1554_v22 }
  0x20   : > { %1344 = vmatprep.subr.bf16.mxu0 %v1468_v1  ;;  %1366 = vmatprep.subr.bf16.mxu1 %v1468_v1  ;;  %v639_v4 = vrot.slane %v632_v59, %v1554_v22  ;;  %v925_v10 = vrot.slane %v918_v7, %v1554_v22  ;;  %v1471_v59 = vmov 1983009808  }
  0x21   : > { %1355 = vmatmul.mubr.msk.bf16.vlgmr.msra.gmra.mrb[4].mxu1 %vm287_vm1, %v525_v45 }
  0x22   : > { %1367 = vmatpush3.bf16.msra.mxu1 %v1435_v47  ;;  %1370 = vmatprep.mubr.msk.bf16.mxu1 %vm1469_vm0, %v1468_v1  ;;  %v932_v13 = vrot.slane %v925_v10, %v1554_v22 }
  0x23   : > { %1345 = vmatpush3.bf16.msra.mxu0 %v1432_v41  ;;  %1368 = vmatprep.subr.bf16.mxu1 %v1468_v1 }
  0x24   : > { %1358 = vmatprep.subr.bf16.mxu0 %v1468_v1 }
  0x26   : > { %1347 = vmatmul.mubr.msk.bf16.vlgmr.msra.gmra.mrb[4].mxu0 %vm287_vm1, %v442_v50  ;;  %1369 = vmatpush3.bf16.msra.mxu1 %v1437_v53 }
  0x27   : > { %1359 = vmatpush3.bf16.msra.mxu0 %v1434_v51  ;;  %1362 = vmatprep.mubr.msk.bf16.mxu0 %vm1469_vm0, %v1468_v1 }
  0x28   : > { %1360 = vmatprep.subr.bf16.mxu0 %v1468_v1  ;;  %1382 = vmatprep.subr.bf16.mxu1 %v1468_v1 }
  0x29   : > { %1371 = vmatmul.mubr.msk.bf16.vlgmr.msra.gmra.mrb[8].mxu1 %vm287_vm1, %v735_v61 }
  0x2a   : > { %1383 = vmatpush3.bf16.msra.mxu1 %v1439_v2  ;;  %1386 = vmatprep.mubr.msk.bf16.mxu1 %vm1469_vm0, %v1468_v1 }
  0x2b   : > { %1361 = vmatpush3.bf16.msra.mxu0 %v1436_v60  ;;  %1384 = vmatprep.subr.bf16.mxu1 %v1468_v1  ;;  %v1096_v60 = vunpack.c.l.s4 %v1471_v59 }
  0x2c   : > { %1374 = vmatprep.subr.bf16.mxu0 %v1468_v1 }
  0x2d   : > { %v1097_v61 = vunpack.c.0.s8 %v1096_v60 }
  0x2e   : > { %1363 = vmatmul.mubr.msk.bf16.vlgmr.msra.gmra.mrb[8].mxu0 %vm287_vm1, %v639_v4  ;;  %1385 = vmatpush3.bf16.msra.mxu1 %v1441_v9 }
  0x2f   : > { %1375 = vmatpush3.bf16.msra.mxu0 %v1438_v8  ;;  %1378 = vmatprep.mubr.msk.bf16.mxu0 %vm1469_vm0, %v1468_v1  ;;  %v1100_v5 = vsub.s32 %v1097_v61, %v1533_v6 }
  0x30   : > { %1376 = vmatprep.subr.bf16.mxu0 %v1468_v1 }
  0x31   : > { %1387 = vmatmul.mubr.msk.bf16.vlgmr.msra.gmra.mrb[12].mxu1 %vm287_vm1, %v932_v13 }
  0x33   : > { %1377 = vmatpush3.bf16.msra.mxu0 %v1440_v12 }
  0x34   : > { %1390 = vmatprep.subr.bf16.mxu0 %v1468_v1 }
  0x36   : > { %1379 = vmatmul.mubr.msk.bf16.vlgmr.msra.gmra.mrb[12].mxu0 %vm287_vm1, %v818_v15 }
  0x37   : > { %1391 = vmatpush3.bf16.msra.mxu0 %v1442_v17  ;;  %1394 = vmatprep.mubr.msk.bf16.mxu0 %vm1469_vm0, %v1468_v1  ;;  %vm1107_vm0 = vcmask 253952  }
  0x38   : > { %1392 = vmatprep.subr.bf16.mxu0 %v1468_v1 }
  0x3b   : > { %1393 = vmatpush3.bf16.msra.mxu0 %v1443_v19 }
  0x3e   : > { %1395 = vmatmul.mubr.msk.bf16.vlgmr.msra.gmra.mrb[16].mxu0 %vm287_vm1, %v1028_v20 }
  0xec   : > { %v397_v21 = vpop.f32.mrb[0].mxu1 }
  0xed   : > { %v1340_v23 = vpop.f32.mrb[1].mxu1 }
  0xee   : > { %v400_v24 = vpop.f32.mrb[2].mxu1 }
  0xef   : > { %v1341_v26 = vpop.f32.mrb[3].mxu1 }
  0xf1   : > { %v325_v25 = vpop.f32.mrb[0].mxu0 }
  0xf2   : > { %v398_v27 = vadd.f32 %v397_v21, %v325_v25  ;;  %v1332_v28 = vpop.f32.mrb[1].mxu0 }
  0xf3   : > { %v328_v29 = vpop.f32.mrb[2].mxu0 }
  0xf4   : > { %v1333_v30 = vpop.f32.mrb[3].mxu0  ;;  %v575_v31 = vpop.f32.mrb[4].mxu1 }
  0xf5   : > { %v1356_v32 = vpop.f32.mrb[5].mxu1 }
  0xf6   : > { %v578_v33 = vpop.f32.mrb[6].mxu1 }
  0xf7   : > { %v1357_v35 = vpop.f32.mrb[7].mxu1 }
  0xf9   : > { %v492_v34 = vpop.f32.mrb[4].mxu0 }
  0xfa   : > { %v498_v1 = vadd.f32 %v492_v34, %v398_v27  ;;  %v1348_v36 = vpop.f32.mrb[5].mxu0 }
  0xfb   : > { %v495_v22 = vpop.f32.mrb[6].mxu0 }
  0xfc   : > { %v581_v37 = vadd.f32 %v575_v31, %v498_v1  ;;  %v1349_v38 = vpop.f32.mrb[7].mxu0  ;;  %v785_v39 = vpop.f32.mrb[8].mxu1 }
  0xfd   : > { %v1372_v40 = vpop.f32.mrb[9].mxu1 }
  0xfe   : > { %v788_v41 = vpop.f32.mrb[10].mxu1 }
  0xff   : > { %v1373_v43 = vpop.f32.mrb[11].mxu1 }
 0x101   : > { %v689_v42 = vpop.f32.mrb[8].mxu0 }
 0x102   : > { %v695_v44 = vadd.f32 %v689_v42, %v581_v37  ;;  %v1364_v45 = vpop.f32.mrb[9].mxu0 }
 0x103   : > { %v692_v46 = vpop.f32.mrb[10].mxu0 }
 0x104   : > { %v791_v47 = vadd.f32 %v785_v39, %v695_v44  ;;  %v1365_v48 = vpop.f32.mrb[11].mxu0  ;;  %v982_v49 = vpop.f32.mrb[12].mxu1 }
 0x105   : > { %v1388_v50 = vpop.f32.mrb[13].mxu1 }
 0x106   : > { %v985_v51 = vpop.f32.mrb[14].mxu1 }
 0x107   : > { %v1389_v53 = vpop.f32.mrb[15].mxu1 }
 0x109   : > { %v868_v52 = vpop.f32.mrb[12].mxu0 }
 0x10a   : > { %v874_v54 = vadd.f32 %v868_v52, %v791_v47  ;;  %v1380_v55 = vpop.f32.mrb[13].mxu0 }
 0x10b   : > { %v871_v56 = vpop.f32.mrb[14].mxu0 }
 0x10c   : > { %v988_v57 = vadd.f32 %v982_v49, %v874_v54  ;;  %v1381_v58 = vpop.f32.mrb[15].mxu0 }
 0x111   : > { %v1078_v62 = vpop.f32.mrb[16].mxu0 }
 0x112   : > { %v1084_v0 = vadd.f32 %v1078_v62, %v988_v57  ;;  %v1396_v2 = vpop.f32.mrb[17].mxu0 }
 0x113   : > { %v1081_v3 = vpop.f32.mrb[18].mxu0 }
 0x114   : > { %v1092_v4 = vadd.f32 %v1295_v63, %v1084_v0  ;;  %v1397_v7 = vpop.f32.mrb[19].mxu0 }
 0x116   : > { %v1093_v8 = vmax.f32 %v1092_v4, 0.0 }
 0x118   : > { %v1101_v9 = vrot.slane %v1093_v8, %v1100_v5 }
 0x11a   : > { %v1102_v10 = vcombine.high %v1101_v9, %v1101_v9  ;;  %v1105_v11 = vpack.c.bf16 %v1101_v9, %v1101_v9 }
 0x11c   : > { %v1106_v12 = vpack.c.bf16 %v1102_v10, %v1102_v10  ;;  %1108 = vst.msk [vmem:[%s190_s11] sm:$0x1] %vm1107_vm0, %v1105_v11 }
 0x11e   : > { %1109 = vst.msk [vmem:[%s190_s11 + $0x1] sm:$0x1] %vm1107_vm0, %v1106_v12 }
 0x11f PF: > { %s13_s14 = sadd.s32 1, %s1466_s14   ;;  %s1696_s12 = smov %s1462_s13 }
 0x120   : > { %p10_p5 = scmp.ge.s32.totalorder %s13_s14, 4   ;;  %s1697_s13 = smov %s1699_s15 }
 0x122   :  { %12 = sbr.rel (!%p10_p5) target bundleno = 2 (0x2), region = 73 }

// kernel: dctvfinet_forward.22
= control target key start
LH: loop header
LB: loop body
LE: loop exit
PB: predicated region body
PF: predicated region fallthrough
CT: control target
= control target key end

     0   :  { %s1999_s12 = smov 0   ;;  %s2001_s13 = smov 0   ;;  %s2277_s0 = inlined_call_operand.vmem [shape: bf16[2,6,6,48], index: 0, kind: input, shape index: {}]   ;;  %s2278_s1 = inlined_call_operand.vmem [shape: bf16[9,48,16], index: 1, kind: input, shape index: {}]   ;;  %s2279_s2 = inlined_call_operand.vmem [shape: f32[1,16], index: 2, kind: input, shape index: {}]   ;;  %s2280_s3 = inlined_call_operand.vmem [shape: bf16[2,4,4,16], index: 3, kind: output, shape index: {}]  }
   0x1   :  { %s2003_s14 = smov 0  }
   0x2 LB: > { %s25_s15 = sadd.s32 1, %s1970_s13  ;;  %p1607_p0 = scmp.ge.s32.totalorder %s1974_s14, 1  ;;  %s1974_s14 = sphi %s2003_s14, %s13_s14   ;;  %s1970_s13 = sphi %s2001_s13, %s2290_s13   ;;  %s1966_s12 = sphi %s1999_s12, %s2289_s12  }
   0x3   : > { %p27_p1 = scmp.ge.s32.totalorder %s25_s15, 2  ;;  %p151_p2 = scmp.lt.s32.totalorder %s1974_s14, 3 }
   0x5   : > { %s2292_s15 = smov (%p27_p1, %s25_s15), 0  ;;  %p152_p3 = pnand %p1607_p0, %p151_p2 }
   0x6   : > { %v1913_v0 = vld [vmem:[%s2278_s1 + $0x18] sm:$0xff] (!%p152_p3)   ;;  %v1976_v1 = vmov (!%p152_p3), 0.0   ;;  %v1914_v2 = vld [vmem:[%s2278_s1] sm:$0xff] (!%p152_p3)   ;;  %vm1977_vm0 = vmmov (!%p152_p3), 0   ;;  %p179_p4 = scmp.lt.s32.totalorder (!%p152_p3), %s1966_s12, 1  ;;  %v1916_v4 = vld [vmem:[%s2278_s1 + $0x8] sm:$0xff] (!%p152_p3)   ;;  %v323_v5 = vlaneseq (!%p152_p3) }
   0x7   : > { %155 = sbr.rel (%p152_p3) target bundleno = 315 (0x13b), region = 32  ;;  %1795 = vmatprep.subr.bf16.mxu0 (!%p152_p3), %v1976_v1  ;;  %1805 = vmatprep.subr.bf16.mxu1 (!%p152_p3), %v1976_v1  ;;  %v1915_v3 = vld [vmem:[%s2278_s1 + $0x20] sm:$0xff] (!%p152_p3)   ;;  %v1917_v6 = vld [vmem:[%s2278_s1 + $0x28] sm:$0xff] (!%p152_p3)   ;;  %vm248_vm1 = vsmask.f32 (!%p152_p3), 1280  ;;  %v1918_v7 = vld [vmem:[%s2278_s1 + $0x10] sm:$0xff] (!%p152_p3)  }
   0x8   : > { %1796 = vmatpush3.bf16.msra.mxu0 (!%p152_p3), %v1913_v0  ;;  %1801 = vmatprep.mubr.msk.bf16.mxu0 (!%p152_p3), %vm1977_vm0, %v1976_v1  ;;  %vm249_vm2 = vsmask.f32 (!%p152_p3), 3336  ;;  %vm251_vm3 = vsmask.f32 (!%p152_p3), 5392  ;;  %v324_v8 = vshrl.u32 (!%p152_p3), %v323_v5, 7  ;;  %vm521_vm6 = vcmask (!%p152_p3), 1040384  }
   0x9   : > { %1806 = vmatpush3.bf16.msra.mxu1 (!%p152_p3), %v1914_v2  ;;  %1797 = vmatprep.subr.bf16.mxu0 (!%p152_p3), %v1976_v1  ;;  %vm253_vm4 = vsmask.f32 (!%p152_p3), 7448  ;;  %v1978_v9 = vmov (!%p152_p3), 1983009808   ;;  %vm2054_vm5 = vmor (!%p152_p3), %vm248_vm1, %vm249_vm2  ;;  %vm353_vm8 = vcmask (!%p152_p3), 392192   ;;  %vm522_vm10 = vcmask (!%p152_p3), 1042434  }
   0xa   : > { %1807 = vmatprep.subr.bf16.mxu1 (!%p152_p3), %v1976_v1  ;;  %1811 = vmatprep.mubr.msk.bf16.mxu1 (!%p152_p3), %vm1977_vm0, %v1976_v1  ;;  %v321_v10 = vunpack.c.l.s4 (!%p152_p3), %v1978_v9  ;;  %vm252_vm7 = vmor (!%p152_p3), %vm2054_vm5, %vm251_vm3  ;;  %v1922_v52 = vld [vmem:[%s2278_s1 + $0x48] sm:$0xff] (!%p152_p3)   ;;  %v1924_v62 = vld [vmem:[%s2278_s1 + $0x50] sm:$0xff] (!%p152_p3)   ;;  %vm524_vm12 = vcmask (!%p152_p3), 1044484   ;;  %vm526_vm14 = vcmask (!%p152_p3), 1046534  }
   0xb   : > { %vm2069_vm9 = vmor (!%p152_p3), %vm252_vm7, %vm253_vm4  ;;  %v1934_v59 = vld [vmem:[%s2278_s1 + $0x88] sm:$0xff] (!%p152_p3)  }
   0xc   : > { %1798 = vmatpush3.bf16.msra.mxu0 (!%p152_p3), %v1915_v3  ;;  %v322_v17 = vunpack.c.0.s8 (!%p152_p3), %v321_v10  ;;  %vm2086_vm11 = vmor (!%p152_p3), %vm521_vm6, %vm522_vm10 }
   0xd   : > { %1808 = vmatpush3.bf16.msra.mxu1 (!%p152_p3), %v1916_v4  ;;  %1799 = vmatprep.subr.bf16.mxu0 (!%p152_p3), %v1976_v1  ;;  %vm525_vm13 = vmor (!%p152_p3), %vm2086_vm11, %vm524_vm12 }
   0xe   : > { %s2294_s12 = smov (!%p179_p4, %s1966_s12), 1  ;;  %1809 = vmatprep.subr.bf16.mxu1 %v1976_v1  ;;  %v2065_v26 = vsub.s32 %v322_v17, %v324_v8  ;;  %vm2114_vm15 = vmor %vm525_vm13, %vm526_vm14 }
   0xf   : > { %s1885_s26 = smul.u32 24, %s2294_s12  ;;  %s1758_s30 = sshll.u32 %s2294_s12, 3 }
  0x10   : > { %1800 = vmatpush3.bf16.msra.mxu0 %v1917_v6  ;;  %s192_s7 = scalar_lea.vmem %s2280_s3, %s1758_s30 }
  0x11   : > { %s2051_s4 = scalar_lea.vmem %s2277_s0, %s1885_s26  ;;  %1810 = vmatpush3.bf16.msra.mxu1 %v1918_v7  ;;  %1815 = vmatprep.subr.bf16.mxu0 %v1976_v1 }
  0x12   : > { %v1611_v11 = vld.sshfl [vmem:[%s2051_s4] sm:$0x13 pattern:$0x76325410]  ;;  %1825 = vmatprep.subr.bf16.mxu1 %v1976_v1 }
  0x13   : > { %v1612_v13 = vld.sshfl [vmem:[%s2051_s4 + $0x4] sm:$0x13 pattern:$0x76325410]  ;;  %v223_v14 = vcombine.high %v1611_v11, %v1611_v11  ;;  %v256_v15 = vshrl.u32 %v1611_v11, 16  ;;  %v259_v16 = vshll.u32 %v1611_v11, 16 }
  0x14   : > { %v1613_v18 = vld.sshfl [vmem:[%s2051_s4 + $0x8] sm:$0x13 pattern:$0x76325410]  ;;  %v231_v19 = vcombine.high %v1612_v13, %v1612_v13  ;;  %v270_v20 = vshrl.u32 %v1612_v13, 16  ;;  %v273_v21 = vshll.u32 %v1612_v13, 16 }
  0x15   : > { %v1614_v22 = vld.sshfl [vmem:[%s2051_s4 + $0xc] sm:$0x13 pattern:$0x76325410]  ;;  %v239_v23 = vcombine.high %v1613_v18, %v1613_v18  ;;  %v258_v24 = vrot.slane %v256_v15, 6  ;;  %v261_v25 = vrot.slane %v259_v16, 7 }
  0x16   : > { %v247_v27 = vcombine.high %v1614_v22, %v1614_v22  ;;  %v265_v28 = vshll.u32 %v223_v14, 16  ;;  %v272_v29 = vrot.slane %v270_v20, 6  ;;  %v275_v30 = vrot.slane %v273_v21, 7  ;;  %v1945_v16 = vld [vmem:[%s2278_s1 + $0xd0] sm:$0xff]  }
  0x17   : > { %v262_v31 = vor.u32 %v261_v25, %v258_v24  ;;  %v279_v32 = vshll.u32 %v231_v19, 16  ;;  %v284_v33 = vshrl.u32 %v1613_v18, 16  ;;  %v287_v34 = vshll.u32 %v1613_v18, 16  ;;  %v1921_v19 = vld [vmem:[%s2278_s1 + $0x30] sm:$0xff]  }
  0x18   : > { %v267_v36 = vrot.slane %v265_v28, 7  ;;  %v276_v37 = vor.u32 %v275_v30, %v272_v29  ;;  %v293_v38 = vshll.u32 %v239_v23, 16  ;;  %v298_v39 = vshrl.u32 %v1614_v22, 16  ;;  %v1926_v23 = vld [vmem:[%s2278_s1 + $0x58] sm:$0xff]  }
  0x19   : > { %v263_v40 = vrot.slane %v262_v31, 2  ;;  %v281_v41 = vrot.slane %v279_v32, 7  ;;  %v286_v42 = vrot.slane %v284_v33, 6  ;;  %v289_v43 = vrot.slane %v287_v34, 7 }
  0x1a   : > { %v1946_v44 = vld.sshfl [vmem:[%s2051_s4] sm:$0xf pattern:$0x76325410]  ;;  %v277_v45 = vrot.slane %v276_v37, 2  ;;  %v300_v46 = vrot.slane %v298_v39, 6 }
  0x1b   : > { %v301_v47 = vshll.u32 %v1614_v22, 16  ;;  %v1947_v48 = vld.sshfl [vmem:[%s2051_s4 + $0x8] sm:$0xf pattern:$0x76325410]  ;;  %v268_v49 = vsel %vm2069_vm9, %v263_v40, %v267_v36  ;;  %v290_v50 = vor.u32 %v289_v43, %v286_v42  ;;  %v307_v51 = vshll.u32 %v247_v27, 16 }
  0x1c   : > { %v2082_v53 = vsel %vm2069_vm9, %v277_v45, %v281_v41  ;;  %v295_v54 = vrot.slane %v293_v38, 7  ;;  %v418_v61 = vcombine.low %v1946_v44, %v1947_v48  ;;  %v1629_v63 = vld.sshfl [vmem:[%s2051_s4] sm:$0x12 pattern:$0x76325410]  ;;  %v1930_v36 = vld [vmem:[%s2278_s1 + $0x78] sm:$0xff]  }
  0x1d   : > { %v303_v55 = vrot.slane %v301_v47, 7  ;;  %v291_v56 = vrot.slane %v290_v50, 2  ;;  %v309_v57 = vrot.slane %v307_v51, 7  ;;  %v318_v58 = vcombine.low %v268_v49, %v2082_v53  ;;  %v1923_v37 = vld [vmem:[%s2278_s1 + $0x38] sm:$0xff]   ;;  %v1932_v39 = vld [vmem:[%s2278_s1 + $0x80] sm:$0xff]  }
  0x1e   : > { %1812 = vmatmul.mubr.msk.bf16.vlgmr.msra.gmra.mrb[0].mxu1 %vm353_vm8, %v418_v61  ;;  %v1630_v3 = vld.sshfl [vmem:[%s2051_s4 + $0x4] sm:$0x12 pattern:$0x76325410]  ;;  %v496_v4 = vcombine.high %v1629_v63, %v1629_v63  ;;  %v1633_v8 = vrot.slane %v1629_v63, 9 }
  0x1f   : > { %v304_v60 = vor.u32 %v303_v55, %v300_v46  ;;  %v2096_v0 = vsel %vm2069_vm9, %v291_v56, %v295_v54  ;;  %v326_v5 = vrot.slane %v318_v58, %v2065_v26  ;;  %1826 = vmatpush3.bf16.msra.mxu1 %v1922_v52  ;;  %v1631_v6 = vld.sshfl [vmem:[%s2051_s4 + $0x8] sm:$0x12 pattern:$0x76325410]  ;;  %v504_v7 = vcombine.high %v1630_v3, %v1630_v3  ;;  %v1925_v47 = vld [vmem:[%s2278_s1 + $0x40] sm:$0xff]  }
  0x20   : > { %1831 = vmatprep.mubr.msk.bf16.mxu1 %vm1977_vm0, %v1976_v1  ;;  %1827 = vmatprep.subr.bf16.mxu1 %v1976_v1  ;;  %v1632_v10 = vld.sshfl [vmem:[%s2051_s4 + $0xc] sm:$0x12 pattern:$0x76325410]  ;;  %v512_v11 = vcombine.high %v1631_v6, %v1631_v6  ;;  %v530_v12 = vrot.slane %v496_v4, 7  ;;  %v1634_v13 = vrot.slane %v1630_v3, 9  ;;  %v834_v4 = vcombine.low %v2082_v53, %v2096_v0 }
  0x21   : > { %v305_v2 = vrot.slane %v304_v60, 2  ;;  %v520_v15 = vcombine.high %v1632_v10, %v1632_v10  ;;  %v534_v17 = vrot.slane %v504_v7, 7  ;;  %v1635_v18 = vrot.slane %v1631_v6, 9  ;;  %v1927_v60 = vld [vmem:[%s2278_s1 + $0x60] sm:$0xff]   ;;  %v1931_v7 = vld [vmem:[%s2278_s1 + $0x68] sm:$0xff]  }
  0x22   : > { %v538_v20 = vrot.slane %v512_v11, 7  ;;  %v1636_v21 = vrot.slane %v1632_v10, 9  ;;  %v531_v25 = vsel %vm2114_vm15, %v1633_v8, %v530_v12  ;;  %v1948_v29 = vld.sshfl [vmem:[%s2051_s4 + $0x4] sm:$0xf pattern:$0x76325410]  ;;  %v842_v12 = vrot.slane %v834_v4, %v2065_v26 }
  0x23   : > { %v2108_v9 = vsel %vm2069_vm9, %v305_v2, %v309_v57  ;;  %1828 = vmatpush3.bf16.msra.mxu1 %v1924_v62  ;;  %v542_v24 = vrot.slane %v520_v15, 7  ;;  %v535_v27 = vsel %vm2114_vm15, %v1634_v13, %v534_v17  ;;  %v1949_v30 = vld.sshfl [vmem:[%s2051_s4 + $0xc] sm:$0xf pattern:$0x76325410] }
  0x24   : > { %v319_v14 = vcombine.low %v2096_v0, %v2108_v9  ;;  %1829 = vmatprep.subr.bf16.mxu1 %v1976_v1  ;;  %v539_v28 = vsel %vm2114_vm15, %v1635_v18, %v538_v20  ;;  %v551_v33 = vcombine.low %v531_v25, %v535_v27  ;;  %v666_v38 = vcombine.low %v1948_v29, %v1949_v30  ;;  %v1668_v40 = vld.sshfl [vmem:[%s2051_s4 + $0x10] sm:$0x13 pattern:$0x76325410]  ;;  %v1936_v8 = vld [vmem:[%s2278_s1 + $0xa8] sm:$0xff]  }
  0x25   : > { %v543_v32 = vsel %vm2114_vm15, %v1636_v21, %v542_v24  ;;  %v770_v41 = vcombine.high %v1668_v40, %v1668_v40  ;;  %v814_v42 = vshrl.u32 %v1668_v40, 16  ;;  %v817_v43 = vshll.u32 %v1668_v40, 16  ;;  %v1686_v46 = vld.sshfl [vmem:[%s2051_s4 + $0x10] sm:$0x12 pattern:$0x76325410] }
  0x26   : > { %v2122_v22 = vrot.slane %v319_v14, %v2065_v26  ;;  %v552_v34 = vcombine.low %v539_v28, %v543_v32  ;;  %v559_v44 = vrot.slane %v551_v33, %v2065_v26  ;;  %v954_v51 = vcombine.high %v1686_v46, %v1686_v46  ;;  %v1722_v10 = vld.sshfl [vmem:[%s2051_s4 + $0x14] sm:$0x13 pattern:$0x76325410]  ;;  %v1937_v33 = vld [vmem:[%s2278_s1 + $0x98] sm:$0xff]  }
  0x27   : > { %1830 = vmatpush3.bf16.msra.mxu1 %v1926_v23  ;;  %v816_v48 = vrot.slane %v814_v42, 6  ;;  %v819_v49 = vrot.slane %v817_v43, 7  ;;  %v823_v50 = vshll.u32 %v770_v41, 16  ;;  %v1690_v52 = vrot.slane %v1686_v46, 9  ;;  %v1933_v15 = vld [vmem:[%s2278_s1 + $0x70] sm:$0xff]   ;;  %v1943_v41 = vld [vmem:[%s2278_s1 + $0xc0] sm:$0xff]  }
  0x28   : > { %v334_v31 = vcombine.low %v326_v5, %v2122_v22  ;;  %1845 = vmatprep.subr.bf16.mxu1 %v1976_v1  ;;  %v2157_v45 = vrot.slane %v552_v34, %v2065_v26  ;;  %v978_v54 = vcombine.low %v535_v27, %v539_v28  ;;  %v969_v57 = vrot.slane %v954_v51, 7  ;;  %v1938_v17 = vld [vmem:[%s2278_s1 + $0xb0] sm:$0xff]   ;;  %v1940_v27 = vld [vmem:[%s2278_s1 + $0xb8] sm:$0xff]   ;;  %v1944_v43 = vld [vmem:[%s2278_s1 + $0xc8] sm:$0xff]  }
  0x29   : > { %v820_v55 = vor.u32 %v819_v49, %v816_v48  ;;  %v825_v56 = vrot.slane %v823_v50, 7  ;;  %v1241_v0 = vshrl.u32 %v1722_v10, 16  ;;  %v1244_v11 = vshll.u32 %v1722_v10, 16  ;;  %v1935_v24 = vld [vmem:[%s2278_s1 + $0x90] sm:$0xff]  }
  0x2a   : > { %1802 = vmatmul.mubr.msk.bf16.vlgmr.msra.gmra.mrb[0].mxu0 %vm353_vm8, %v334_v31  ;;  %1832 = vmatmul.mubr.msk.bf16.vlgmr.msra.gmra.mrb[4].mxu1 %vm353_vm8, %v666_v38  ;;  %v567_v58 = vcombine.low %v559_v44, %v2157_v45  ;;  %v2177_v62 = vsel %vm2114_vm15, %v1690_v52, %v969_v57  ;;  %v986_v2 = vrot.slane %v978_v54, %v2065_v26  ;;  %v1740_v28 = vld.sshfl [vmem:[%s2051_s4 + $0x14] sm:$0x12 pattern:$0x76325410] }
  0x2b   : > { %1816 = vmatpush3.bf16.msra.mxu0 %v1921_v19  ;;  %1821 = vmatprep.mubr.msk.bf16.mxu0 %vm1977_vm0, %v1976_v1  ;;  %v821_v61 = vrot.slane %v820_v55, 2  ;;  %v979_v63 = vcombine.low %v543_v32, %v2177_v62  ;;  %v1243_v14 = vrot.slane %v1241_v0, 6  ;;  %v1246_v18 = vrot.slane %v1244_v11, 7 }
  0x2c   : > { %1817 = vmatprep.subr.bf16.mxu0 %v1976_v1  ;;  %1846 = vmatpush3.bf16.msra.mxu1 %v1930_v36  ;;  %v1950_v30 = vld.sshfl [vmem:[%s2051_s4 + $0x8] sm:$0xf pattern:$0x76325410]  ;;  %v1381_v34 = vcombine.high %v1740_v28, %v1740_v28  ;;  %v1744_v38 = vrot.slane %v1740_v28, 9 }
  0x2d   : > { %1851 = vmatprep.mubr.msk.bf16.mxu1 %vm1977_vm0, %v1976_v1  ;;  %1847 = vmatprep.subr.bf16.mxu1 %v1976_v1  ;;  %v826_v3 = vsel %vm2069_vm9, %v821_v61, %v825_v56  ;;  %v993_v6 = vrot.slane %v979_v63, %v2065_v26  ;;  %v1247_v20 = vor.u32 %v1246_v18, %v1243_v14  ;;  %v1951_v31 = vld.sshfl [vmem:[%s2051_s4 + $0x10] sm:$0xf pattern:$0x76325410] }
  0x2e   : > { %v835_v5 = vcombine.low %v2108_v9, %v826_v3  ;;  %v1197_v9 = vcombine.high %v1722_v10, %v1722_v10  ;;  %v1093_v40 = vcombine.low %v1950_v30, %v1951_v31  ;;  %v1755_v31 = vld [vmem:[%s2279_s2] ss:$0 sm:$0xff] }
  0x2f   : > { %1818 = vmatpush3.bf16.msra.mxu0 %v1923_v37  ;;  %v994_v53 = vcombine.low %v986_v2, %v993_v6  ;;  %v1248_v25 = vrot.slane %v1247_v20, 2  ;;  %v1939_v37 = vld [vmem:[%s2278_s1 + $0xa0] sm:$0xff]  }
  0x30   : > { %1819 = vmatprep.subr.bf16.mxu0 %v1976_v1  ;;  %1848 = vmatpush3.bf16.msra.mxu1 %v1932_v39  ;;  %v849_v13 = vrot.slane %v835_v5, %v2065_v26  ;;  %v1250_v19 = vshll.u32 %v1197_v9, 16  ;;  %v1396_v39 = vrot.slane %v1381_v34, 7 }
  0x31   : > { %1849 = vmatprep.subr.bf16.mxu1 %v1976_v1 }
  0x32   : > { %v1252_v21 = vrot.slane %v1250_v19, 7  ;;  %v850_v23 = vcombine.low %v842_v12, %v849_v13 }
  0x33   : > { %1820 = vmatpush3.bf16.msra.mxu0 %v1925_v47 }
  0x34   : > { %1835 = vmatprep.subr.bf16.mxu0 %v1976_v1  ;;  %1850 = vmatpush3.bf16.msra.mxu1 %v1934_v59  ;;  %v1253_v29 = vsel %vm2069_vm9, %v1248_v25, %v1252_v21 }
  0x35   : > { %1865 = vmatprep.subr.bf16.mxu1 %v1976_v1  ;;  %v1262_v32 = vcombine.low %v826_v3, %v1253_v29 }
  0x36   : > { %1822 = vmatmul.mubr.msk.bf16.vlgmr.msra.gmra.mrb[4].mxu0 %vm353_vm8, %v567_v58 }
  0x37   : > { %1836 = vmatpush3.bf16.msra.mxu0 %v1927_v60  ;;  %1841 = vmatprep.mubr.msk.bf16.mxu0 %vm1977_vm0, %v1976_v1  ;;  %v1276_v35 = vrot.slane %v1262_v32, %v2065_v26 }
  0x38   : > { %1837 = vmatprep.subr.bf16.mxu0 %v1976_v1  ;;  %1852 = vmatmul.mubr.msk.bf16.vlgmr.msra.gmra.mrb[8].mxu1 %vm353_vm8, %v994_v53 }
  0x39   : > { %1866 = vmatpush3.bf16.msra.mxu1 %v1936_v8  ;;  %1871 = vmatprep.mubr.msk.bf16.mxu1 %vm1977_vm0, %v1976_v1  ;;  %v1277_v36 = vcombine.low %v2122_v22, %v1276_v35  ;;  %v1397_v22 = vsel %vm2114_vm15, %v1744_v38, %v1396_v39 }
  0x3a   : > { %1867 = vmatprep.subr.bf16.mxu1 %v1976_v1  ;;  %v1406_v42 = vcombine.low %v2177_v62, %v1397_v22 }
  0x3b   : > { %1838 = vmatpush3.bf16.msra.mxu0 %v1931_v7 }
  0x3c   : > { %1839 = vmatprep.subr.bf16.mxu0 %v1976_v1  ;;  %v1420_v44 = vrot.slane %v1406_v42, %v2065_v26 }
  0x3d   : > { %1868 = vmatpush3.bf16.msra.mxu1 %v1938_v17 }
  0x3e   : > { %1869 = vmatprep.subr.bf16.mxu1 %v1976_v1  ;;  %v1421_v46 = vcombine.low %v2157_v45, %v1420_v44 }
  0x3f   : > { %1840 = vmatpush3.bf16.msra.mxu0 %v1933_v15 }
  0x40   : > { %1855 = vmatprep.subr.bf16.mxu0 %v1976_v1 }
  0x41   : > { %1870 = vmatpush3.bf16.msra.mxu1 %v1940_v27 }
  0x42   : > { %1842 = vmatmul.mubr.msk.bf16.vlgmr.msra.gmra.mrb[8].mxu0 %vm353_vm8, %v850_v23 }
  0x43   : > { %1856 = vmatpush3.bf16.msra.mxu0 %v1935_v24  ;;  %1861 = vmatprep.mubr.msk.bf16.mxu0 %vm1977_vm0, %v1976_v1 }
  0x44   : > { %1857 = vmatprep.subr.bf16.mxu0 %v1976_v1  ;;  %1872 = vmatmul.mubr.msk.bf16.vlgmr.msra.gmra.mrb[12].mxu1 %vm353_vm8, %v1277_v36 }
  0x47   : > { %1858 = vmatpush3.bf16.msra.mxu0 %v1937_v33 }
  0x48   : > { %1859 = vmatprep.subr.bf16.mxu0 %v1976_v1 }
  0x4b   : > { %1860 = vmatpush3.bf16.msra.mxu0 %v1939_v37 }
  0x4c   : > { %1875 = vmatprep.subr.bf16.mxu0 %v1976_v1 }
  0x4e   : > { %1862 = vmatmul.mubr.msk.bf16.vlgmr.msra.gmra.mrb[12].mxu0 %vm353_vm8, %v1093_v40 }
  0x4f   : > { %1876 = vmatpush3.bf16.msra.mxu0 %v1943_v41  ;;  %1881 = vmatprep.mubr.msk.bf16.mxu0 %vm1977_vm0, %v1976_v1  ;;  %vm1507_vm0 = vcmask 123904  }
  0x50   : > { %1877 = vmatprep.subr.bf16.mxu0 %v1976_v1 }
  0x53   : > { %1878 = vmatpush3.bf16.msra.mxu0 %v1944_v43 }
  0x54   : > { %1879 = vmatprep.subr.bf16.mxu0 %v1976_v1 }
  0x57   : > { %1880 = vmatpush3.bf16.msra.mxu0 %v1945_v16 }
  0x5a   : > { %1882 = vmatmul.mubr.msk.bf16.vlgmr.msra.gmra.mrb[16].mxu0 %vm353_vm8, %v1421_v46 }
  0xf1   : > { %v474_v47 = vpop.f32.mrb[0].mxu1 }
  0xf2   : > { %v1813_v48 = vpop.f32.mrb[1].mxu1 }
  0xf3   : > { %v477_v49 = vpop.f32.mrb[2].mxu1 }
  0xf4   : > { %v1814_v50 = vpop.f32.mrb[3].mxu1 }
  0xfd   : > { %v391_v51 = vpop.f32.mrb[0].mxu0  ;;  %v722_v57 = vpop.f32.mrb[4].mxu1 }
  0xfe   : > { %v475_v52 = vadd.f32 %v474_v47, %v391_v51  ;;  %v1803_v54 = vpop.f32.mrb[1].mxu0  ;;  %v1833_v58 = vpop.f32.mrb[5].mxu1 }
  0xff   : > { %v394_v26 = vpop.f32.mrb[2].mxu0  ;;  %v725_v59 = vpop.f32.mrb[6].mxu1 }
 0x100   : > { %v478_v55 = vadd.f32 %v477_v49, %v394_v26  ;;  %v1804_v56 = vpop.f32.mrb[3].mxu0  ;;  %v1834_v60 = vpop.f32.mrb[7].mxu1 }
 0x109   : > { %v623_v1 = vpop.f32.mrb[4].mxu0 }
 0x10a   : > { %v630_v61 = vadd.f32 %v623_v1, %v475_v52  ;;  %v1823_v45 = vpop.f32.mrb[5].mxu0 }
 0x10b   : > { %v626_v62 = vpop.f32.mrb[6].mxu0  ;;  %v1050_v4 = vpop.f32.mrb[8].mxu1 }
 0x10c   : > { %v631_v63 = vadd.f32 %v626_v62, %v478_v55  ;;  %v729_v2 = vadd.f32 %v722_v57, %v630_v61  ;;  %v1824_v3 = vpop.f32.mrb[7].mxu0  ;;  %v1853_v6 = vpop.f32.mrb[9].mxu1 }
 0x10d   : > { %v1053_v7 = vpop.f32.mrb[10].mxu1 }
 0x10e   : > { %v730_v5 = vadd.f32 %v725_v59, %v631_v63  ;;  %v1854_v8 = vpop.f32.mrb[11].mxu1 }
 0x115   : > { %v906_v10 = vpop.f32.mrb[8].mxu0 }
 0x116   : > { %v913_v53 = vadd.f32 %v906_v10, %v729_v2  ;;  %v1843_v0 = vpop.f32.mrb[9].mxu0 }
 0x117   : > { %v909_v9 = vpop.f32.mrb[10].mxu0  ;;  %v1333_v15 = vpop.f32.mrb[12].mxu1 }
 0x118   : > { %v914_v11 = vadd.f32 %v909_v9, %v730_v5  ;;  %v1057_v12 = vadd.f32 %v1050_v4, %v913_v53  ;;  %v1844_v13 = vpop.f32.mrb[11].mxu0  ;;  %v1873_v17 = vpop.f32.mrb[13].mxu1 }
 0x119   : > { %v1336_v18 = vpop.f32.mrb[14].mxu1 }
 0x11a   : > { %v1058_v14 = vadd.f32 %v1053_v7, %v914_v11  ;;  %v1874_v19 = vpop.f32.mrb[15].mxu1 }
 0x121   : > { %v1149_v20 = vpop.f32.mrb[12].mxu0 }
 0x122   : > { %v1156_v21 = vadd.f32 %v1149_v20, %v1057_v12  ;;  %v1863_v23 = vpop.f32.mrb[13].mxu0 }
 0x123   : > { %v1152_v24 = vpop.f32.mrb[14].mxu0 }
 0x124   : > { %v1157_v25 = vadd.f32 %v1152_v24, %v1058_v14  ;;  %v1340_v27 = vadd.f32 %v1333_v15, %v1156_v21  ;;  %v1864_v28 = vpop.f32.mrb[15].mxu0 }
 0x126   : > { %v1341_v29 = vadd.f32 %v1336_v18, %v1157_v25 }
 0x12d   : > { %v1477_v30 = vpop.f32.mrb[16].mxu0 }
 0x12e   : > { %v1484_v32 = vadd.f32 %v1477_v30, %v1340_v27  ;;  %v1883_v33 = vpop.f32.mrb[17].mxu0 }
 0x12f   : > { %v1480_v34 = vpop.f32.mrb[18].mxu0 }
 0x130   : > { %v1493_v35 = vadd.f32 %v1755_v31, %v1484_v32  ;;  %v1485_v36 = vadd.f32 %v1480_v34, %v1341_v29  ;;  %v1884_v37 = vpop.f32.mrb[19].mxu0 }
 0x132   : > { %v1495_v38 = vmax.f32 %v1493_v35, 0.0  ;;  %v1494_v39 = vadd.f32 %v1755_v31, %v1485_v36 }
 0x134   : > { %v1499_v40 = vcombine.high %v1495_v38, %v1495_v38  ;;  %v1503_v41 = vpack.c.bf16 %v1495_v38, %v1495_v38  ;;  %v1496_v22 = vmax.f32 %v1494_v39, 0.0 }
 0x136   : > { %v1504_v42 = vpack.c.bf16 %v1499_v40, %v1499_v40  ;;  %1508 = vst.msk [vmem:[%s192_s7] sm:$0x3] %vm1507_vm0, %v1503_v41  ;;  %v1500_v43 = vcombine.high %v1496_v22, %v1496_v22  ;;  %v1505_v44 = vpack.c.bf16 %v1496_v22, %v1496_v22 }
 0x138   : > { %1509 = vst.msk [vmem:[%s192_s7 + $0x2] sm:$0x3] %vm1507_vm0, %v1504_v42  ;;  %v1506_v16 = vpack.c.bf16 %v1500_v43, %v1500_v43  ;;  %1510 = vst.msk [vmem:[%s192_s7 + $0x4] sm:$0x3] %vm1507_vm0, %v1505_v44 }
 0x13a   : > { %1511 = vst.msk [vmem:[%s192_s7 + $0x6] sm:$0x3] %vm1507_vm0, %v1506_v16 }
 0x13b PF: > { %s13_s14 = sadd.s32 1, %s1974_s14   ;;  %s2289_s12 = smov %s1970_s13 }
 0x13c   : > { %p10_p5 = scmp.ge.s32.totalorder %s13_s14, 4   ;;  %s2290_s13 = smov %s2292_s15 }
 0x13e   :  { %12 = sbr.rel (!%p10_p5) target bundleno = 2 (0x2), region = 73 }

// kernel: dctvfinet_forward.23
= control target key start
LH: loop header
LB: loop body
LE: loop exit
PB: predicated region body
PF: predicated region fallthrough
CT: control target
= control target key end

     0   :  { %s2491_s12 = smov 0   ;;  %s2493_s13 = smov 0   ;;  %s3083_s0 = inlined_call_operand.vmem [shape: bf16[2,10,10,24], index: 0, kind: input, shape index: {}]   ;;  %s3084_s1 = inlined_call_operand.vmem [shape: bf16[9,24,8], index: 1, kind: input, shape index: {}]   ;;  %s3085_s2 = inlined_call_operand.vmem [shape: f32[1,8], index: 2, kind: input, shape index: {}]   ;;  %s3086_s3 = inlined_call_operand.vmem [shape: bf16[2,8,8,8], index: 3, kind: output, shape index: {}]  }
   0x1   :  { %s2495_s14 = smov 0  }
   0x2 LB: > { %s25_s15 = sadd.s32 1, %s2465_s13  ;;  %p1942_p0 = scmp.ge.s32.totalorder %s2469_s14, 1  ;;  %s2469_s14 = sphi %s2495_s14, %s13_s14   ;;  %s2465_s13 = sphi %s2493_s13, %s3092_s13   ;;  %s2461_s12 = sphi %s2491_s12, %s3091_s12  }
   0x3   : > { %p27_p1 = scmp.ge.s32.totalorder %s25_s15, 2  ;;  %p151_p2 = scmp.lt.s32.totalorder %s2469_s14, 3 }
   0x5   : > { %s3094_s15 = smov (%p27_p1, %s25_s15), 0  ;;  %p152_p3 = pnand %p1942_p0, %p151_p2 }
   0x6   : > { %v2417_v0 = vld [vmem:[%s3084_s1 + $0xc] sm:$0xff] (!%p152_p3)   ;;  %vm371_vm0 = vcmask (!%p152_p3), 1043456   ;;  %p179_p4 = scmp.lt.s32.totalorder (!%p152_p3), %s2461_s12, 1  ;;  %v2419_v2 = vld [vmem:[%s3084_s1 + $0x14] ss:$0 sps:$4 sm:$0xff] (!%p152_p3)   ;;  %v2534_v5 = vld [vmem:[%s3084_s1] sm:$0xff] (!%p152_p3)  }
   0x7   : > { %155 = sbr.rel (%p152_p3) target bundleno = 339 (0x153), region = 32  ;;  %v2515_v1 = vld [vmem:[%s3084_s1 + $0x30] sm:$0xff] (!%p152_p3)   ;;  %2206 = vmatprep.subr.bf16.mxu1 (!%p152_p3), %v2417_v0  ;;  %v2524_v3 = vld [vmem:[%s3084_s1 + $0x38] ss:$0 sps:$4 sm:$0xff] (!%p152_p3)   ;;  %v373_v4 = vsel (!%p152_p3), %vm371_vm0, %v2419_v2, 0  ;;  %v2546_v7 = vld [vmem:[%s3084_s1 + $0x3c] sm:$0xff] (!%p152_p3)  }
   0x8   : > { %2254 = vmatprep.subr.bf16.mxu0 (!%p152_p3), %v2515_v1  ;;  %2207 = vmatpush3.bf16.msra.mxu1 (!%p152_p3), %v2417_v0  ;;  %v2540_v6 = vsel (!%p152_p3), %vm371_vm0, %v2524_v3, 0  ;;  %vm218_vm1 = vsmask.f32 (!%p152_p3), 3328  ;;  %vm219_vm2 = vsmask.f32 (!%p152_p3), 7440  ;;  %vm358_vm4 = vcmask (!%p152_p3), 195584  }
   0x9   : > { %2255 = vmatpush3.bf16.msra.mxu0 (!%p152_p3), %v2515_v1  ;;  %2382 = vmatprep.subr.msk.bf16.mxu1 (!%p152_p3), %vm371_vm0, %v2419_v2  ;;  %vm2585_vm3 = vmor (!%p152_p3), %vm218_vm1, %vm219_vm2  ;;  %vm573_vm5 = vcmask (!%p152_p3), 1042432   ;;  %vm574_vm6 = vcmask (!%p152_p3), 1046532   ;;  %vm1838_vm8 = vcmask (!%p152_p3), 60416  }
   0xa   : > { %2386 = vmatprep.subr.msk.bf16.mxu0 (!%p152_p3), %vm371_vm0, %v2524_v3  ;;  %vm2719_vm7 = vmor (!%p152_p3), %vm573_vm5, %vm574_vm6 }
   0xc   : > { %2209 = vmatpush3.bf16.msra.mxu1 (!%p152_p3), %v373_v4 }
   0xd   : > { %2257 = vmatpush3.bf16.msra.mxu0 (!%p152_p3), %v2540_v6  ;;  %2218 = vmatprep.subr.bf16.mxu1 (!%p152_p3), %v2534_v5 }
   0xe   : > { %s3096_s12 = smov (!%p179_p4, %s2461_s12), 1  ;;  %2266 = vmatprep.subr.bf16.mxu0 %v2546_v7 }
   0xf   : > { %s2392_s26 = smul.u32 80, %s3096_s12  ;;  %s2151_s8 = sshll.u32 %s3096_s12, 5 }
  0x10   : > { %s3056_s11 = scalar_lea.vmem %s3086_s3, %s2151_s8 }
  0x11   : > { %s2551_s4 = scalar_lea.vmem %s3083_s0, %s2392_s26 }
  0x12   : > { %v2555_v8 = vld [vmem:[%s2551_s4] sm:$0xf]  ;;  %v2558_v9 = vld [vmem:[%s2551_s4 + $0x8] sm:$0xf]  ;;  %v2561_v10 = vld [vmem:[%s2551_s4 + $0x4] sm:$0x1] }
  0x13   : > { %v2565_v11 = vld [vmem:[%s2551_s4 + $0xc] sm:$0x1]  ;;  %v222_v12 = vshrl.u32 %v2555_v8, 16  ;;  %v225_v13 = vshll.u32 %v2555_v8, 16  ;;  %v231_v14 = vshll.u32 %v2561_v10, 16  ;;  %v236_v15 = vshrl.u32 %v2558_v9, 16 }
  0x14   : > { %v239_v16 = vshll.u32 %v2558_v9, 16  ;;  %v245_v17 = vshll.u32 %v2565_v11, 16  ;;  %v2011_v18 = vld [vmem:[%s2551_s4 + $0x8] sm:$0xf]  ;;  %v2576_v23 = vld [vmem:[%s2551_s4 + $0xc] sm:$0x1] }
  0x15   : > { %v224_v19 = vrot.slane %v222_v12, 4  ;;  %v227_v20 = vrot.slane %v225_v13, 5  ;;  %v233_v21 = vrot.slane %v231_v14, 5  ;;  %v238_v22 = vrot.slane %v236_v15, 4  ;;  %v2013_v26 = vld [vmem:[%s2551_s4 + $0x10] sm:$0xf] }
  0x16   : > { %v241_v24 = vrot.slane %v239_v16, 5  ;;  %v247_v25 = vrot.slane %v245_v17, 5  ;;  %v2580_v27 = vld [vmem:[%s2551_s4 + $0x14] sm:$0x1]  ;;  %v871_v29 = vshrl.u32 %v2011_v18, 16  ;;  %v874_v30 = vshll.u32 %v2011_v18, 16 }
  0x17   : > { %v228_v28 = vor.u32 %v227_v20, %v224_v19  ;;  %v880_v31 = vshll.u32 %v2576_v23, 16  ;;  %v885_v34 = vshrl.u32 %v2013_v26, 16  ;;  %v888_v35 = vshll.u32 %v2013_v26, 16  ;;  %v2591_v37 = vld [vmem:[%s2551_s4 + $0x10] sm:$0xf] }
  0x18   : > { %v242_v33 = vor.u32 %v241_v24, %v238_v22  ;;  %v894_v36 = vshll.u32 %v2580_v27, 16  ;;  %v873_v39 = vrot.slane %v871_v29, 4  ;;  %v876_v40 = vrot.slane %v874_v30, 5  ;;  %v2594_v41 = vld [vmem:[%s2551_s4 + $0x18] sm:$0xf] }
  0x19   : > { %v229_v38 = vrot.slane %v228_v28, 4  ;;  %v887_v43 = vrot.slane %v885_v34, 4  ;;  %v890_v44 = vrot.slane %v888_v35, 5  ;;  %v2597_v45 = vld [vmem:[%s2551_s4 + $0x14] sm:$0x1]  ;;  %v882_v48 = vrot.slane %v880_v31, 5 }
  0x1a   : > { %v243_v42 = vrot.slane %v242_v33, 4  ;;  %v877_v47 = vor.u32 %v876_v40, %v873_v39  ;;  %v896_v49 = vrot.slane %v894_v36, 5  ;;  %v2604_v52 = vld [vmem:[%s2551_s4 + $0x1c] sm:$0x1]  ;;  %v250_v53 = vshrl.u32 %v2591_v37, 16 }
  0x1b   : > { %v234_v46 = vsel %vm2585_vm3, %v229_v38, %v233_v21  ;;  %v891_v51 = vor.u32 %v890_v44, %v887_v43  ;;  %v253_v54 = vshll.u32 %v2591_v37, 16  ;;  %v259_v57 = vshll.u32 %v2597_v45, 16  ;;  %v2015_v63 = vld [vmem:[%s2551_s4 + $0x18] sm:$0xf]  ;;  %v2618_v13 = vld [vmem:[%s2551_s4 + $0x1c] sm:$0x1] }
  0x1c   : > { %v248_v50 = vsel %vm2585_vm3, %v243_v42, %v247_v25  ;;  %v878_v56 = vrot.slane %v877_v47, 4  ;;  %v264_v58 = vshrl.u32 %v2594_v41, 16  ;;  %v252_v60 = vrot.slane %v250_v53, 4  ;;  %v2017_v18 = vld [vmem:[%s2551_s4 + $0x20] sm:$0xf] }
  0x1d   : > { %v1949_v55 = vcombine.low %v234_v46, %v248_v50  ;;  %v892_v59 = vrot.slane %v891_v51, 4  ;;  %v255_v61 = vrot.slane %v253_v54, 5  ;;  %v267_v62 = vshll.u32 %v2594_v41, 16  ;;  %v2624_v19 = vld [vmem:[%s2551_s4 + $0x24] sm:$0x1] }
  0x1e   : > { %v883_v0 = vsel %vm2585_vm3, %v878_v56, %v882_v48  ;;  %v1121_v2 = vrot.slane %v2576_v23, 5  ;;  %v266_v4 = vrot.slane %v264_v58, 4  ;;  %v273_v12 = vshll.u32 %v2604_v52, 16  ;;  %v2630_v25 = vld [vmem:[%s3084_s1 + $0x44] ss:$0 sps:$4 sm:$0xff]  }
  0x1f   : > { %2210 = vmatprep.mubr.msk.bf16.mxu1 %vm358_vm4, %v1949_v55  ;;  %v897_v14 = vsel %vm2585_vm3, %v892_v59, %v896_v49  ;;  %v256_v15 = vor.u32 %v255_v61, %v252_v60  ;;  %v261_v16 = vrot.slane %v259_v57, 5  ;;  %v269_v17 = vrot.slane %v267_v62, 5  ;;  %v2634_v31 = vld [vmem:[%s2551_s4 + $0x20] sm:$0xf]  ;;  %v2639_v38 = vld [vmem:[%s2551_s4 + $0x28] sm:$0xf] }
  0x20   : > { %v2030_v20 = vcombine.low %v883_v0, %v897_v14  ;;  %v1125_v21 = vrot.slane %v2580_v27, 5  ;;  %v275_v22 = vrot.slane %v273_v12, 5  ;;  %v899_v24 = vshrl.u32 %v2015_v63, 16  ;;  %v2644_v44 = vld [vmem:[%s2551_s4 + $0x24] sm:$0x1] }
  0x21   : > { %v257_v26 = vrot.slane %v256_v15, 4  ;;  %v270_v28 = vor.u32 %v269_v17, %v266_v4  ;;  %v902_v29 = vshll.u32 %v2015_v63, 16  ;;  %v908_v30 = vshll.u32 %v2618_v13, 16  ;;  %v2648_v50 = vld [vmem:[%s2551_s4 + $0x2c] sm:$0x1] }
  0x22   : > { %2258 = vmatprep.mubr.msk.bf16.mxu0 %vm358_vm4, %v2030_v20  ;;  %v901_v33 = vrot.slane %v899_v24, 4  ;;  %v913_v34 = vshrl.u32 %v2017_v18, 16  ;;  %v916_v35 = vshll.u32 %v2017_v18, 16  ;;  %v922_v36 = vshll.u32 %v2624_v19, 16  ;;  %v2424_v51 = vld [vmem:[%s3084_s1 + $0x8] ss:$0 sps:$4 sm:$0xff]  }
  0x23   : > { %v262_v39 = vsel %vm2585_vm3, %v257_v26, %v261_v16  ;;  %v271_v40 = vrot.slane %v270_v28, 4  ;;  %v904_v42 = vrot.slane %v902_v29, 5  ;;  %v910_v43 = vrot.slane %v908_v30, 5  ;;  %v2663_v61 = vld [vmem:[%s2551_s4 + $0x30] sm:$0xf] }
  0x24   : > { %v915_v46 = vrot.slane %v913_v34, 4  ;;  %v918_v47 = vrot.slane %v916_v35, 5  ;;  %v924_v48 = vrot.slane %v922_v36, 5  ;;  %v1129_v49 = vrot.slane %v2618_v13, 5  ;;  %v2666_v62 = vld [vmem:[%s2551_s4 + $0x34] sm:$0x1] }
  0x25   : > { %v276_v53 = vsel %vm2585_vm3, %v271_v40, %v275_v22  ;;  %v905_v54 = vor.u32 %v904_v42, %v901_v33  ;;  %v1133_v55 = vrot.slane %v2624_v19, 5  ;;  %v2658_v56 = vsel %vm371_vm0, %v2630_v25, 0  ;;  %v2677_v26 = vld [vmem:[%s2551_s4 + $0x38] sm:$0xf]  ;;  %v2683_v33 = vld [vmem:[%s2551_s4 + $0x3c] sm:$0x1] }
  0x26   : > { %v1950_v57 = vcombine.low %v262_v39, %v276_v53  ;;  %v919_v58 = vor.u32 %v918_v47, %v915_v46  ;;  %v278_v59 = vshrl.u32 %v2634_v31, 16  ;;  %v281_v60 = vshll.u32 %v2634_v31, 16  ;;  %v2689_v34 = vld [vmem:[%s3084_s1 + $0x18] sm:$0xff]   ;;  %v2040_v42 = vld [vmem:[%s2551_s4 + $0x8] sm:$0xe] }
  0x27   : > { %v906_v63 = vrot.slane %v905_v54, 4  ;;  %v287_v0 = vshll.u32 %v2644_v44, 16  ;;  %v292_v4 = vshrl.u32 %v2639_v38, 16  ;;  %v295_v12 = vshll.u32 %v2639_v38, 16  ;;  %v2041_v53 = vld [vmem:[%s2551_s4 + $0x10] sm:$0xe] }
  0x28   : > { %2211 = vmatmul.mubr.msk.bf16.vlgmr.msra.gmra.mrb[0].mxu1 %vm358_vm4, %v1950_v57  ;;  %v920_v14 = vrot.slane %v919_v58, 4  ;;  %v280_v15 = vrot.slane %v278_v59, 4  ;;  %v283_v16 = vrot.slane %v281_v60, 5  ;;  %v301_v17 = vshll.u32 %v2648_v50, 16  ;;  %v2042_v60 = vld [vmem:[%s2551_s4 + $0x18] sm:$0xe] }
  0x29   : > { %2219 = vmatpush3.bf16.msra.mxu1 %v2534_v5  ;;  %v911_v18 = vsel %vm2585_vm3, %v906_v63, %v910_v43  ;;  %v289_v20 = vrot.slane %v287_v0, 5  ;;  %v294_v22 = vrot.slane %v292_v4, 4  ;;  %v297_v24 = vrot.slane %v295_v12, 5  ;;  %v2760_v13 = vld [vmem:[%s2551_s4 + $0x44] sm:$0x1] }
  0x2a   : > { %v925_v28 = vsel %vm2585_vm3, %v920_v14, %v924_v48  ;;  %v284_v29 = vor.u32 %v283_v16, %v280_v15  ;;  %v303_v30 = vrot.slane %v301_v17, 5  ;;  %2383 = vmatprep.subr.msk.bf16.mxu1 %vm371_vm0, %v2424_v51  ;;  %v306_v5 = vshrl.u32 %v2663_v61, 16  ;;  %v2707_v14 = vld [vmem:[%s3084_s1 + $0x48] sm:$0xff]   ;;  %v2043_v15 = vld [vmem:[%s2551_s4 + $0x20] sm:$0xe] }
  0x2b   : > { %v2031_v35 = vcombine.low %v911_v18, %v925_v28  ;;  %v298_v36 = vor.u32 %v297_v24, %v294_v22  ;;  %v309_v39 = vshll.u32 %v2663_v61, 16  ;;  %v315_v40 = vshll.u32 %v2666_v62, 16  ;;  %v2044_v18 = vld [vmem:[%s2551_s4 + $0x28] sm:$0xe]  ;;  %v2148_v24 = vld [vmem:[%s3085_s2] ss:$0 sm:$0xff] }
  0x2c   : > { %v285_v43 = vrot.slane %v284_v29, 4  ;;  %v308_v46 = vrot.slane %v306_v5, 4  ;;  %v320_v47 = vshrl.u32 %v2677_v26, 16  ;;  %v323_v48 = vshll.u32 %v2677_v26, 16  ;;  %v2725_v29 = vld [vmem:[%s2551_s4 + $0x34] sm:$0x1] }
  0x2d   : > { %2259 = vmatmul.mubr.msk.bf16.vlgmr.msra.gmra.mrb[0].mxu0 %vm358_vm4, %v2031_v35  ;;  %v299_v54 = vrot.slane %v298_v36, 4  ;;  %v311_v57 = vrot.slane %v309_v39, 5  ;;  %v317_v58 = vrot.slane %v315_v40, 5  ;;  %v329_v59 = vshll.u32 %v2683_v33, 16  ;;  %v2729_v39 = vld [vmem:[%s2551_s4 + $0x3c] sm:$0x1] }
  0x2e   : > { %2267 = vmatpush3.bf16.msra.mxu0 %v2546_v7  ;;  %v290_v63 = vsel %vm2585_vm3, %v285_v43, %v289_v20  ;;  %v322_v0 = vrot.slane %v320_v47, 4  ;;  %v325_v4 = vrot.slane %v323_v48, 5  ;;  %v482_v12 = vsel %vm371_vm0, %v2424_v51, 0  ;;  %v2715_v51 = vld [vmem:[%s2551_s4 + $0x2c] sm:$0x1] }
  0x2f   : > { %2388 = vmatprep.subr.msk.bf16.mxu0 %vm371_vm0, %v2630_v25  ;;  %v304_v7 = vsel %vm2585_vm3, %v299_v54, %v303_v30  ;;  %v312_v16 = vor.u32 %v311_v57, %v308_v46  ;;  %v331_v17 = vrot.slane %v329_v59, 5  ;;  %2221 = vmatpush3.bf16.msra.mxu1 %v482_v12  ;;  %v2048_v25 = vrot.slane %v2040_v42, 9  ;;  %v2045_v30 = vld [vmem:[%s2551_s4 + $0x30] sm:$0xe]  ;;  %v2046_v40 = vld [vmem:[%s2551_s4 + $0x38] sm:$0xe] }
  0x30   : > { %v1951_v20 = vcombine.low %v290_v63, %v304_v7  ;;  %v326_v22 = vor.u32 %v325_v4, %v322_v0  ;;  %v2049_v28 = vrot.slane %v2041_v53, 9  ;;  %2230 = vmatprep.subr.bf16.mxu1 %v2689_v34  ;;  %v2050_v35 = vrot.slane %v2042_v60, 9  ;;  %v2047_v48 = vld [vmem:[%s2551_s4 + $0x40] sm:$0xe] }
  0x31   : > { %v313_v5 = vrot.slane %v312_v16, 4  ;;  %v2051_v36 = vrot.slane %v2043_v15, 9  ;;  %v1122_v42 = vsel %vm2719_vm7, %v2048_v25, %v1121_v2  ;;  %v2052_v47 = vrot.slane %v2044_v18, 9  ;;  %v549_v63 = vld [vmem:[%s2551_s4] sm:$0xe] }
  0x32   : > { %2269 = vmatpush3.bf16.msra.mxu0 %v2658_v56  ;;  %2214 = vmatprep.mubr.msk.bf16.mxu1 %vm358_vm4, %v1951_v20  ;;  %v327_v43 = vrot.slane %v326_v22, 4  ;;  %v1126_v46 = vsel %vm2719_vm7, %v2049_v28, %v1125_v21  ;;  %v1130_v23 = vsel %vm2719_vm7, %v2050_v35, %v1129_v49  ;;  %v1959_v21 = vcombine.low %v2555_v8, %v2558_v9  ;;  %v550_v15 = vld [vmem:[%s2551_s4 + $0x8] sm:$0xe]  ;;  %v551_v18 = vld [vmem:[%s2551_s4 + $0x10] sm:$0xe]  ;;  %v2800_v35 = vld [vmem:[%s3084_s1 + $0x54] sm:$0xff]  }
  0x33   : > { %v318_v53 = vsel %vm2585_vm3, %v313_v5, %v317_v58  ;;  %v2059_v56 = vcombine.low %v1122_v42, %v1126_v46  ;;  %2278 = vmatprep.subr.bf16.mxu0 %v2707_v14  ;;  %v1134_v27 = vsel %vm2719_vm7, %v2051_v36, %v1133_v55  ;;  %v1137_v54 = vrot.slane %v2715_v51, 5  ;;  %v2429_v55 = vld [vmem:[%s3084_s1 + $0x50] ss:$0 sps:$4 sm:$0xff]   ;;  %v552_v25 = vld [vmem:[%s2551_s4 + $0x18] sm:$0xe] }
  0x34   : > { %v332_v2 = vsel %vm2585_vm3, %v327_v43, %v331_v17  ;;  %v2053_v57 = vrot.slane %v2045_v30, 9  ;;  %v2060_v19 = vcombine.low %v1130_v23, %v1134_v27  ;;  %v1141_v49 = vrot.slane %v2725_v29, 5  ;;  %v553_v43 = vld [vmem:[%s2551_s4 + $0x20] sm:$0xe]  ;;  %v554_v42 = vld [vmem:[%s2551_s4 + $0x28] sm:$0xe] }
  0x35   : > { %v1952_v58 = vcombine.low %v318_v53, %v332_v2  ;;  %2270 = vmatprep.mubr.msk.bf16.mxu0 %vm358_vm4, %v2059_v56  ;;  %v1138_v8 = vsel %vm2719_vm7, %v2052_v47, %v1137_v54  ;;  %v2054_v9 = vrot.slane %v2046_v40, 9  ;;  %v1145_v59 = vrot.slane %v2729_v39, 5  ;;  %v2433_v46 = vld [vmem:[%s2551_s4 + $0x10] ss:$8 sps:$4 sm:$0xff]   ;;  %v2830_v56 = vld [vmem:[%s3084_s1 + $0x24] sm:$0xff]  }
  0x36   : > { %v2055_v60 = vrot.slane %v2047_v48, 9  ;;  %v578_v0 = vrot.slane %v2561_v10, 5  ;;  %v1142_v4 = vsel %vm2719_vm7, %v2053_v57, %v1141_v49  ;;  %v1149_v12 = vrot.slane %v2760_v13, 5  ;;  %v2841_v54 = vld [vmem:[%s2551_s4 + $0x14] sm:$0x1] }
  0x37   : > { %2215 = vmatmul.mubr.msk.bf16.gmra.mrb[4].mxu1 %vm358_vm4, %v1952_v58  ;;  %v582_v7 = vrot.slane %v2565_v11, 5  ;;  %v586_v16 = vrot.slane %v2597_v45, 5  ;;  %v2061_v17 = vcombine.low %v1138_v8, %v1142_v4  ;;  %v590_v20 = vrot.slane %v2604_v52, 5  ;;  %v2852_v58 = vld [vmem:[%s2551_s4 + $0x38] sm:$0xe] }
  0x38   : > { %2222 = vmatprep.mubr.msk.bf16.mxu1 %vm358_vm4, %v1959_v21  ;;  %v1146_v10 = vsel %vm2719_vm7, %v2054_v9, %v1145_v59  ;;  %v1969_v22 = vrot.slane %v549_v63, 9  ;;  %v1150_v11 = vsel %vm2719_vm7, %v2055_v60, %v1149_v12  ;;  %v1970_v45 = vrot.slane %v550_v15, 9  ;;  %v2090_v21 = vld [vmem:[%s2551_s4 + $0x10] sm:$0xf]  ;;  %v2856_v49 = vld [vmem:[%s2551_s4 + $0x1c] sm:$0x1] }
  0x39   : > { %2271 = vmatmul.mubr.msk.bf16.vlgmr.msra.gmra.mrb[0].mxu0 %vm358_vm4, %v2060_v19  ;;  %v1971_v28 = vrot.slane %v551_v18, 9  ;;  %v1972_v52 = vrot.slane %v552_v25, 9  ;;  %v1960_v30 = vcombine.low %v2591_v37, %v2594_v41  ;;  %v1322_v5 = vsel %vm371_vm0, %v2429_v55, 0  ;;  %v2092_v19 = vld [vmem:[%s2551_s4 + $0x18] sm:$0xf] }
  0x3a   : > { %2279 = vmatpush3.bf16.msra.mxu0 %v2707_v14  ;;  %2274 = vmatprep.mubr.msk.bf16.mxu0 %vm358_vm4, %v2061_v17  ;;  %v2431_v14 = vld [vmem:[%s3084_s1 + $0x20] ss:$0 sps:$4 sm:$0xff]   ;;  %v1961_v36 = vcombine.low %v2634_v31, %v2639_v38  ;;  %v2062_v40 = vcombine.low %v1146_v10, %v1150_v11  ;;  %v2806_v37 = vsel %vm2719_vm7, %v1969_v22, %v578_v0  ;;  %v1973_v38 = vrot.slane %v553_v43, 9  ;;  %v2438_v59 = vld [vmem:[%s3084_s1 + $0x5c] ss:$0 sps:$4 sm:$0xff]  }
  0x3b   : > { %2389 = vmatprep.subr.msk.bf16.mxu0 %vm371_vm0, %v2429_v55  ;;  %v2810_v41 = vsel %vm2719_vm7, %v1970_v45, %v582_v7  ;;  %v2817_v47 = vsel %vm2719_vm7, %v1971_v28, %v586_v16  ;;  %v2821_v31 = vsel %vm2719_vm7, %v1972_v52, %v590_v20  ;;  %v594_v48 = vrot.slane %v2644_v44, 5  ;;  %v2837_v44 = vld [vmem:[%s2551_s4 + $0x30] sm:$0xe]  ;;  %v2435_v9 = vld [vmem:[%s2551_s4 + $0x20] ss:$8 sps:$4 sm:$0xff]  }
  0x3c   : > { %v646_v53 = vsel %vm371_vm0, %v2431_v14, 0  ;;  %v1974_v23 = vrot.slane %v554_v42, 9  ;;  %v598_v27 = vrot.slane %v2648_v50, 5  ;;  %v602_v2 = vrot.slane %v2666_v62, 5  ;;  %v2437_v12 = vld [vmem:[%s2551_s4 + $0x30] ss:$8 sps:$4 sm:$0xff]  }
  0x3d   : > { %v1962_v57 = vcombine.low %v2663_v61, %v2677_v26  ;;  %v1980_v50 = vcombine.low %v2806_v37, %v2810_v41  ;;  %v2861_v55 = vsel %vm2719_vm7, %v1973_v38, %v594_v48  ;;  %v1414_v8 = vshrl.u32 %v2090_v21, 16  ;;  %v2874_v15 = vld [vmem:[%s3084_s1 + $0x2c] ss:$0 sps:$4 sm:$0xff]   ;;  %v2094_v20 = vld [vmem:[%s2551_s4 + $0x20] sm:$0xf] }
  0x3e   : > { %2281 = vmatpush3.bf16.msra.mxu0 %v1322_v5  ;;  %v1417_v61 = vshll.u32 %v2090_v21, 16  ;;  %v1423_v26 = vshll.u32 %v2841_v54, 16  ;;  %v1975_v60 = vrot.slane %v2837_v44, 9  ;;  %v1428_v63 = vshrl.u32 %v2092_v19, 16  ;;  %v2880_v11 = vld [vmem:[%s2551_s4 + $0x24] sm:$0x1] }
  0x3f   : > { %2223 = vmatmul.mubr.msk.bf16.vlgmr.msra.gmra.mrb[0].mxu1 %vm358_vm4, %v1960_v30  ;;  %2290 = vmatprep.subr.bf16.mxu0 %v2800_v35  ;;  %v1431_v0 = vshll.u32 %v2092_v19, 16  ;;  %v1437_v4 = vshll.u32 %v2856_v49, 16  ;;  %v1976_v7 = vrot.slane %v2852_v58, 9  ;;  %v1416_v16 = vrot.slane %v1414_v8, 4  ;;  %v2096_v30 = vld [vmem:[%s2551_s4 + $0x28] sm:$0xf] }
  0x40   : > { %2231 = vmatpush3.bf16.msra.mxu1 %v2689_v34  ;;  %2226 = vmatprep.mubr.msk.bf16.mxu1 %vm358_vm4, %v1961_v36  ;;  %v1981_v34 = vcombine.low %v2817_v47, %v2821_v31  ;;  %v1419_v17 = vrot.slane %v1417_v61, 5  ;;  %v1425_v18 = vrot.slane %v1423_v26, 5  ;;  %v1430_v10 = vrot.slane %v1428_v63, 4  ;;  %v2886_v5 = vld [vmem:[%s2551_s4 + $0x2c] sm:$0x1] }
  0x41   : > { %2275 = vmatmul.mubr.msk.bf16.gmra.mrb[4].mxu0 %vm358_vm4, %v2062_v40  ;;  %2384 = vmatprep.subr.msk.bf16.mxu1 %vm371_vm0, %v2431_v14  ;;  %v1433_v22 = vrot.slane %v1431_v0, 5  ;;  %v1439_v25 = vrot.slane %v1437_v4, 5  ;;  %v1442_v45 = vshrl.u32 %v2094_v20, 16  ;;  %v599_v28 = vsel %vm2719_vm7, %v1974_v23, %v598_v27  ;;  %v2439_v58 = vld [vmem:[%s2551_s4 + $0x40] ss:$8 sps:$4 sm:$0xff]  }
  0x42   : > { %2282 = vmatprep.mubr.msk.bf16.mxu0 %vm358_vm4, %v2433_v46  ;;  %v1420_v52 = vor.u32 %v1419_v17, %v1416_v16  ;;  %v1445_v14 = vshll.u32 %v2094_v20, 16  ;;  %v1451_v36 = vshll.u32 %v2880_v11, 16  ;;  %v1456_v41 = vshrl.u32 %v2096_v30, 16  ;;  %v2098_v26 = vld [vmem:[%s2551_s4 + $0x30] sm:$0xf] }
  0x43   : > { %v1434_v40 = vor.u32 %v1433_v22, %v1430_v10  ;;  %v1444_v37 = vrot.slane %v1442_v45, 4  ;;  %v1459_v43 = vshll.u32 %v2096_v30, 16  ;;  %v606_v42 = vrot.slane %v2683_v33, 5  ;;  %v2100_v4 = vld [vmem:[%s2551_s4 + $0x38] sm:$0xf] }
  0x44   : > { %2233 = vmatpush3.bf16.msra.mxu1 %v646_v53  ;;  %v1421_v46 = vrot.slane %v1420_v52, 4  ;;  %v1447_v38 = vrot.slane %v1445_v14, 5  ;;  %v1465_v48 = vshll.u32 %v2886_v5, 16  ;;  %v1563_v53 = vsel %vm371_vm0, %v2438_v59, 0  ;;  %v2102_v52 = vld [vmem:[%s2551_s4 + $0x40] sm:$0xf] }
  0x45   : > { %2242 = vmatprep.subr.bf16.mxu1 %v2830_v56  ;;  %v1435_v23 = vrot.slane %v1434_v40, 4  ;;  %v1458_v27 = vrot.slane %v1456_v41, 4  ;;  %v1461_v44 = vrot.slane %v1459_v43, 5  ;;  %v1982_v33 = vcombine.low %v2861_v55, %v599_v28  ;;  %v2911_v55 = vld [vmem:[%s3084_s1 + $0x60] sm:$0xff]   ;;  %v2956_v40 = vld [vmem:[%s2551_s4 + $0x4c] sm:$0x1] }
  0x46   : > { %v779_v21 = vsel %vm371_vm0, %v2874_v15, 0  ;;  %v1426_v19 = vsel %vm2585_vm3, %v1421_v46, %v1425_v18  ;;  %v1467_v61 = vrot.slane %v1465_v48, 5  ;;  %v2925_v63 = vsel %vm2719_vm7, %v1976_v7, %v606_v42  ;;  %v2949_v14 = vld [vmem:[%s2551_s4 + $0x44] sm:$0x1]  ;;  %v2442_v42 = vld [vmem:[%s2551_s4 + $0x8] ss:$8 sps:$4 sm:$0xff]  }
  0x47   : > { %2227 = vmatmul.mubr.msk.bf16.gmra.mrb[4].mxu1 %vm358_vm4, %v1962_v57  ;;  %v1448_v57 = vor.u32 %v1447_v38, %v1444_v37  ;;  %v1462_v8 = vor.u32 %v1461_v44, %v1458_v27  ;;  %v1470_v16 = vshrl.u32 %v2098_v26, 16  ;;  %v1473_v18 = vshll.u32 %v2098_v26, 16 }
  0x48   : > { %2234 = vmatprep.mubr.msk.bf16.mxu1 %vm358_vm4, %v1980_v50  ;;  %v2900_v50 = vrot.slane %v1451_v36, 5  ;;  %v1484_v10 = vshrl.u32 %v2100_v4, 16  ;;  %v2104_v36 = vld [vmem:[%s2551_s4 + $0x48] sm:$0xf]  ;;  %v1498_v37 = vshrl.u32 %v2102_v52, 16  ;;  %v1501_v41 = vshll.u32 %v2102_v52, 16 }
  0x49   : > { %2283 = vmatmul.mubr.msk.bf16.vlgmr.msra.gmra.mrb[0].mxu0 %vm358_vm4, %v2435_v9  ;;  %v2915_v9 = vld [vmem:[%s2551_s4 + $0x34] sm:$0x1]  ;;  %v1449_v0 = vrot.slane %v1448_v57, 4  ;;  %v1463_v17 = vrot.slane %v1462_v8, 4  ;;  %v1472_v22 = vrot.slane %v1470_v16, 4  ;;  %v1507_v43 = vshll.u32 %v2949_v14, 16 }
  0x4a   : > { %2291 = vmatpush3.bf16.msra.mxu0 %v2800_v35  ;;  %2286 = vmatprep.mubr.msk.bf16.mxu0 %vm358_vm4, %v2437_v12  ;;  %v1440_v35 = vsel %vm2585_vm3, %v1435_v23, %v1439_v25  ;;  %v2929_v12 = vld [vmem:[%s2551_s4 + $0x3c] sm:$0x1]  ;;  %v1479_v20 = vshll.u32 %v2915_v9, 16  ;;  %v1475_v25 = vrot.slane %v1473_v18, 5  ;;  %v1486_v28 = vrot.slane %v1484_v10, 4 }
  0x4b   : > { %2390 = vmatprep.subr.msk.bf16.mxu0 %vm371_vm0, %v2438_v59  ;;  %v2921_v59 = vsel %vm2719_vm7, %v1975_v60, %v602_v2  ;;  %v2109_v62 = vcombine.low %v1426_v19, %v1440_v35  ;;  %v1487_v2 = vshll.u32 %v2100_v4, 16  ;;  %v1493_v60 = vshll.u32 %v2929_v12, 16  ;;  %v2444_v57 = vld [vmem:[%s3084_s1 + $0x68] ss:$0 sps:$4 sm:$0xff]  }
  0x4c   : > { %v1983_v7 = vcombine.low %v2921_v59, %v2925_v63  ;;  %v1481_v45 = vrot.slane %v1479_v20, 5  ;;  %v1454_v47 = vsel %vm2585_vm3, %v1449_v0, %v2900_v50  ;;  %v1468_v31 = vsel %vm2585_vm3, %v1463_v17, %v1467_v61  ;;  %v2119_v63 = vld [vmem:[%s2551_s4 + $0x10] sm:$0xe]  ;;  %v2120_v0 = vld [vmem:[%s2551_s4 + $0x18] sm:$0xe] }
  0x4d   : > { %v1495_v30 = vrot.slane %v1493_v60, 5  ;;  %v1512_v38 = vshrl.u32 %v2104_v36, 16  ;;  %v1515_v48 = vshll.u32 %v2104_v36, 16  ;;  %v1500_v27 = vrot.slane %v1498_v37, 4  ;;  %v2121_v20 = vld [vmem:[%s2551_s4 + $0x20] sm:$0xe] }
  0x4e   : > { %2293 = vmatpush3.bf16.msra.mxu0 %v1563_v53  ;;  %v1521_v53 = vshll.u32 %v2956_v40, 16  ;;  %v1503_v44 = vrot.slane %v1501_v41, 5  ;;  %v1668_v19 = vrot.slane %v2856_v49, 5  ;;  %v2110_v35 = vcombine.low %v1454_v47, %v1468_v31  ;;  %v2445_v36 = vld [vmem:[%s2551_s4 + $0x28] ss:$8 sps:$4 sm:$0xff]  }
  0x4f   : > { %2235 = vmatmul.mubr.msk.bf16.vlgmr.msra.gmra.mrb[0].mxu1 %vm358_vm4, %v1981_v34  ;;  %2302 = vmatprep.subr.bf16.mxu0 %v2911_v55  ;;  %v1489_v34 = vrot.slane %v1487_v2, 5  ;;  %v1514_v50 = vrot.slane %v1512_v38, 4  ;;  %v1672_v49 = vrot.slane %v2880_v11, 5  ;;  %v2127_v17 = vrot.slane %v2119_v63, 9  ;;  %v2443_v2 = vld [vmem:[%s2551_s4 + $0x18] ss:$8 sps:$4 sm:$0xff]  }
  0x50   : > { %2243 = vmatpush3.bf16.msra.mxu1 %v2830_v56  ;;  %2238 = vmatprep.mubr.msk.bf16.mxu1 %vm358_vm4, %v1982_v33  ;;  %v1476_v56 = vor.u32 %v1475_v25, %v1472_v22  ;;  %v1504_v61 = vor.u32 %v1503_v44, %v1500_v27  ;;  %v1523_v59 = vrot.slane %v1521_v53, 5  ;;  %v2128_v18 = vrot.slane %v2120_v0, 9  ;;  %v2025_v44 = vld [vmem:[%s2551_s4 + $0x40] sm:$0xf] }
  0x51   : > { %2287 = vmatmul.mubr.msk.bf16.gmra.mrb[4].mxu0 %vm358_vm4, %v2439_v58  ;;  %2385 = vmatprep.subr.msk.bf16.mxu1 %vm371_vm0, %v2874_v15  ;;  %v1490_v46 = vor.u32 %v1489_v34, %v1486_v28  ;;  %v1664_v15 = vrot.slane %v2841_v54, 5  ;;  %v1517_v58 = vrot.slane %v1515_v48, 5  ;;  %v1509_v54 = vrot.slane %v1507_v43, 5  ;;  %v2021_v28 = vld [vmem:[%s2551_s4 + $0x30] sm:$0xf] }
  0x52   : > { %2294 = vmatprep.mubr.msk.bf16.mxu0 %vm358_vm4, %v2109_v62  ;;  %v1477_v23 = vrot.slane %v1476_v56, 4  ;;  %v1505_v16 = vrot.slane %v1504_v61, 4  ;;  %v2122_v62 = vld [vmem:[%s2551_s4 + $0x28] sm:$0xe]  ;;  %v2129_v22 = vrot.slane %v2121_v20, 9  ;;  %v1732_v60 = vsel %vm371_vm0, %v2444_v57, 0 }
  0x53   : > { %v1491_v33 = vrot.slane %v1490_v46, 4  ;;  %v1518_v26 = vor.u32 %v1517_v58, %v1514_v50  ;;  %v1669_v25 = vsel %vm2719_vm7, %v2128_v18, %v1668_v19  ;;  %v1676_v47 = vrot.slane %v2886_v5, 5  ;;  %v2124_v43 = vld [vmem:[%s2551_s4 + $0x38] sm:$0xe]  ;;  %v2126_v18 = vld [vmem:[%s2551_s4 + $0x48] sm:$0xe] }
  0x54   : > { %2245 = vmatpush3.bf16.msra.mxu1 %v779_v21  ;;  %v1482_v8 = vsel %vm2585_vm3, %v1477_v23, %v1481_v45  ;;  %v1510_v11 = vsel %vm2585_vm3, %v1505_v16, %v1509_v54  ;;  %v2019_v45 = vld [vmem:[%s2551_s4 + $0x28] sm:$0xf]  ;;  %v936_v34 = vshll.u32 %v2715_v51, 16  ;;  %v2130_v37 = vrot.slane %v2122_v62, 9  ;;  %v2023_v48 = vld [vmem:[%s2551_s4 + $0x38] sm:$0xf] }
  0x55   : > { %2314 = vmatprep.subr.bf16.mxu1 %v2515_v1  ;;  %v1496_v21 = vsel %vm2585_vm3, %v1491_v33, %v1495_v30  ;;  %v1519_v10 = vrot.slane %v1518_v26, 4  ;;  %v927_v31 = vshrl.u32 %v2019_v45, 16  ;;  %v2123_v30 = vld [vmem:[%s2551_s4 + $0x30] sm:$0xe]  ;;  %v930_v41 = vshll.u32 %v2019_v45, 16 }
  0x56   : > { %v2111_v4 = vcombine.low %v1482_v8, %v1496_v21  ;;  %v941_v38 = vshrl.u32 %v2021_v28, 16  ;;  %v944_v5 = vshll.u32 %v2021_v28, 16  ;;  %v950_v51 = vshll.u32 %v2725_v29, 16 }
  0x57   : > { %2239 = vmatmul.mubr.msk.bf16.gmra.mrb[4].mxu1 %vm358_vm4, %v1983_v7  ;;  %v1665_v7 = vsel %vm2719_vm7, %v2127_v17, %v1664_v15  ;;  %v1524_v52 = vsel %vm2585_vm3, %v1519_v10, %v1523_v59  ;;  %v929_v46 = vrot.slane %v927_v31, 4  ;;  %v932_v53 = vrot.slane %v930_v41, 5 }
  0x58   : > { %2246 = vmatprep.mubr.msk.bf16.mxu1 %vm358_vm4, %v2442_v42  ;;  %v2138_v56 = vcombine.low %v1665_v7, %v1669_v25  ;;  %v2112_v42 = vcombine.low %v1510_v11, %v1524_v52  ;;  %v2131_v23 = vrot.slane %v2123_v30, 9  ;;  %v1680_v27 = vrot.slane %v2915_v9, 5 }
  0x59   : > { %2295 = vmatmul.mubr.msk.bf16.vlgmr.msra.gmra.mrb[0].mxu0 %vm358_vm4, %v2110_v35  ;;  %v943_v15 = vrot.slane %v941_v38, 4  ;;  %v946_v33 = vrot.slane %v944_v5, 5  ;;  %v1684_v50 = vrot.slane %v2929_v12, 5  ;;  %v1677_v58 = vsel %vm2719_vm7, %v2130_v37, %v1676_v47 }
  0x5a   : > { %2303 = vmatpush3.bf16.msra.mxu0 %v2911_v55  ;;  %2298 = vmatprep.mubr.msk.bf16.mxu0 %vm358_vm4, %v2111_v4  ;;  %v3001_v55 = vsel %vm2719_vm7, %v2129_v22, %v1672_v49  ;;  %v933_v19 = vor.u32 %v932_v53, %v929_v46  ;;  %v938_v35 = vrot.slane %v936_v34, 5  ;;  %v955_v8 = vshrl.u32 %v2023_v48, 16 }
  0x5b   : > { %2391 = vmatprep.subr.msk.bf16.mxu0 %vm371_vm0, %v2444_v57  ;;  %v2132_v57 = vrot.slane %v2124_v43, 9  ;;  %v947_v29 = vor.u32 %v946_v33, %v943_v15  ;;  %v952_v9 = vrot.slane %v950_v51, 5  ;;  %v958_v61 = vshll.u32 %v2023_v48, 16 }
  0x5c   : > { %v969_v54 = vshrl.u32 %v2025_v44, 16  ;;  %v934_v12 = vrot.slane %v933_v19, 4  ;;  %v1681_v21 = vsel %vm2719_vm7, %v2131_v23, %v1680_v27  ;;  %v957_v26 = vrot.slane %v955_v8, 4 }
  0x5d   : > { %v972_v59 = vshll.u32 %v2025_v44, 16  ;;  %v948_v63 = vrot.slane %v947_v29, 4  ;;  %v1685_v0 = vsel %vm2719_vm7, %v2132_v57, %v1684_v50  ;;  %v960_v49 = vrot.slane %v958_v61, 5 }
  0x5e   : > { %2305 = vmatpush3.bf16.msra.mxu0 %v1732_v60  ;;  %v971_v4 = vrot.slane %v969_v54, 4  ;;  %v939_v16 = vsel %vm2585_vm3, %v934_v12, %v938_v35  ;;  %v964_v20 = vshll.u32 %v2729_v39, 16  ;;  %v978_v10 = vshll.u32 %v2760_v13, 16 }
  0x5f   : > { %2247 = vmatmul.mubr.msk.bf16.vlgmr.msra.gmra.mrb[0].mxu1 %vm358_vm4, %v2443_v2  ;;  %v974_v17 = vrot.slane %v972_v59, 5  ;;  %v953_v62 = vsel %vm2585_vm3, %v948_v63, %v952_v9  ;;  %v961_v22 = vor.u32 %v960_v49, %v957_v26  ;;  %v2139_v2 = vcombine.low %v3001_v55, %v1677_v58 }
  0x60   : > { %2316 = vmatpush3.bf16.msra.mxu1 %v2515_v1  ;;  %2250 = vmatprep.mubr.msk.bf16.mxu1 %vm358_vm4, %v2445_v36  ;;  %v2446_v1 = vld [vmem:[%s2551_s4 + $0x38] ss:$8 sps:$4 sm:$0xff]   ;;  %v2032_v11 = vcombine.low %v939_v16, %v953_v62  ;;  %v2140_v60 = vcombine.low %v1681_v21, %v1685_v0  ;;  %v1688_v45 = vrot.slane %v2949_v14, 5  ;;  %v2134_v28 = vrot.slane %v2126_v18, 9 }
  0x61   : > { %2299 = vmatmul.mubr.msk.bf16.gmra.mrb[4].mxu0 %vm358_vm4, %v2112_v42  ;;  %2387 = vmatprep.subr.msk.bf16.mxu1 %vm371_vm0, %v2524_v3  ;;  %v2125_v3 = vld [vmem:[%s2551_s4 + $0x40] sm:$0xe]  ;;  %v975_v7 = vor.u32 %v974_v17, %v971_v4  ;;  %v1692_v52 = vrot.slane %v2956_v40, 5  ;;  %v966_v39 = vrot.slane %v964_v20, 5  ;;  %v980_v13 = vrot.slane %v978_v10, 5 }
  0x62   : > { %2306 = vmatprep.mubr.msk.bf16.mxu0 %vm358_vm4, %v2138_v56  ;;  %v2133_v25 = vrot.slane %v2125_v3, 9 }
  0x63   : > { %v976_v47 = vrot.slane %v975_v7, 4  ;;  %v1693_v14 = vsel %vm2719_vm7, %v2134_v28, %v1692_v52 }
  0x64   : > { %2317 = vmatpush3.bf16.msra.mxu1 %v2540_v6  ;;  %v962_v6 = vrot.slane %v961_v22, 4  ;;  %v1689_v31 = vsel %vm2719_vm7, %v2133_v25, %v1688_v45 }
  0x65   : > { %v981_v34 = vsel %vm2585_vm3, %v976_v47, %v980_v13  ;;  %v2141_v30 = vcombine.low %v1689_v31, %v1693_v14 }
  0x66   : > { %v967_v40 = vsel %vm2585_vm3, %v962_v6, %v966_v39 }
  0x67   : > { %2251 = vmatmul.mubr.msk.bf16.gmra.mrb[4].mxu1 %vm358_vm4, %v2446_v1  ;;  %v2033_v36 = vcombine.low %v967_v40, %v981_v34 }
  0x68   : > { %2262 = vmatprep.mubr.msk.bf16.mxu1 %vm358_vm4, %v2032_v11 }
  0x69   : > { %2307 = vmatmul.mubr.msk.bf16.vlgmr.msra.gmra.mrb[0].mxu0 %vm358_vm4, %v2139_v2 }
  0x6a   : > { %2310 = vmatprep.mubr.msk.bf16.mxu0 %vm358_vm4, %v2140_v60 }
  0x71   : > { %2311 = vmatmul.mubr.msk.bf16.gmra.mrb[4].mxu0 %vm358_vm4, %v2141_v30 }
  0x73   : > { %2263 = vmatmul.mubr.msk.bf16.vlgmr.msra.gmra.mrb[4].mxu1 %vm358_vm4, %v2033_v36 }
 0x132   : > { %v2248_v56 = vpop.f32.mrb[0].mxu1 }
 0x133   : > { %v815_v55 = vpop.f32.mrb[1].mxu1 }
 0x134   : > { %v2249_v37 = vpop.f32.mrb[2].mxu1 }
 0x135   : > { %v818_v41 = vpop.f32.mrb[3].mxu1 }
 0x13c   : > { %v2308_v43 = vpop.f32.mrb[0].mxu0 }
 0x13d   : > { %v2318_v42 = vadd.f32 %v2308_v43, %v2248_v56  ;;  %v1768_v46 = vpop.f32.mrb[1].mxu0 }
 0x13e   : > { %v2319_v32 = vadd.f32 %v1768_v46, %v815_v55  ;;  %v2309_v38 = vpop.f32.mrb[2].mxu0 }
 0x13f   : > { %v1816_v5 = vadd.f32 %v2318_v42, %v2148_v24  ;;  %v2320_v48 = vadd.f32 %v2309_v38, %v2249_v37  ;;  %v1771_v53 = vpop.f32.mrb[3].mxu0 }
 0x140   : > { %v1814_v51 = vadd.f32 %v2319_v32, %v2148_v24  ;;  %v2321_v23 = vadd.f32 %v1771_v53, %v818_v41 }
 0x141   : > { %v1824_v27 = vmax.f32 %v1816_v5, 0.0  ;;  %v1817_v44 = vadd.f32 %v2320_v48, %v2148_v24 }
 0x142   : > { %v1822_v15 = vmax.f32 %v1814_v51, 0.0  ;;  %v1815_v33 = vadd.f32 %v2321_v23, %v2148_v24 }
 0x143   : > { %v1832_v57 = vpack.c.bf16 %v1824_v27, %v1824_v27  ;;  %v1825_v50 = vmax.f32 %v1817_v44, 0.0 }
 0x144   : > { %v1830_v58 = vpack.c.bf16 %v1822_v15, %v1822_v15  ;;  %v1823_v19 = vmax.f32 %v1815_v33, 0.0  ;;  %v2312_v35 = vpop.f32.mrb[4].mxu0 }
 0x145   : > { %1841 = vst.msk [vmem:[%s3056_s11 + $0x8] sm:$0xf] %vm1838_vm8, %v1832_v57  ;;  %v1833_v8 = vpack.c.bf16 %v1825_v50, %v1825_v50  ;;  %v1784_v29 = vpop.f32.mrb[5].mxu0 }
 0x146   : > { %1839 = vst.msk [vmem:[%s3056_s11] sm:$0xf] %vm1838_vm8, %v1830_v58  ;;  %v1831_v9 = vpack.c.bf16 %v1823_v19, %v1823_v19  ;;  %v2264_v61 = vpop.f32.mrb[4].mxu1  ;;  %v2313_v54 = vpop.f32.mrb[6].mxu0 }
 0x147   : > { %1842 = vst.msk [vmem:[%s3056_s11 + $0xc] sm:$0xf] %vm1838_vm8, %v1833_v8  ;;  %v2322_v12 = vadd.f32 %v2312_v35, %v2264_v61  ;;  %v1072_v21 = vpop.f32.mrb[5].mxu1  ;;  %v1787_v26 = vpop.f32.mrb[7].mxu0 }
 0x148   : > { %1840 = vst.msk [vmem:[%s3056_s11 + $0x4] sm:$0xf] %vm1838_vm8, %v1831_v9  ;;  %v2323_v59 = vadd.f32 %v1784_v29, %v1072_v21  ;;  %v2265_v1 = vpop.f32.mrb[6].mxu1 }
 0x149   : > { %v1820_v63 = vadd.f32 %v2322_v12, %v2148_v24  ;;  %v2324_v0 = vadd.f32 %v2313_v54, %v2265_v1  ;;  %v1075_v49 = vpop.f32.mrb[7].mxu1 }
 0x14a   : > { %v1818_v4 = vadd.f32 %v2323_v59, %v2148_v24  ;;  %v2325_v16 = vadd.f32 %v1787_v26, %v1075_v49 }
 0x14b   : > { %v1828_v17 = vmax.f32 %v1820_v63, 0.0  ;;  %v1821_v3 = vadd.f32 %v2324_v0, %v2148_v24 }
 0x14c   : > { %v1826_v18 = vmax.f32 %v1818_v4, 0.0  ;;  %v1819_v20 = vadd.f32 %v2325_v16, %v2148_v24 }
 0x14d   : > { %v1836_v10 = vpack.c.bf16 %v1828_v17, %v1828_v17  ;;  %v1829_v62 = vmax.f32 %v1821_v3, 0.0 }
 0x14e   : > { %v1834_v22 = vpack.c.bf16 %v1826_v18, %v1826_v18  ;;  %v1827_v2 = vmax.f32 %v1819_v20, 0.0 }
 0x14f   : > { %1845 = vst.msk [vmem:[%s3056_s11 + $0x18] sm:$0xf] %vm1838_vm8, %v1836_v10  ;;  %v1837_v11 = vpack.c.bf16 %v1829_v62, %v1829_v62 }
 0x150   : > { %1843 = vst.msk [vmem:[%s3056_s11 + $0x10] sm:$0xf] %vm1838_vm8, %v1834_v22  ;;  %v1835_v60 = vpack.c.bf16 %v1827_v2, %v1827_v2 }
 0x151   : > { %1846 = vst.msk [vmem:[%s3056_s11 + $0x1c] sm:$0xf] %vm1838_vm8, %v1837_v11 }
 0x152   : > { %1844 = vst.msk [vmem:[%s3056_s11 + $0x14] sm:$0xf] %vm1838_vm8, %v1835_v60 }
 0x153 PF: > { %s13_s14 = sadd.s32 1, %s2469_s14   ;;  %s3091_s12 = smov %s2465_s13 }
 0x154   : > { %p10_p5 = scmp.ge.s32.totalorder %s13_s14, 4   ;;  %s3092_s13 = smov %s3094_s15 }
 0x156   :  { %12 = sbr.rel (!%p10_p5) target bundleno = 2 (0x2), region = 73 }

// kernel: dctvfinet_forward.25
= control target key start
LH: loop header
LB: loop body
LE: loop exit
PB: predicated region body
PF: predicated region fallthrough
CT: control target
= control target key end

     0   :  { %s1851_s0 = inlined_call_operand.vmem [shape: f32[2,1], index: 0, kind: input, shape index: {}]   ;;  %s1852_s1 = inlined_call_operand.vmem [shape: f32[2,6,16,16], index: 1, kind: input, shape index: {}]   ;;  %s1853_s2 = inlined_call_operand.vmem [shape: f32[2,3,16,16], index: 2, kind: input, shape index: {}]   ;;  %s1854_s3 = inlined_call_operand.vmem [shape: f32[2,3,16,16], index: 3, kind: input, shape index: {}]   ;;  %s1855_s4 = inlined_call_operand.vmem [shape: f32[2,3,16,16], index: 4, kind: input, shape index: {}]   ;;  %s1856_s5 = inlined_call_operand.vmem [shape: f32[2,3,16,16], index: 5, kind: input, shape index: {}]   ;;  %s1857_s6 = inlined_call_operand.vmem [shape: f32[2,3,16,16], index: 6, kind: input, shape index: {}]   ;;  %s1858_s7 = inlined_call_operand.vmem [shape: f32[2,3,16,16], index: 7, kind: input, shape index: {}]   ;;  %s1859_s8 = inlined_call_operand.hbm [shape: f32[2,3,16,16], index: 8, kind: output, shape index: {0}]   ;;  %s1860_s9 = inlined_call_operand.hbm [shape: f32[2,1,16,16], index: 9, kind: output, shape index: {1}]  }
   0x1   :  { %1862 = sst [smem:[#allocation11_spill]] %s1851_s0 }
   0x2   :  { %15 = vsyncpa [#allocation4], 0 }
   0x3   :  { %16 = vsyncpa [#allocation3], 0 }
   0x4   :  { %18 = vsyncpa [#allocation3 + $0x1], 0 }
   0x5   :  { %19 = vsyncpa [#allocation7], 0 }
   0x6   :  { %21 = vsyncpa [#allocation7 + $0x1], 0  ;;  %s1443_s30 = smov 0   ;;  %s1445_s10 = smov 0  }
   0x7   :  { %s1447_s11 = smov 0   ;;  %s1449_s12 = smov 0  }
   0x8   :  { %s1451_s13 = smov 0   ;;  %s1453_s14 = smov 0  }
   0x9 LB: > { %s1125_s15 = sadd.s32 4294967295, %s1386_s14   ;;  %s1126_s16 = sadd.s32 4294967294, %s1386_s14   ;;  %s1386_s14 = sphi %s1453_s14, %s27_s14   ;;  %s1382_s13 = sphi %s1451_s13, %s1874_s13   ;;  %s1378_s12 = sphi %s1449_s12, %s1873_s12   ;;  %s1374_s11 = sphi %s1447_s11, %s1872_s11   ;;  %s1370_s10 = sphi %s1445_s10, %s1871_s10   ;;  %s1366_s30 = sphi %s1443_s30, %s1870_s30  }
   0xa   : > { %s39_s17 = sadd.s32 1, %s1382_s13  ;;  %s265_s18 = sadd.s32 1, %s1374_s11 }
   0xb   : > { %p41_p0 = scmp.ge.s32.totalorder %s39_s17, 2  ;;  %p275_p1 = scmp.ne.s32.totalorder %s1374_s11, %s1370_s10 }
   0xc   : > { %p276_p2 = scmp.eq.s32.totalorder %s1125_s15, 1  ;;  %p281_p3 = scmp.ne.s32.totalorder %s1370_s10, %s1366_s30 }
   0xd   : > { %s1876_s17 = smov (%p41_p0, %s39_s17), 0  ;;  %p282_p5 = scmp.eq.s32.totalorder %s1126_s16, 1 }
   0xe   : > { %p1483_p4 = por %p276_p2, %p275_p1  ;;  %s260_s20 = ssub.s32 %s1382_s13, %s1876_s17 }
   0xf   : > { %p1127_p6 = scmp.ge.s32.totalorder %s1386_s14, 1  ;;  %p263_p7 = scmp.eq.s32.totalorder %s260_s20, 0 }
  0x10   : > { %p1490_p8 = por %p282_p5, %p281_p3  ;;  %p317_p9 = scmp.lt.s32.totalorder %s1386_s14, 3 }
  0x11   : > { %s1496_s22 = scalar_select %p263_p7, %s1374_s11, %s265_s18  }
  0x12   : > { %p1498_p10 = pnand %p1127_p6, %p317_p9  ;;  %p1502_p11 = scmp.eq.s32.totalorder %s1125_s15, 0 }
  0x13   : > { %s1867_s0 = sld [smem:[#allocation11_spill]] }
  0x14   : > { %p1160_p12 = pneg %p1498_p10 }
  0x16   : > { %p1161_p13 = pnand %p1502_p11, %p1160_p12 }
  0x18   : > { %p1259_p1 = pneg %p1161_p13 }
  0x19   : > { %s330_s27 = sshll.u32 %s1867_s0, 4  ;;  %s331_s27 = int_to_ptr.vmem [resolvable:$true] %s330_s27 }
  0x1a   : > { %s1257_s28 = scalar_lea.vmem %s331_s27, 32  ;;  %p1265_p5 = scmp.lt.s32.totalorder %s331_s27, %s331_s27 }
  0x1b   : > { %p1258_p0 = scmp.ne.s32.totalorder %s331_s27, %s1257_s28  ;;  %p1266_p6 = scmp.lt.s32.totalorder %s1257_s28, %s1257_s28 }
  0x1d   : > { %p1260_p2 = pnand %p1259_p1, %p1258_p0  ;;  %p1267_p7 = por %p1266_p6, %p1265_p5 }
  0x1f   : > { %p1261_p3 = pneg %p1260_p2 }
  0x21   : > { %p1268_p9 = pnand %p1267_p7, %p1261_p3 }
  0x23   : > { %1271 = shalt.err (!%p1268_p9)
}
  0x24   : > { %s1388_s29 = smov [#allocation2]   ;;  %434 = sbr.rel (%p1498_p10) target bundleno = 150 (0x96), region = 52 }
  0x25   : > { %1163 = dma.vmem_to_smem (!%p1161_p13), %s331_s27, 32, %s1388_s29, [#allocation4]  }
  0x2b   : > { %1353 = dma.done.wait (%p1502_p11), [#allocation4], 32  }
  0x2c   : > { %1355 = vsyncadd (%p1502_p11), [#allocation4], 4294967264 }
  0x2d   : > { %440 = sfence }
  0x2e   : > { %p535_p12 = scmp.lt.s32.totalorder %s1378_s12, 1  ;;  %vm621_vm0 = vcmask 130048   ;;  %s1140_s24 = sshll.u32 %s1378_s12, 7 }
  0x2f   : > { %s1540_s25 = sld [smem:[#allocation2 + %s1140_s24]] }
  0x30   : > { %s1521_s15 = scalar_select %p535_p12, %s1378_s12, 1 }
  0x32   : > { %s1149_s16 = smul.u32 96, %s1521_s15 }
  0x33   : > { %s1543_s26 = smul.u32 48, %s1521_s15 }
  0x34   : > { %s542_s23 = scalar_lea.vmem %s1852_s1, %s1149_s16 }
  0x35   : > { %v609_v0 = vld [vmem:[%s542_s23] sm:$0xff]  ;;  %v611_v1 = vld [vmem:[%s542_s23 + $0x10] sm:$0xff]  ;;  %v610_v13 = vld [vmem:[%s542_s23 + $0x8] sm:$0xff]  ;;  %s608_s27 = ssub.f32 1.0, %s1540_s25  ;;  %s1550_s16 = scalar_lea.vmem %s1853_s2, %s1543_s26  ;;  %v1561_v59 = vstv %s1540_s25 }
  0x36   : > { %v613_v2 = vld [vmem:[%s542_s23 + $0x20] sm:$0xff]  ;;  %v615_v3 = vld [vmem:[%s542_s23 + $0x30] sm:$0xff]  ;;  %v622_v6 = vsel %vm621_vm0, %v609_v0, -inf  ;;  %v623_v7 = vsel %vm621_vm0, %v611_v1, -inf  ;;  %v612_v14 = vld [vmem:[%s542_s23 + $0x18] sm:$0xff]  ;;  %v633_v20 = vsel %vm621_vm0, %v610_v13, -inf  ;;  %s1556_s20 = scalar_lea.vmem %s1854_s3, %s1543_s26  ;;  %s1569_s28 = scalar_lea.vmem %s1855_s4, %s1543_s26 }
  0x37   : > { %v617_v4 = vld [vmem:[%s542_s23 + $0x40] sm:$0xff]  ;;  %v619_v5 = vld [vmem:[%s542_s23 + $0x50] sm:$0xff]  ;;  %v624_v8 = vsel %vm621_vm0, %v613_v2, -inf  ;;  %v626_v10 = vsel %vm621_vm0, %v615_v3, -inf  ;;  %v614_v15 = vld [vmem:[%s542_s23 + $0x28] sm:$0xff]  ;;  %v634_v21 = vsel %vm621_vm0, %v612_v14, -inf  ;;  %v1558_v58 = vstv %s608_s27  ;;  %s1578_s25 = scalar_lea.vmem %s1856_s5, %s1543_s26  ;;  %s1616_s29 = scalar_lea.vmem %s1858_s7, %s1543_s26 }
  0x38   : > { %v625_v9 = vmax.f32 %v622_v6, %v624_v8  ;;  %v628_v11 = vsel %vm621_vm0, %v617_v4, -inf  ;;  %v630_v12 = vsel %vm621_vm0, %v619_v5, -inf  ;;  %v627_v16 = vmax.f32 %v623_v7, %v626_v10  ;;  %v616_v17 = vld [vmem:[%s542_s23 + $0x38] sm:$0xff]  ;;  %v618_v18 = vld [vmem:[%s542_s23 + $0x48] sm:$0xff]  ;;  %v726_v61 = vld [vmem:[%s1550_s16] sm:$0xff] }
  0x39   : > { %v620_v19 = vld [vmem:[%s542_s23 + $0x58] sm:$0xff]  ;;  %v635_v22 = vsel %vm621_vm0, %v614_v15, -inf  ;;  %v637_v25 = vsel %vm621_vm0, %v616_v17, -inf  ;;  %v639_v26 = vsel %vm621_vm0, %v618_v18, -inf  ;;  %v760_v10 = vld [vmem:[%s1569_s28] sm:$0xff]  ;;  %s1598_s23 = scalar_lea.vmem %s1857_s6, %s1543_s26  ;;  %s1654_s26 = sand.u32 1, %s1370_s10  }
  0x3a   : > { %v629_v23 = vmax.f32 %v625_v9, %v628_v11  ;;  %v636_v24 = vmax.f32 %v633_v20, %v635_v22  ;;  %v631_v27 = vmax.f32 %v627_v16, %v630_v12  ;;  %v638_v28 = vmax.f32 %v634_v21, %v637_v25  ;;  %v780_v16 = vld [vmem:[%s1578_s25] sm:$0xff]  ;;  %s1148_s15 = smul.u32 48, %s1654_s26  ;;  %s1132_s18 = sshll.u32 %s1654_s26, 4 }
  0x3b   : > { %v641_v29 = vsel %vm621_vm0, %v620_v19, -inf }
  0x3c   : > { %v640_v30 = vmax.f32 %v636_v24, %v639_v26  ;;  %v632_v31 = vmax.f32 %v629_v23, %v631_v27  ;;  %v642_v32 = vmax.f32 %v638_v28, %v641_v29  ;;  %s1713_s24 = scalar_lea.vmem [#allocation5], %s1148_s15 }
  0x3e   : > { %v644_v33 = vsub.f32 %v609_v0, %v632_v31  ;;  %v646_v34 = vsub.f32 %v611_v1, %v632_v31  ;;  %v648_v35 = vsub.f32 %v613_v2, %v632_v31  ;;  %v650_v36 = vsub.f32 %v615_v3, %v632_v31  ;;  %v740_v1 = vld [vmem:[%s1556_s20] sm:$0xff] }
  0x3f   : > { %v652_v37 = vsub.f32 %v617_v4, %v632_v31  ;;  %v654_v38 = vsub.f32 %v619_v5, %v632_v31  ;;  %v643_v39 = vmax.f32 %v640_v30, %v642_v32  ;;  %v800_v32 = vld [vmem:[%s1598_s23] sm:$0xff] }
  0x40   : > { %v656_v40 = vmul.f32 1.442695, %v644_v33  ;;  %v660_v41 = vmul.f32 1.442695, %v646_v34  ;;  %v664_v42 = vmul.f32 1.442695, %v648_v35 }
  0x41   : > { %v668_v43 = vmul.f32 1.442695, %v650_v36  ;;  %v645_v44 = vsub.f32 %v610_v13, %v643_v39  ;;  %v672_v45 = vmul.f32 1.442695, %v652_v37  ;;  %v647_v46 = vsub.f32 %v612_v14, %v643_v39 }
  0x42   : > { %1225 = vpow2.f32 %v656_v40  ;;  %v649_v47 = vsub.f32 %v614_v15, %v643_v39  ;;  %v676_v48 = vmul.f32 1.442695, %v654_v38  ;;  %v651_v49 = vsub.f32 %v616_v17, %v643_v39 }
  0x43   : > { %1227 = vpow2.f32 %v660_v41  ;;  %v653_v50 = vsub.f32 %v618_v18, %v643_v39  ;;  %v658_v51 = vmul.f32 1.442695, %v645_v44  ;;  %v655_v52 = vsub.f32 %v620_v19, %v643_v39 }
  0x44   : > { %1229 = vpow2.f32 %v664_v42  ;;  %v662_v53 = vmul.f32 1.442695, %v647_v46  ;;  %v666_v54 = vmul.f32 1.442695, %v649_v47  ;;  %v670_v55 = vmul.f32 1.442695, %v651_v49 }
  0x45   : > { %1231 = vpow2.f32 %v668_v43  ;;  %v674_v56 = vmul.f32 1.442695, %v653_v50  ;;  %v678_v57 = vmul.f32 1.442695, %v655_v52  ;;  %v820_v43 = vld [vmem:[%s1616_s29] sm:$0xff] }
  0x46   : > { %1233 = vpow2.f32 %v672_v45 }
  0x47   : > { %1235 = vpow2.f32 %v676_v48 }
  0x48   : > { %1237 = vpow2.f32 %v658_v51 }
  0x49   : > { %1239 = vpow2.f32 %v662_v53 }
  0x4a   : > { %1241 = vpow2.f32 %v666_v54 }
  0x4b   : > { %1243 = vpow2.f32 %v670_v55 }
  0x4c   : > { %v1563_v60 = vpop.eup %1225  ;;  %1245 = vpow2.f32 %v674_v56  ;;  %v727_v56 = vld [vmem:[%s1550_s16 + $0x8] sm:$0xff] }
  0x4d   : > { %v1228_v62 = vpop.eup %1227  ;;  %v680_v63 = vsel %vm621_vm0, %v1563_v60, 0.0  ;;  %1247 = vpow2.f32 %v678_v57  ;;  %v1582_v0 = vmul.f32 %v1563_v60, %v1558_v58 }
  0x4e   : > { %v1230_v2 = vpop.eup %1229  ;;  %v681_v3 = vsel %vm621_vm0, %v1228_v62, 0.0  ;;  %v1587_v4 = vmul.f32 %v1228_v62, %v1561_v59 }
  0x4f   : > { %v1232_v5 = vpop.eup %1231  ;;  %v682_v6 = vadd.f32 %v681_v3, %v680_v63  ;;  %v683_v7 = vsel %vm621_vm0, %v1230_v2, 0.0  ;;  %v708_v8 = vadd.f32 %v1230_v2, %v1563_v60  ;;  %v732_v9 = vmul.f32 %v726_v61, %v1582_v0  ;;  %v741_v63 = vld [vmem:[%s1556_s20 + $0x8] sm:$0xff] }
  0x50   : > { %v1234_v11 = vpop.eup %1233  ;;  %v685_v12 = vsel %vm621_vm0, %v1232_v5, 0.0  ;;  %v715_v13 = vadd.f32 %v1232_v5, %v1228_v62  ;;  %v746_v14 = vmul.f32 %v740_v1, %v1587_v4  ;;  %v1602_v15 = vmul.f32 %v1230_v2, %v1558_v58  ;;  %v761_v1 = vld [vmem:[%s1569_s28 + $0x8] sm:$0xff] }
  0x51   : > { %v1236_v17 = vpop.eup %1235  ;;  %v684_v18 = vadd.f32 %v683_v7, %v682_v6  ;;  %v687_v19 = vsel %vm621_vm0, %v1234_v11, 0.0  ;;  %v710_v20 = vadd.f32 %v1234_v11, %v708_v8  ;;  %v1607_v21 = vmul.f32 %v1232_v5, %v1561_v59 }
  0x52   : > { %v1609_v22 = vpop.eup %1237  ;;  %v689_v23 = vsel %vm621_vm0, %v1236_v17, 0.0  ;;  %v717_v24 = vadd.f32 %v1236_v17, %v715_v13  ;;  %v752_v25 = vadd.f32 %v746_v14, %v732_v9  ;;  %v766_v26 = vmul.f32 %v760_v10, %v1602_v15  ;;  %v742_v13 = vld [vmem:[%s1556_s20 + $0x10] sm:$0xff] }
  0x53   : > { %v1240_v27 = vpop.eup %1239  ;;  %v686_v28 = vadd.f32 %v685_v12, %v684_v18  ;;  %v691_v29 = vsel %vm621_vm0, %v1609_v22, 0.0  ;;  %v713_v30 = vmul.f32 %v1558_v58, %v710_v20  ;;  %v786_v31 = vmul.f32 %v780_v16, %v1607_v21  ;;  %v728_v12 = vld [vmem:[%s1550_s16 + $0x10] sm:$0xff] }
  0x54   : > { %v1242_v33 = vpop.eup %1241  ;;  %v692_v34 = vsel %vm621_vm0, %v1240_v27, 0.0  ;;  %v720_v35 = vmul.f32 %v1561_v59, %v717_v24  ;;  %v772_v36 = vadd.f32 %v766_v26, %v752_v25  ;;  %v1627_v37 = vmul.f32 %v1234_v11, %v1558_v58  ;;  %v781_v11 = vld [vmem:[%s1578_s25 + $0x8] sm:$0xff]  ;;  %v782_v26 = vld [vmem:[%s1578_s25 + $0x10] sm:$0xff] }
  0x55   : > { %v1244_v38 = vpop.eup %1243  ;;  %v688_v39 = vadd.f32 %v687_v19, %v686_v28  ;;  %v693_v40 = vadd.f32 %v692_v34, %v691_v29  ;;  %v694_v41 = vsel %vm621_vm0, %v1242_v33, 0.0  ;;  %v1631_v42 = vmul.f32 %v1236_v17, %v1561_v59  ;;  %v762_v19 = vld [vmem:[%s1569_s28 + $0x10] sm:$0xff]  ;;  %v801_v24 = vld [vmem:[%s1598_s23 + $0x8] sm:$0xff] }
  0x56   : > { %v1246_v44 = vpop.eup %1245  ;;  %v696_v45 = vsel %vm621_vm0, %v1244_v38, 0.0  ;;  %v722_v46 = vadd.f32 %v720_v35, %v713_v30  ;;  %v792_v47 = vadd.f32 %v786_v31, %v772_v36  ;;  %v806_v48 = vmul.f32 %v800_v32, %v1627_v37  ;;  %v821_v29 = vld [vmem:[%s1616_s29 + $0x8] sm:$0xff]  ;;  %v729_v31 = vld [vmem:[%s1550_s16 + $0x18] sm:$0xff]  ;;  %v802_v35 = vld [vmem:[%s1598_s23 + $0x10] sm:$0xff] }
  0x57   : > { %v1248_v49 = vpop.eup %1247  ;;  %v690_v50 = vadd.f32 %v689_v23, %v688_v39  ;;  %v695_v51 = vadd.f32 %v694_v41, %v693_v40  ;;  %v698_v52 = vsel %vm621_vm0, %v1246_v44, 0.0  ;;  %v826_v54 = vmul.f32 %v820_v43, %v1631_v42  ;;  %v743_v32 = vld [vmem:[%s1556_s20 + $0x18] sm:$0xff]  ;;  %v822_v43 = vld [vmem:[%s1616_s29 + $0x10] sm:$0xff] }
  0x58   : > { %v700_v53 = vsel %vm621_vm0, %v1248_v49, 0.0  ;;  %1249 = vrcp.f32 %v722_v46  ;;  %v709_v55 = vadd.f32 %v1242_v33, %v1609_v22  ;;  %v716_v61 = vadd.f32 %v1244_v38, %v1240_v27  ;;  %v763_v36 = vld [vmem:[%s1569_s28 + $0x18] sm:$0xff] }
  0x59   : > { %1251 = vrcp.f32 %v690_v50  ;;  %v697_v57 = vadd.f32 %v696_v45, %v695_v51  ;;  %v1643_v62 = vmul.f32 %v1609_v22, %v1558_v58  ;;  %v812_v2 = vadd.f32 %v806_v48, %v792_v47  ;;  %v730_v48 = vld [vmem:[%s1550_s16 + $0x20] sm:$0xff] }
  0x5a   : > { %v711_v3 = vadd.f32 %v1246_v44, %v709_v55  ;;  %v1648_v5 = vmul.f32 %v1240_v27, %v1561_v59  ;;  %v1651_v6 = vmul.f32 %v1242_v33, %v1558_v58  ;;  %v718_v8 = vadd.f32 %v1248_v49, %v716_v61  ;;  %v744_v55 = vld [vmem:[%s1556_s20 + $0x20] sm:$0xff] }
  0x5b   : > { %v699_v7 = vadd.f32 %v698_v52, %v697_v57  ;;  %v733_v9 = vmul.f32 %v727_v56, %v1643_v62  ;;  %v1658_v10 = vmul.f32 %v1244_v38, %v1561_v59  ;;  %v1667_v18 = vmul.f32 %v1246_v44, %v1558_v58  ;;  %v783_v44 = vld [vmem:[%s1578_s25 + $0x18] sm:$0xff]  ;;  %v764_v56 = vld [vmem:[%s1569_s28 + $0x20] sm:$0xff] }
  0x5c   : > { %v714_v14 = vmul.f32 %v1558_v58, %v711_v3  ;;  %v747_v16 = vmul.f32 %v741_v63, %v1648_v5  ;;  %v767_v17 = vmul.f32 %v761_v1, %v1651_v6  ;;  %v721_v23 = vmul.f32 %v1561_v59, %v718_v8  ;;  %v823_v3 = vld [vmem:[%s1616_s29 + $0x18] sm:$0xff] }
  0x5d   : > { %v701_v20 = vadd.f32 %v700_v53, %v699_v7  ;;  %v1673_v25 = vmul.f32 %v1248_v49, %v1561_v59  ;;  %v787_v28 = vmul.f32 %v781_v11, %v1658_v10  ;;  %v734_v58 = vmul.f32 %v728_v12, %v1582_v0  ;;  %v784_v7 = vld [vmem:[%s1578_s25 + $0x20] sm:$0xff] }
  0x5e   : > { %v753_v27 = vadd.f32 %v747_v16, %v733_v9  ;;  %v748_v30 = vmul.f32 %v742_v13, %v1587_v4  ;;  %v832_v33 = vadd.f32 %v826_v54, %v812_v2  ;;  %v723_v59 = vadd.f32 %v721_v23, %v714_v14  ;;  %v803_v54 = vld [vmem:[%s1598_s23 + $0x18] sm:$0xff]  ;;  %v731_v13 = vld [vmem:[%s1550_s16 + $0x28] sm:$0xff]  ;;  %s1724_s16 = scalar_lea.vmem [#allocation6], %s1132_s18  ;;  %s1389_s18 = smov [#allocation6]  }
  0x5f   : > { %1253 = vrcp.f32 %v701_v20  ;;  %v768_v34 = vmul.f32 %v762_v19, %v1602_v15  ;;  %v807_v39 = vmul.f32 %v801_v24, %v1667_v18  ;;  %v788_v41 = vmul.f32 %v782_v26, %v1607_v21  ;;  %v745_v14 = vld [vmem:[%s1556_s20 + $0x28] sm:$0xff]  ;;  %v804_v20 = vld [vmem:[%s1598_s23 + $0x20] sm:$0xff]  ;;  %s891_s20 = sshll.u32 %s1724_s16, 4  ;;  %s1739_s20 = int_to_ptr.vmem [resolvable:$true] %s891_s20 }
  0x60   : > { %v773_v38 = vadd.f32 %v767_v17, %v753_v27  ;;  %v754_v40 = vadd.f32 %v748_v30, %v734_v58  ;;  %v827_v45 = vmul.f32 %v821_v29, %v1673_v25  ;;  %1255 = vrcp.f32 %v723_v59  ;;  %v805_v59 = vld [vmem:[%s1598_s23 + $0x28] sm:$0xff]  ;;  %s1272_s15 = scalar_lea.vmem %s1739_s20, 256 }
  0x61   : > { %v735_v46 = vmul.f32 %v729_v31, %v1643_v62  ;;  %v749_v47 = vmul.f32 %v743_v32, %v1648_v5  ;;  %v808_v52 = vmul.f32 %v802_v35, %v1627_v37  ;;  %v769_v53 = vmul.f32 %v763_v36, %v1651_v6  ;;  %p1273_p10 = scmp.ne.s32.totalorder %s1739_s20, %s1272_s15 }
  0x62   : > { %v1695_v49 = vpop.eup %1249  ;;  %v793_v50 = vadd.f32 %v787_v28, %v773_v38  ;;  %v774_v51 = vadd.f32 %v768_v34, %v754_v40  ;;  %v828_v63 = vmul.f32 %v822_v43, %v1631_v42  ;;  %v789_v2 = vmul.f32 %v783_v44, %v1658_v10 }
  0x63   : > { %v1252_v57 = vpop.eup %1251  ;;  %v839_v61 = vmul.f32 %v1695_v49, %v832_v33  ;;  %v755_v1 = vadd.f32 %v749_v47, %v735_v46  ;;  %v736_v12 = vmul.f32 %v730_v48, %v1582_v0  ;;  %v809_v17 = vmul.f32 %v803_v54, %v1667_v18  ;;  %v765_v0 = vld [vmem:[%s1569_s28 + $0x28] sm:$0xff]  ;;  %s1147_s28 = sshll.u32 %s1378_s12, 8  ;;  %p1274_p11 = pnand %p1273_p10, %p1483_p4 }
  0x64   : > { %v704_v8 = vmul.f32 %v1252_v57, %v1563_v60  ;;  %v813_v9 = vadd.f32 %v807_v39, %v793_v50  ;;  %v794_v11 = vadd.f32 %v788_v41, %v774_v51  ;;  %v750_v19 = vmul.f32 %v744_v55, %v1587_v4  ;;  %v785_v4 = vld [vmem:[%s1578_s25 + $0x28] sm:$0xff]  ;;  %s1749_s27 = scalar_lea.hbm %s1860_s9, %s1147_s28  ;;  %s1276_s28 = sshll.u32 %s1389_s18, 4  ;;  %s1277_s28 = int_to_ptr.vmem [resolvable:$false] %s1276_s28 }
  0x65   : > { %846 = vst.msk [vmem:[%s1713_s24] sm:$0xff] %vm621_vm0, %v839_v61  ;;  %v775_v16 = vadd.f32 %v769_v53, %v755_v1  ;;  %v770_v60 = vmul.f32 %v764_v56, %v1602_v15  ;;  %v829_v24 = vmul.f32 %v823_v3, %v1673_v25  ;;  %v790_v26 = vmul.f32 %v784_v7, %v1607_v21  ;;  %v824_v15 = vld [vmem:[%s1616_s29 + $0x20] sm:$0xff]  ;;  %p1275_p13 = pneg %p1274_p11  ;;  %s1278_s25 = scalar_lea.vmem %s1277_s28, 512 }
  0x66   : > { %706 = vst.msk [vmem:[%s1724_s16] sm:$0xff] %vm621_vm0, %v704_v8  ;;  %v814_v23 = vadd.f32 %v808_v52, %v794_v11  ;;  %v756_v28 = vadd.f32 %v750_v19, %v736_v12  ;;  %v737_v29 = vmul.f32 %v731_v13, %v1643_v62  ;;  %v751_v58 = vmul.f32 %v745_v14, %v1648_v5  ;;  %p1279_p0 = scmp.lt.s32.totalorder %s1739_s20, %s1277_s28  ;;  %p1280_p1 = scmp.lt.s32.totalorder %s1278_s25, %s1272_s15 }
  0x67   : > { %v795_v27 = vadd.f32 %v789_v2, %v775_v16  ;;  %v833_v30 = vadd.f32 %v827_v45, %v813_v9  ;;  %v810_v32 = vmul.f32 %v804_v20, %v1627_v37  ;;  %v771_v33 = vmul.f32 %v765_v0, %v1651_v6  ;;  %v825_v6 = vld [vmem:[%s1616_s29 + $0x28] sm:$0xff] }
  0x68   : > { %v834_v31 = vadd.f32 %v828_v63, %v814_v23  ;;  %v776_v35 = vadd.f32 %v770_v60, %v756_v28  ;;  %v757_v36 = vadd.f32 %v751_v58, %v737_v29  ;;  %v791_v62 = vmul.f32 %v785_v4, %v1658_v10  ;;  %p1281_p2 = por %p1280_p1, %p1279_p0 }
  0x69   : > { %v1254_v34 = vpop.eup %1253  ;;  %v815_v21 = vadd.f32 %v809_v17, %v795_v27  ;;  %v830_v37 = vmul.f32 %v824_v15, %v1631_v42  ;;  %v831_v46 = vmul.f32 %v825_v6, %v1673_v25 }
  0x6a   : > { %v705_v5 = vmul.f32 %v1254_v34, %v1609_v22  ;;  %v842_v38 = vmul.f32 %v1695_v49, %v834_v31  ;;  %v1256_v39 = vpop.eup %1255  ;;  %v796_v41 = vadd.f32 %v790_v26, %v776_v35  ;;  %v777_v10 = vadd.f32 %v771_v33, %v757_v36  ;;  %p1282_p3 = pnand %p1281_p2, %p1275_p13 }
  0x6b   : > { %v835_v40 = vadd.f32 %v829_v24, %v815_v21  ;;  %v811_v22 = vmul.f32 %v805_v59, %v1667_v18  ;;  %v841_v43 = vmul.f32 %v1256_v39, %v833_v30 }
  0x6c   : > { %707 = vst.msk [vmem:[%s1724_s16 + $0x8] sm:$0xff] %vm621_vm0, %v705_v5  ;;  %848 = vst.msk [vmem:[%s1713_s24 + $0x10] sm:$0xff] %vm621_vm0, %v842_v38  ;;  %v816_v44 = vadd.f32 %v810_v32, %v796_v41  ;;  %v797_v45 = vadd.f32 %v791_v62, %v777_v10 }
  0x6d   : > { %v843_v42 = vmul.f32 %v1256_v39, %v835_v40 }
  0x6e   : > { %1285 = shalt.err (!%p1282_p3)
}
  0x6f   : > { %s1286_s16 = scalar_lea.hbm %s1749_s27, 256  ;;  %s1290_s18 = scalar_lea.hbm %s1860_s9, 512 }
  0x70   : > { %p1287_p5 = scmp.ne.s32.totalorder %s1749_s27, %s1286_s16  ;;  %p1291_p9 = scmp.lt.u32.totalorder %s1749_s27, %s1860_s9 }
  0x71   : > { %p1292_p12 = scmp.lt.u32.totalorder %s1290_s18, %s1286_s16  ;;  %p1294_p11 = scmp.lt.u32.totalorder %s1286_s16, %s1749_s27 }
  0x72   : > { %p1288_p6 = pnand %p1287_p5, %p1483_p4 }
  0x73   : > { %p1293_p10 = por %p1292_p12, %p1291_p9 }
  0x74   : > { %p1289_p7 = pneg %p1288_p6 }
  0x75   : > { %p1295_p13 = por %p1294_p11, %p1293_p10 }
  0x77   : > { %p1296_p0 = pnand %p1295_p13, %p1289_p7 }
  0x79   : > { %1299 = shalt.err (!%p1296_p0)
}
  0x7a   : > { %s1861_s15 = smov 128   ;;  %s1391_s0 = smov 8   ;;  %847 = vst.msk [vmem:[%s1713_s24 + $0x8] sm:$0xff] %vm621_vm0, %v841_v43  ;;  %849 = vst.msk [vmem:[%s1713_s24 + $0x18] sm:$0xff] %vm621_vm0, %v843_v42  ;;  %v836_v18 = vadd.f32 %v830_v37, %v816_v44  ;;  %v817_v25 = vadd.f32 %v811_v22, %v797_v45 }
  0x7b   : > { %s1868_s29 = scalar_lea.sflag [#allocation7], %s1654_s26  ;;  %s1151_s25 = smul.u32 768, %s1378_s12 }
  0x7c   : > { %1157 = dma.vmem_to_hbm [thread:$0]  (%p1483_p4), %s1739_s20, 256, %s1749_s27, %s1868_s29, %s1861_s15, %s1861_s15, %s1391_s0   ;;  %v844_v47 = vmul.f32 %v1695_v49, %v836_v18  ;;  %v837_v48 = vadd.f32 %v831_v46, %v817_v25 }
  0x7d   : > { %s873_s16 = sshll.u32 %s1713_s24, 4  ;;  %s1798_s23 = scalar_lea.hbm %s1859_s8, %s1151_s25  ;;  %s1791_s16 = int_to_ptr.vmem [resolvable:$true] %s873_s16 }
  0x7e   : > { %850 = vst.msk [vmem:[%s1713_s24 + $0x20] sm:$0xff] %vm621_vm0, %v844_v47  ;;  %v845_v50 = vmul.f32 %v1256_v39, %v837_v48  ;;  %s853_s12 = scalar_lea.sflag [#allocation3], %s1654_s26  ;;  %s1300_s18 = scalar_lea.vmem %s1791_s16, 768 }
  0x7f   : > { %p1301_p1 = scmp.ne.s32.totalorder %s1791_s16, %s1300_s18  ;;  %s1392_s28 = smov [#allocation5]  }
  0x80   : > { %851 = vst.msk [vmem:[%s1713_s24 + $0x28] sm:$0xff] %vm621_vm0, %v845_v50  ;;  %s1304_s29 = sshll.u32 %s1392_s28, 4  ;;  %s1305_s29 = int_to_ptr.vmem [resolvable:$false] %s1304_s29 }
  0x81   : > { %p1302_p2 = pnand %p1301_p1, %p1483_p4  ;;  %s1306_s15 = scalar_lea.vmem %s1305_s29, 1536 }
  0x82   : > { %p1307_p5 = scmp.lt.s32.totalorder %s1791_s16, %s1305_s29  ;;  %p1308_p6 = scmp.lt.s32.totalorder %s1306_s15, %s1300_s18 }
  0x83   : > { %p1303_p3 = pneg %p1302_p2 }
  0x84   : > { %p1309_p7 = por %p1308_p6, %p1307_p5 }
  0x86   : > { %p1310_p9 = pnand %p1309_p7, %p1303_p3 }
  0x88   : > { %1313 = shalt.err (!%p1310_p9)
}
  0x89   : > { %s1314_s24 = scalar_lea.hbm %s1798_s23, 768  ;;  %s1318_s27 = scalar_lea.hbm %s1859_s8, 1536 }
  0x8a   : > { %p1315_p12 = scmp.ne.s32.totalorder %s1798_s23, %s1314_s24  ;;  %p1319_p13 = scmp.lt.u32.totalorder %s1798_s23, %s1859_s8 }
  0x8b   : > { %p1320_p0 = scmp.lt.u32.totalorder %s1318_s27, %s1314_s24  ;;  %p1322_p2 = scmp.lt.u32.totalorder %s1314_s24, %s1798_s23 }
  0x8c   : > { %p1316_p10 = pnand %p1315_p12, %p1483_p4 }
  0x8d   : > { %p1321_p1 = por %p1320_p0, %p1319_p13 }
  0x8e   : > { %p1317_p11 = pneg %p1316_p10 }
  0x8f   : > { %p1323_p3 = por %p1322_p2, %p1321_p1 }
  0x91   : > { %p1324_p5 = pnand %p1323_p3, %p1317_p11 }
  0x93   : > { %1327 = shalt.err (!%p1324_p5)
}
  0x94   : > { %s1869_s15 = smov 128  }
  0x95   : > { %1156 = dma.vmem_to_hbm [thread:$0]  (%p1483_p4), %s1791_s16, 768, %s1798_s23, %s853_s12, %s1869_s15, %s1869_s15, %s1391_s0  }
  0x96 PF: > { %p1173_p6 = scmp.ge.s32.totalorder %s1386_s14, 2  ;;  %s906_s18 = sand.u32 1, %s1366_s30  }
  0x97   : > { %s907_s24 = scalar_lea.sflag [#allocation3], %s906_s18 }
  0x98   : > { %p1165_p7 = pnand %p1173_p6, %p1490_p8 }
  0x9a   : > { %1357 = dma.done.wait (!%p1165_p7), %s907_s24, 768  }
  0x9b   : > { %1359 = vsyncadd (!%p1165_p7), %s907_s24, 4294966528  ;;  %s916_s19 = scalar_lea.sflag [#allocation7], %s906_s18 }
  0x9c   : > { %1361 = dma.done.wait (!%p1165_p7), %s916_s19, 256  }
  0x9d   : > { %1363 = vsyncadd (!%p1165_p7), %s916_s19, 4294967040  ;;  %s27_s14 = sadd.s32 1, %s1386_s14   ;;  %s1870_s30 = smov %s1370_s10 }
  0x9e   : > { %p24_p9 = scmp.ge.s32.totalorder %s27_s14, 4   ;;  %s1871_s10 = smov %s1374_s11 }
  0x9f   : > { %s1872_s11 = smov %s1496_s22  ;;  %s1873_s12 = smov %s1382_s13 }
  0xa0   : > { %s1874_s13 = smov %s1876_s17  ;;  %26 = sbr.rel (!%p24_p9) target bundleno = 9 (0x9), region = 127 }
  0xa7   :  { %921 = vsyncpa [#allocation3], 1 }
  0xa8   :  { %923 = vsyncpa [#allocation3 + $0x1], 1 }
  0xa9   :  { %924 = vsyncpa [#allocation7], 1 }
  0xaa   :  { %926 = vsyncpa [#allocation7 + $0x1], 1 }
  0xab   :  { %927 = vsyncpa [#allocation4], 1 }
  0xac   :  { %929 = vsyncpa [#allocation4 + $0x1], 1 }

// kernel: dctvfinet_forward.24
= control target key start
LH: loop header
LB: loop body
LE: loop exit
PB: predicated region body
PF: predicated region fallthrough
CT: control target
= control target key end

     0   :  { %s6384_s12 = smov 0   ;;  %s6386_s13 = smov 0   ;;  %s8221_s0 = inlined_call_operand.vmem [shape: bf16[2,18,18,8], index: 0, kind: input, shape index: {}]   ;;  %s8222_s1 = inlined_call_operand.vmem [shape: bf16[9,8,7], index: 1, kind: input, shape index: {}]   ;;  %s8223_s2 = inlined_call_operand.vmem [shape: f32[1,7], index: 2, kind: input, shape index: {}]   ;;  %s8224_s3 = inlined_call_operand.vmem [shape: f32[2,16,16,7], index: 3, kind: output, shape index: {}]  }
   0x1   :  { %s6388_s14 = smov 0  }
   0x2 LB: > { %s25_s15 = sadd.s32 1, %s6358_s13  ;;  %p4939_p0 = scmp.ge.s32.totalorder %s6362_s14, 1  ;;  %s6362_s14 = sphi %s6388_s14, %s13_s14   ;;  %s6358_s13 = sphi %s6386_s13, %s8293_s13   ;;  %s6354_s12 = sphi %s6384_s12, %s8292_s12  }
   0x3   : > { %p27_p1 = scmp.ge.s32.totalorder %s25_s15, 2  ;;  %p151_p2 = scmp.lt.s32.totalorder %s6362_s14, 3 }
   0x5   : > { %s8295_s15 = smov (%p27_p1, %s25_s15), 0  ;;  %p152_p3 = pnand %p4939_p0, %p151_p2 }
   0x7   : > { %155 = sbr.rel (%p152_p3) target bundleno = 586 (0x24a), region = 32 }
   0xe   : > { %v4943_v0 = vld [vmem:[%s8222_s1 + $0x4] sm:$0xf]  ;;  %vm736_vm0 = vcmask 1043456   ;;  %v5170_v1 = vld [vmem:[%s8222_s1 + $0x10] sm:$0xf]  ;;  %p180_p4 = scmp.lt.s32.totalorder %s6354_s12, 1 }
   0xf   : > { %6200 = vmatprep.subr.msk.bf16.mxu1 %vm736_vm0, %v4943_v0  ;;  %6204 = vmatprep.subr.msk.bf16.mxu0 %vm736_vm0, %v5170_v1  ;;  %v738_v2 = vsel %vm736_vm0, %v4943_v0, 0  ;;  %v6412_v3 = vsel %vm736_vm0, %v5170_v1, 0  ;;  %v233_v4 = vld [vmem:[%s8222_s1] sm:$0xf]  ;;  %v5235_v5 = vld [vmem:[%s8222_s1 + $0x14] sm:$0xf] }
  0x10   : > { %8238 = vst [vmem:[#allocation2_spill] sm:$0xff] %v6412_v3  ;;  %5637 = vmatpush3.bf16.msra.mxu1 %v738_v2  ;;  %5773 = vmatpush3.bf16.msra.mxu0 %v6412_v3  ;;  %s8297_s12 = smov (!%p180_p4, %s6354_s12), 1  ;;  %vm250_vm1 = vsmask.f32 3328  ;;  %vm251_vm2 = vsmask.f32 7440 }
  0x11   : > { %6201 = vmatprep.subr.msk.bf16.mxu1 %vm736_vm0, %v233_v4  ;;  %6206 = vmatprep.subr.msk.bf16.mxu0 %vm736_vm0, %v5235_v5  ;;  %s6210_s24 = smul.u32 216, %s8297_s12  ;;  %vm687_vm3 = vcmask 64512   ;;  %v6442_v17 = vsel %vm736_vm0, %v233_v4, 0  ;;  %v6448_v26 = vld [vmem:[%s8222_s1 + $0x18] sm:$0xf]  ;;  %vm6455_vm4 = vmor %vm250_vm1, %vm251_vm2  ;;  %v6461_v37 = vsel %vm736_vm0, %v5235_v5, 0 }
  0x12   : > { %v6465_v41 = vsel %vm736_vm0, %v6448_v26, 0  ;;  %vm1241_vm5 = vcmask 1042432   ;;  %vm1242_vm6 = vcmask 1046532   ;;  %s5482_s19 = sshll.u32 %s8297_s12, 8  ;;  %vm4805_vm8 = vcmask 56320  }
  0x13   : > { %s6429_s27 = scalar_lea.vmem %s8221_s0, %s6210_s24  ;;  %vm6681_vm7 = vmor %vm1241_vm5, %vm1242_vm6  ;;  %s8114_s24 = scalar_lea.vmem %s8224_s3, %s5482_s19 }
  0x14   : > { %v201_v6 = vld [vmem:[%s6429_s27] sm:$0xf]  ;;  %v202_v7 = vld [vmem:[%s6429_s27 + $0x4] sm:$0xf]  ;;  %v234_v8 = vld [vmem:[%s6429_s27 + $0x8] sm:$0x1] }
  0x15   : > { %v254_v9 = vshrl.u32 %v201_v6, 16  ;;  %v257_v10 = vshll.u32 %v201_v6, 16  ;;  %v263_v11 = vshll.u32 %v202_v7, 16  ;;  %v267_v12 = vshrl.u32 %v202_v7, 16  ;;  %v5122_v13 = vld [vmem:[%s6429_s27 + $0xc] sm:$0xf] }
  0x16   : > { %v273_v14 = vshll.u32 %v234_v8, 16  ;;  %v6436_v15 = vld [vmem:[%s6429_s27 + $0x10] sm:$0xf]  ;;  %v6439_v16 = vld [vmem:[%s6429_s27 + $0x14] sm:$0x1]  ;;  %v2061_v23 = vshrl.u32 %v5122_v13, 16 }
  0x17   : > { %v256_v18 = vrot.slane %v254_v9, 4  ;;  %v259_v19 = vrot.slane %v257_v10, 5  ;;  %v265_v20 = vrot.slane %v263_v11, 5  ;;  %v269_v21 = vrot.slane %v267_v12, 4  ;;  %v203_v31 = vld [vmem:[%s6429_s27 + $0xc] sm:$0xf] }
  0x18   : > { %v275_v22 = vrot.slane %v273_v14, 5  ;;  %v2064_v24 = vshll.u32 %v5122_v13, 16  ;;  %v2070_v25 = vshll.u32 %v6436_v15, 16  ;;  %v2074_v29 = vshrl.u32 %v6436_v15, 16  ;;  %v204_v36 = vld [vmem:[%s6429_s27 + $0x10] sm:$0xf] }
  0x19   : > { %v260_v27 = vor.u32 %v259_v19, %v256_v18  ;;  %v270_v28 = vor.u32 %v269_v21, %v265_v20  ;;  %v2080_v30 = vshll.u32 %v6439_v16, 16  ;;  %v2063_v33 = vrot.slane %v2061_v23, 4  ;;  %v235_v44 = vld [vmem:[%s6429_s27 + $0x14] sm:$0x1]  ;;  %v5125_v55 = vld [vmem:[%s6429_s27 + $0x18] sm:$0xf] }
  0x1a   : > { %v2066_v34 = vrot.slane %v2064_v24, 5  ;;  %v2072_v35 = vrot.slane %v2070_v25, 5  ;;  %v2076_v40 = vrot.slane %v2074_v29, 4  ;;  %v278_v45 = vshrl.u32 %v203_v31, 16  ;;  %v6474_v60 = vld [vmem:[%s6429_s27 + $0x1c] sm:$0xf] }
  0x1b   : > { %v261_v38 = vrot.slane %v260_v27, 4  ;;  %v271_v39 = vrot.slane %v270_v28, 4  ;;  %v2082_v43 = vrot.slane %v2080_v30, 5  ;;  %v281_v46 = vshll.u32 %v203_v31, 16  ;;  %v6482_v1 = vld [vmem:[%s6429_s27 + $0x20] sm:$0x1] }
  0x1c   : > { %v2067_v42 = vor.u32 %v2066_v34, %v2063_v33  ;;  %v2077_v49 = vor.u32 %v2076_v40, %v2072_v35  ;;  %v287_v50 = vshll.u32 %v204_v36, 16  ;;  %v280_v53 = vrot.slane %v278_v45, 4  ;;  %v205_v18 = vld [vmem:[%s6429_s27 + $0x18] sm:$0xf]  ;;  %v206_v23 = vld [vmem:[%s6429_s27 + $0x1c] sm:$0xf] }
  0x1d   : > { %v266_v47 = vsel %vm6455_vm4, %v261_v38, %v265_v20  ;;  %v276_v48 = vsel %vm6455_vm4, %v271_v39, %v275_v22  ;;  %v283_v54 = vrot.slane %v281_v46, 5  ;;  %v291_v58 = vshrl.u32 %v204_v36, 16  ;;  %v236_v31 = vld [vmem:[%s6429_s27 + $0x20] sm:$0x1]  ;;  %v5128_v40 = vld [vmem:[%s6429_s27 + $0x24] sm:$0xf] }
  0x1e   : > { %v4944_v51 = vcombine.low %v266_v47, %v276_v48  ;;  %v2068_v52 = vrot.slane %v2067_v42, 4  ;;  %v2078_v56 = vrot.slane %v2077_v49, 4  ;;  %v289_v57 = vrot.slane %v287_v50, 5  ;;  %v6505_v46 = vld [vmem:[%s6429_s27 + $0x28] sm:$0xf] }
  0x1f   : > { %v297_v59 = vshll.u32 %v235_v44, 16  ;;  %v2804_v62 = vrot.slane %v6436_v15, 5  ;;  %v2807_v63 = vrot.slane %v6439_v16, 5  ;;  %v284_v0 = vor.u32 %v283_v54, %v280_v53  ;;  %v6514_v54 = vld [vmem:[%s6429_s27 + $0x2c] sm:$0x1] }
  0x20   : > { %5638 = vmatprep.mubr.msk.bf16.mxu1 %vm687_vm3, %v4944_v51  ;;  %v2073_v61 = vsel %vm6455_vm4, %v2068_v52, %v2072_v35  ;;  %v2083_v2 = vsel %vm6455_vm4, %v2078_v56, %v2082_v43  ;;  %v293_v4 = vrot.slane %v291_v58, 4  ;;  %v2085_v6 = vshrl.u32 %v5125_v55, 16  ;;  %v5024_v51 = vld [vmem:[%s8222_s1 + $0x8] sm:$0xf]  ;;  %v6714_v16 = vld [vmem:[%s6429_s27 + $0x7c] sm:$0xf] }
  0x21   : > { %v299_v5 = vrot.slane %v297_v59, 5  ;;  %v5171_v7 = vcombine.low %v2073_v61, %v2083_v2  ;;  %v285_v8 = vrot.slane %v284_v0, 4  ;;  %v2088_v9 = vshll.u32 %v5125_v55, 16  ;;  %v207_v0 = vld [vmem:[%s6429_s27 + $0x24] sm:$0xf] }
  0x22   : > { %v2094_v10 = vshll.u32 %v6474_v60, 16  ;;  %v294_v11 = vor.u32 %v293_v4, %v289_v57  ;;  %v2087_v12 = vrot.slane %v2085_v6, 4  ;;  %v2098_v13 = vshrl.u32 %v6474_v60, 16 }
  0x23   : > { %v2104_v14 = vshll.u32 %v6482_v1, 16  ;;  %5774 = vmatprep.mubr.msk.bf16.mxu0 %vm687_vm3, %v5171_v7  ;;  %v290_v19 = vsel %vm6455_vm4, %v285_v8, %v289_v57  ;;  %v2090_v20 = vrot.slane %v2088_v9, 5  ;;  %v2811_v22 = vrot.slane %v6474_v60, 5  ;;  %v208_v7 = vld [vmem:[%s6429_s27 + $0x28] sm:$0xf] }
  0x24   : > { %v2096_v21 = vrot.slane %v2094_v10, 5  ;;  %v295_v24 = vrot.slane %v294_v11, 4  ;;  %v2100_v25 = vrot.slane %v2098_v13, 4  ;;  %v2814_v28 = vrot.slane %v6482_v1, 5  ;;  %v237_v13 = vld [vmem:[%s6429_s27 + $0x2c] sm:$0x1] }
  0x25   : > { %v2106_v27 = vrot.slane %v2104_v14, 5  ;;  %v2091_v29 = vor.u32 %v2090_v20, %v2087_v12  ;;  %v6498_v30 = vrot.slane %v2811_v22, 4  ;;  %v302_v33 = vshrl.u32 %v205_v18, 16 }
  0x26   : > { %v305_v34 = vshll.u32 %v205_v18, 16  ;;  %v300_v35 = vsel %vm6455_vm4, %v295_v24, %v299_v5  ;;  %v2101_v36 = vor.u32 %v2100_v25, %v2096_v21  ;;  %v311_v38 = vshll.u32 %v206_v23, 16  ;;  %v5131_v24 = vld [vmem:[%s6429_s27 + $0x30] sm:$0xf] }
  0x27   : > { %v315_v39 = vshrl.u32 %v206_v23, 16  ;;  %v4945_v42 = vcombine.low %v290_v19, %v300_v35  ;;  %v2092_v43 = vrot.slane %v2091_v29, 4  ;;  %v304_v44 = vrot.slane %v302_v33, 4  ;;  %v6534_v33 = vld [vmem:[%s6429_s27 + $0x34] sm:$0xf] }
  0x28   : > { %v307_v45 = vrot.slane %v305_v34, 5  ;;  %v2102_v47 = vrot.slane %v2101_v36, 4  ;;  %v313_v48 = vrot.slane %v311_v38, 5  ;;  %v321_v50 = vshll.u32 %v236_v31, 16 }
  0x29   : > { %v317_v49 = vrot.slane %v315_v39, 4  ;;  %5639 = vmatmul.mubr.msk.bf16.vlgmr.msra.gmra.mrb[0].mxu1 %vm687_vm3, %v4945_v42  ;;  %v2097_v52 = vsel %vm6455_vm4, %v2092_v43, %v2096_v21  ;;  %v2109_v55 = vshrl.u32 %v5128_v40, 16  ;;  %v2112_v56 = vshll.u32 %v5128_v40, 16  ;;  %v6542_v40 = vld [vmem:[%s6429_s27 + $0x38] sm:$0x1] }
  0x2a   : > { %v308_v53 = vor.u32 %v307_v45, %v304_v44  ;;  %5671 = vmatpush3.bf16.msra.mxu1 %v6442_v17  ;;  %v2107_v57 = vsel %vm6455_vm4, %v2102_v47, %v2106_v27  ;;  %v323_v59 = vrot.slane %v321_v50, 5  ;;  %v2118_v61 = vshll.u32 %v6505_v46, 16 }
  0x2b   : > { %v318_v58 = vor.u32 %v317_v49, %v313_v48  ;;  %v5172_v2 = vcombine.low %v2097_v52, %v2107_v57  ;;  %v2111_v5 = vrot.slane %v2109_v55, 4  ;;  %v2114_v6 = vrot.slane %v2112_v56, 5  ;;  %6202 = vmatprep.subr.msk.bf16.mxu1 %vm736_vm0, %v5024_v51  ;;  %v209_v52 = vld [vmem:[%s6429_s27 + $0x30] sm:$0xf] }
  0x2c   : > { %v309_v4 = vrot.slane %v308_v53, 4  ;;  %v2120_v9 = vrot.slane %v2118_v61, 5  ;;  %v2122_v17 = vshrl.u32 %v6505_v46, 16  ;;  %v2128_v10 = vshll.u32 %v6514_v54, 16 }
  0x2d   : > { %v319_v8 = vrot.slane %v318_v58, 4  ;;  %5775 = vmatmul.mubr.msk.bf16.vlgmr.msra.gmra.mrb[0].mxu0 %vm687_vm3, %v5172_v2  ;;  %v2115_v12 = vor.u32 %v2114_v6, %v2111_v5  ;;  %v326_v14 = vshrl.u32 %v207_v0, 16  ;;  %v329_v18 = vshll.u32 %v207_v0, 16  ;;  %v210_v58 = vld [vmem:[%s6429_s27 + $0x34] sm:$0xf] }
  0x2e   : > { %v314_v11 = vsel %vm6455_vm4, %v309_v4, %v313_v48  ;;  %5807 = vmatpush3.bf16.msra.mxu0 %v6461_v37  ;;  %v2124_v20 = vrot.slane %v2122_v17, 4  ;;  %v2130_v21 = vrot.slane %v2128_v10, 5  ;;  %v335_v23 = vshll.u32 %v208_v7, 16  ;;  %v238_v4 = vld [vmem:[%s6429_s27 + $0x38] sm:$0x1] }
  0x2f   : > { %v324_v19 = vsel %vm6455_vm4, %v319_v8, %v323_v59  ;;  %v2116_v27 = vrot.slane %v2115_v12, 4  ;;  %v328_v29 = vrot.slane %v326_v14, 4  ;;  %v331_v31 = vrot.slane %v329_v18, 5  ;;  %6207 = vmatprep.subr.msk.bf16.mxu0 %vm736_vm0, %v6448_v26  ;;  %v5134_v12 = vld [vmem:[%s6429_s27 + $0x3c] sm:$0xf] }
  0x30   : > { %v4946_v25 = vcombine.low %v314_v11, %v324_v19  ;;  %v2125_v34 = vor.u32 %v2124_v20, %v2120_v9  ;;  %v337_v35 = vrot.slane %v335_v23, 5  ;;  %v339_v37 = vshrl.u32 %v208_v7, 16  ;;  %v6559_v20 = vld [vmem:[%s6429_s27 + $0x40] sm:$0xf] }
  0x31   : > { %v345_v36 = vshll.u32 %v237_v13, 16  ;;  %v2121_v38 = vsel %vm6455_vm4, %v2116_v27, %v2120_v9  ;;  %v332_v39 = vor.u32 %v331_v31, %v328_v29  ;;  %v2133_v42 = vshrl.u32 %v5131_v24, 16 }
  0x32   : > { %5642 = vmatprep.mubr.msk.bf16.mxu1 %vm687_vm3, %v4946_v25  ;;  %v2136_v43 = vshll.u32 %v5131_v24, 16  ;;  %v2126_v44 = vrot.slane %v2125_v34, 4  ;;  %v341_v45 = vrot.slane %v339_v37, 4  ;;  %v2142_v26 = vshll.u32 %v6534_v33, 16  ;;  %v6564_v34 = vld [vmem:[%s6429_s27 + $0x44] sm:$0x1] }
  0x33   : > { %v347_v47 = vrot.slane %v345_v36, 5  ;;  %v333_v48 = vrot.slane %v332_v39, 4  ;;  %v2135_v49 = vrot.slane %v2133_v42, 4  ;;  %v2146_v51 = vshrl.u32 %v6534_v33, 16  ;;  %v211_v42 = vld [vmem:[%s6429_s27 + $0x3c] sm:$0xf] }
  0x34   : > { %v2138_v50 = vrot.slane %v2136_v43, 5  ;;  %v2131_v53 = vsel %vm6455_vm4, %v2126_v44, %v2130_v21  ;;  %v342_v55 = vor.u32 %v341_v45, %v337_v35  ;;  %v2144_v56 = vrot.slane %v2142_v26, 5  ;;  %v212_v26 = vld [vmem:[%s6429_s27 + $0x40] sm:$0xf] }
  0x35   : > { %v2152_v57 = vshll.u32 %v6542_v40, 16  ;;  %v5173_v59 = vcombine.low %v2121_v38, %v2131_v53  ;;  %v338_v61 = vsel %vm6455_vm4, %v333_v48, %v337_v35  ;;  %v2148_v2 = vrot.slane %v2146_v51, 4 }
  0x36   : > { %v2139_v0 = vor.u32 %v2138_v50, %v2135_v49  ;;  %v343_v5 = vrot.slane %v342_v55, 4  ;;  %v350_v7 = vshrl.u32 %v209_v52, 16  ;;  %v353_v8 = vshll.u32 %v209_v52, 16 }
  0x37   : > { %v2154_v6 = vrot.slane %v2152_v57, 5  ;;  %5778 = vmatprep.mubr.msk.bf16.mxu0 %vm687_vm3, %v5173_v59  ;;  %v2149_v17 = vor.u32 %v2148_v2, %v2144_v56  ;;  %v359_v10 = vshll.u32 %v210_v58, 16  ;;  %v363_v11 = vshrl.u32 %v210_v58, 16  ;;  %v5137_v2 = vld [vmem:[%s6429_s27 + $0x48] sm:$0xf] }
  0x38   : > { %v2140_v9 = vrot.slane %v2139_v0, 4  ;;  %v348_v13 = vsel %vm6455_vm4, %v343_v5, %v347_v47  ;;  %v352_v14 = vrot.slane %v350_v7, 4  ;;  %v355_v18 = vrot.slane %v353_v8, 5  ;;  %v6582_v8 = vld [vmem:[%s6429_s27 + $0x4c] sm:$0xf] }
  0x39   : > { %v369_v19 = vshll.u32 %v238_v4, 16  ;;  %v4947_v21 = vcombine.low %v338_v61, %v348_v13  ;;  %v2150_v24 = vrot.slane %v2149_v17, 4  ;;  %v361_v25 = vrot.slane %v359_v10, 5  ;;  %v239_v61 = vld [vmem:[%s6429_s27 + $0x44] sm:$0x1] }
  0x3a   : > { %v2145_v23 = vsel %vm6455_vm4, %v2140_v9, %v2144_v56  ;;  %v356_v27 = vor.u32 %v355_v18, %v352_v14  ;;  %v365_v29 = vrot.slane %v363_v11, 4  ;;  %v2157_v35 = vshrl.u32 %v5134_v12, 16 }
  0x3b   : > { %v371_v31 = vrot.slane %v369_v19, 5  ;;  %5643 = vmatmul.mubr.msk.bf16.gmra.mrb[4].mxu1 %vm687_vm3, %v4947_v21  ;;  %v2155_v37 = vsel %vm6455_vm4, %v2150_v24, %v2154_v6  ;;  %v2160_v36 = vshll.u32 %v5134_v12, 16  ;;  %v2166_v38 = vshll.u32 %v6559_v20, 16 }
  0x3c   : > { %v2170_v39 = vshrl.u32 %v6559_v20, 16  ;;  %v5174_v43 = vcombine.low %v2145_v23, %v2155_v37  ;;  %v357_v44 = vrot.slane %v356_v27, 4  ;;  %v366_v45 = vor.u32 %v365_v29, %v361_v25  ;;  %v6590_v23 = vld [vmem:[%s6429_s27 + $0x50] sm:$0x1]  ;;  %v6594_v27 = vld [vmem:[%s6429_s27 + $0x48] sm:$0xf] }
  0x3d   : > { %v2159_v47 = vrot.slane %v2157_v35, 4  ;;  %v2162_v48 = vrot.slane %v2160_v36, 5  ;;  %v2168_v49 = vrot.slane %v2166_v38, 5  ;;  %v2176_v51 = vshll.u32 %v6564_v34, 16  ;;  %v6597_v36 = vld [vmem:[%s6429_s27 + $0x4c] sm:$0xf] }
  0x3e   : > { %v2172_v50 = vrot.slane %v2170_v39, 4  ;;  %5779 = vmatmul.mubr.msk.bf16.gmra.mrb[4].mxu0 %vm687_vm3, %v5174_v43  ;;  %v362_v52 = vsel %vm6455_vm4, %v357_v44, %v361_v25  ;;  %v367_v53 = vrot.slane %v366_v45, 4  ;;  %v374_v55 = vshrl.u32 %v211_v42, 16 }
  0x3f   : > { %v377_v56 = vshll.u32 %v211_v42, 16  ;;  %v2163_v57 = vor.u32 %v2162_v48, %v2159_v47  ;;  %v2178_v59 = vrot.slane %v2176_v51, 5  ;;  %v383_v0 = vshll.u32 %v212_v26, 16 }
  0x40   : > { %v2173_v58 = vor.u32 %v2172_v50, %v2168_v49  ;;  %v372_v4 = vsel %vm6455_vm4, %v367_v53, %v371_v31  ;;  %v376_v5 = vrot.slane %v374_v55, 4  ;;  %v387_v7 = vshrl.u32 %v212_v26, 16  ;;  %v240_v26 = vld [vmem:[%s6429_s27 + $0x50] sm:$0x1]  ;;  %v5140_v53 = vld [vmem:[%s6429_s27 + $0x54] sm:$0xf] }
  0x41   : > { %v379_v6 = vrot.slane %v377_v56, 5  ;;  %v4948_v9 = vcombine.low %v362_v52, %v372_v4  ;;  %v2164_v17 = vrot.slane %v2163_v57, 4  ;;  %v385_v11 = vrot.slane %v383_v0, 5  ;;  %v6613_v4 = vld [vmem:[%s6429_s27 + $0x58] sm:$0xf] }
  0x42   : > { %v2174_v10 = vrot.slane %v2173_v58, 4  ;;  %v389_v13 = vrot.slane %v387_v7, 4  ;;  %v393_v14 = vshll.u32 %v239_v61, 16  ;;  %v2181_v18 = vshrl.u32 %v5137_v2, 16 }
  0x43   : > { %v380_v12 = vor.u32 %v379_v6, %v376_v5  ;;  %5646 = vmatprep.mubr.msk.bf16.mxu1 %vm687_vm3, %v4948_v9  ;;  %v2169_v19 = vsel %vm6455_vm4, %v2164_v17, %v2168_v49  ;;  %v2184_v24 = vshll.u32 %v5137_v2, 16  ;;  %v2190_v25 = vshll.u32 %v6582_v8, 16 }
  0x44   : > { %v2179_v21 = vsel %vm6455_vm4, %v2174_v10, %v2178_v59  ;;  %v390_v35 = vor.u32 %v389_v13, %v385_v11  ;;  %v395_v37 = vrot.slane %v393_v14, 5  ;;  %v2183_v38 = vrot.slane %v2181_v18, 4 }
  0x45   : > { %v5175_v29 = vcombine.low %v2169_v19, %v2179_v21  ;;  %v381_v31 = vrot.slane %v380_v12, 4  ;;  %v2186_v39 = vrot.slane %v2184_v24, 5  ;;  %v2192_v42 = vrot.slane %v2190_v25, 5  ;;  %v6619_v12 = vld [vmem:[%s6429_s27 + $0x5c] sm:$0x1] }
  0x46   : > { %v2194_v43 = vshrl.u32 %v6582_v8, 16  ;;  %v391_v45 = vrot.slane %v390_v35, 4  ;;  %v2200_v47 = vshll.u32 %v6590_v23, 16  ;;  %v398_v48 = vshrl.u32 %v6594_v27, 16  ;;  %v6623_v24 = vld [vmem:[%s6429_s27 + $0x54] sm:$0xf] }
  0x47   : > { %5782 = vmatprep.mubr.msk.bf16.mxu0 %vm687_vm3, %v5175_v29  ;;  %v386_v44 = vsel %vm6455_vm4, %v381_v31, %v385_v11  ;;  %v2187_v49 = vor.u32 %v2186_v39, %v2183_v38  ;;  %v401_v51 = vshll.u32 %v6594_v27, 16  ;;  %v407_v52 = vshll.u32 %v6597_v36, 16 }
  0x48   : > { %v2196_v50 = vrot.slane %v2194_v43, 4  ;;  %v396_v55 = vsel %vm6455_vm4, %v391_v45, %v395_v37  ;;  %v2202_v56 = vrot.slane %v2200_v47, 5  ;;  %v400_v57 = vrot.slane %v398_v48, 4  ;;  %v6629_v37 = vld [vmem:[%s6429_s27 + $0x58] sm:$0xf] }
  0x49   : > { %v411_v58 = vshrl.u32 %v6597_v36, 16  ;;  %v4949_v59 = vcombine.low %v386_v44, %v396_v55  ;;  %v2188_v61 = vrot.slane %v2187_v49, 4  ;;  %v403_v2 = vrot.slane %v401_v51, 5 }
  0x4a   : > { %v2197_v0 = vor.u32 %v2196_v50, %v2192_v42  ;;  %v409_v5 = vrot.slane %v407_v52, 5  ;;  %v417_v7 = vshll.u32 %v240_v26, 16  ;;  %v2205_v9 = vshrl.u32 %v5140_v53, 16  ;;  %v241_v26 = vld [vmem:[%s6429_s27 + $0x5c] sm:$0x1] }
  0x4b   : > { %v413_v6 = vrot.slane %v411_v58, 4  ;;  %5647 = vmatmul.mubr.msk.bf16.gmra.mrb[8].mxu1 %vm687_vm3, %v4949_v59  ;;  %v2193_v17 = vsel %vm6455_vm4, %v2188_v61, %v2192_v42  ;;  %v404_v11 = vor.u32 %v403_v2, %v400_v57  ;;  %v2208_v13 = vshll.u32 %v5140_v53, 16  ;;  %v5143_v53 = vld [vmem:[%s6429_s27 + $0x60] sm:$0xf]  ;;  %v6643_v59 = vld [vmem:[%s6429_s27 + $0x64] sm:$0xf] }
  0x4c   : > { %v2198_v10 = vrot.slane %v2197_v0, 4  ;;  %v419_v18 = vrot.slane %v417_v7, 5  ;;  %v2207_v19 = vrot.slane %v2205_v9, 4  ;;  %v2214_v21 = vshll.u32 %v6613_v4, 16  ;;  %v6650_v9 = vld [vmem:[%s6429_s27 + $0x68] sm:$0x1] }
  0x4d   : > { %v414_v14 = vor.u32 %v413_v6, %v409_v5  ;;  %v405_v29 = vrot.slane %v404_v11, 4  ;;  %v2210_v31 = vrot.slane %v2208_v13, 5  ;;  %v2218_v35 = vshrl.u32 %v6613_v4, 16 }
  0x4e   : > { %v2203_v25 = vsel %vm6455_vm4, %v2198_v10, %v2202_v56  ;;  %v2216_v42 = vrot.slane %v2214_v21, 5  ;;  %v2224_v43 = vshll.u32 %v6619_v12, 16  ;;  %v422_v48 = vshrl.u32 %v6623_v24, 16 }
  0x4f   : > { %v5176_v38 = vcombine.low %v2193_v17, %v2203_v25  ;;  %v415_v39 = vrot.slane %v414_v14, 4  ;;  %v410_v44 = vsel %vm6455_vm4, %v405_v29, %v409_v5  ;;  %v2211_v45 = vor.u32 %v2210_v31, %v2207_v19  ;;  %v6654_v19 = vld [vmem:[%s6429_s27 + $0x60] sm:$0xf] }
  0x50   : > { %v2220_v47 = vrot.slane %v2218_v35, 4  ;;  %v2226_v50 = vrot.slane %v2224_v43, 5  ;;  %v425_v51 = vshll.u32 %v6623_v24, 16  ;;  %v431_v52 = vshll.u32 %v6629_v37, 16  ;;  %v6660_v35 = vld [vmem:[%s6429_s27 + $0x64] sm:$0xf] }
  0x51   : > { %5783 = vmatmul.mubr.msk.bf16.gmra.mrb[8].mxu0 %vm687_vm3, %v5176_v38  ;;  %v420_v49 = vsel %vm6455_vm4, %v415_v39, %v419_v18  ;;  %v2212_v56 = vrot.slane %v2211_v45, 4  ;;  %v424_v58 = vrot.slane %v422_v48, 4  ;;  %v435_v2 = vshrl.u32 %v6629_v37, 16 }
  0x52   : > { %v4950_v55 = vcombine.low %v410_v44, %v420_v49  ;;  %v2221_v57 = vor.u32 %v2220_v47, %v2216_v42  ;;  %v427_v61 = vrot.slane %v425_v51, 5  ;;  %v433_v0 = vrot.slane %v431_v52, 5 }
  0x53   : > { %v441_v5 = vshll.u32 %v241_v26, 16  ;;  %v2217_v6 = vsel %vm6455_vm4, %v2212_v56, %v2216_v42  ;;  %v2229_v17 = vshrl.u32 %v5143_v53, 16  ;;  %v2232_v10 = vshll.u32 %v5143_v53, 16 }
  0x54   : > { %5650 = vmatprep.mubr.msk.bf16.mxu1 %vm687_vm3, %v4950_v55  ;;  %v2222_v7 = vrot.slane %v2221_v57, 4  ;;  %v428_v11 = vor.u32 %v427_v61, %v424_v58  ;;  %v437_v13 = vrot.slane %v435_v2, 4  ;;  %v2238_v18 = vshll.u32 %v6643_v59, 16  ;;  %v5203_v58 = vld [vmem:[%s6429_s27 + $0xc] sm:$0xe] }
  0x55   : > { %v443_v14 = vrot.slane %v441_v5, 5  ;;  %v2231_v25 = vrot.slane %v2229_v17, 4  ;;  %v2234_v29 = vrot.slane %v2232_v10, 5  ;;  %v2242_v31 = vshrl.u32 %v6643_v59, 16 }
  0x56   : > { %v2227_v21 = vsel %vm6455_vm4, %v2222_v7, %v2226_v50  ;;  %v429_v39 = vrot.slane %v428_v11, 4  ;;  %v438_v42 = vor.u32 %v437_v13, %v433_v0  ;;  %v2240_v43 = vrot.slane %v2238_v18, 5  ;;  %v242_v50 = vld [vmem:[%s6429_s27 + $0x68] sm:$0x1] }
  0x57   : > { %v5177_v38 = vcombine.low %v2217_v6, %v2227_v21  ;;  %v2235_v44 = vor.u32 %v2234_v29, %v2231_v25  ;;  %v2244_v45 = vrot.slane %v2242_v31, 4  ;;  %v2248_v47 = vshll.u32 %v6650_v9, 16  ;;  %v6688_v29 = vld [vmem:[%s6429_s27 + $0x70] sm:$0xf] }
  0x58   : > { %v446_v26 = vshrl.u32 %v6654_v19, 16  ;;  %v434_v48 = vsel %vm6455_vm4, %v429_v39, %v433_v0  ;;  %v439_v49 = vrot.slane %v438_v42, 4  ;;  %v449_v51 = vshll.u32 %v6654_v19, 16  ;;  %v6675_v0 = vld [vmem:[%s6429_s27 + $0x6c] sm:$0xf] }
  0x59   : > { %5786 = vmatprep.mubr.msk.bf16.mxu0 %vm687_vm3, %v5177_v38  ;;  %v455_v52 = vshll.u32 %v6660_v35, 16  ;;  %v2236_v53 = vrot.slane %v2235_v44, 4  ;;  %v2245_v55 = vor.u32 %v2244_v45, %v2240_v43  ;;  %v2250_v56 = vrot.slane %v2248_v47, 5 }
  0x5a   : > { %v448_v57 = vrot.slane %v446_v26, 4  ;;  %v444_v61 = vsel %vm6455_vm4, %v439_v49, %v443_v14  ;;  %v451_v2 = vrot.slane %v449_v51, 5  ;;  %v459_v6 = vshrl.u32 %v6660_v35, 16  ;;  %v243_v26 = vld [vmem:[%s6429_s27 + $0x74] sm:$0x1] }
  0x5b   : > { %v457_v5 = vrot.slane %v455_v52, 5  ;;  %v4951_v7 = vcombine.low %v434_v48, %v444_v61  ;;  %v2241_v17 = vsel %vm6455_vm4, %v2236_v53, %v2240_v43  ;;  %v2246_v10 = vrot.slane %v2245_v55, 4  ;;  %v5204_v48 = vld [vmem:[%s6429_s27 + $0x18] sm:$0xe] }
  0x5c   : > { %v465_v11 = vshll.u32 %v242_v50, 16  ;;  %v452_v14 = vor.u32 %v451_v2, %v448_v57  ;;  %v461_v18 = vrot.slane %v459_v6, 4  ;;  %v5219_v21 = vrot.slane %v5203_v58, 9  ;;  %v6707_v53 = vld [vmem:[%s6429_s27 + $0x78] sm:$0xf] }
  0x5d   : > { %v2806_v25 = vrot.slane %v2804_v62, 4  ;;  %5651 = vmatmul.mubr.msk.bf16.gmra.mrb[12].mxu1 %vm687_vm3, %v4951_v7  ;;  %v2251_v31 = vsel %vm6455_vm4, %v2246_v10, %v2250_v56  ;;  %v470_v39 = vshrl.u32 %v6675_v0, 16  ;;  %v473_v42 = vshll.u32 %v6675_v0, 16  ;;  %v244_v57 = vld [vmem:[%s6429_s27 + $0x80] sm:$0x1] }
  0x5e   : > { %v467_v38 = vrot.slane %v465_v11, 5  ;;  %v5178_v43 = vcombine.low %v2241_v17, %v2251_v31  ;;  %v453_v44 = vrot.slane %v452_v14, 4  ;;  %v462_v45 = vor.u32 %v461_v18, %v457_v5  ;;  %v5205_v10 = vld [vmem:[%s6429_s27 + $0x24] sm:$0xe] }
  0x5f   : > { %v2805_v47 = vsel %vm6681_vm7, %v5219_v21, %v2804_v62  ;;  %v2808_v49 = vsel %vm6681_vm7, %v2806_v25, %v2807_v63  ;;  %v472_v50 = vrot.slane %v470_v39, 4  ;;  %v475_v51 = vrot.slane %v473_v42, 5  ;;  %v6733_v39 = vld [vmem:[%s6429_s27 + $0x84] sm:$0xf] }
  0x60   : > { %v479_v52 = vshll.u32 %v6688_v29, 16  ;;  %5787 = vmatmul.mubr.msk.bf16.gmra.mrb[12].mxu0 %vm687_vm3, %v5178_v43  ;;  %v458_v15 = vsel %vm6455_vm4, %v453_v44, %v457_v5  ;;  %v463_v62 = vrot.slane %v462_v45, 4  ;;  %v5236_v55 = vcombine.low %v2805_v47, %v2808_v49  ;;  %v6741_v43 = vld [vmem:[%s6429_s27 + $0x88] sm:$0xf] }
  0x61   : > { %v483_v56 = vshrl.u32 %v6688_v29, 16  ;;  %v476_v63 = vor.u32 %v475_v51, %v472_v50  ;;  %v489_v61 = vshll.u32 %v243_v26, 16  ;;  %v5220_v2 = vrot.slane %v5204_v48, 9 }
  0x62   : > { %v481_v58 = vrot.slane %v479_v52, 5  ;;  %v468_v6 = vsel %vm6455_vm4, %v463_v62, %v467_v38  ;;  %5808 = vmatprep.mubr.msk.bf16.mxu0 %vm687_vm3, %v5236_v55  ;;  %v2815_v5 = vsel %vm6681_vm7, %v6498_v30, %v2814_v28  ;;  %v494_v17 = vshrl.u32 %v6707_v53, 16  ;;  %v245_v52 = vld [vmem:[%s6429_s27 + $0x8c] sm:$0x1] }
  0x63   : > { %v485_v7 = vrot.slane %v483_v56, 4  ;;  %v4952_v11 = vcombine.low %v458_v15, %v468_v6  ;;  %v477_v14 = vrot.slane %v476_v63, 4  ;;  %v491_v18 = vrot.slane %v489_v61, 5 }
  0x64   : > { %v2812_v21 = vsel %vm6681_vm7, %v5220_v2, %v2811_v22  ;;  %v496_v38 = vrot.slane %v494_v17, 4  ;;  %v497_v1 = vshll.u32 %v6707_v53, 16  ;;  %v503_v30 = vshll.u32 %v6714_v16, 16  ;;  %v6746_v22 = vld [vmem:[%s8222_s1 + $0x1c] sm:$0xf] }
  0x65   : > { %v486_v25 = vor.u32 %v485_v7, %v481_v58  ;;  %v5237_v31 = vcombine.low %v2812_v21, %v2815_v5  ;;  %5654 = vmatprep.mubr.msk.bf16.mxu1 %vm687_vm3, %v4952_v11  ;;  %v482_v28 = vsel %vm6455_vm4, %v477_v14, %v481_v58  ;;  %v507_v60 = vshrl.u32 %v6714_v16, 16  ;;  %v6765_v5 = vld [vmem:[%s6429_s27 + $0x90] sm:$0xf] }
  0x66   : > { %v513_v42 = vshll.u32 %v244_v57, 16  ;;  %v499_v45 = vrot.slane %v497_v1, 5  ;;  %v5221_v47 = vrot.slane %v5205_v10, 9  ;;  %v2818_v26 = vrot.slane %v6505_v46, 5  ;;  %v5206_v57 = vld [vmem:[%s6429_s27 + $0x30] sm:$0xe] }
  0x67   : > { %v487_v44 = vrot.slane %v486_v25, 4  ;;  %v505_v48 = vrot.slane %v503_v30, 5  ;;  %v509_v49 = vrot.slane %v507_v60, 4  ;;  %v2821_v51 = vrot.slane %v6514_v54, 5  ;;  %v6777_v30 = vld [vmem:[%s6429_s27 + $0x94] sm:$0xf] }
  0x68   : > { %v515_v50 = vrot.slane %v513_v42, 5  ;;  %5809 = vmatmul.mubr.msk.bf16.vlgmr.msra.gmra.mrb[0].mxu0 %vm687_vm3, %v5237_v31  ;;  %v500_v62 = vor.u32 %v499_v45, %v496_v38  ;;  %v2819_v55 = vsel %vm6681_vm7, %v5221_v47, %v2818_v26  ;;  %v2820_v56 = vrot.slane %v2818_v26, 4  ;;  %v246_v60 = vld [vmem:[%s6429_s27 + $0x98] sm:$0x1]  ;;  %v5207_v26 = vld [vmem:[%s6429_s27 + $0x3c] sm:$0xe] }
  0x69   : > { %v492_v15 = vsel %vm6455_vm4, %v487_v44, %v491_v18  ;;  %5841 = vmatpush3.bf16.msra.mxu0 %v6465_v41  ;;  %v510_v46 = vor.u32 %v509_v49, %v505_v48  ;;  %v518_v58 = vshrl.u32 %v6733_v39, 16  ;;  %v521_v54 = vshll.u32 %v6733_v39, 16 }
  0x6a   : > { %v4953_v63 = vcombine.low %v482_v28, %v492_v15  ;;  %v501_v61 = vrot.slane %v500_v62, 4  ;;  %v2822_v2 = vsel %vm6681_vm7, %v2820_v56, %v2821_v51  ;;  %v527_v6 = vshll.u32 %v6741_v43, 16  ;;  %6208 = vmatprep.subr.msk.bf16.mxu0 %vm736_vm0, %v6746_v22 }
  0x6b   : > { %v531_v7 = vshrl.u32 %v6741_v43, 16  ;;  %v511_v41 = vrot.slane %v510_v46, 4  ;;  %v5238_v17 = vcombine.low %v2819_v55, %v2822_v2  ;;  %v520_v10 = vrot.slane %v518_v58, 4  ;;  %v6797_v46 = vld [vmem:[%s6429_s27 + $0xa0] sm:$0xf] }
  0x6c   : > { %5655 = vmatmul.mubr.msk.bf16.gmra.mrb[16].mxu1 %vm687_vm3, %v4953_v63  ;;  %v523_v11 = vrot.slane %v521_v54, 5  ;;  %v506_v14 = vsel %vm6455_vm4, %v501_v61, %v505_v48  ;;  %v529_v18 = vrot.slane %v527_v6, 5  ;;  %v537_v25 = vshll.u32 %v245_v52, 16  ;;  %v6786_v52 = vld [vmem:[%s6429_s27 + $0x9c] sm:$0xf] }
  0x6d   : > { %v533_v21 = vrot.slane %v531_v7, 4  ;;  %v516_v31 = vsel %vm6455_vm4, %v511_v41, %v515_v50  ;;  %5812 = vmatprep.mubr.msk.bf16.mxu0 %vm687_vm3, %v5238_v17  ;;  %v5222_v1 = vrot.slane %v5206_v57, 9  ;;  %v2825_v28 = vrot.slane %v6534_v33, 5 }
  0x6e   : > { %v524_v38 = vor.u32 %v523_v11, %v520_v10  ;;  %v4954_v42 = vcombine.low %v506_v14, %v516_v31  ;;  %v539_v45 = vrot.slane %v537_v25, 5  ;;  %v2828_v47 = vrot.slane %v6542_v40, 5  ;;  %v247_v10 = vld [vmem:[%s6429_s27 + $0xa4] sm:$0x1]  ;;  %v5208_v11 = vld [vmem:[%s6429_s27 + $0x48] sm:$0xe] }
  0x6f   : > { %v534_v44 = vor.u32 %v533_v21, %v529_v18  ;;  %v2826_v49 = vsel %vm6681_vm7, %v5222_v1, %v2825_v28  ;;  %v2827_v50 = vrot.slane %v2825_v28, 4  ;;  %v542_v51 = vshrl.u32 %v6765_v5, 16 }
  0x70   : > { %v525_v48 = vrot.slane %v524_v38, 4  ;;  %5658 = vmatprep.mubr.msk.bf16.mxu1 %vm687_vm3, %v4954_v42  ;;  %v545_v15 = vshll.u32 %v6765_v5, 16  ;;  %v551_v62 = vshll.u32 %v6777_v30, 16  ;;  %v555_v40 = vshrl.u32 %v6777_v30, 16 }
  0x71   : > { %v535_v33 = vrot.slane %v534_v44, 4  ;;  %v2829_v56 = vsel %vm6681_vm7, %v2827_v50, %v2828_v47  ;;  %v544_v57 = vrot.slane %v542_v51, 4  ;;  %v561_v63 = vshll.u32 %v246_v60, 16 }
  0x72   : > { %v530_v55 = vsel %vm6455_vm4, %v525_v48, %v529_v18  ;;  %v5239_v54 = vcombine.low %v2826_v49, %v2829_v56  ;;  %v547_v61 = vrot.slane %v545_v15, 5  ;;  %v553_v2 = vrot.slane %v551_v62, 5  ;;  %v6823_v56 = vld [vmem:[%s6429_s27 + $0xac] sm:$0xf] }
  0x73   : > { %v540_v58 = vsel %vm6455_vm4, %v535_v33, %v539_v45  ;;  %v557_v7 = vrot.slane %v555_v40, 4  ;;  %v563_v41 = vrot.slane %v561_v63, 5  ;;  %v5223_v17 = vrot.slane %v5207_v26, 9  ;;  %v6818_v33 = vld [vmem:[%s6429_s27 + $0xa8] sm:$0xf] }
  0x74   : > { %v4955_v6 = vcombine.low %v530_v55, %v540_v58  ;;  %5813 = vmatmul.mubr.msk.bf16.gmra.mrb[4].mxu0 %vm687_vm3, %v5239_v54  ;;  %v548_v14 = vor.u32 %v547_v61, %v544_v57  ;;  %v2832_v18 = vrot.slane %v6559_v20, 5  ;;  %v2835_v21 = vrot.slane %v6564_v34, 5  ;;  %v248_v61 = vld [vmem:[%s6429_s27 + $0xb0] sm:$0x1] }
  0x75   : > { %v566_v25 = vshrl.u32 %v6786_v52, 16  ;;  %v558_v31 = vor.u32 %v557_v7, %v553_v2  ;;  %v569_v38 = vshll.u32 %v6786_v52, 16  ;;  %v575_v1 = vshll.u32 %v6797_v46, 16 }
  0x76   : > { %5659 = vmatmul.mubr.msk.bf16.gmra.mrb[20].mxu1 %vm687_vm3, %v4955_v6  ;;  %v579_v28 = vshrl.u32 %v6797_v46, 16  ;;  %v549_v60 = vrot.slane %v548_v14, 4  ;;  %v2833_v42 = vsel %vm6681_vm7, %v5223_v17, %v2832_v18  ;;  %v2834_v20 = vrot.slane %v2832_v18, 4  ;;  %v6838_v14 = vld [vmem:[%s6429_s27 + $0xb4] sm:$0xf] }
  0x77   : > { %v568_v44 = vrot.slane %v566_v25, 4  ;;  %v559_v34 = vrot.slane %v558_v31, 4  ;;  %v571_v45 = vrot.slane %v569_v38, 5  ;;  %v577_v47 = vrot.slane %v575_v1, 5 }
  0x78   : > { %v581_v26 = vrot.slane %v579_v28, 4  ;;  %v554_v48 = vsel %vm6455_vm4, %v549_v60, %v553_v2  ;;  %v2836_v49 = vsel %vm6681_vm7, %v2834_v20, %v2835_v21  ;;  %v585_v50 = vshll.u32 %v247_v10, 16  ;;  %v5209_v2 = vld [vmem:[%s6429_s27 + $0x54] sm:$0xe] }
  0x79   : > { %v5224_v51 = vrot.slane %v5208_v11, 9  ;;  %v564_v15 = vsel %vm6455_vm4, %v559_v34, %v563_v41  ;;  %v5240_v62 = vcombine.low %v2833_v42, %v2836_v49  ;;  %v572_v40 = vor.u32 %v571_v45, %v568_v44  ;;  %v6847_v42 = vld [vmem:[%s6429_s27 + $0xb8] sm:$0xf]  ;;  %v249_v49 = vld [vmem:[%s6429_s27 + $0xbc] sm:$0x1] }
  0x7a   : > { %v582_v55 = vor.u32 %v581_v26, %v577_v47  ;;  %v4956_v57 = vcombine.low %v554_v48, %v564_v15  ;;  %v587_v63 = vrot.slane %v585_v50, 5  ;;  %v2839_v58 = vrot.slane %v6582_v8, 5 }
  0x7b   : > { %v2842_v54 = vrot.slane %v6590_v23, 5  ;;  %5816 = vmatprep.mubr.msk.bf16.mxu0 %vm687_vm3, %v5240_v62  ;;  %v573_v6 = vrot.slane %v572_v40, 4  ;;  %v590_v41 = vshrl.u32 %v6818_v33, 16  ;;  %v593_v17 = vshll.u32 %v6818_v33, 16 }
  0x7c   : > { %v583_v7 = vrot.slane %v582_v55, 4  ;;  %5662 = vmatprep.mubr.msk.bf16.mxu1 %vm687_vm3, %v4956_v57  ;;  %v2840_v10 = vsel %vm6681_vm7, %v5224_v51, %v2839_v58  ;;  %v2841_v11 = vrot.slane %v2839_v58, 4  ;;  %v599_v8 = vshll.u32 %v6823_v56, 16  ;;  %v5210_v55 = vld [vmem:[%s6429_s27 + $0x60] sm:$0xe] }
  0x7d   : > { %v603_v23 = vshrl.u32 %v6823_v56, 16  ;;  %v578_v18 = vsel %vm6455_vm4, %v573_v6, %v577_v47  ;;  %v592_v25 = vrot.slane %v590_v41, 4  ;;  %v595_v31 = vrot.slane %v593_v17, 5  ;;  %v5211_v6 = vld [vmem:[%s6429_s27 + $0x6c] sm:$0xe] }
  0x7e   : > { %v588_v21 = vsel %vm6455_vm4, %v583_v7, %v587_v63  ;;  %v2843_v1 = vsel %vm6681_vm7, %v2841_v11, %v2842_v54  ;;  %v601_v28 = vrot.slane %v599_v8, 5  ;;  %v609_v34 = vshll.u32 %v248_v61, 16  ;;  %v5147_v11 = vld [vmem:[%s6429_s27 + $0x70] sm:$0xf]  ;;  %v5148_v8 = vld [vmem:[%s6429_s27 + $0x74] sm:$0x1] }
  0x7f   : > { %v4957_v38 = vcombine.low %v578_v18, %v588_v21  ;;  %v605_v60 = vrot.slane %v603_v23, 4  ;;  %v5241_v20 = vcombine.low %v2840_v10, %v2843_v1  ;;  %v596_v44 = vor.u32 %v595_v31, %v592_v25 }
  0x80   : > { %v5225_v45 = vrot.slane %v5209_v2, 9  ;;  %v2846_v26 = vrot.slane %v6613_v4, 5  ;;  %v2849_v48 = vrot.slane %v6619_v12, 5  ;;  %v614_v50 = vshrl.u32 %v6838_v14, 16 }
  0x81   : > { %5663 = vmatmul.mubr.msk.bf16.gmra.mrb[24].mxu1 %vm687_vm3, %v4957_v38  ;;  %v606_v47 = vor.u32 %v605_v60, %v601_v28  ;;  %5817 = vmatmul.mubr.msk.bf16.gmra.mrb[8].mxu0 %vm687_vm3, %v5241_v20  ;;  %v597_v51 = vrot.slane %v596_v44, 4  ;;  %v611_v15 = vrot.slane %v609_v34, 5  ;;  %v617_v62 = vshll.u32 %v6838_v14, 16 }
  0x82   : > { %v623_v40 = vshll.u32 %v6847_v42, 16  ;;  %v2847_v4 = vsel %vm6681_vm7, %v5225_v45, %v2846_v26  ;;  %v2848_v12 = vrot.slane %v2846_v26, 4  ;;  %v616_v63 = vrot.slane %v614_v50, 4 }
  0x83   : > { %v607_v57 = vrot.slane %v606_v47, 4  ;;  %v602_v58 = vsel %vm6455_vm4, %v597_v51, %v601_v28  ;;  %v619_v54 = vrot.slane %v617_v62, 5  ;;  %v627_v2 = vshrl.u32 %v6847_v42, 16  ;;  %v5212_v47 = vld [vmem:[%s6429_s27 + $0x78] sm:$0xe] }
  0x84   : > { %v625_v61 = vrot.slane %v623_v40, 5  ;;  %v2850_v41 = vsel %vm6681_vm7, %v2848_v12, %v2849_v48  ;;  %v633_v17 = vshll.u32 %v249_v49, 16  ;;  %v5226_v10 = vrot.slane %v5210_v55, 9  ;;  %v6283_v51 = vld [vmem:[%s6429_s27] sm:$0xf] }
  0x85   : > { %v612_v7 = vsel %vm6455_vm4, %v607_v57, %v611_v15  ;;  %v5242_v18 = vcombine.low %v2847_v4, %v2850_v41  ;;  %v620_v21 = vor.u32 %v619_v54, %v616_v63  ;;  %v629_v25 = vrot.slane %v627_v2, 4  ;;  %v6885_v15 = vld [vmem:[%s6429_s27 + $0x4] sm:$0xf]  ;;  %v6889_v40 = vld [vmem:[%s6429_s27 + $0x7c] sm:$0xf] }
  0x86   : > { %v4958_v23 = vcombine.low %v602_v58, %v612_v7  ;;  %v635_v31 = vrot.slane %v633_v17, 5  ;;  %v2853_v38 = vrot.slane %v6643_v59, 5  ;;  %v2856_v1 = vrot.slane %v6650_v9, 5  ;;  %v6892_v55 = vld [vmem:[%s6429_s27 + $0x80] sm:$0x1] }
  0x87   : > { %v5227_v28 = vrot.slane %v5211_v6, 9  ;;  %5820 = vmatprep.mubr.msk.bf16.mxu0 %vm687_vm3, %v5242_v18  ;;  %v621_v60 = vrot.slane %v620_v21, 4  ;;  %v630_v20 = vor.u32 %v629_v25, %v625_v61  ;;  %v2860_v44 = vrot.slane %v5147_v11, 5  ;;  %v5153_v57 = vld [vmem:[%s6429_s27 + $0x88] sm:$0xf] }
  0x88   : > { %5666 = vmatprep.mubr.msk.bf16.mxu1 %vm687_vm3, %v4958_v23  ;;  %v2863_v34 = vrot.slane %v5148_v8, 5  ;;  %v2854_v45 = vsel %vm6681_vm7, %v5226_v10, %v2853_v38  ;;  %v2855_v59 = vrot.slane %v2853_v38, 4  ;;  %v4976_v62 = vcombine.low %v6283_v51, %v6885_v15  ;;  %v5154_v54 = vld [vmem:[%s6429_s27 + $0x8c] sm:$0x1]  ;;  %v5156_v17 = vld [vmem:[%s6429_s27 + $0x94] sm:$0xf] }
  0x89   : > { %v626_v9 = vsel %vm6455_vm4, %v621_v60, %v625_v61  ;;  %v631_v26 = vrot.slane %v630_v20, 4  ;;  %v2861_v48 = vsel %vm6681_vm7, %v5227_v28, %v2860_v44  ;;  %v2862_v49 = vrot.slane %v2860_v44, 4  ;;  %v5213_v61 = vld [vmem:[%s6429_s27 + $0x84] sm:$0xe]  ;;  %v5214_v23 = vld [vmem:[%s6429_s27 + $0x90] sm:$0xe] }
  0x8a   : > { %v2857_v50 = vsel %vm6681_vm7, %v2855_v59, %v2856_v1  ;;  %v5228_v58 = vrot.slane %v5212_v47, 9  ;;  %v2867_v7 = vrot.slane %v6889_v40, 5  ;;  %v2870_v41 = vrot.slane %v6892_v55, 5  ;;  %v5157_v25 = vld [vmem:[%s6429_s27 + $0x98] sm:$0x1] }
  0x8b   : > { %v636_v4 = vsel %vm6455_vm4, %v631_v26, %v635_v31  ;;  %v5243_v12 = vcombine.low %v2854_v45, %v2857_v50  ;;  %v2864_v63 = vsel %vm6681_vm7, %v2862_v49, %v2863_v34  ;;  %v5229_v10 = vrot.slane %v5213_v61, 9  ;;  %v5159_v31 = vld [vmem:[%s6429_s27 + $0xa0] sm:$0xf]  ;;  %v5160_v60 = vld [vmem:[%s6429_s27 + $0xa4] sm:$0x1] }
  0x8c   : > { %v4959_v2 = vcombine.low %v626_v9, %v636_v4  ;;  %v5244_v6 = vcombine.low %v2861_v48, %v2864_v63  ;;  %v2874_v11 = vrot.slane %v5153_v57, 5  ;;  %v2877_v8 = vrot.slane %v5154_v54, 5  ;;  %v5215_v20 = vld [vmem:[%s6429_s27 + $0x9c] sm:$0xe]  ;;  %v6285_v44 = vld [vmem:[%s6429_s27 + $0xc] sm:$0xf] }
  0x8d   : > { %5821 = vmatmul.mubr.msk.bf16.gmra.mrb[12].mxu0 %vm687_vm3, %v5243_v12  ;;  %v2868_v18 = vsel %vm6681_vm7, %v5228_v58, %v2867_v7  ;;  %v2869_v21 = vrot.slane %v2867_v7, 4  ;;  %v2881_v28 = vrot.slane %v5156_v17, 5  ;;  %v6919_v34 = vld [vmem:[%s6429_s27 + $0x10] sm:$0xf]  ;;  %v6287_v47 = vld [vmem:[%s6429_s27 + $0x18] sm:$0xf] }
  0x8e   : > { %5667 = vmatmul.mubr.msk.bf16.gmra.mrb[28].mxu1 %vm687_vm3, %v4959_v2  ;;  %5824 = vmatprep.mubr.msk.bf16.mxu0 %vm687_vm3, %v5244_v6  ;;  %v2875_v38 = vsel %vm6681_vm7, %v5229_v10, %v2874_v11  ;;  %v2876_v1 = vrot.slane %v2874_v11, 4  ;;  %v4977_v45 = vcombine.low %v6285_v44, %v6919_v34  ;;  %v6926_v9 = vld [vmem:[%s6429_s27 + $0x1c] sm:$0xf]  ;;  %v5230_v48 = vrot.slane %v5214_v23, 9  ;;  %v5162_v57 = vld [vmem:[%s6429_s27 + $0xac] sm:$0xf] }
  0x8f   : > { %5672 = vmatprep.mubr.msk.bf16.mxu1 %vm687_vm3, %v4976_v62  ;;  %v2871_v59 = vsel %vm6681_vm7, %v2869_v21, %v2870_v41  ;;  %v4978_v26 = vcombine.low %v6287_v47, %v6926_v9  ;;  %v2883_v51 = vrot.slane %v2881_v28, 4  ;;  %v2884_v62 = vrot.slane %v5157_v25, 5  ;;  %v6289_v54 = vld [vmem:[%s8222_s1 + $0x8] sm:$0xf]  ;;  %v5165_v2 = vld [vmem:[%s6429_s27 + $0xb8] sm:$0xf] }
  0x90   : > { %v5245_v49 = vcombine.low %v2868_v18, %v2871_v59  ;;  %v2878_v50 = vsel %vm6681_vm7, %v2876_v1, %v2877_v8  ;;  %v5231_v12 = vrot.slane %v5215_v20, 9  ;;  %v2888_v63 = vrot.slane %v5159_v31, 5  ;;  %v6941_v7 = vld [vmem:[%s8222_s1 + $0xc] sm:$0xf]  ;;  %v5163_v10 = vld [vmem:[%s6429_s27 + $0xb0] sm:$0x1] }
  0x91   : > { %v5246_v4 = vcombine.low %v2875_v38, %v2878_v50  ;;  %v2891_v58 = vrot.slane %v5160_v60, 5  ;;  %v1455_v61 = vsel %vm736_vm0, %v6289_v54, 0  ;;  %v2882_v41 = vsel %vm6681_vm7, %v5230_v48, %v2881_v28  ;;  %v5216_v11 = vld [vmem:[%s6429_s27 + $0xa8] sm:$0xe]  ;;  %v5166_v25 = vld [vmem:[%s6429_s27 + $0xbc] sm:$0x1] }
  0x92   : > { %v2890_v6 = vrot.slane %v2888_v63, 4  ;;  %v2885_v17 = vsel %vm6681_vm7, %v2883_v51, %v2884_v62  ;;  %v2895_v8 = vrot.slane %v5162_v57, 5  ;;  %v2889_v23 = vsel %vm6681_vm7, %v5231_v12, %v2888_v63  ;;  %v5217_v31 = vld [vmem:[%s6429_s27 + $0xb4] sm:$0xe]  ;;  %v6290_v38 = vld [vmem:[%s6429_s27 + $0x24] sm:$0xf] }
  0x93   : > { %v2902_v21 = vrot.slane %v5165_v2, 5  ;;  %v6962_v1 = vld [vmem:[%s6429_s27 + $0x28] sm:$0xf]  ;;  %v5247_v60 = vcombine.low %v2882_v41, %v2885_v17  ;;  %v5232_v44 = vrot.slane %v5216_v11, 9  ;;  %v2898_v59 = vrot.slane %v5163_v10, 5 }
  0x94   : > { %v2892_v18 = vsel %vm6681_vm7, %v2890_v6, %v2891_v58  ;;  %v4979_v28 = vcombine.low %v6290_v38, %v6962_v1  ;;  %v6292_v47 = vld [vmem:[%s6429_s27 + $0x30] sm:$0xf]  ;;  %v2905_v51 = vrot.slane %v5166_v25, 5  ;;  %v5168_v62 = vld [vmem:[%s6429_s27 + $0xc4] sm:$0xf]  ;;  %v2290_v25 = vshrl.u32 %v6889_v40, 16 }
  0x95   : > { %5825 = vmatmul.mubr.msk.bf16.gmra.mrb[16].mxu0 %vm687_vm3, %v5245_v49  ;;  %v5248_v20 = vcombine.low %v2889_v23, %v2892_v18  ;;  %v5233_v49 = vrot.slane %v5217_v31, 9  ;;  %v2904_v50 = vrot.slane %v2902_v21, 4  ;;  %v2896_v57 = vsel %vm6681_vm7, %v5232_v44, %v2895_v8  ;;  %v5218_v12 = vld [vmem:[%s6429_s27 + $0xc0] sm:$0xe]  ;;  %v6294_v41 = vld [vmem:[%s6429_s27 + $0x3c] sm:$0xf] }
  0x96   : > { %5673 = vmatmul.mubr.msk.bf16.vlgmr.msra.gmra.mrb[0].mxu1 %vm687_vm3, %v4977_v45  ;;  %5828 = vmatprep.mubr.msk.bf16.mxu0 %vm687_vm3, %v5246_v4  ;;  %v2897_v45 = vrot.slane %v2895_v8, 4  ;;  %v2909_v63 = vrot.slane %v5168_v62, 5  ;;  %v5234_v6 = vrot.slane %v5218_v12, 9  ;;  %v6987_v17 = vld [vmem:[%s6429_s27 + $0x40] sm:$0xf]  ;;  %v4982_v18 = vcombine.low %v6594_v27, %v6597_v36  ;;  %v6246_v62 = vld [vmem:[%s6429_s27 + $0x24] sm:$0xff]  }
  0x97   : > { %5705 = vmatpush3.bf16.msra.mxu1 %v1455_v61  ;;  %5676 = vmatprep.mubr.msk.bf16.mxu1 %vm687_vm3, %v4978_v26  ;;  %v6967_v26 = vld [vmem:[%s6429_s27 + $0x34] sm:$0xf]  ;;  %v2903_v58 = vsel %vm6681_vm7, %v5233_v49, %v2902_v21  ;;  %v2906_v54 = vsel %vm6681_vm7, %v2904_v50, %v2905_v51  ;;  %v5169_v61 = vld [vmem:[%s6429_s27 + $0xc8] sm:$0x1]  ;;  %v4981_v10 = vcombine.low %v6294_v41, %v6987_v17  ;;  %v2286_v21 = vshll.u32 %v6889_v40, 16 }
  0x98   : > { %6203 = vmatprep.subr.msk.bf16.mxu1 %vm736_vm0, %v6941_v7  ;;  %v4980_v48 = vcombine.low %v6292_v47, %v6967_v26  ;;  %v2899_v4 = vsel %vm6681_vm7, %v2897_v45, %v2898_v59  ;;  %v5250_v11 = vcombine.low %v2903_v58, %v2906_v54  ;;  %v2911_v8 = vrot.slane %v2909_v63, 4  ;;  %v1193_v45 = vld [vmem:[%s6429_s27] sm:$0xe]  ;;  %v1194_v59 = vld [vmem:[%s6429_s27 + $0xc] sm:$0xe] }
  0x99   : > { %v5249_v2 = vcombine.low %v2896_v57, %v2899_v4  ;;  %v2912_v23 = vrot.slane %v5169_v61, 5  ;;  %v2910_v31 = vsel %vm6681_vm7, %v5234_v6, %v2909_v63  ;;  %v7002_v27 = vrot.slane %v2286_v21, 5  ;;  %v1197_v41 = vld [vmem:[%s6429_s27 + $0x30] sm:$0xe] }
  0x9a   : > { %v2292_v36 = vrot.slane %v2290_v25, 4  ;;  %v4984_v44 = vcombine.low %v6654_v19, %v6660_v35  ;;  %v2296_v47 = vshll.u32 %v6892_v55, 16  ;;  %v5008_v19 = vrot.slane %v1193_v45, 9 }
  0x9b   : > { %v2913_v38 = vsel %vm6681_vm7, %v2911_v8, %v2912_v23  ;;  %8243 = vst [vmem:[#allocation3_spill] sm:$0xff] %v7002_v27  ;;  %v5009_v35 = vrot.slane %v1194_v59, 9  ;;  %v1260_v4 = vrot.slane %v6926_v9, 5  ;;  %v1267_v12 = vrot.slane %v6962_v1, 5  ;;  %v1198_v8 = vld [vmem:[%s6429_s27 + $0x3c] sm:$0xe] }
  0x9c   : > { %v5251_v40 = vcombine.low %v2910_v31, %v2913_v38  ;;  %v2293_v49 = vor.u32 %v2292_v36, %v7002_v27  ;;  %v7022_v51 = vrot.slane %v2296_v47, 5  ;;  %v4985_v58 = vcombine.low %v6675_v0, %v6688_v29  ;;  %v1199_v31 = vld [vmem:[%s6429_s27 + $0x48] sm:$0xe]  ;;  %v6300_v59 = vld [vmem:[%s6429_s27 + $0x38] sm:$0x1] }
  0x9d   : > { %5829 = vmatmul.mubr.msk.bf16.gmra.mrb[20].mxu0 %vm687_vm3, %v5247_v60  ;;  %v4983_v60 = vcombine.low %v6623_v24, %v6629_v37  ;;  %v6297_v24 = vld [vmem:[%s6429_s27 + $0x14] sm:$0x1]  ;;  %v4101_v54 = vsel %vm736_vm0, %v6746_v22, 0  ;;  %v4986_v61 = vcombine.low %v6707_v53, %v6714_v16  ;;  %v4987_v6 = vcombine.low %v6733_v39, %v6741_v43  ;;  %v6298_v16 = vld [vmem:[%s6429_s27 + $0x20] sm:$0x1] }
  0x9e   : > { %5677 = vmatmul.mubr.msk.bf16.gmra.mrb[4].mxu1 %vm687_vm3, %v4979_v28  ;;  %5832 = vmatprep.mubr.msk.bf16.mxu0 %vm687_vm3, %v5248_v20  ;;  %v1253_v28 = vrot.slane %v6919_v34, 5  ;;  %v6244_v20 = vld [vmem:[%s6429_s27 + $0x18] sm:$0xff]   ;;  %v6296_v34 = vld [vmem:[%s6429_s27 + $0x8] sm:$0x1]  ;;  %v1256_v37 = vrot.slane %v6297_v24, 5  ;;  %8244 = vst [vmem:[#allocation4_spill] sm:$0xff] %v7022_v51  ;;  %v4988_v9 = vcombine.low %v6765_v5, %v6777_v30 }
  0x9f   : > { %5680 = vmatprep.mubr.msk.bf16.mxu1 %vm687_vm3, %v4980_v48  ;;  %v1246_v48 = vrot.slane %v6885_v15, 5  ;;  %v1249_v50 = vrot.slane %v6296_v34, 5  ;;  %v1195_v15 = vld [vmem:[%s6429_s27 + $0x18] sm:$0xe]  ;;  %v7027_v63 = vrot.slane %v2293_v49, 4  ;;  %v1263_v22 = vrot.slane %v6298_v16, 5 }
  0xa0   : > { %v1255_v55 = vrot.slane %v1253_v28, 4  ;;  %v5010_v1 = vrot.slane %v1195_v15, 9  ;;  %v7049_v29 = vsel %vm6681_vm7, %v5009_v35, %v1253_v28  ;;  %v1269_v25 = vrot.slane %v1267_v12, 4  ;;  %v5333_v24 = vld [vmem:[%s6429_s27 + $0x18] sm:$0xf] }
  0xa1   : > { %v1248_v57 = vrot.slane %v1246_v48, 4  ;;  %8245 = vst [vmem:[#allocation5_spill] sm:$0xff] %v7027_v63  ;;  %v7045_v0 = vsel %vm6681_vm7, %v5008_v19, %v1246_v48  ;;  %v1277_v47 = vrot.slane %v6300_v59, 5  ;;  %v7086_v49 = vsel %vm736_vm0, %v6941_v7, 0  ;;  %v5334_v7 = vld [vmem:[%s6429_s27 + $0x1c] sm:$0xf] }
  0xa2   : > { %v7053_v53 = vsel %vm6681_vm7, %v1255_v55, %v1256_v37  ;;  %v7090_v34 = vsel %vm6681_vm7, %v5010_v1, %v1260_v4  ;;  %v6250_v37 = vld [vmem:[%s6429_s27 + $0x3c] sm:$0xff]   ;;  %v5013_v35 = vrot.slane %v1198_v8, 9  ;;  %v6301_v55 = vld [vmem:[%s6429_s27 + $0x44] sm:$0x1]  ;;  %v3622_v8 = vshll.u32 %v5333_v24, 16 }
  0xa3   : > { %v7064_v23 = vsel %vm6681_vm7, %v1248_v57, %v1249_v50  ;;  %v1200_v50 = vld [vmem:[%s6429_s27 + $0x54] sm:$0xe]  ;;  %v1284_v15 = vrot.slane %v6301_v55, 5  ;;  %v5337_v39 = vld [vmem:[%s6429_s27 + $0x28] sm:$0xf] }
  0xa4   : > { %v6308_v5 = vld [vmem:[%s6429_s27 + $0x70] sm:$0xf] }
  0xa5   : > { %5833 = vmatmul.mubr.msk.bf16.gmra.mrb[24].mxu0 %vm687_vm3, %v5249_v2  ;;  %v1196_v2 = vld [vmem:[%s6429_s27 + $0x24] sm:$0xe]  ;;  %v1309_v30 = vrot.slane %v6308_v5, 5 }
  0xa6   : > { %5681 = vmatmul.mubr.msk.bf16.gmra.mrb[8].mxu1 %vm687_vm3, %v4981_v10  ;;  %5836 = vmatprep.mubr.msk.bf16.mxu0 %vm687_vm3, %v5250_v11  ;;  %v1274_v10 = vrot.slane %v6967_v26, 5  ;;  %v6248_v11 = vld [vmem:[%s6429_s27 + $0x30] sm:$0xff]   ;;  %v7060_v26 = vld [vmem:[%s8222_s1 + $0x20] sm:$0xf]  ;;  %v5011_v21 = vrot.slane %v1196_v2, 9 }
  0xa7   : > { %5684 = vmatprep.mubr.msk.bf16.mxu1 %vm687_vm3, %v4982_v18  ;;  %v1262_v18 = vrot.slane %v1260_v4, 4  ;;  %v1311_v48 = vrot.slane %v1309_v30, 4 }
  0xa8   : > { %v1276_v45 = vrot.slane %v1274_v10, 4  ;;  %v7097_v19 = vsel %vm6681_vm7, %v5011_v21, %v1267_v12  ;;  %v3632_v21 = vshrl.u32 %v5334_v7, 16 }
  0xa9   : > { %v7106_v4 = vsel %vm6681_vm7, %v1262_v18, %v1263_v22  ;;  %v3619_v22 = vshrl.u32 %v5333_v24, 16  ;;  %v3628_v18 = vshll.u32 %v5334_v7, 16  ;;  %v5336_v24 = vld [vmem:[%s6429_s27 + $0x24] sm:$0xf] }
  0xaa   : > { %v7119_v1 = vsel %vm6681_vm7, %v1276_v45, %v1277_v47 }
  0xab   : > { %v3621_v43 = vrot.slane %v3619_v22, 4  ;;  %v7161_v7 = vrot.slane %v3628_v18, 5  ;;  %v3646_v22 = vshll.u32 %v5336_v24, 16  ;;  %v3656_v18 = vshrl.u32 %v5337_v39, 16 }
  0xad   : > { %5837 = vmatmul.mubr.msk.bf16.gmra.mrb[28].mxu0 %vm687_vm3, %v5251_v40  ;;  %v6299_v40 = vld [vmem:[%s6429_s27 + $0x2c] sm:$0x1]  ;;  %v3648_v27 = vrot.slane %v3646_v22, 5 }
  0xae   : > { %5685 = vmatmul.mubr.msk.bf16.gmra.mrb[12].mxu1 %vm687_vm3, %v4983_v60  ;;  %5842 = vmatprep.mubr.msk.bf16.mxu0 %vm687_vm3, %v6244_v20  ;;  %v1270_v28 = vrot.slane %v6299_v40, 5  ;;  %v1281_v60 = vrot.slane %v6987_v17, 5  ;;  %v6304_v40 = vld [vmem:[%s6429_s27 + $0x50] sm:$0x1]  ;;  %v6309_v17 = vld [vmem:[%s6429_s27 + $0x74] sm:$0x1] }
  0xaf   : > { %5688 = vmatprep.mubr.msk.bf16.mxu1 %vm687_vm3, %v4984_v44  ;;  %v5012_v44 = vrot.slane %v1197_v41, 9  ;;  %v5015_v41 = vrot.slane %v1200_v50, 9  ;;  %v1201_v50 = vld [vmem:[%s6429_s27 + $0x60] sm:$0xe]  ;;  %v5338_v20 = vld [vmem:[%s6429_s27 + $0x2c] sm:$0x1] }
  0xb0   : > { %v1283_v12 = vrot.slane %v1281_v60, 4  ;;  %v7132_v45 = vsel %vm6681_vm7, %v5013_v35, %v1281_v60  ;;  %v6305_v35 = vld [vmem:[%s6429_s27 + $0x5c] sm:$0x1] }
  0xb1   : > { %v7115_v2 = vsel %vm6681_vm7, %v5012_v44, %v1274_v10  ;;  %v1298_v55 = vrot.slane %v6305_v35, 5  ;;  %v1202_v35 = vld [vmem:[%s6429_s27 + $0x6c] sm:$0xe] }
  0xb2   : > { %v7136_v59 = vsel %vm6681_vm7, %v1283_v12, %v1284_v15  ;;  %v6306_v15 = vld [vmem:[%s6429_s27 + $0x64] sm:$0xf]  ;;  %v3634_v12 = vrot.slane %v3632_v21, 4  ;;  %v5017_v5 = vrot.slane %v1202_v35, 9 }
  0xb3   : > { %v6256_v21 = vld [vmem:[%s6429_s27 + $0x60] sm:$0xff]  }
  0xb5   : > { %5843 = vmatmul.mubr.msk.bf16.vlgmr.msra.gmra.mrb[0].mxu0 %vm687_vm3, %v6246_v62  ;;  %v6302_v62 = vld [vmem:[%s6429_s27 + $0x4c] sm:$0xf] }
  0xb6   : > { %5689 = vmatmul.mubr.msk.bf16.gmra.mrb[16].mxu1 %vm687_vm3, %v4985_v58  ;;  %5875 = vmatpush3.bf16.msra.mxu0 %v4101_v54  ;;  %v1288_v57 = vrot.slane %v6302_v62, 5  ;;  %v7110_v58 = vsel %vm6681_vm7, %v1269_v25, %v1270_v28  ;;  %v5014_v54 = vrot.slane %v1199_v31, 9  ;;  %v1291_v28 = vrot.slane %v6304_v40, 5 }
  0xb7   : > { %5692 = vmatprep.mubr.msk.bf16.mxu1 %vm687_vm3, %v4986_v61  ;;  %5846 = vmatprep.mubr.msk.bf16.mxu0 %vm687_vm3, %v6248_v11  ;;  %v6252_v61 = vld [vmem:[%s6429_s27 + $0x48] sm:$0xff]   ;;  %v6303_v11 = vld [vmem:[%s6429_s27 + $0x58] sm:$0xf]  ;;  %v1302_v62 = vrot.slane %v6306_v15, 5  ;;  %v5340_v15 = vld [vmem:[%s6429_s27 + $0x34] sm:$0xf] }
  0xb8   : > { %6209 = vmatprep.subr.msk.bf16.mxu0 %vm736_vm0, %v7060_v26  ;;  %v1295_v16 = vrot.slane %v6303_v11, 5  ;;  %v1290_v31 = vrot.slane %v1288_v57, 4  ;;  %v7140_v47 = vsel %vm6681_vm7, %v5014_v54, %v1288_v57  ;;  %v5335_v57 = vld [vmem:[%s6429_s27 + $0x20] sm:$0x1]  ;;  %v5339_v54 = vld [vmem:[%s6429_s27 + $0x30] sm:$0xf] }
  0xb9   : > { %v5016_v11 = vrot.slane %v1201_v50, 9  ;;  %v3670_v50 = vshll.u32 %v5339_v54, 16  ;;  %v3638_v25 = vshll.u32 %v5335_v57, 16  ;;  %v3676_v36 = vshll.u32 %v5340_v15, 16 }
  0xba   : > { %v7151_v60 = vsel %vm6681_vm7, %v5015_v41, %v1295_v16  ;;  %v7167_v41 = vsel %vm6681_vm7, %v1290_v31, %v1291_v28  ;;  %v1304_v31 = vrot.slane %v1302_v62, 4  ;;  %v3667_v28 = vshrl.u32 %v5339_v54, 16 }
  0xbb   : > { %v7209_v35 = vrot.slane %v3676_v36, 5 }
  0xbd   : > { %5847 = vmatmul.mubr.msk.bf16.gmra.mrb[4].mxu0 %vm687_vm3, %v6250_v37  ;;  %v1297_v37 = vrot.slane %v1295_v16, 4  ;;  %v6307_v16 = vld [vmem:[%s6429_s27 + $0x68] sm:$0x1] }
  0xbe   : > { %5693 = vmatmul.mubr.msk.bf16.gmra.mrb[20].mxu1 %vm687_vm3, %v4987_v6  ;;  %5850 = vmatprep.mubr.msk.bf16.mxu0 %vm687_vm3, %v6252_v61  ;;  %v3624_v6 = vrot.slane %v3622_v8, 5  ;;  %v6254_v61 = vld [vmem:[%s6429_s27 + $0x54] sm:$0xff]   ;;  %v1305_v40 = vrot.slane %v6307_v16, 5  ;;  %v3652_v8 = vshll.u32 %v5337_v39, 16  ;;  %v3635_v16 = vor.u32 %v3634_v12, %v7161_v7 }
  0xbf   : > { %5696 = vmatprep.mubr.msk.bf16.mxu1 %vm687_vm3, %v4988_v9  ;;  %v3643_v9 = vshrl.u32 %v5336_v24, 16  ;;  %v7176_v44 = vsel %vm6681_vm7, %v1297_v37, %v1298_v55  ;;  %v1312_v24 = vrot.slane %v6309_v17, 5  ;;  %v3680_v39 = vshrl.u32 %v5340_v15, 16 }
  0xc0   : > { %v3625_v10 = vor.u32 %v3624_v6, %v3621_v43  ;;  %v7182_v37 = vrot.slane %v3652_v8, 5  ;;  %v3658_v55 = vrot.slane %v3656_v18, 4  ;;  %v8246_v43 = vcombine.low %v6786_v52, %v6797_v46  ;;  %v6310_v8 = vld [vmem:[%s6429_s27 + $0x7c] sm:$0xf]  ;;  %v7218_v18 = vld [vmem:[%s6429_s27 + $0x38] sm:$0x1] }
  0xc1   : > { %v3645_v38 = vrot.slane %v3643_v9, 4  ;;  %v7191_v17 = vsel %vm6681_vm7, %v5016_v11, %v1302_v62  ;;  %v7195_v57 = vsel %vm6681_vm7, %v1304_v31, %v1305_v40  ;;  %v3669_v6 = vrot.slane %v3667_v28, 4  ;;  %8248 = vst [vmem:[#allocation6_spill] sm:$0xff] %v7218_v18 }
  0xc2   : > { %v3672_v12 = vrot.slane %v3670_v50, 5  ;;  %v8247_v52 = vcombine.low %v6818_v33, %v6823_v56  ;;  %v3626_v46 = vrot.slane %v3625_v10, 4  ;;  %v3636_v54 = vrot.slane %v3635_v16, 4  ;;  %v6258_v33 = vld [vmem:[%s6429_s27 + $0x6c] sm:$0xff]   ;;  %v1204_v16 = vld [vmem:[%s6429_s27 + $0x84] sm:$0xe] }
  0xc3   : > { %v3662_v62 = vshll.u32 %v5338_v20, 16  ;;  %v7203_v11 = vsel %vm6681_vm7, %v5017_v5, %v1309_v30  ;;  %v7207_v40 = vsel %vm6681_vm7, %v1311_v48, %v1312_v24  ;;  %v3682_v9 = vrot.slane %v3680_v39, 4  ;;  %v6259_v48 = vld [vmem:[%s6429_s27 + $0x78] sm:$0xff]  }
  0xc4   : > { %v3649_v10 = vor.u32 %v3648_v27, %v3645_v38  ;;  %v3659_v20 = vor.u32 %v3658_v55, %v7182_v37  ;;  %v1316_v30 = vrot.slane %v6310_v8, 5  ;;  %v3673_v38 = vor.u32 %v3672_v12, %v3669_v6  ;;  %v5342_v5 = vld [vmem:[%s6429_s27 + $0x3c] sm:$0xf] }
  0xc5   : > { %5851 = vmatmul.mubr.msk.bf16.gmra.mrb[8].mxu0 %vm687_vm3, %v6254_v61  ;;  %v3640_v61 = vrot.slane %v3638_v25, 5  ;;  %v1203_v25 = vld [vmem:[%s6429_s27 + $0x78] sm:$0xe]  ;;  %v7234_v50 = vrot.slane %v3662_v62, 5  ;;  %v3683_v39 = vor.u32 %v3682_v9, %v7209_v35  ;;  %v3686_v55 = vshll.u32 %v7218_v18, 16 }
  0xc6   : > { %5697 = vmatmul.mubr.msk.bf16.gmra.mrb[24].mxu1 %vm687_vm3, %v8246_v43  ;;  %5854 = vmatprep.mubr.msk.bf16.mxu0 %vm687_vm3, %v6256_v21  ;;  %v3631_v21 = vsel %vm6455_vm4, %v3626_v46, %v7161_v7  ;;  %v5018_v24 = vrot.slane %v1203_v25, 9  ;;  %v6311_v43 = vld [vmem:[%s6429_s27 + $0x88] sm:$0xf]  ;;  %v7242_v7 = vld [vmem:[%s6429_s27 + $0x40] sm:$0xf]  ;;  %v3650_v12 = vrot.slane %v3649_v10, 4  ;;  %v8250_v62 = vcombine.low %v6838_v14, %v6847_v42 }
  0xc7   : > { %5700 = vmatprep.mubr.msk.bf16.mxu1 %vm687_vm3, %v8247_v52  ;;  %v3641_v31 = vsel %vm6455_vm4, %v3636_v54, %v3640_v61  ;;  %v1323_v6 = vrot.slane %v6311_v43, 5  ;;  %8249 = vst [vmem:[#allocation7_spill] sm:$0xff] %v7242_v7  ;;  %v3660_v52 = vrot.slane %v3659_v20, 4  ;;  %v1318_v46 = vrot.slane %v1316_v30, 4  ;;  %v6312_v54 = vld [vmem:[%s6429_s27 + $0x80] sm:$0x1] }
  0xc8   : > { %v1319_v61 = vrot.slane %v6312_v54, 5  ;;  %v3674_v9 = vrot.slane %v3673_v38, 4  ;;  %v5019_v25 = vrot.slane %v1204_v16, 9  ;;  %v3691_v8 = vshrl.u32 %v5342_v5, 16  ;;  %v6260_v10 = vld [vmem:[%s6429_s27 + $0x84] sm:$0xff]  }
  0xc9   : > { %v3694_v43 = vshll.u32 %v5342_v5, 16  ;;  %v7256_v20 = vcombine.low %v3631_v21, %v3641_v31  ;;  %v7260_v14 = vsel %vm736_vm0, %v7060_v26, 0  ;;  %v3704_v38 = vshrl.u32 %v7242_v7, 16  ;;  %v6261_v21 = vld [vmem:[%s6429_s27 + $0x90] sm:$0xff]   ;;  %v6317_v18 = vld [vmem:[%s6429_s27 + $0xa0] sm:$0xf] }
  0xca   : > { %v3684_v16 = vrot.slane %v3683_v39, 4  ;;  %v3688_v5 = vrot.slane %v3686_v55, 5  ;;  %v1325_v54 = vrot.slane %v1323_v6, 4  ;;  %v3655_v31 = vsel %vm6455_vm4, %v3650_v12, %v7182_v37 }
  0xcb   : > { %v3665_v26 = vsel %vm6455_vm4, %v3660_v52, %v7234_v50  ;;  %v7275_v39 = vsel %vm6681_vm7, %v5018_v24, %v1316_v30  ;;  %v7279_v55 = vsel %vm6681_vm7, %v1318_v46, %v1319_v61  ;;  %v3679_v37 = vsel %vm6455_vm4, %v3674_v9, %v7209_v35  ;;  %v5348_v30 = vld [vmem:[%s6429_s27 + $0x54] sm:$0xf]  ;;  %v7296_v24 = vld [vmem:[%s6429_s27 + $0x58] sm:$0xf]  ;;  %v7301_v61 = vld [vmem:[%s6429_s27 + $0x90] sm:$0xe] }
  0xcc   : > { %v7292_v12 = vsel %vm6681_vm7, %v5019_v25, %v1323_v6  ;;  %v3693_v50 = vrot.slane %v3691_v8, 4  ;;  %v3696_v52 = vrot.slane %v3694_v43, 5  ;;  %v3706_v46 = vrot.slane %v3704_v38, 4 }
  0xcd   : > { %5855 = vmatmul.mubr.msk.bf16.gmra.mrb[12].mxu0 %vm687_vm3, %v6258_v33  ;;  %v8251_v33 = vcombine.low %v7045_v0, %v7064_v23  ;;  %v6313_v0 = vld [vmem:[%s6429_s27 + $0x8c] sm:$0x1]  ;;  %v3689_v36 = vsel %vm6455_vm4, %v3684_v16, %v3688_v5  ;;  %v3739_v25 = vshrl.u32 %v5348_v30, 16  ;;  %v3742_v8 = vshll.u32 %v5348_v30, 16 }
  0xce   : > { %5701 = vmatmul.mubr.msk.bf16.gmra.mrb[28].mxu1 %vm687_vm3, %v8250_v62  ;;  %5858 = vmatprep.mubr.msk.bf16.mxu0 %vm687_vm3, %v6259_v48  ;;  %v3700_v48 = vshll.u32 %v7242_v7, 16  ;;  %v1326_v23 = vrot.slane %v6313_v0, 5  ;;  %v5345_v62 = vld [vmem:[%s6429_s27 + $0x48] sm:$0xf]  ;;  %v7285_v0 = vld [vmem:[%s6429_s27 + $0x4c] sm:$0xf]  ;;  %v8253_v38 = vcombine.low %v7049_v29, %v7053_v53  ;;  %v7319_v16 = vcombine.low %v3655_v31, %v3665_v26 }
  0xcf   : > { %5706 = vmatprep.mubr.msk.bf16.mxu1 %vm687_vm3, %v8251_v33  ;;  %v7282_v33 = vld [vmem:[%s6429_s27 + $0x44] sm:$0x1]  ;;  %v3715_v27 = vshrl.u32 %v5345_v62, 16  ;;  %v3718_v15 = vshll.u32 %v5345_v62, 16  ;;  %v3724_v6 = vshll.u32 %v7285_v0, 16  ;;  %v3728_v9 = vshrl.u32 %v7285_v0, 16 }
  0xd0   : > { %8252 = vst [vmem:[#allocation8_spill] sm:$0xff] %v7282_v33  ;;  %v7298_v28 = vrot.slane %v3700_v48, 5  ;;  %v7307_v35 = vsel %vm6681_vm7, %v1325_v54, %v1326_v23  ;;  %v3748_v43 = vshll.u32 %v7296_v24, 16  ;;  %v3752_v48 = vshrl.u32 %v7296_v24, 16  ;;  %v5351_v31 = vld [vmem:[%s6429_s27 + $0x60] sm:$0xf] }
  0xd1   : > { %v3710_v5 = vshll.u32 %v7282_v33, 16  ;;  %v5020_v54 = vrot.slane %v7301_v61, 9  ;;  %v8254_v23 = vcombine.low %v7090_v34, %v7106_v4  ;;  %v7330_v29 = vcombine.low %v3679_v37, %v3689_v36  ;;  %v6262_v26 = vld [vmem:[%s6429_s27 + $0x9c] sm:$0xff]   ;;  %v6263_v30 = vld [vmem:[%s6429_s27 + $0xa8] sm:$0xff]   ;;  %v6314_v36 = vld [vmem:[%s8222_s1 + $0x10] sm:$0xf] }
  0xd2   : > { %v3697_v53 = vor.u32 %v3696_v52, %v3693_v50  ;;  %v3717_v62 = vrot.slane %v3715_v27, 4  ;;  %v7341_v34 = vrot.slane %v3724_v6, 5  ;;  %v3730_v4 = vrot.slane %v3728_v9, 4  ;;  %v6315_v6 = vld [vmem:[%s6429_s27 + $0x94] sm:$0xf] }
  0xd3   : > { %v3741_v27 = vrot.slane %v3739_v25, 4  ;;  %v3744_v37 = vrot.slane %v3742_v8, 5  ;;  %v7350_v50 = vrot.slane %v3748_v43, 5  ;;  %v3754_v52 = vrot.slane %v3752_v48, 4  ;;  %v7356_v9 = vld [vmem:[%s6429_s27 + $0x64] sm:$0xf] }
  0xd4   : > { %8255 = vst [vmem:[#allocation9_spill] sm:$0xff] %v7356_v9  ;;  %v3763_v61 = vshrl.u32 %v5351_v31, 16  ;;  %v7358_v22 = vrot.slane %v3697_v53, 4  ;;  %v1337_v25 = vrot.slane %v6317_v18, 5  ;;  %v3731_v43 = vor.u32 %v3730_v4, %v7341_v34 }
  0xd5   : > { %5859 = vmatmul.mubr.msk.bf16.gmra.mrb[16].mxu0 %vm687_vm3, %v6260_v10  ;;  %v3766_v10 = vshll.u32 %v5351_v31, 16  ;;  %v3745_v31 = vor.u32 %v3744_v37, %v3741_v27  ;;  %v3755_v53 = vor.u32 %v3754_v52, %v7350_v50  ;;  %v8256_v18 = vcombine.low %v7097_v19, %v7110_v58  ;;  %v6264_v37 = vld [vmem:[%s6429_s27 + $0xb4] sm:$0xff]  }
  0xd6   : > { %5707 = vmatmul.mubr.msk.bf16.vlgmr.msra.gmra.mrb[0].mxu1 %vm687_vm3, %v8253_v38  ;;  %5862 = vmatprep.mubr.msk.bf16.mxu0 %vm687_vm3, %v6261_v21  ;;  %v3720_v21 = vrot.slane %v3718_v15, 5  ;;  %v7339_v38 = vld [vmem:[%s6429_s27 + $0x50] sm:$0x1]  ;;  %v7348_v15 = vld [vmem:[%s6429_s27 + $0x5c] sm:$0x1]  ;;  %v8257_v27 = vcombine.low %v7115_v2, %v7119_v1  ;;  %v1339_v52 = vrot.slane %v1337_v25, 4 }
  0xd7   : > { %5739 = vmatpush3.bf16.msra.mxu1 %v7086_v49  ;;  %5710 = vmatprep.mubr.msk.bf16.mxu1 %vm687_vm3, %v8254_v23  ;;  %v3707_v49 = vor.u32 %v3706_v46, %v7298_v28  ;;  %v7352_v46 = vrot.slane %v3710_v5, 5  ;;  %v1330_v23 = vrot.slane %v6315_v6, 5  ;;  %v3734_v48 = vshll.u32 %v7339_v38, 16  ;;  %v1206_v5 = vld [vmem:[%s6429_s27 + $0x9c] sm:$0xe] }
  0xd8   : > { %6205 = vmatprep.subr.msk.bf16.mxu1 %vm736_vm0, %v6314_v36  ;;  %v6316_v36 = vld [vmem:[%s6429_s27 + $0x98] sm:$0x1]  ;;  %v3721_v7 = vor.u32 %v3720_v21, %v3717_v62  ;;  %v3758_v6 = vshll.u32 %v7348_v15, 16  ;;  %v3776_v62 = vshrl.u32 %v7356_v9, 16  ;;  %v3768_v4 = vrot.slane %v3766_v10, 5 }
  0xd9   : > { %v1333_v33 = vrot.slane %v6316_v36, 5  ;;  %v3708_v8 = vrot.slane %v3707_v49, 4  ;;  %v3772_v36 = vshll.u32 %v7356_v9, 16  ;;  %v7377_v21 = vsel %vm6681_vm7, %v5020_v54, %v1330_v23  ;;  %v7388_v2 = vld [vmem:[%s6429_s27 + $0x68] sm:$0x1] }
  0xda   : > { %v3765_v49 = vrot.slane %v3763_v61, 4  ;;  %v3722_v19 = vrot.slane %v3721_v7, 4  ;;  %v5021_v58 = vrot.slane %v1206_v5, 9  ;;  %v3732_v3 = vrot.slane %v3731_v43, 4  ;;  %8258 = vst [vmem:[#allocation10_spill] sm:$0xff] %v7388_v2  ;;  %v6265_v5 = vld [vmem:[%s6429_s27 + $0xc0] sm:$0xff]  }
  0xdb   : > { %v3736_v54 = vrot.slane %v3734_v48, 5  ;;  %v3760_v63 = vrot.slane %v3758_v6, 5  ;;  %v1344_v61 = vrot.slane %v6823_v56, 5  ;;  %v3746_v10 = vrot.slane %v3745_v31, 4  ;;  %v1208_v31 = vld [vmem:[%s6429_s27 + $0xb4] sm:$0xe] }
  0xdc   : > { %v3756_v51 = vrot.slane %v3755_v53, 4  ;;  %v7390_v1 = vrot.slane %v3772_v36, 5  ;;  %v3778_v7 = vrot.slane %v3776_v62, 4  ;;  %v3703_v43 = vsel %vm6455_vm4, %v7358_v22, %v7298_v28  ;;  %v6319_v62 = vld [vmem:[%s6429_s27 + $0xb0] sm:$0x1] }
  0xdd   : > { %5863 = vmatmul.mubr.msk.bf16.gmra.mrb[20].mxu0 %vm687_vm3, %v6262_v26  ;;  %v1332_v26 = vrot.slane %v1330_v23, 4  ;;  %v1207_v23 = vld [vmem:[%s6429_s27 + $0xa8] sm:$0xe]  ;;  %v3713_v48 = vsel %vm6455_vm4, %v3708_v8, %v7352_v46  ;;  %v3769_v6 = vor.u32 %v3768_v4, %v3765_v49  ;;  %v3727_v53 = vsel %vm6455_vm4, %v3722_v19, %v7341_v34  ;;  %v5354_v46 = vld [vmem:[%s6429_s27 + $0x6c] sm:$0xf] }
  0xde   : > { %5711 = vmatmul.mubr.msk.bf16.gmra.mrb[4].mxu1 %vm687_vm3, %v8256_v18  ;;  %5866 = vmatprep.mubr.msk.bf16.mxu0 %vm687_vm3, %v6263_v30  ;;  %v6318_v18 = vld [vmem:[%s6429_s27 + $0xa4] sm:$0x1]  ;;  %v7410_v36 = vsel %vm6681_vm7, %v5021_v58, %v1337_v25  ;;  %v5022_v28 = vrot.slane %v1207_v23, 9  ;;  %v1346_v8 = vrot.slane %v1344_v61, 4  ;;  %v3782_v49 = vshll.u32 %v7388_v2, 16 }
  0xdf   : > { %5714 = vmatprep.mubr.msk.bf16.mxu1 %vm687_vm3, %v8257_v27  ;;  %v1340_v30 = vrot.slane %v6318_v18, 5  ;;  %v7402_v56 = vsel %vm6681_vm7, %v1332_v26, %v1333_v33  ;;  %v3737_v33 = vsel %vm6455_vm4, %v3732_v3, %v3736_v54  ;;  %v1347_v26 = vrot.slane %v6319_v62, 5  ;;  %v5357_v18 = vld [vmem:[%s6429_s27 + $0x78] sm:$0xf]  ;;  %v7465_v54 = vld [vmem:[%s6429_s27 + $0xbc] sm:$0x1] }
  0xe0   : > { %v3751_v34 = vsel %vm6455_vm4, %v3746_v10, %v7350_v50  ;;  %v3761_v25 = vsel %vm6455_vm4, %v3756_v51, %v3760_v63  ;;  %v3779_v4 = vor.u32 %v3778_v7, %v7390_v1  ;;  %v5023_v27 = vrot.slane %v1208_v31, 9  ;;  %v7439_v51 = vld [vmem:[%s6429_s27 + $0x70] sm:$0xf]  ;;  %v7469_v10 = vld [vmem:[%s6429_s27 + $0x7c] sm:$0xf] }
  0xe1   : > { %v7414_v22 = vsel %vm6681_vm7, %v1339_v52, %v1340_v30  ;;  %v8260_v3 = vcombine.low %v7132_v45, %v7136_v59  ;;  %v7435_v19 = vrot.slane %v3769_v6, 4  ;;  %v1351_v50 = vrot.slane %v6847_v42, 5  ;;  %8261 = vst [vmem:[#allocation12_spill] sm:$0xff] %v7439_v51  ;;  %8263 = vst [vmem:[#allocation13_spill] sm:$0xff] %v7469_v10  ;;  %v5360_v7 = vld [vmem:[%s6429_s27 + $0x84] sm:$0xf] }
  0xe2   : > { %8259 = vst [vmem:[#allocation11_spill] sm:$0xff] %v7414_v22  ;;  %v3787_v63 = vshrl.u32 %v5354_v46, 16  ;;  %v8262_v45 = vcombine.low %v7140_v47, %v7167_v41  ;;  %v7447_v58 = vcombine.low %v3727_v53, %v3737_v33  ;;  %v7453_v42 = vsel %vm6681_vm7, %v5022_v28, %v1344_v61  ;;  %v6266_v61 = vld [vmem:[%s6429_s27 + $0xcc] sm:$0xff]   ;;  %v7481_v31 = vld [vmem:[%s6429_s27 + $0x88] sm:$0xf] }
  0xe3   : > { %v7456_v30 = vcombine.low %v3751_v34, %v3761_v25  ;;  %v7460_v47 = vsel %vm6681_vm7, %v1346_v8, %v1347_v26  ;;  %v7462_v41 = vrot.slane %v3782_v49, 5  ;;  %v3796_v6 = vshll.u32 %v7439_v51, 16  ;;  %8264 = vst [vmem:[#allocation14_spill] sm:$0xff] %v7481_v31  ;;  %v5363_v62 = vld [vmem:[%s6429_s27 + $0x90] sm:$0xf] }
  0xe4   : > { %v7487_v28 = vrot.slane %v1351_v50, 4  ;;  %v7489_v33 = vrot.slane %v3787_v63, 4  ;;  %v3800_v8 = vshrl.u32 %v7439_v51, 16  ;;  %v3811_v26 = vshrl.u32 %v5357_v18, 16  ;;  %v7496_v25 = vld [vmem:[%s6429_s27 + $0x94] sm:$0xf] }
  0xe5   : > { %5867 = vmatmul.mubr.msk.bf16.gmra.mrb[24].mxu0 %vm687_vm3, %v6264_v37  ;;  %v7433_v37 = vcombine.low %v3703_v43, %v3713_v48  ;;  %v7477_v43 = vsel %vm6681_vm7, %v5023_v27, %v1351_v50  ;;  %v3790_v48 = vshll.u32 %v5354_v46, 16  ;;  %v3814_v49 = vshll.u32 %v5357_v18, 16  ;;  %8265 = vst [vmem:[#allocation15_spill] sm:$0xff] %v7496_v25  ;;  %v7534_v2 = vld [vmem:[%s6429_s27 + $0x8c] sm:$0x1] }
  0xe6   : > { %5715 = vmatmul.mubr.msk.bf16.gmra.mrb[8].mxu1 %vm687_vm3, %v8260_v3  ;;  %5870 = vmatprep.mubr.msk.bf16.mxu0 %vm687_vm3, %v6265_v5  ;;  %v7473_v5 = vrot.slane %v3779_v4, 4  ;;  %v3820_v46 = vshll.u32 %v7469_v10, 16  ;;  %v3824_v34 = vshrl.u32 %v7469_v10, 16  ;;  %v3835_v4 = vshrl.u32 %v5360_v7, 16 }
  0xe7   : > { %5718 = vmatprep.mubr.msk.bf16.mxu1 %vm687_vm3, %v8262_v45  ;;  %v3838_v27 = vshll.u32 %v5360_v7, 16  ;;  %v3844_v3 = vshll.u32 %v7481_v31, 16  ;;  %v3848_v50 = vshrl.u32 %v7481_v31, 16  ;;  %v7506_v45 = vld [vmem:[%s6429_s27 + $0x74] sm:$0x1]  ;;  %v3792_v18 = vrot.slane %v3790_v48, 5 }
  0xe8   : > { %v3859_v52 = vshrl.u32 %v5363_v62, 16  ;;  %v3862_v53 = vshll.u32 %v5363_v62, 16  ;;  %v8266_v7 = vcombine.low %v7151_v60, %v7176_v44  ;;  %v3802_v59 = vrot.slane %v3800_v8, 4  ;;  %v5366_v48 = vld [vmem:[%s6429_s27 + $0x9c] sm:$0xf] }
  0xe9   : > { %v3868_v63 = vshll.u32 %v7496_v25, 16  ;;  %v3872_v23 = vshrl.u32 %v7496_v25, 16  ;;  %v8267_v62 = vcombine.low %v7191_v17, %v7195_v57  ;;  %v7524_v44 = vld [vmem:[%s6429_s27 + $0x80] sm:$0x1]  ;;  %v3813_v60 = vrot.slane %v3811_v26, 4 }
  0xea   : > { %8268 = vst [vmem:[#allocation16_spill] sm:$0xff] %v7524_v44  ;;  %v3837_v31 = vrot.slane %v3835_v4, 4  ;;  %v3840_v8 = vrot.slane %v3838_v27, 5  ;;  %v7528_v10 = vrot.slane %v3844_v3, 5  ;;  %v3850_v51 = vrot.slane %v3848_v50, 4 }
  0xeb   : > { %v7531_v25 = vld [vmem:[%s6429_s27 + $0xa0] sm:$0xf]  ;;  %v3861_v17 = vrot.slane %v3859_v52, 4  ;;  %v3864_v57 = vrot.slane %v3862_v53, 5  ;;  %v3886_v9 = vshll.u32 %v5366_v48, 16  ;;  %v3793_v26 = vor.u32 %v3792_v18, %v7489_v33 }
  0xec   : > { %v3830_v27 = vshll.u32 %v7524_v44, 16  ;;  %v7543_v3 = vld [vmem:[%s6429_s27 + $0x98] sm:$0x1]  ;;  %v3892_v50 = vshll.u32 %v7531_v25, 16  ;;  %v3896_v52 = vshrl.u32 %v7531_v25, 16  ;;  %v3841_v22 = vor.u32 %v3840_v8, %v3837_v31 }
  0xed   : > { %5871 = vmatmul.mubr.msk.bf16.gmra.mrb[28].mxu0 %vm687_vm3, %v6266_v61  ;;  %v7514_v61 = vrot.slane %v3796_v6, 5  ;;  %v3826_v6 = vrot.slane %v3824_v34, 4  ;;  %v3874_v34 = vrot.slane %v3872_v23, 4  ;;  %v3854_v33 = vshll.u32 %v7534_v2, 16 }
  0xee   : > { %5719 = vmatmul.mubr.msk.bf16.gmra.mrb[12].mxu1 %vm687_vm3, %v8266_v7  ;;  %5876 = vmatprep.mubr.msk.bf16.mxu0 %vm687_vm3, %v7256_v20  ;;  %v3816_v7 = vrot.slane %v3814_v49, 5  ;;  %v7526_v20 = vrot.slane %v3820_v46, 5  ;;  %v3806_v49 = vshll.u32 %v7506_v45, 16  ;;  %v7538_v46 = vrot.slane %v3868_v63, 5 }
  0xef   : > { %5722 = vmatprep.mubr.msk.bf16.mxu1 %vm687_vm3, %v8267_v62  ;;  %v3883_v62 = vshrl.u32 %v5366_v48, 16  ;;  %v3803_v4 = vor.u32 %v3802_v59, %v7514_v61  ;;  %v3851_v23 = vor.u32 %v3850_v51, %v7528_v10  ;;  %v3865_v59 = vor.u32 %v3864_v57, %v3861_v17  ;;  %v7576_v57 = vld [vmem:[%s6429_s27 + $0xa4] sm:$0x1] }
  0xf0   : > { %v3817_v53 = vor.u32 %v3816_v7, %v3813_v60  ;;  %v3827_v48 = vor.u32 %v3826_v6, %v7526_v20  ;;  %v3888_v18 = vrot.slane %v3886_v9, 5  ;;  %v8269_v44 = vcombine.low %v7203_v11, %v7207_v40 }
  0xf1   : > { %v3885_v63 = vrot.slane %v3883_v62, 4  ;;  %v8270_v31 = vrot.slane %v7465_v54, 5  ;;  %v3808_v51 = vrot.slane %v3806_v49, 5  ;;  %v3875_v60 = vor.u32 %v3874_v34, %v7538_v46  ;;  %v7579_v34 = vld [vmem:[%s6429_s27 + $0xac] sm:$0xf] }
  0xf2   : > { %v3878_v9 = vshll.u32 %v7543_v3, 16  ;;  %v8271_v11 = vcombine.low %v7275_v39, %v7279_v55  ;;  %v3794_v40 = vrot.slane %v3793_v26, 4  ;;  %v7572_v54 = vrot.slane %v3892_v50, 5 }
  0xf3   : > { %v3818_v7 = vrot.slane %v3817_v53, 4  ;;  %v3828_v6 = vrot.slane %v3827_v48, 4  ;;  %v3832_v8 = vrot.slane %v3830_v27, 5  ;;  %v3856_v17 = vrot.slane %v3854_v33, 5  ;;  %v7589_v48 = vld [vmem:[%s6429_s27 + $0xb0] sm:$0x1] }
  0xf4   : > { %v3842_v39 = vrot.slane %v3841_v22, 4  ;;  %v3852_v55 = vrot.slane %v3851_v23, 4  ;;  %v3866_v62 = vrot.slane %v3865_v59, 4  ;;  %v3889_v49 = vor.u32 %v3888_v18, %v3885_v63 }
  0xf5   : > { %5877 = vmatmul.mubr.msk.bf16.vlgmr.msra.gmra.mrb[0].mxu0 %vm687_vm3, %v7319_v16  ;;  %v7562_v16 = vsel %vm6681_vm7, %v7487_v28, %v8270_v31  ;;  %v3898_v28 = vrot.slane %v3896_v52, 4  ;;  %v3880_v26 = vrot.slane %v3878_v9, 5  ;;  %v3799_v52 = vsel %vm6455_vm4, %v3794_v40, %v7514_v61 }
  0xf6   : > { %5723 = vmatmul.mubr.msk.bf16.gmra.mrb[16].mxu1 %vm687_vm3, %v8269_v44  ;;  %5909 = vmatpush3.bf16.msra.mxu0 %v7260_v14  ;;  %v3804_v14 = vrot.slane %v3803_v4, 4  ;;  %v5369_v44 = vld [vmem:[%s6429_s27 + $0xa8] sm:$0xf]  ;;  %v3902_v22 = vshll.u32 %v7576_v57, 16  ;;  %v3823_v33 = vsel %vm6455_vm4, %v3818_v7, %v7526_v20  ;;  %v3833_v23 = vsel %vm6455_vm4, %v3828_v6, %v3832_v8 }
  0xf7   : > { %5726 = vmatprep.mubr.msk.bf16.mxu1 %vm687_vm3, %v8271_v11  ;;  %5880 = vmatprep.mubr.msk.bf16.mxu0 %vm687_vm3, %v7330_v29  ;;  %v3876_v29 = vrot.slane %v3875_v60, 4  ;;  %v3907_v4 = vshrl.u32 %v5369_v44, 16  ;;  %v3910_v50 = vshll.u32 %v5369_v44, 16  ;;  %v3899_v53 = vor.u32 %v3898_v28, %v7572_v54  ;;  %v5418_v11 = vld [vmem:[%s6429_s27 + $0x48] sm:$0xe] }
  0xf8   : > { %v3809_v27 = vsel %vm6455_vm4, %v3804_v14, %v3808_v51  ;;  %v3916_v59 = vshll.u32 %v7579_v34, 16  ;;  %v3920_v61 = vshrl.u32 %v7579_v34, 16  ;;  %v3847_v63 = vsel %vm6455_vm4, %v3842_v39, %v7528_v10  ;;  %v7654_v39 = vld [vmem:[%s6429_s27 + $0xb8] sm:$0xf] }
  0xf9   : > { %v3857_v18 = vsel %vm6455_vm4, %v3852_v55, %v3856_v17  ;;  %v3871_v20 = vsel %vm6455_vm4, %v3866_v62, %v7538_v46  ;;  %v3890_v31 = vrot.slane %v3889_v49, 4  ;;  %v8272_v51 = vcombine.low %v7292_v12, %v7307_v35 }
  0xfa   : > { %v3909_v10 = vrot.slane %v3907_v4, 4  ;;  %v3912_v60 = vrot.slane %v3910_v50, 5  ;;  %v3926_v9 = vshll.u32 %v7589_v48, 16  ;;  %v8273_v46 = vcombine.low %v7377_v21, %v7402_v56  ;;  %v5372_v21 = vld [vmem:[%s6429_s27 + $0xb4] sm:$0xf] }
  0xfb   : > { %v5039_v12 = vcombine.low %v7453_v42, %v7460_v47  ;;  %v8274_v35 = vsel %vm6455_vm4, %v7473_v5, %v7462_v41  ;;  %v3900_v14 = vrot.slane %v3899_v53, 4  ;;  %v3904_v28 = vrot.slane %v3902_v22, 5  ;;  %v5420_v4 = vld [vmem:[%s6429_s27 + $0x60] sm:$0xe]  ;;  %v5421_v53 = vld [vmem:[%s6429_s27 + $0x6c] sm:$0xe] }
  0xfc   : > { %v5040_v56 = vcombine.low %v7477_v43, %v7562_v16  ;;  %v7637_v44 = vcombine.low %v3799_v52, %v3809_v27  ;;  %v7639_v42 = vrot.slane %v3916_v59, 5  ;;  %v3922_v47 = vrot.slane %v3920_v61, 4  ;;  %v8283_v16 = vld [vmem:[#allocation4_spill] sm:$0xff] }
  0xfd   : > { %5881 = vmatmul.mubr.msk.bf16.gmra.mrb[4].mxu0 %vm687_vm3, %v7433_v37  ;;  %v3881_v37 = vsel %vm6455_vm4, %v3876_v29, %v3880_v26  ;;  %v7641_v41 = vcombine.low %v3823_v33, %v3833_v23  ;;  %v7643_v5 = vcombine.low %v3847_v63, %v3857_v18  ;;  %v3895_v6 = vsel %vm6455_vm4, %v3890_v31, %v7572_v54  ;;  %v8276_v23 = vld [vmem:[#allocation11_spill] sm:$0xff]  ;;  %v5375_v63 = vld [vmem:[%s6429_s27 + $0xc0] sm:$0xf]  ;;  %v8278_v18 = vld [vmem:[#allocation9_spill] sm:$0xff] }
  0xfe   : > { %5727 = vmatmul.mubr.msk.bf16.gmra.mrb[20].mxu1 %vm687_vm3, %v8272_v51  ;;  %5884 = vmatprep.mubr.msk.bf16.mxu0 %vm687_vm3, %v7447_v58  ;;  %v8275_v58 = vsel %vm6455_vm4, %v7435_v19, %v7390_v1  ;;  %v7645_v7 = vcombine.low %v3871_v20, %v3881_v37  ;;  %v5434_v1 = vrot.slane %v5418_v11, 9  ;;  %v5419_v19 = vld [vmem:[%s6429_s27 + $0x54] sm:$0xe]  ;;  %v3913_v8 = vor.u32 %v3912_v60, %v3909_v10  ;;  %v8279_v31 = vld [vmem:[#allocation10_spill] sm:$0xff] }
  0xff   : > { %5730 = vmatprep.mubr.msk.bf16.mxu1 %vm687_vm3, %v8273_v46  ;;  %v5388_v40 = vcombine.low %v8275_v58, %v8274_v35  ;;  %v7651_v17 = vrot.slane %v3926_v9, 5  ;;  %v3931_v55 = vshrl.u32 %v5372_v21, 16  ;;  %v3905_v62 = vsel %vm6455_vm4, %v3900_v14, %v3904_v28  ;;  %v8280_v9 = vld [vmem:[#allocation12_spill] sm:$0xff]  ;;  %v7703_v35 = vld [vmem:[%s6429_s27 + $0xbc] sm:$0x1] }
 0x100   : > { %v3934_v49 = vshll.u32 %v5372_v21, 16  ;;  %v4390_v29 = vrot.slane %v7285_v0, 5  ;;  %v4393_v26 = vrot.slane %v7339_v38, 5  ;;  %v3923_v50 = vor.u32 %v3922_v47, %v7639_v42  ;;  %v7706_v58 = vld [vmem:[%s6429_s27 + $0xc4] sm:$0xf] }
 0x101   : > { %v5435_v52 = vrot.slane %v5419_v19, 9  ;;  %v4397_v54 = vrot.slane %v7296_v24, 5  ;;  %v4400_v27 = vrot.slane %v7348_v15, 5  ;;  %v3940_v22 = vshll.u32 %v7654_v39, 16  ;;  %v5422_v19 = vld [vmem:[%s6429_s27 + $0x78] sm:$0xe] }
 0x102   : > { %v3944_v33 = vshrl.u32 %v7654_v39, 16  ;;  %v7671_v0 = vsel %vm6681_vm7, %v5434_v1, %v4390_v29  ;;  %v4392_v38 = vrot.slane %v4390_v29, 4  ;;  %v8277_v59 = vcombine.low %v7410_v36, %v8276_v23  ;;  %v8281_v23 = vld [vmem:[#allocation13_spill] sm:$0xff] }
 0x103   : > { %v7678_v24 = vcombine.low %v3895_v6, %v3905_v62  ;;  %v7682_v15 = vsel %vm6681_vm7, %v5435_v52, %v4397_v54  ;;  %v5436_v61 = vrot.slane %v5420_v4, 9  ;;  %v4404_v20 = vrot.slane %v8278_v18, 5  ;;  %v6267_v6 = vld [vmem:[%s6429_s27 + $0xc] sm:$0xff]  }
 0x104   : > { %v7688_v36 = vsel %vm6681_vm7, %v4392_v38, %v4393_v26  ;;  %v4407_v51 = vrot.slane %v8279_v31, 5  ;;  %v5437_v37 = vrot.slane %v5421_v53, 9  ;;  %v4411_v11 = vrot.slane %v8280_v9, 5 }
 0x105   : > { %5885 = vmatmul.mubr.msk.bf16.gmra.mrb[8].mxu0 %vm687_vm3, %v7456_v30  ;;  %v4399_v30 = vrot.slane %v4397_v54, 4  ;;  %v5451_v10 = vcombine.low %v7671_v0, %v7688_v36  ;;  %v4414_v46 = vrot.slane %v7506_v45, 5  ;;  %v7712_v14 = vsel %vm6681_vm7, %v5436_v61, %v4404_v20 }
 0x106   : > { %5731 = vmatmul.mubr.msk.bf16.gmra.mrb[24].mxu1 %vm687_vm3, %v8277_v59  ;;  %5888 = vmatprep.mubr.msk.bf16.mxu0 %vm687_vm3, %v5388_v40  ;;  %v4406_v28 = vrot.slane %v4404_v20, 4  ;;  %v7714_v21 = vrot.slane %v3931_v55, 4  ;;  %v3955_v47 = vshrl.u32 %v5375_v63, 16  ;;  %v7718_v45 = vsel %vm6681_vm7, %v5437_v37, %v4411_v11  ;;  %v5149_v55 = vld [vmem:[%s6429_s27 + $0x78] sm:$0xf]  ;;  %v8282_v59 = vld [vmem:[#allocation16_spill] sm:$0xff] }
 0x107   : > { %5734 = vmatprep.mubr.msk.bf16.mxu1 %vm687_vm3, %v5039_v12  ;;  %v7696_v60 = vsel %vm6681_vm7, %v4399_v30, %v4400_v27  ;;  %v7700_v12 = vrot.slane %v3913_v8, 4  ;;  %v4413_v1 = vrot.slane %v4411_v11, 4  ;;  %v7722_v8 = vrot.slane %v3923_v50, 4 }
 0x108   : > { %v5452_v40 = vcombine.low %v7682_v15, %v7696_v60  ;;  %v7724_v62 = vrot.slane %v3934_v49, 5  ;;  %v3958_v29 = vshll.u32 %v5375_v63, 16  ;;  %v7728_v26 = vsel %vm6681_vm7, %v4406_v28, %v4407_v51  ;;  %v8285_v28 = vld [vmem:[#allocation14_spill] sm:$0xff] }
 0x109   : > { %v7731_v4 = vrot.slane %v3940_v22, 5  ;;  %v7733_v52 = vrot.slane %v3944_v33, 4  ;;  %v5453_v54 = vcombine.low %v7712_v14, %v7728_v26  ;;  %v7739_v27 = vsel %vm6681_vm7, %v4413_v1, %v4414_v46  ;;  %v5423_v33 = vld [vmem:[%s6429_s27 + $0x84] sm:$0xe]  ;;  %v6268_v1 = vld [vmem:[%s6429_s27 + $0x18] sm:$0xff]  }
 0x10a   : > { %v3950_v49 = vshll.u32 %v7703_v35, 16  ;;  %v3964_v50 = vshll.u32 %v7706_v58, 16  ;;  %v5454_v53 = vcombine.low %v7718_v45, %v7739_v27  ;;  %v5438_v22 = vrot.slane %v5422_v19, 9  ;;  %v6330_v60 = vld [vmem:[%s6429_s27 + $0xa0] sm:$0xf] }
 0x10b   : > { %v3957_v38 = vrot.slane %v3955_v47, 4  ;;  %v4421_v30 = vrot.slane %v8282_v59, 5  ;;  %v2277_v61 = vshrl.u32 %v5149_v55, 16  ;;  %v3960_v63 = vrot.slane %v3958_v29, 5  ;;  %v5378_v29 = vld [vmem:[%s6429_s27 + $0xcc] sm:$0xf] }
 0x10c   : > { %v3968_v18 = vshrl.u32 %v7706_v58, 16  ;;  %v2280_v43 = vshll.u32 %v5149_v55, 16  ;;  %v5439_v37 = vrot.slane %v5423_v33, 9  ;;  %v3919_v9 = vsel %vm6455_vm4, %v7700_v12, %v7639_v42  ;;  %v7782_v55 = vld [vmem:[%s6429_s27 + $0xd0] sm:$0xf] }
 0x10d   : > { %5889 = vmatmul.mubr.msk.bf16.gmra.mrb[12].mxu0 %vm687_vm3, %v7637_v44  ;;  %v4418_v44 = vrot.slane %v8281_v23, 5  ;;  %v2279_v51 = vrot.slane %v2277_v61, 4  ;;  %v3937_v11 = vor.u32 %v7724_v62, %v7714_v21  ;;  %v4425_v47 = vrot.slane %v8285_v28, 5  ;;  %v6269_v21 = vld [vmem:[%s6429_s27 + $0x24] sm:$0xff]   ;;  %v6334_v27 = vld [vmem:[%s6429_s27 + $0xac] sm:$0xf] }
 0x10e   : > { %5735 = vmatmul.mubr.msk.bf16.gmra.mrb[28].mxu1 %vm687_vm3, %v5040_v56  ;;  %5892 = vmatprep.mubr.msk.bf16.mxu0 %vm687_vm3, %v7641_v41  ;;  %v8284_v56 = vld [vmem:[#allocation5_spill] sm:$0xff]  ;;  %v2282_v46 = vrot.slane %v2280_v43, 5  ;;  %v3929_v19 = vsel %vm6455_vm4, %v7722_v8, %v7651_v17  ;;  %v4428_v12 = vrot.slane %v7534_v2, 5  ;;  %v7790_v62 = vrot.slane %v3964_v50, 5  ;;  %v5424_v8 = vld [vmem:[%s6429_s27 + $0x90] sm:$0xe] }
 0x10f   : > { %5740 = vmatprep.mubr.msk.bf16.mxu1 %vm687_vm3, %v6267_v6  ;;  %v2299_v41 = vsel %vm6455_vm4, %v8284_v56, %v8283_v16  ;;  %v7764_v20 = vsel %vm6681_vm7, %v5438_v22, %v4418_v44  ;;  %v4420_v31 = vrot.slane %v4418_v44, 4  ;;  %v3947_v6 = vor.u32 %v7733_v52, %v7731_v4  ;;  %v7796_v52 = vld [vmem:[%s6429_s27 + $0xc8] sm:$0x1]  ;;  %v8287_v16 = vld [vmem:[#allocation2_spill] sm:$0xff] }
 0x110   : > { %v3970_v22 = vrot.slane %v3968_v18, 4  ;;  %v2283_v17 = vor.u32 %v2282_v46, %v2279_v51  ;;  %v3952_v23 = vrot.slane %v3950_v49, 5  ;;  %v3961_v44 = vor.u32 %v3960_v63, %v3957_v38  ;;  %v8288_v51 = vld [vmem:[#allocation3_spill] sm:$0xff] }
 0x111   : > { %v7786_v42 = vsel %vm6681_vm7, %v4420_v31, %v4421_v30  ;;  %v7800_v59 = vsel %vm6681_vm7, %v5439_v37, %v4425_v47  ;;  %v4427_v30 = vrot.slane %v4425_v47, 4  ;;  %v3979_v2 = vshrl.u32 %v5378_v29, 16 }
 0x112   : > { %v5455_v33 = vcombine.low %v7764_v20, %v7786_v42  ;;  %v3982_v50 = vshll.u32 %v5378_v29, 16  ;;  %v3988_v61 = vshll.u32 %v7782_v55, 16  ;;  %v2284_v18 = vrot.slane %v2283_v17, 4  ;;  %v6270_v29 = vld [vmem:[%s6429_s27 + $0x30] sm:$0xff]  }
 0x113   : > { %v3992_v49 = vshrl.u32 %v7782_v55, 16  ;;  %v7811_v38 = vsel %vm6681_vm7, %v4427_v30, %v4428_v12  ;;  %v5440_v63 = vrot.slane %v5424_v8, 9  ;;  %v3971_v56 = vor.u32 %v3970_v22, %v7790_v62 }
 0x114   : > { %v3974_v31 = vshll.u32 %v7796_v52, 16  ;;  %v5456_v37 = vcombine.low %v7800_v59, %v7811_v38  ;;  %v5394_v46 = vcombine.low %v3919_v9, %v3929_v19  ;;  %v3938_v28 = vrot.slane %v3937_v11, 4  ;;  %v5425_v11 = vld [vmem:[%s6429_s27 + $0x9c] sm:$0xe] }
 0x115   : > { %5893 = vmatmul.mubr.msk.bf16.gmra.mrb[16].mxu0 %vm687_vm3, %v7643_v5  ;;  %v8286_v5 = vld [vmem:[#allocation15_spill] sm:$0xff]  ;;  %v3948_v47 = vrot.slane %v3947_v6, 4  ;;  %v3962_v12 = vrot.slane %v3961_v44, 4  ;;  %v4435_v8 = vrot.slane %v7543_v3, 5  ;;  %v3981_v30 = vrot.slane %v3979_v2, 4  ;;  %v6271_v19 = vld [vmem:[%s6429_s27 + $0x3c] sm:$0xff]  }
 0x116   : > { %5741 = vmatmul.mubr.msk.bf16.vlgmr.msra.gmra.mrb[0].mxu1 %vm687_vm3, %v6268_v1  ;;  %5896 = vmatprep.mubr.msk.bf16.mxu0 %vm687_vm3, %v7645_v7  ;;  %v4432_v43 = vrot.slane %v8286_v5, 5  ;;  %v2289_v7 = vsel %vm6455_vm4, %v2284_v18, %v8288_v51  ;;  %v3984_v18 = vrot.slane %v3982_v50, 5  ;;  %v7834_v5 = vrot.slane %v3988_v61, 5 }
 0x117   : > { %5943 = vmatpush3.bf16.msra.mxu1 %v8287_v16  ;;  %5744 = vmatprep.mubr.msk.bf16.mxu1 %vm687_vm3, %v6269_v21  ;;  %v7823_v1 = vcombine.low %v2289_v7, %v2299_v41  ;;  %v7827_v21 = vld [vmem:[%s6429_s27 + $0xd4] sm:$0x1]  ;;  %v3994_v9 = vrot.slane %v3992_v49, 4  ;;  %v3972_v41 = vrot.slane %v3971_v56, 4  ;;  %v3976_v6 = vrot.slane %v3974_v31, 5 }
 0x118   : > { %v7831_v22 = vsel %vm6681_vm7, %v5440_v63, %v4432_v43  ;;  %v4434_v17 = vrot.slane %v4432_v43, 4  ;;  %v3943_v63 = vsel %vm6455_vm4, %v3938_v28, %v7731_v4  ;;  %v3953_v2 = vsel %vm6455_vm4, %v3948_v47, %v3952_v23  ;;  %v6321_v16 = vld [vmem:[%s6429_s27 + $0x1c] sm:$0xf]  ;;  %v5426_v28 = vld [vmem:[%s6429_s27 + $0xa8] sm:$0xe] }
 0x119   : > { %v3998_v50 = vshll.u32 %v7827_v21, 16  ;;  %v5441_v61 = vrot.slane %v5425_v11, 9  ;;  %v4439_v49 = vrot.slane %v7531_v25, 5  ;;  %v3967_v4 = vsel %vm6455_vm4, %v3962_v12, %v7790_v62  ;;  %v5414_v62 = vld [vmem:[%s6429_s27 + $0x18] sm:$0xe]  ;;  %v6272_v47 = vld [vmem:[%s6429_s27 + $0x48] sm:$0xff]  }
 0x11a   : > { %v7840_v44 = vsel %vm6681_vm7, %v4434_v17, %v4435_v8  ;;  %v3995_v43 = vor.u32 %v3994_v9, %v7834_v5  ;;  %v4442_v23 = vrot.slane %v7576_v57, 5  ;;  %v3977_v25 = vsel %vm6455_vm4, %v3972_v41, %v3976_v6  ;;  %v6322_v11 = vld [vmem:[%s6429_s27 + $0x20] sm:$0x1] }
 0x11b   : > { %v5457_v3 = vcombine.low %v7831_v22, %v7840_v44  ;;  %v4362_v56 = vrot.slane %v6321_v16, 5  ;;  %v7866_v31 = vsel %vm6681_vm7, %v5441_v61, %v4439_v49  ;;  %v4441_v51 = vrot.slane %v4439_v49, 4  ;;  %v5427_v49 = vld [vmem:[%s6429_s27 + $0xb4] sm:$0xe] }
 0x11c   : > { %v5395_v7 = vcombine.low %v3943_v63, %v3953_v2  ;;  %v3996_v17 = vrot.slane %v3995_v43, 4  ;;  %v5442_v41 = vrot.slane %v5426_v28, 9  ;;  %v4446_v6 = vrot.slane %v7579_v34, 5  ;;  %v5415_v2 = vld [vmem:[%s6429_s27 + $0x24] sm:$0xe] }
 0x11d   : > { %5897 = vmatmul.mubr.msk.bf16.gmra.mrb[20].mxu0 %vm687_vm3, %v7678_v24  ;;  %v3985_v24 = vor.u32 %v3984_v18, %v3981_v30  ;;  %v7871_v57 = vsel %vm6681_vm7, %v4441_v51, %v4442_v23  ;;  %v6273_v30 = vld [vmem:[%s6429_s27 + $0x54] sm:$0xff]   ;;  %v5430_v18 = vrot.slane %v5414_v62, 9  ;;  %v4364_v9 = vrot.slane %v4362_v56, 4  ;;  %v6325_v28 = vld [vmem:[%s6429_s27 + $0x2c] sm:$0x1] }
 0x11e   : > { %5745 = vmatmul.mubr.msk.bf16.gmra.mrb[4].mxu1 %vm687_vm3, %v6270_v29  ;;  %5900 = vmatprep.mubr.msk.bf16.mxu0 %vm687_vm3, %v5394_v46  ;;  %v4000_v46 = vrot.slane %v3998_v50, 5  ;;  %v5396_v29 = vcombine.low %v3967_v4, %v3977_v25  ;;  %v5458_v8 = vcombine.low %v7866_v31, %v7871_v57  ;;  %v4449_v63 = vrot.slane %v7589_v48, 5  ;;  %v6323_v50 = vld [vmem:[%s6429_s27 + $0x28] sm:$0xf]  ;;  %v5416_v25 = vld [vmem:[%s6429_s27 + $0x30] sm:$0xe] }
 0x11f   : > { %5748 = vmatprep.mubr.msk.bf16.mxu1 %vm687_vm3, %v6271_v19  ;;  %v3986_v12 = vrot.slane %v3985_v24, 4  ;;  %v4365_v19 = vrot.slane %v6322_v11, 5  ;;  %v4369_v61 = vrot.slane %v6323_v50, 5  ;;  %v7894_v48 = vsel %vm6681_vm7, %v5442_v41, %v4446_v6  ;;  %v6275_v11 = vld [vmem:[%s6429_s27 + $0x6c] sm:$0xff]   ;;  %v8289_v41 = vld [vmem:[#allocation6_spill] sm:$0xff] }
 0x120   : > { %v4001_v34 = vsel %vm6455_vm4, %v3996_v17, %v4000_v46  ;;  %v4448_v24 = vrot.slane %v4446_v6, 4  ;;  %v4363_v43 = vsel %vm6681_vm7, %v5430_v18, %v4362_v56  ;;  %v5431_v51 = vrot.slane %v5415_v2, 9  ;;  %v5428_v50 = vld [vmem:[%s6429_s27 + $0xc0] sm:$0xe]  ;;  %v6339_v31 = vld [vmem:[%s6429_s27 + $0xc8] sm:$0x1] }
 0x121   : > { %v3991_v4 = vsel %vm6455_vm4, %v3986_v12, %v7834_v5  ;;  %v4366_v23 = vsel %vm6681_vm7, %v4364_v9, %v4365_v19  ;;  %v6324_v5 = vld [vmem:[%s6429_s27 + $0x34] sm:$0xf]  ;;  %v6274_v12 = vld [vmem:[%s6429_s27 + $0x60] sm:$0xff]   ;;  %v5432_v18 = vrot.slane %v5416_v25, 9  ;;  %v4456_v9 = vrot.slane %v7703_v35, 5 }
 0x122   : > { %v4376_v16 = vrot.slane %v6324_v5, 5  ;;  %v7905_v62 = vsel %vm6681_vm7, %v4448_v24, %v4449_v63  ;;  %v5397_v46 = vcombine.low %v3991_v4, %v4001_v34  ;;  %v5447_v17 = vcombine.low %v4363_v43, %v4366_v23  ;;  %v5417_v24 = vld [vmem:[%s6429_s27 + $0x3c] sm:$0xe] }
 0x123   : > { %v5459_v56 = vcombine.low %v7894_v48, %v7905_v62  ;;  %v4379_v6 = vrot.slane %v8289_v41, 5  ;;  %v4370_v35 = vsel %vm6681_vm7, %v5431_v51, %v4369_v61  ;;  %v5444_v5 = vrot.slane %v5428_v50, 9 }
 0x124   : > { %v4378_v19 = vrot.slane %v4376_v16, 4  ;;  %v4377_v23 = vsel %vm6681_vm7, %v5432_v18, %v4376_v16  ;;  %v4463_v51 = vrot.slane %v7796_v52, 5  ;;  %v2440_v57 = vshll.u32 %v6339_v31, 16 }
 0x125   : > { %5901 = vmatmul.mubr.msk.bf16.gmra.mrb[24].mxu0 %vm687_vm3, %v5395_v7  ;;  %v5443_v7 = vrot.slane %v5427_v49, 9 }
 0x126   : > { %5749 = vmatmul.mubr.msk.bf16.gmra.mrb[8].mxu1 %vm687_vm3, %v6272_v47  ;;  %5904 = vmatprep.mubr.msk.bf16.mxu0 %vm687_vm3, %v5396_v29  ;;  %v4372_v47 = vrot.slane %v6325_v28, 5  ;;  %v4453_v29 = vrot.slane %v7654_v39, 5  ;;  %v8290_v39 = vld [vmem:[#allocation7_spill] sm:$0xff]  ;;  %v4380_v25 = vsel %vm6681_vm7, %v4378_v19, %v4379_v6  ;;  %v5433_v28 = vrot.slane %v5417_v24, 9 }
 0x127   : > { %5752 = vmatprep.mubr.msk.bf16.mxu1 %vm687_vm3, %v6273_v30  ;;  %v4371_v30 = vrot.slane %v4369_v61, 4  ;;  %v4383_v49 = vrot.slane %v8290_v39, 5  ;;  %v4460_v61 = vrot.slane %v7706_v58, 5  ;;  %v6326_v39 = vld [vmem:[%s6429_s27 + $0x70] sm:$0xf]  ;;  %v4467_v24 = vrot.slane %v7782_v55, 5 }
 0x128   : > { %v7917_v63 = vsel %vm6681_vm7, %v5443_v7, %v4453_v29  ;;  %v4455_v2 = vrot.slane %v4453_v29, 4  ;;  %v5146_v7 = vld [vmem:[%s6429_s27 + $0x6c] sm:$0xf]  ;;  %v8291_v29 = vld [vmem:[#allocation8_spill] sm:$0xff] }
 0x129   : > { %v4373_v34 = vsel %vm6681_vm7, %v4371_v30, %v4372_v47  ;;  %v4385_v47 = vrot.slane %v4383_v49, 4  ;;  %v6276_v30 = vld [vmem:[%s6429_s27 + $0x78] sm:$0xff]   ;;  %v7948_v16 = vsel %vm6681_vm7, %v5444_v5, %v4460_v61  ;;  %v4462_v18 = vrot.slane %v4460_v61, 4 }
 0x12a   : > { %v7924_v4 = vsel %vm6681_vm7, %v4455_v2, %v4456_v9  ;;  %v5449_v9 = vcombine.low %v4377_v23, %v4380_v25  ;;  %v2253_v19 = vshrl.u32 %v5146_v7, 16  ;;  %v2256_v41 = vshll.u32 %v5146_v7, 16 }
 0x12b   : > { %v5460_v43 = vcombine.low %v7917_v63, %v7924_v4  ;;  %v7953_v58 = vsel %vm6681_vm7, %v4462_v18, %v4463_v51  ;;  %v4384_v6 = vsel %vm6681_vm7, %v5433_v28, %v4383_v49  ;;  %v4470_v49 = vrot.slane %v7827_v21, 5  ;;  %v6278_v51 = vld [vmem:[%s6429_s27 + $0x90] sm:$0xff]   ;;  %v6279_v21 = vld [vmem:[%s6429_s27 + $0x9c] sm:$0xff]  }
 0x12c   : > { %v5461_v50 = vcombine.low %v7948_v16, %v7953_v58  ;;  %v2255_v23 = vrot.slane %v2253_v19, 4  ;;  %v2258_v25 = vrot.slane %v2256_v41, 5  ;;  %v4469_v7 = vrot.slane %v4467_v24, 4 }
 0x12d   : > { %5905 = vmatmul.mubr.msk.bf16.gmra.mrb[28].mxu0 %vm687_vm3, %v5397_v46  ;;  %v5448_v46 = vcombine.low %v4370_v35, %v4373_v34  ;;  %v2262_v35 = vshll.u32 %v6326_v39, 16  ;;  %v2266_v34 = vshrl.u32 %v6326_v39, 16 }
 0x12e   : > { %5753 = vmatmul.mubr.msk.bf16.gmra.mrb[12].mxu1 %vm687_vm3, %v6274_v12  ;;  %5910 = vmatprep.mubr.msk.bf16.mxu0 %vm687_vm3, %v5447_v17  ;;  %v4386_v12 = vrot.slane %v8291_v29, 5  ;;  %v5429_v17 = vld [vmem:[%s6429_s27 + $0xcc] sm:$0xe]  ;;  %v7975_v55 = vsel %vm6681_vm7, %v4469_v7, %v4470_v49 }
 0x12f   : > { %5756 = vmatprep.mubr.msk.bf16.mxu1 %vm687_vm3, %v6275_v11  ;;  %v6277_v11 = vld [vmem:[%s6429_s27 + $0x84] sm:$0xff]   ;;  %v5445_v52 = vrot.slane %v5429_v17, 9  ;;  %v2268_v28 = vrot.slane %v2266_v34, 4  ;;  %v6327_v17 = vld [vmem:[%s6429_s27 + $0x74] sm:$0x1] }
 0x130   : > { %v4387_v2 = vsel %vm6681_vm7, %v4385_v47, %v4386_v12  ;;  %v5152_v47 = vld [vmem:[%s6429_s27 + $0x84] sm:$0xf]  ;;  %v2259_v12 = vor.u32 %v2258_v25, %v2255_v23  ;;  %v6281_v34 = vld [vmem:[%s6429_s27 + $0xb4] sm:$0xff]  }
 0x131   : > { %v7970_v5 = vsel %vm6681_vm7, %v5445_v52, %v4467_v24  ;;  %v5450_v61 = vcombine.low %v4384_v6, %v4387_v2  ;;  %v2304_v18 = vshll.u32 %v5152_v47, 16  ;;  %v5155_v6 = vld [vmem:[%s6429_s27 + $0x90] sm:$0xf]  ;;  %v6280_v2 = vld [vmem:[%s6429_s27 + $0xa8] sm:$0xff]  }
 0x132   : > { %v5462_v29 = vcombine.low %v7970_v5, %v7975_v55  ;;  %v2260_v52 = vrot.slane %v2259_v12, 4  ;;  %v2325_v23 = vshrl.u32 %v5155_v6, 16  ;;  %v2328_v25 = vshll.u32 %v5155_v6, 16 }
 0x133   : > { %v2358_v12 = vshll.u32 %v6330_v60, 16 }
 0x134   : > { %v2330_v14 = vrot.slane %v2328_v25, 5  ;;  %v6333_v25 = vld [vmem:[%s6429_s27 + $0xa4] sm:$0x1] }
 0x135   : > { %5911 = vmatmul.mubr.msk.bf16.vlgmr.msra.gmra.mrb[0].mxu0 %vm687_vm3, %v5448_v46  ;;  %v2264_v46 = vrot.slane %v2262_v35, 5  ;;  %v5158_v35 = vld [vmem:[%s6429_s27 + $0x9c] sm:$0xf]  ;;  %v8017_v6 = vrot.slane %v2358_v12, 5 }
 0x136   : > { %5757 = vmatmul.mubr.msk.bf16.gmra.mrb[16].mxu1 %vm687_vm3, %v6276_v30  ;;  %5914 = vmatprep.mubr.msk.bf16.mxu0 %vm687_vm3, %v5449_v9  ;;  %v2272_v30 = vshll.u32 %v6327_v17, 16  ;;  %v2301_v9 = vshrl.u32 %v5152_v47, 16  ;;  %v2352_v47 = vshll.u32 %v5158_v35, 16  ;;  %v6331_v17 = vld [vmem:[%s6429_s27 + $0x8c] sm:$0x1] }
 0x137   : > { %5760 = vmatprep.mubr.msk.bf16.mxu1 %vm687_vm3, %v6277_v11  ;;  %v2269_v13 = vor.u32 %v2268_v28, %v2264_v46  ;;  %v6328_v11 = vld [vmem:[%s6429_s27 + $0x88] sm:$0xf]  ;;  %v2265_v7 = vsel %vm6455_vm4, %v2260_v52, %v2264_v46 }
 0x138   : > { %v2310_v19 = vshll.u32 %v6328_v11, 16  ;;  %v2314_v41 = vshrl.u32 %v6328_v11, 16  ;;  %v2274_v0 = vrot.slane %v2272_v30, 5  ;;  %v2303_v36 = vrot.slane %v2301_v9, 4 }
 0x139   : > { %v2270_v39 = vrot.slane %v2269_v13, 4  ;;  %v2320_v30 = vshll.u32 %v6331_v17, 16  ;;  %v2327_v9 = vrot.slane %v2325_v23, 4  ;;  %v2354_v11 = vrot.slane %v2352_v47, 5 }
 0x13a   : > { %v7994_v24 = vrot.slane %v2310_v19, 5  ;;  %v2316_v49 = vrot.slane %v2314_v41, 4  ;;  %v6282_v19 = vld [vmem:[%s6429_s27 + $0xc0] sm:$0xff]  }
 0x13b   : > { %v2275_v46 = vsel %vm6455_vm4, %v2270_v39, %v2274_v0  ;;  %v5161_v39 = vld [vmem:[%s6429_s27 + $0xa8] sm:$0xf] }
 0x13c   : > { %v2317_v13 = vor.u32 %v2316_v49, %v7994_v24  ;;  %v5179_v41 = vcombine.low %v2265_v7, %v2275_v46  ;;  %v2368_v7 = vshll.u32 %v6333_v25, 16  ;;  %v2376_v45 = vshll.u32 %v5161_v39, 16 }
 0x13d   : > { %5915 = vmatmul.mubr.msk.bf16.gmra.mrb[4].mxu0 %vm687_vm3, %v5450_v61  ;;  %v6329_v61 = vld [vmem:[%s6429_s27 + $0x94] sm:$0xf] }
 0x13e   : > { %5761 = vmatmul.mubr.msk.bf16.gmra.mrb[20].mxu1 %vm687_vm3, %v6278_v51  ;;  %5918 = vmatprep.mubr.msk.bf16.mxu0 %vm687_vm3, %v5451_v10  ;;  %v2306_v10 = vrot.slane %v2304_v18, 5  ;;  %v2334_v51 = vshll.u32 %v6329_v61, 16  ;;  %v2338_v28 = vshrl.u32 %v6329_v61, 16  ;;  %v2318_v0 = vrot.slane %v2317_v13, 4 }
 0x13f   : > { %5764 = vmatprep.mubr.msk.bf16.mxu1 %vm687_vm3, %v6279_v21  ;;  %v2349_v21 = vshrl.u32 %v5158_v35, 16  ;;  %v6332_v35 = vld [vmem:[%s6429_s27 + $0x98] sm:$0x1]  ;;  %v2373_v61 = vshrl.u32 %v5161_v39, 16  ;;  %v5167_v39 = vld [vmem:[%s6429_s27 + $0xc0] sm:$0xf] }
 0x140   : > { %v2307_v15 = vor.u32 %v2306_v10, %v2303_v36  ;;  %v8014_v26 = vrot.slane %v2334_v51, 5  ;;  %v2322_v36 = vrot.slane %v2320_v30, 5  ;;  %v2331_v10 = vor.u32 %v2330_v14, %v2327_v9  ;;  %v5164_v51 = vld [vmem:[%s6429_s27 + $0xb4] sm:$0xf] }
 0x141   : > { %v2351_v18 = vrot.slane %v2349_v21, 4  ;;  %v2386_v21 = vshrl.u32 %v6334_v27, 16  ;;  %v2397_v20 = vshrl.u32 %v5164_v51, 16  ;;  %v2400_v42 = vshll.u32 %v5164_v51, 16 }
 0x142   : > { %v2308_v52 = vrot.slane %v2307_v15, 4  ;;  %v2323_v46 = vsel %vm6455_vm4, %v2318_v0, %v2322_v36  ;;  %v2332_v15 = vrot.slane %v2331_v10, 4  ;;  %v2370_v30 = vrot.slane %v2368_v7, 5 }
 0x143   : > { %v2355_v23 = vor.u32 %v2354_v11, %v2351_v18  ;;  %v2375_v9 = vrot.slane %v2373_v61, 4  ;;  %v2388_v11 = vrot.slane %v2386_v21, 4  ;;  %v6338_v61 = vld [vmem:[%s6429_s27 + $0xbc] sm:$0x1] }
 0x144   : > { %v2313_v47 = vsel %vm6455_vm4, %v2308_v52, %v7994_v24  ;;  %v2337_v0 = vsel %vm6455_vm4, %v2332_v15, %v8014_v26  ;;  %v2416_v22 = vshll.u32 %v6338_v61, 16 }
 0x145   : > { %5919 = vmatmul.mubr.msk.bf16.gmra.mrb[8].mxu0 %vm687_vm3, %v5452_v40  ;;  %v2362_v40 = vshrl.u32 %v6330_v60, 16  ;;  %v2356_v17 = vrot.slane %v2355_v23, 4  ;;  %v5181_v24 = vcombine.low %v2313_v47, %v2323_v46 }
 0x146   : > { %5765 = vmatmul.mubr.msk.bf16.gmra.mrb[24].mxu1 %vm687_vm3, %v6280_v2  ;;  %5922 = vmatprep.mubr.msk.bf16.mxu0 %vm687_vm3, %v5453_v54  ;;  %v2340_v54 = vrot.slane %v2338_v28, 4 }
 0x147   : > { %5768 = vmatprep.mubr.msk.bf16.mxu1 %vm687_vm3, %v6281_v34  ;;  %v2364_v2 = vrot.slane %v2362_v40, 4  ;;  %v2344_v34 = vshll.u32 %v6332_v35, 16  ;;  %v2361_v10 = vsel %vm6455_vm4, %v2356_v17, %v8017_v6  ;;  %v2442_v17 = vrot.slane %v2440_v57, 5 }
 0x148   : > { %v2341_v49 = vor.u32 %v2340_v54, %v8014_v26  ;;  %v2378_v54 = vrot.slane %v2376_v45, 5  ;;  %v6336_v26 = vld [vmem:[%s6429_s27 + $0xb0] sm:$0x1] }
 0x149   : > { %v2365_v28 = vor.u32 %v2364_v2, %v8017_v6  ;;  %v2346_v60 = vrot.slane %v2344_v34, 5  ;;  %v2392_v35 = vshll.u32 %v6336_v26, 16  ;;  %v2421_v34 = vshrl.u32 %v5167_v39, 16 }
 0x14a   : > { %v2342_v13 = vrot.slane %v2341_v49, 4  ;;  %v2379_v38 = vor.u32 %v2378_v54, %v2375_v9  ;;  %v2424_v6 = vshll.u32 %v5167_v39, 16  ;;  %v6337_v49 = vld [vmem:[%s6429_s27 + $0xc4] sm:$0xf] }
 0x14b   : > { %v2366_v14 = vrot.slane %v2365_v28, 4  ;;  %v2430_v23 = vshll.u32 %v6337_v49, 16  ;;  %v2434_v25 = vshrl.u32 %v6337_v49, 16  ;;  %v2394_v45 = vrot.slane %v2392_v35, 5 }
 0x14c   : > { %v2347_v36 = vsel %vm6455_vm4, %v2342_v13, %v2346_v60  ;;  %v2380_v51 = vrot.slane %v2379_v38, 4  ;;  %v2418_v60 = vrot.slane %v2416_v22, 5 }
 0x14d   : > { %5923 = vmatmul.mubr.msk.bf16.gmra.mrb[12].mxu0 %vm687_vm3, %v5454_v53  ;;  %v2382_v53 = vshll.u32 %v6334_v27, 16  ;;  %v2371_v59 = vsel %vm6455_vm4, %v2366_v14, %v2370_v30  ;;  %v5182_v44 = vcombine.low %v2337_v0, %v2347_v36  ;;  %v2423_v27 = vrot.slane %v2421_v34, 4 }
 0x14e   : > { %5769 = vmatmul.mubr.msk.bf16.gmra.mrb[28].mxu1 %vm687_vm3, %v6282_v19  ;;  %5926 = vmatprep.mubr.msk.bf16.mxu0 %vm687_vm3, %v5455_v33  ;;  %v6335_v33 = vld [vmem:[%s6429_s27 + $0xb8] sm:$0xf]  ;;  %v2399_v19 = vrot.slane %v2397_v20, 4  ;;  %v2432_v21 = vrot.slane %v2430_v23, 5  ;;  %v2436_v47 = vrot.slane %v2434_v25, 4 }
 0x14f   : > { %5790 = vmatprep.mubr.msk.bf16.mxu1 %vm687_vm3, %v5179_v41  ;;  %v2406_v12 = vshll.u32 %v6335_v33, 16  ;;  %v2410_v40 = vshrl.u32 %v6335_v33, 16  ;;  %v2384_v18 = vrot.slane %v2382_v53, 5  ;;  %v2402_v41 = vrot.slane %v2400_v42, 5 }
 0x150   : > { %v2426_v53 = vrot.slane %v2424_v6, 5 }
 0x151   : > { %v2408_v52 = vrot.slane %v2406_v12, 5  ;;  %v2412_v2 = vrot.slane %v2410_v40, 4  ;;  %v2385_v20 = vsel %vm6455_vm4, %v2380_v51, %v2384_v18  ;;  %v2437_v12 = vor.u32 %v2436_v47, %v2432_v21 }
 0x152   : > { %v2427_v33 = vor.u32 %v2426_v53, %v2423_v27 }
 0x153   : > { %v2413_v7 = vor.u32 %v2412_v2, %v2408_v52  ;;  %v2438_v13 = vrot.slane %v2437_v12, 4  ;;  %v8109_v2 = vld [vmem:[%s8223_s2] ss:$0 sm:$0xff] }
 0x154   : > { %v2428_v40 = vrot.slane %v2427_v33, 4 }
 0x155   : > { %5927 = vmatmul.mubr.msk.bf16.gmra.mrb[16].mxu0 %vm687_vm3, %v5456_v37  ;;  %v2389_v37 = vor.u32 %v2388_v11, %v2384_v18  ;;  %v2414_v15 = vrot.slane %v2413_v7, 4  ;;  %v2443_v9 = vsel %vm6455_vm4, %v2438_v13, %v2442_v17 }
 0x156   : > { %5791 = vmatmul.mubr.msk.bf16.vlgmr.msra.gmra.mrb[16].mxu1 %vm687_vm3, %v7823_v1  ;;  %5930 = vmatprep.mubr.msk.bf16.mxu0 %vm687_vm3, %v5457_v3  ;;  %v2403_v1 = vor.u32 %v2402_v41, %v2399_v19  ;;  %v5183_v3 = vcombine.low %v2361_v10, %v2371_v59  ;;  %v2433_v30 = vsel %vm6455_vm4, %v2428_v40, %v2432_v21 }
 0x157   : > { %5794 = vmatprep.mubr.msk.bf16.mxu1 %vm687_vm3, %v5181_v24  ;;  %v2390_v28 = vrot.slane %v2389_v37, 4  ;;  %v2419_v48 = vsel %vm6455_vm4, %v2414_v15, %v2418_v60  ;;  %v5186_v14 = vcombine.low %v2433_v30, %v2443_v9 }
 0x158   : > { %v2404_v46 = vrot.slane %v2403_v1, 4 }
 0x159   : > { %v2395_v42 = vsel %vm6455_vm4, %v2390_v28, %v2394_v45 }
 0x15a   : > { %v5184_v62 = vcombine.low %v2385_v20, %v2395_v42 }
 0x15d   : > { %5931 = vmatmul.mubr.msk.bf16.gmra.mrb[20].mxu0 %vm687_vm3, %v5458_v8  ;;  %v2409_v8 = vsel %vm6455_vm4, %v2404_v46, %v2408_v52 }
 0x15e   : > { %5795 = vmatmul.mubr.msk.bf16.gmra.mrb[20].mxu1 %vm687_vm3, %v5182_v44  ;;  %5934 = vmatprep.mubr.msk.bf16.mxu0 %vm687_vm3, %v5459_v56  ;;  %v5185_v56 = vcombine.low %v2409_v8, %v2419_v48 }
 0x15f   : > { %5798 = vmatprep.mubr.msk.bf16.mxu1 %vm687_vm3, %v5183_v3 }
 0x165   : > { %5935 = vmatmul.mubr.msk.bf16.gmra.mrb[24].mxu0 %vm687_vm3, %v5460_v43 }
 0x166   : > { %5799 = vmatmul.mubr.msk.bf16.gmra.mrb[24].mxu1 %vm687_vm3, %v5184_v62  ;;  %5938 = vmatprep.mubr.msk.bf16.mxu0 %vm687_vm3, %v5461_v50 }
 0x167   : > { %5802 = vmatprep.mubr.msk.bf16.mxu1 %vm687_vm3, %v5185_v56 }
 0x16d   : > { %5939 = vmatmul.mubr.msk.bf16.gmra.mrb[28].mxu0 %vm687_vm3, %v5462_v29 }
 0x16e   : > { %5803 = vmatmul.mubr.msk.bf16.gmra.mrb[28].mxu1 %vm687_vm3, %v5186_v14 }
 0x1e9   : > { %v5742_v63 = vpop.f32.mrb[0].mxu1 }
 0x1ea   : > { %v1853_v4 = vpop.f32.mrb[1].mxu1 }
 0x1eb   : > { %v5743_v43 = vpop.f32.mrb[2].mxu1 }
 0x1ec   : > { %v1856_v16 = vpop.f32.mrb[3].mxu1 }
 0x1f1   : > { %v5746_v58 = vpop.f32.mrb[4].mxu1 }
 0x1f2   : > { %v1869_v50 = vpop.f32.mrb[5].mxu1 }
 0x1f3   : > { %v5747_v54 = vpop.f32.mrb[6].mxu1 }
 0x1f4   : > { %v1872_v18 = vpop.f32.mrb[7].mxu1 }
 0x1f9   : > { %v5750_v11 = vpop.f32.mrb[8].mxu1 }
 0x1fa   : > { %v1885_v32 = vpop.f32.mrb[9].mxu1 }
 0x1fb   : > { %v5751_v24 = vpop.f32.mrb[10].mxu1 }
 0x1fc   : > { %v1888_v19 = vpop.f32.mrb[11].mxu1 }
 0x201   : > { %v5754_v41 = vpop.f32.mrb[12].mxu1 }
 0x202   : > { %v1901_v52 = vpop.f32.mrb[13].mxu1 }
 0x203   : > { %v5755_v5 = vpop.f32.mrb[14].mxu1 }
 0x204   : > { %v1904_v55 = vpop.f32.mrb[15].mxu1 }
 0x208   : > { %v5912_v29 = vpop.f32.mrb[0].mxu0 }
 0x209   : > { %v5944_v39 = vadd.f32 %v5912_v29, %v5742_v63  ;;  %v4607_v0 = vpop.f32.mrb[1].mxu0 }
 0x20a   : > { %v5945_v36 = vadd.f32 %v4607_v0, %v1853_v4  ;;  %v5913_v10 = vpop.f32.mrb[2].mxu0 }
 0x20b   : > { %v4775_v59 = vadd.f32 %v5944_v39, %v8109_v2  ;;  %v5946_v38 = vadd.f32 %v5913_v10, %v5743_v43  ;;  %v4610_v37 = vpop.f32.mrb[3].mxu0 }
 0x20c   : > { %v4773_v26 = vadd.f32 %v5945_v36, %v8109_v2  ;;  %v5947_v35 = vadd.f32 %v4610_v37, %v1856_v16 }
 0x20d   : > { %4808 = vst.msk [vmem:[%s8114_s24 + $0x10] sm:$0xff] %vm4805_vm8, %v4775_v59  ;;  %v4776_v34 = vadd.f32 %v5946_v38, %v8109_v2 }
 0x20e   : > { %4806 = vst.msk [vmem:[%s8114_s24] sm:$0xff] %vm4805_vm8, %v4773_v26  ;;  %v4774_v6 = vadd.f32 %v5947_v35, %v8109_v2 }
 0x20f   : > { %4809 = vst.msk [vmem:[%s8114_s24 + $0x18] sm:$0xff] %vm4805_vm8, %v4776_v34 }
 0x210   : > { %4807 = vst.msk [vmem:[%s8114_s24 + $0x8] sm:$0xff] %vm4805_vm8, %v4774_v6  ;;  %v5916_v49 = vpop.f32.mrb[4].mxu0 }
 0x211   : > { %v5948_v23 = vadd.f32 %v5916_v49, %v5746_v58  ;;  %v4623_v25 = vpop.f32.mrb[5].mxu0 }
 0x212   : > { %v5949_v1 = vadd.f32 %v4623_v25, %v1869_v50  ;;  %v5917_v7 = vpop.f32.mrb[6].mxu0 }
 0x213   : > { %v4779_v61 = vadd.f32 %v5948_v23, %v8109_v2  ;;  %v5950_v22 = vadd.f32 %v5917_v7, %v5747_v54  ;;  %v4626_v44 = vpop.f32.mrb[7].mxu0 }
 0x214   : > { %v4777_v3 = vadd.f32 %v5949_v1, %v8109_v2  ;;  %v5951_v51 = vadd.f32 %v4626_v44, %v1872_v18 }
 0x215   : > { %4812 = vst.msk [vmem:[%s8114_s24 + $0x30] sm:$0xff] %vm4805_vm8, %v4779_v61  ;;  %v4780_v28 = vadd.f32 %v5950_v22, %v8109_v2 }
 0x216   : > { %4810 = vst.msk [vmem:[%s8114_s24 + $0x20] sm:$0xff] %vm4805_vm8, %v4777_v3  ;;  %v4778_v45 = vadd.f32 %v5951_v51, %v8109_v2 }
 0x217   : > { %4813 = vst.msk [vmem:[%s8114_s24 + $0x38] sm:$0xff] %vm4805_vm8, %v4780_v28 }
 0x218   : > { %4811 = vst.msk [vmem:[%s8114_s24 + $0x28] sm:$0xff] %vm4805_vm8, %v4778_v45  ;;  %v5920_v27 = vpop.f32.mrb[8].mxu0 }
 0x219   : > { %v5952_v53 = vadd.f32 %v5920_v27, %v5750_v11  ;;  %v4639_v21 = vpop.f32.mrb[9].mxu0 }
 0x21a   : > { %v5953_v47 = vadd.f32 %v4639_v21, %v1885_v32  ;;  %v5921_v46 = vpop.f32.mrb[10].mxu0 }
 0x21b   : > { %v4783_v15 = vadd.f32 %v5952_v53, %v8109_v2  ;;  %v5954_v60 = vadd.f32 %v5921_v46, %v5751_v24  ;;  %v4642_v20 = vpop.f32.mrb[11].mxu0 }
 0x21c   : > { %v4781_v42 = vadd.f32 %v5953_v47, %v8109_v2  ;;  %v5955_v33 = vadd.f32 %v4642_v20, %v1888_v19 }
 0x21d   : > { %4816 = vst.msk [vmem:[%s8114_s24 + $0x50] sm:$0xff] %vm4805_vm8, %v4783_v15  ;;  %v4784_v12 = vadd.f32 %v5954_v60, %v8109_v2 }
 0x21e   : > { %4814 = vst.msk [vmem:[%s8114_s24 + $0x40] sm:$0xff] %vm4805_vm8, %v4781_v42  ;;  %v4782_v31 = vadd.f32 %v5955_v33, %v8109_v2 }
 0x21f   : > { %4817 = vst.msk [vmem:[%s8114_s24 + $0x58] sm:$0xff] %vm4805_vm8, %v4784_v12 }
 0x220   : > { %4815 = vst.msk [vmem:[%s8114_s24 + $0x48] sm:$0xff] %vm4805_vm8, %v4782_v31  ;;  %v5924_v57 = vpop.f32.mrb[12].mxu0 }
 0x221   : > { %v5956_v8 = vadd.f32 %v5924_v57, %v5754_v41  ;;  %v4655_v48 = vpop.f32.mrb[13].mxu0 }
 0x222   : > { %v5957_v62 = vadd.f32 %v4655_v48, %v1901_v52  ;;  %v5925_v56 = vpop.f32.mrb[14].mxu0 }
 0x223   : > { %v4787_v40 = vadd.f32 %v5956_v8, %v8109_v2  ;;  %v5958_v13 = vadd.f32 %v5925_v56, %v5755_v5  ;;  %v4658_v17 = vpop.f32.mrb[15].mxu0 }
 0x224   : > { %v4785_v30 = vadd.f32 %v5957_v62, %v8109_v2  ;;  %v5959_v9 = vadd.f32 %v4658_v17, %v1904_v55 }
 0x225   : > { %4820 = vst.msk [vmem:[%s8114_s24 + $0x70] sm:$0xff] %vm4805_vm8, %v4787_v40  ;;  %v4788_v14 = vadd.f32 %v5958_v13, %v8109_v2 }
 0x226   : > { %4818 = vst.msk [vmem:[%s8114_s24 + $0x60] sm:$0xff] %vm4805_vm8, %v4785_v30  ;;  %v4786_v63 = vadd.f32 %v5959_v9, %v8109_v2 }
 0x227   : > { %4821 = vst.msk [vmem:[%s8114_s24 + $0x78] sm:$0xff] %vm4805_vm8, %v4788_v14 }
 0x228   : > { %4819 = vst.msk [vmem:[%s8114_s24 + $0x68] sm:$0xff] %vm4805_vm8, %v4786_v63  ;;  %v5928_v4 = vpop.f32.mrb[16].mxu0 }
 0x229   : > { %v5792_v43 = vpop.f32.mrb[16].mxu1  ;;  %v4671_v16 = vpop.f32.mrb[17].mxu0 }
 0x22a   : > { %v5960_v58 = vadd.f32 %v5928_v4, %v5792_v43  ;;  %v2643_v50 = vpop.f32.mrb[17].mxu1  ;;  %v5929_v54 = vpop.f32.mrb[18].mxu0 }
 0x22b   : > { %v5961_v18 = vadd.f32 %v4671_v16, %v2643_v50  ;;  %v5793_v11 = vpop.f32.mrb[18].mxu1  ;;  %v4674_v32 = vpop.f32.mrb[19].mxu0 }
 0x22c   : > { %v4791_v24 = vadd.f32 %v5960_v58, %v8109_v2  ;;  %v5962_v19 = vadd.f32 %v5929_v54, %v5793_v11  ;;  %v2646_v41 = vpop.f32.mrb[19].mxu1 }
 0x22d   : > { %v4789_v52 = vadd.f32 %v5961_v18, %v8109_v2  ;;  %v5963_v5 = vadd.f32 %v4674_v32, %v2646_v41 }
 0x22e   : > { %4824 = vst.msk [vmem:[%s8114_s24 + $0x90] sm:$0xff] %vm4805_vm8, %v4791_v24  ;;  %v4792_v55 = vadd.f32 %v5962_v19, %v8109_v2 }
 0x22f   : > { %4822 = vst.msk [vmem:[%s8114_s24 + $0x80] sm:$0xff] %vm4805_vm8, %v4789_v52  ;;  %v4790_v29 = vadd.f32 %v5963_v5, %v8109_v2 }
 0x230   : > { %4825 = vst.msk [vmem:[%s8114_s24 + $0x98] sm:$0xff] %vm4805_vm8, %v4792_v55  ;;  %v5932_v39 = vpop.f32.mrb[20].mxu0 }
 0x231   : > { %4823 = vst.msk [vmem:[%s8114_s24 + $0x88] sm:$0xff] %vm4805_vm8, %v4790_v29  ;;  %v5796_v0 = vpop.f32.mrb[20].mxu1  ;;  %v4687_v36 = vpop.f32.mrb[21].mxu0 }
 0x232   : > { %v5964_v10 = vadd.f32 %v5932_v39, %v5796_v0  ;;  %v2659_v59 = vpop.f32.mrb[21].mxu1  ;;  %v5933_v38 = vpop.f32.mrb[22].mxu0 }
 0x233   : > { %v5965_v37 = vadd.f32 %v4687_v36, %v2659_v59  ;;  %v5797_v26 = vpop.f32.mrb[22].mxu1  ;;  %v4690_v35 = vpop.f32.mrb[23].mxu0 }
 0x234   : > { %v4795_v34 = vadd.f32 %v5964_v10, %v8109_v2  ;;  %v5966_v6 = vadd.f32 %v5933_v38, %v5797_v26  ;;  %v2662_v49 = vpop.f32.mrb[23].mxu1 }
 0x235   : > { %v4793_v23 = vadd.f32 %v5965_v37, %v8109_v2  ;;  %v5967_v25 = vadd.f32 %v4690_v35, %v2662_v49 }
 0x236   : > { %4828 = vst.msk [vmem:[%s8114_s24 + $0xb0] sm:$0xff] %vm4805_vm8, %v4795_v34  ;;  %v4796_v1 = vadd.f32 %v5966_v6, %v8109_v2 }
 0x237   : > { %4826 = vst.msk [vmem:[%s8114_s24 + $0xa0] sm:$0xff] %vm4805_vm8, %v4793_v23  ;;  %v4794_v7 = vadd.f32 %v5967_v25, %v8109_v2 }
 0x238   : > { %4829 = vst.msk [vmem:[%s8114_s24 + $0xb8] sm:$0xff] %vm4805_vm8, %v4796_v1  ;;  %v5936_v61 = vpop.f32.mrb[24].mxu0 }
 0x239   : > { %4827 = vst.msk [vmem:[%s8114_s24 + $0xa8] sm:$0xff] %vm4805_vm8, %v4794_v7  ;;  %v5800_v22 = vpop.f32.mrb[24].mxu1  ;;  %v4703_v44 = vpop.f32.mrb[25].mxu0 }
 0x23a   : > { %v5968_v3 = vadd.f32 %v5936_v61, %v5800_v22  ;;  %v2675_v51 = vpop.f32.mrb[25].mxu1  ;;  %v5937_v28 = vpop.f32.mrb[26].mxu0 }
 0x23b   : > { %v5969_v45 = vadd.f32 %v4703_v44, %v2675_v51  ;;  %v5801_v27 = vpop.f32.mrb[26].mxu1  ;;  %v4706_v53 = vpop.f32.mrb[27].mxu0 }
 0x23c   : > { %v4799_v21 = vadd.f32 %v5968_v3, %v8109_v2  ;;  %v5970_v47 = vadd.f32 %v5937_v28, %v5801_v27  ;;  %v2678_v46 = vpop.f32.mrb[27].mxu1 }
 0x23d   : > { %v4797_v15 = vadd.f32 %v5969_v45, %v8109_v2  ;;  %v5971_v60 = vadd.f32 %v4706_v53, %v2678_v46 }
 0x23e   : > { %4832 = vst.msk [vmem:[%s8114_s24 + $0xd0] sm:$0xff] %vm4805_vm8, %v4799_v21  ;;  %v4800_v20 = vadd.f32 %v5970_v47, %v8109_v2 }
 0x23f   : > { %4830 = vst.msk [vmem:[%s8114_s24 + $0xc0] sm:$0xff] %vm4805_vm8, %v4797_v15  ;;  %v4798_v42 = vadd.f32 %v5971_v60, %v8109_v2 }
 0x240   : > { %4833 = vst.msk [vmem:[%s8114_s24 + $0xd8] sm:$0xff] %vm4805_vm8, %v4800_v20  ;;  %v5940_v33 = vpop.f32.mrb[28].mxu0 }
 0x241   : > { %4831 = vst.msk [vmem:[%s8114_s24 + $0xc8] sm:$0xff] %vm4805_vm8, %v4798_v42  ;;  %v5804_v12 = vpop.f32.mrb[28].mxu1  ;;  %v4719_v31 = vpop.f32.mrb[29].mxu0 }
 0x242   : > { %v5972_v57 = vadd.f32 %v5940_v33, %v5804_v12  ;;  %v2691_v8 = vpop.f32.mrb[29].mxu1  ;;  %v5941_v48 = vpop.f32.mrb[30].mxu0 }
 0x243   : > { %v5973_v62 = vadd.f32 %v4719_v31, %v2691_v8  ;;  %v5805_v56 = vpop.f32.mrb[30].mxu1  ;;  %v4722_v40 = vpop.f32.mrb[31].mxu0 }
 0x244   : > { %v4803_v13 = vadd.f32 %v5972_v57, %v8109_v2  ;;  %v5974_v17 = vadd.f32 %v5941_v48, %v5805_v56  ;;  %v2694_v30 = vpop.f32.mrb[31].mxu1 }
 0x245   : > { %v4801_v9 = vadd.f32 %v5973_v62, %v8109_v2  ;;  %v5975_v14 = vadd.f32 %v4722_v40, %v2694_v30 }
 0x246   : > { %4836 = vst.msk [vmem:[%s8114_s24 + $0xf0] sm:$0xff] %vm4805_vm8, %v4803_v13  ;;  %v4804_v63 = vadd.f32 %v5974_v17, %v8109_v2 }
 0x247   : > { %4834 = vst.msk [vmem:[%s8114_s24 + $0xe0] sm:$0xff] %vm4805_vm8, %v4801_v9  ;;  %v4802_v4 = vadd.f32 %v5975_v14, %v8109_v2 }
 0x248   : > { %4837 = vst.msk [vmem:[%s8114_s24 + $0xf8] sm:$0xff] %vm4805_vm8, %v4804_v63 }
 0x249   : > { %4835 = vst.msk [vmem:[%s8114_s24 + $0xe8] sm:$0xff] %vm4805_vm8, %v4802_v4 }
 0x24a PF: > { %s13_s14 = sadd.s32 1, %s6362_s14   ;;  %s8292_s12 = smov %s6358_s13 }
 0x24b   : > { %p10_p5 = scmp.ge.s32.totalorder %s13_s14, 4   ;;  %s8293_s13 = smov %s8295_s15 }
 0x24d   :  { %12 = sbr.rel (!%p10_p5) target bundleno = 2 (0x2), region = 73 }

</bundles_post_ra>
